<compile_context>
chip_gen: v7x
topology: tpu7x:2x2x1
jax: 0.10.0
libtpu: 0.0.40
codegen_flags: <defaults>
</compile_context>

<pallas_src>
import math

import numpy as np

import jax
import jax.numpy as jnp
from jax.experimental import pallas as pl
from jax.experimental.pallas import tpu as pltpu


# ----------------------------------------------------------------------------
# Fused Conv3d(3x3x3, pad 1, stride 1) + bias + ReLU + MaxPool3d((pool_d, 2, 2))
# ----------------------------------------------------------------------------
def conv_relu_pool(x, w, b, *, pool_d):
    """x: (B, D, H, W, Cin) bf16 NDHWC.  w: (3,3,3,Cin,Cout) f32.  b: (Cout,) f32.

    Returns (B, D//pool_d, H//2, W//2, Cout) bf16.
    """
    B, D, H, W, Cin = x.shape
    Cout = w.shape[-1]
    pd = pool_d
    assert D % pd == 0 and H % 2 == 0 and W % 2 == 0
    Do, Ho, Wo = D // pd, H // 2, W // 2
    HW = H * W
    M = pd * HW              # conv-output pixels per grid step => one MXU dot
    K = 27 * Cin             # fully merged tap group: one wide-K contraction

    # im2col in the XLA wrapper: tap-major (kd, kh, kw), channel-minor columns,
    # matching w.reshape(K, Cout).  Removes all narrow in-kernel scratch writes.
    # TODO(synk): at real C3D resolutions move this in-kernel (per-tap dot
    # accumulation) to avoid the 27x HBM expansion of the patches array.
    xp = jnp.pad(x, ((0, 0), (1, 1), (1, 1), (1, 1), (0, 0)))
    cols = [xp[:, kd:kd + D, kh:kh + H, kw:kw + W, :]
            for kd in range(3) for kh in range(3) for kw in range(3)]
    patches = jnp.concatenate(cols, axis=-1).reshape(B, D, HW, K)
    w_r = w.reshape(K, Cout).astype(jnp.bfloat16)
    b2 = b.reshape(1, Cout).astype(jnp.float32)

    def kernel(p_ref, w_ref, b_ref, o_ref):
        # One wide-K MXU dot over the whole (pd, H, W) plane of this grid step.
        mat = p_ref[...].reshape(M, K)                             # bf16
        acc = jnp.dot(mat, w_ref[...], preferred_element_type=jnp.float32)
        v = jnp.maximum(acc + b_ref[...], 0.0)                     # (M, Cout) f32
        # Depth pooling: max over pd conv depth planes (leading-dim slices).
        vd = v[:HW]
        for d in range(1, pd):
            vd = jnp.maximum(vd, v[d * HW:(d + 1) * HW])           # (HW, Cout)
        # H pooling: max of adjacent conv rows, whole plane at once.
        vh4 = vd.reshape(Ho, 2, W, Cout)
        vh = jnp.maximum(vh4[:, 0], vh4[:, 1])                     # (Ho, W, Cout)
        # W pooling: max of adjacent columns, whole plane at once.
        vw = vh.reshape(Ho * Wo, 2, Cout)
        pooled = jnp.maximum(vw[:, 0, :], vw[:, 1, :])             # (Ho*Wo, Cout)
        # Single whole-block store per grid step.
        o_ref[...] = pooled.reshape(1, 1, Ho * Wo, Cout).astype(o_ref.dtype)

    out = pl.pallas_call(
        kernel,
        out_shape=jax.ShapeDtypeStruct((B, Do, Ho * Wo, Cout), jnp.bfloat16),
        grid=(B, Do),
        in_specs=[
            pl.BlockSpec((1, pd, HW, K), lambda bi, di: (bi, di, 0, 0)),
            pl.BlockSpec((K, Cout), lambda bi, di: (0, 0)),
            pl.BlockSpec((1, Cout), lambda bi, di: (0, 0)),
        ],
        out_specs=pl.BlockSpec((1, 1, Ho * Wo, Cout),
                               lambda bi, di: (bi, di, 0, 0)),
        compiler_params=pltpu.CompilerParams(
            dimension_semantics=("parallel", "parallel")),
    )(patches, w_r, b2)
    return out.reshape(B, Do, Ho, Wo, Cout)


# ----------------------------------------------------------------------------
# Fused MLP head: fc6 + ReLU + dropout(eval) + fc7.
# ----------------------------------------------------------------------------
def mlp_head(x, w6, b6, w7, b7):
    B, F = x.shape
    H6 = w6.shape[1]
    NC = w7.shape[1]

    def kernel(x_ref, w6_ref, b6_ref, w7_ref, b7_ref, o_ref):
        h = jnp.dot(x_ref[...], w6_ref[...],
                    preferred_element_type=jnp.float32) + b6_ref[...]
        h = jnp.maximum(h, 0.0)
        # TODO(synk): training-mode dropout (random mask + 1/(1-p) scale) not
        # implemented; nn.Dropout(p=0.5) is an identity in eval/inference mode.
        o_ref[...] = jnp.dot(h.astype(jnp.bfloat16), w7_ref[...],
                             preferred_element_type=jnp.float32) + b7_ref[...]

    # TODO(synk): at real C3D sizes (fc6: 25088x4096) block fc6 over K with a
    # VMEM f32 accumulator instead of whole-weight-in-VMEM specs.
    vmem = pl.BlockSpec(memory_space=pltpu.MemorySpace.VMEM)
    return pl.pallas_call(
        kernel,
        out_shape=jax.ShapeDtypeStruct((B, NC), jnp.float32),
        in_specs=[vmem] * 5,
        out_specs=vmem,
    )(x.astype(jnp.bfloat16), w6.astype(jnp.bfloat16),
      b6.reshape(1, H6).astype(jnp.float32),
      w7.astype(jnp.bfloat16), b7.reshape(1, NC).astype(jnp.float32))


# ----------------------------------------------------------------------------
# Parameter init (deterministic, mirrors the torch module's init recipe).
# ----------------------------------------------------------------------------
def init_params(key, num_classes, flat_features, fc6_out=256):
    keys = jax.random.split(key, 10)

    def conv_params(kw_key, kb_key, cin, cout):
        fan_in = cin * 27
        std = math.sqrt(2.0 / fan_in)                      # kaiming_normal_
        w = std * jax.random.normal(kw_key, (3, 3, 3, cin, cout), jnp.float32)
        bound = 1.0 / math.sqrt(fan_in)                    # torch conv default bias init
        b = jax.random.uniform(kb_key, (cout,), jnp.float32, -bound, bound)
        return w, b

    def linear_params(kw_key, kb_key, fin, fout):
        bound = 1.0 / math.sqrt(fin)                       # torch Linear default init
        w = jax.random.uniform(kw_key, (fin, fout), jnp.float32, -bound, bound)
        b = jax.random.uniform(kb_key, (fout,), jnp.float32, -bound, bound)
        return w, b

    p = {}
    p["w1"], p["b1"] = conv_params(keys[0], keys[1], 3, 32)
    p["w2"], p["b2"] = conv_params(keys[2], keys[3], 32, 64)
    p["w3"], p["b3"] = conv_params(keys[4], keys[5], 64, 128)
    # w6 rows are created in PyTorch NCDHW-flatten order (what x.view(B,-1)
    # would index); they are permuted ONCE (outside jit) to NDHWC order so the
    # forward pass needs no activation transpose before fc6.
    p["w6"], p["b6"] = linear_params(keys[6], keys[7], flat_features, fc6_out)
    p["w7"], p["b7"] = linear_params(keys[8], keys[9], fc6_out, num_classes)
    return p


def fc_rows_ncdhw_to_ndhwc(w_fc, C, D, H, W):
    """Reorder fc weight rows from NCDHW-flatten order to NDHWC-flatten order."""
    perm = (np.arange(C * D * H * W).reshape(C, D, H, W)
            .transpose(1, 2, 3, 0).reshape(-1))
    return w_fc[perm, :]


# ----------------------------------------------------------------------------
# Full forward pass.
# ----------------------------------------------------------------------------
def c3d_forward(x_ncdhw, params):
    # Interface is PyTorch NCDHW; kernels run channels-last NDHWC with bf16
    # MXU inputs and f32 accumulation / epilogues.
    x = jnp.transpose(x_ncdhw, (0, 2, 3, 4, 1)).astype(jnp.bfloat16)

    x = conv_relu_pool(x, params["w1"], params["b1"], pool_d=1)   # conv1 + pool1 (1,2,2)
    x = conv_relu_pool(x, params["w2"], params["b2"], pool_d=2)   # conv2 + pool2 (2,2,2)
    x = conv_relu_pool(x, params["w3"], params["b3"], pool_d=2)   # conv3a + pool3 (2,2,2)

    # NDHWC flatten feeds fc6 directly (w6 rows were pre-permuted to match
    # PyTorch's NCDHW flatten) — no activation relayout between pallas_calls.
    x = x.reshape(x.shape[0], -1)
    return mlp_head(x, params["w6"], params["b6"], params["w7"], params["b7"])


if __name__ == "__main__":
    # Small shapes consistent with the module: B=2, Cin=3, D=4, H=W=32.
    # After pool1 (1,2,2): (4,16,16); pool2 (2,2,2): (2,8,8); pool3: (1,4,4)
    # -> flatten = 128 * 1 * 4 * 4 = 2048 features into fc6.
    B, C, D, H, W = 2, 3, 4, 32, 32
    num_classes = 10
    Do, Ho, Wo = D // 4, H // 8, W // 8
    flat_features = 128 * Do * Ho * Wo

    key = jax.random.PRNGKey(0)
    k_in, k_params = jax.random.split(key)
    x = jax.random.normal(k_in, (B, C, D, H, W), jnp.float32)
    params = init_params(k_params, num_classes, flat_features)
    # One-time (eager) row permutation of fc6: NCDHW-flat -> NDHWC-flat order.
    params["w6"] = fc_rows_ncdhw_to_ndhwc(params["w6"], 128, Do, Ho, Wo)

    logits = jax.jit(c3d_forward)(x, params)
    logits = jax.block_until_ready(logits)

    assert logits.shape == (B, num_classes), logits.shape
    assert bool(jnp.all(jnp.isfinite(logits)))
    print("KERNEL_OK")
</pallas_src>

<mosaic_0001>
module attributes {stable_mosaic.version = 11 : i64} {
  func.func @kernel(%arg0: i32, %arg1: i32, %arg2: memref<1x1x1024x81xbf16, #tpu.memory_space<vmem>>, %arg3: memref<81x32xbf16, #tpu.memory_space<vmem>>, %arg4: memref<1x32xf32, #tpu.memory_space<vmem>>, %arg5: memref<1x1x256x32xbf16, #tpu.memory_space<vmem>>) attributes {dimension_semantics = [#tpu.dimension_semantics<parallel>, #tpu.dimension_semantics<parallel>], iteration_bounds = array<i64: 2, 4>, scalar_prefetch = 0 : i64, scratch_operands = 0 : i64, tpu.core_type = #tpu.core_type<tc>, window_params = [{transform_indices = @transform_0, window_bounds = array<i64: 1, 1, 1024, 81>}, {pipeline_mode = #tpu.pipeline_mode<synchronous>, transform_indices = @transform_1, window_bounds = array<i64: 81, 32>}, {pipeline_mode = #tpu.pipeline_mode<synchronous>, transform_indices = @transform_2, window_bounds = array<i64: 1, 32>}, {transform_indices = @transform_3, window_bounds = array<i64: 1, 1, 256, 32>}]} {
    %c0 = arith.constant 0 : index
    %c0_0 = arith.constant 0 : index
    %c0_1 = arith.constant 0 : index
    %c0_2 = arith.constant 0 : index
    %0 = vector.load %arg2[%c0, %c0_0, %c0_1, %c0_2] : memref<1x1x1024x81xbf16, #tpu.memory_space<vmem>>, vector<1x1x1024x81xbf16>
    %1 = vector.shape_cast %0 : vector<1x1x1024x81xbf16> to vector<1024x81xbf16>
    %c0_3 = arith.constant 0 : index
    %c0_4 = arith.constant 0 : index
    %2 = vector.load %arg3[%c0_3, %c0_4] : memref<81x32xbf16, #tpu.memory_space<vmem>>, vector<81x32xbf16>
    %cst = arith.constant dense<0.000000e+00> : vector<1024x32xf32>
    %3 = tpu.matmul %1, %2, %cst {dimension_numbers = #tpu.dot_dimension_numbers<[1], [0], [0], [1], [0, 0, 1, 1], [], []>} : vector<1024x81xbf16>, vector<81x32xbf16>, vector<1024x32xf32> -> vector<1024x32xf32>
    %c0_5 = arith.constant 0 : index
    %c0_6 = arith.constant 0 : index
    %4 = vector.load %arg4[%c0_5, %c0_6] : memref<1x32xf32, #tpu.memory_space<vmem>>, vector<1x32xf32>
    %5 = vector.broadcast %4 : vector<1x32xf32> to vector<1024x32xf32>
    %6 = arith.addf %3, %5 : vector<1024x32xf32>
    %cst_7 = arith.constant 0.000000e+00 : f32
    %7 = vector.broadcast %cst_7 : f32 to vector<1024x32xf32>
    %8 = arith.maximumf %6, %7 : vector<1024x32xf32>
    %9 = vector.shape_cast %8 : vector<1024x32xf32> to vector<16x2x32x32xf32>
    %10 = vector.extract_strided_slice %9 {offsets = [0, 0, 0, 0], sizes = [16, 1, 32, 32], strides = [1, 1, 1, 1]} : vector<16x2x32x32xf32> to vector<16x1x32x32xf32>
    %11 = vector.shape_cast %10 : vector<16x1x32x32xf32> to vector<16x32x32xf32>
    %12 = vector.extract_strided_slice %9 {offsets = [0, 1, 0, 0], sizes = [16, 1, 32, 32], strides = [1, 1, 1, 1]} : vector<16x2x32x32xf32> to vector<16x1x32x32xf32>
    %13 = vector.shape_cast %12 : vector<16x1x32x32xf32> to vector<16x32x32xf32>
    %14 = arith.maximumf %11, %13 : vector<16x32x32xf32>
    %15 = vector.shape_cast %14 : vector<16x32x32xf32> to vector<256x2x32xf32>
    %16 = vector.extract_strided_slice %15 {offsets = [0, 0, 0], sizes = [256, 1, 32], strides = [1, 1, 1]} : vector<256x2x32xf32> to vector<256x1x32xf32>
    %17 = vector.shape_cast %16 : vector<256x1x32xf32> to vector<256x32xf32>
    %18 = vector.extract_strided_slice %15 {offsets = [0, 1, 0], sizes = [256, 1, 32], strides = [1, 1, 1]} : vector<256x2x32xf32> to vector<256x1x32xf32>
    %19 = vector.shape_cast %18 : vector<256x1x32xf32> to vector<256x32xf32>
    %20 = arith.maximumf %17, %19 : vector<256x32xf32>
    %21 = vector.shape_cast %20 : vector<256x32xf32> to vector<1x1x256x32xf32>
    %22 = arith.truncf %21 : vector<1x1x256x32xf32> to vector<1x1x256x32xbf16>
    %c0_8 = arith.constant 0 : index
    %c0_9 = arith.constant 0 : index
    %c0_10 = arith.constant 0 : index
    %c0_11 = arith.constant 0 : index
    %23 = vector.load %arg5[%c0_8, %c0_9, %c0_10, %c0_11] : memref<1x1x256x32xbf16, #tpu.memory_space<vmem>>, vector<1x1x256x32xbf16>
    tpu.vector_store %arg5[%c0_8, %c0_9, %c0_10, %c0_11], %22 {strides = array<i32>} : memref<1x1x256x32xbf16, #tpu.memory_space<vmem>>, vector<1x1x256x32xbf16>,
    return
  }
  func.func @transform_0(%arg0: i32, %arg1: i32) -> (i32, i32, i32, i32) {
    %c0_i32 = arith.constant 0 : i32
    %c0_i32_0 = arith.constant 0 : i32
    %c0_i32_1 = arith.constant 0 : i32
    return %arg0, %arg1, %c0_i32, %c0_i32_0 : i32, i32, i32, i32
  }
  func.func @transform_1(%arg0: i32, %arg1: i32) -> (i32, i32) {
    %c0_i32 = arith.constant 0 : i32
    %c0_i32_0 = arith.constant 0 : i32
    %c0_i32_1 = arith.constant 0 : i32
    return %c0_i32, %c0_i32_0 : i32, i32
  }
  func.func @transform_2(%arg0: i32, %arg1: i32) -> (i32, i32) {
    %c0_i32 = arith.constant 0 : i32
    %c0_i32_0 = arith.constant 0 : i32
    %c0_i32_1 = arith.constant 0 : i32
    return %c0_i32, %c0_i32_0 : i32, i32
  }
  func.func @transform_3(%arg0: i32, %arg1: i32) -> (i32, i32, i32, i32) {
    %c0_i32 = arith.constant 0 : i32
    %c0_i32_0 = arith.constant 0 : i32
    %c0_i32_1 = arith.constant 0 : i32
    return %arg0, %arg1, %c0_i32, %c0_i32_0 : i32, i32, i32, i32
  }
}

module attributes {stable_mosaic.version = 11 : i64} {
  func.func @kernel(%arg0: i32, %arg1: i32, %arg2: memref<1x2x256x864xbf16, #tpu.memory_space<vmem>>, %arg3: memref<864x64xbf16, #tpu.memory_space<vmem>>, %arg4: memref<1x64xf32, #tpu.memory_space<vmem>>, %arg5: memref<1x1x64x64xbf16, #tpu.memory_space<vmem>>) attributes {dimension_semantics = [#tpu.dimension_semantics<parallel>, #tpu.dimension_semantics<parallel>], iteration_bounds = array<i64: 2, 2>, scalar_prefetch = 0 : i64, scratch_operands = 0 : i64, tpu.core_type = #tpu.core_type<tc>, window_params = [{transform_indices = @transform_0, window_bounds = array<i64: 1, 2, 256, 864>}, {pipeline_mode = #tpu.pipeline_mode<synchronous>, transform_indices = @transform_1, window_bounds = array<i64: 864, 64>}, {pipeline_mode = #tpu.pipeline_mode<synchronous>, transform_indices = @transform_2, window_bounds = array<i64: 1, 64>}, {transform_indices = @transform_3, window_bounds = array<i64: 1, 1, 64, 64>}]} {
    %c0 = arith.constant 0 : index
    %c0_0 = arith.constant 0 : index
    %c0_1 = arith.constant 0 : index
    %c0_2 = arith.constant 0 : index
    %0 = vector.load %arg2[%c0, %c0_0, %c0_1, %c0_2] : memref<1x2x256x864xbf16, #tpu.memory_space<vmem>>, vector<1x2x256x864xbf16>
    %1 = vector.shape_cast %0 : vector<1x2x256x864xbf16> to vector<512x864xbf16>
    %c0_3 = arith.constant 0 : index
    %c0_4 = arith.constant 0 : index
    %2 = vector.load %arg3[%c0_3, %c0_4] : memref<864x64xbf16, #tpu.memory_space<vmem>>, vector<864x64xbf16>
    %cst = arith.constant dense<0.000000e+00> : vector<512x64xf32>
    %3 = tpu.matmul %1, %2, %cst {dimension_numbers = #tpu.dot_dimension_numbers<[1], [0], [0], [1], [0, 0, 1, 1], [], []>} : vector<512x864xbf16>, vector<864x64xbf16>, vector<512x64xf32> -> vector<512x64xf32>
    %c0_5 = arith.constant 0 : index
    %c0_6 = arith.constant 0 : index
    %4 = vector.load %arg4[%c0_5, %c0_6] : memref<1x64xf32, #tpu.memory_space<vmem>>, vector<1x64xf32>
    %5 = vector.broadcast %4 : vector<1x64xf32> to vector<512x64xf32>
    %6 = arith.addf %3, %5 : vector<512x64xf32>
    %cst_7 = arith.constant 0.000000e+00 : f32
    %7 = vector.broadcast %cst_7 : f32 to vector<512x64xf32>
    %8 = arith.maximumf %6, %7 : vector<512x64xf32>
    %9 = vector.extract_strided_slice %8 {offsets = [0, 0], sizes = [256, 64], strides = [1, 1]} : vector<512x64xf32> to vector<256x64xf32>
    %10 = vector.extract_strided_slice %8 {offsets = [256, 0], sizes = [256, 64], strides = [1, 1]} : vector<512x64xf32> to vector<256x64xf32>
    %11 = arith.maximumf %9, %10 : vector<256x64xf32>
    %12 = vector.shape_cast %11 : vector<256x64xf32> to vector<8x2x16x64xf32>
    %13 = vector.extract_strided_slice %12 {offsets = [0, 0, 0, 0], sizes = [8, 1, 16, 64], strides = [1, 1, 1, 1]} : vector<8x2x16x64xf32> to vector<8x1x16x64xf32>
    %14 = vector.shape_cast %13 : vector<8x1x16x64xf32> to vector<8x16x64xf32>
    %15 = vector.extract_strided_slice %12 {offsets = [0, 1, 0, 0], sizes = [8, 1, 16, 64], strides = [1, 1, 1, 1]} : vector<8x2x16x64xf32> to vector<8x1x16x64xf32>
    %16 = vector.shape_cast %15 : vector<8x1x16x64xf32> to vector<8x16x64xf32>
    %17 = arith.maximumf %14, %16 : vector<8x16x64xf32>
    %18 = vector.shape_cast %17 : vector<8x16x64xf32> to vector<64x2x64xf32>
    %19 = vector.extract_strided_slice %18 {offsets = [0, 0, 0], sizes = [64, 1, 64], strides = [1, 1, 1]} : vector<64x2x64xf32> to vector<64x1x64xf32>
    %20 = vector.shape_cast %19 : vector<64x1x64xf32> to vector<64x64xf32>
    %21 = vector.extract_strided_slice %18 {offsets = [0, 1, 0], sizes = [64, 1, 64], strides = [1, 1, 1]} : vector<64x2x64xf32> to vector<64x1x64xf32>
    %22 = vector.shape_cast %21 : vector<64x1x64xf32> to vector<64x64xf32>
    %23 = arith.maximumf %20, %22 : vector<64x64xf32>
    %24 = vector.shape_cast %23 : vector<64x64xf32> to vector<1x1x64x64xf32>
    %25 = arith.truncf %24 : vector<1x1x64x64xf32> to vector<1x1x64x64xbf16>
    %c0_8 = arith.constant 0 : index
    %c0_9 = arith.constant 0 : index
    %c0_10 = arith.constant 0 : index
    %c0_11 = arith.constant 0 : index
    %26 = vector.load %arg5[%c0_8, %c0_9, %c0_10, %c0_11] : memref<1x1x64x64xbf16, #tpu.memory_space<vmem>>, vector<1x1x64x64xbf16>
    tpu.vector_store %arg5[%c0_8, %c0_9, %c0_10, %c0_11], %25 {strides = array<i32>} : memref<1x1x64x64xbf16, #tpu.memory_space<vmem>>, vector<1x1x64x64xbf16>,
    return
  }
  func.func @transform_0(%arg0: i32, %arg1: i32) -> (i32, i32, i32, i32) {
    %c0_i32 = arith.constant 0 : i32
    %c0_i32_0 = arith.constant 0 : i32
    %c0_i32_1 = arith.constant 0 : i32
    return %arg0, %arg1, %c0_i32, %c0_i32_0 : i32, i32, i32, i32
  }
  func.func @transform_1(%arg0: i32, %arg1: i32) -> (i32, i32) {
    %c0_i32 = arith.constant 0 : i32
    %c0_i32_0 = arith.constant 0 : i32
    %c0_i32_1 = arith.constant 0 : i32
    return %c0_i32, %c0_i32_0 : i32, i32
  }
  func.func @transform_2(%arg0: i32, %arg1: i32) -> (i32, i32) {
    %c0_i32 = arith.constant 0 : i32
    %c0_i32_0 = arith.constant 0 : i32
    %c0_i32_1 = arith.constant 0 : i32
    return %c0_i32, %c0_i32_0 : i32, i32
  }
  func.func @transform_3(%arg0: i32, %arg1: i32) -> (i32, i32, i32, i32) {
    %c0_i32 = arith.constant 0 : i32
    %c0_i32_0 = arith.constant 0 : i32
    %c0_i32_1 = arith.constant 0 : i32
    return %arg0, %arg1, %c0_i32, %c0_i32_0 : i32, i32, i32, i32
  }
}

module attributes {stable_mosaic.version = 11 : i64} {
  func.func @kernel(%arg0: i32, %arg1: i32, %arg2: memref<1x2x64x1728xbf16, #tpu.memory_space<vmem>>, %arg3: memref<1728x128xbf16, #tpu.memory_space<vmem>>, %arg4: memref<1x128xf32, #tpu.memory_space<vmem>>, %arg5: memref<1x1x16x128xbf16, #tpu.memory_space<vmem>>) attributes {dimension_semantics = [#tpu.dimension_semantics<parallel>, #tpu.dimension_semantics<parallel>], iteration_bounds = array<i64: 2, 1>, scalar_prefetch = 0 : i64, scratch_operands = 0 : i64, tpu.core_type = #tpu.core_type<tc>, window_params = [{transform_indices = @transform_0, window_bounds = array<i64: 1, 2, 64, 1728>}, {pipeline_mode = #tpu.pipeline_mode<synchronous>, transform_indices = @transform_1, window_bounds = array<i64: 1728, 128>}, {pipeline_mode = #tpu.pipeline_mode<synchronous>, transform_indices = @transform_2, window_bounds = array<i64: 1, 128>}, {transform_indices = @transform_3, window_bounds = array<i64: 1, 1, 16, 128>}]} {
    %c0 = arith.constant 0 : index
    %c0_0 = arith.constant 0 : index
    %c0_1 = arith.constant 0 : index
    %c0_2 = arith.constant 0 : index
    %0 = vector.load %arg2[%c0, %c0_0, %c0_1, %c0_2] : memref<1x2x64x1728xbf16, #tpu.memory_space<vmem>>, vector<1x2x64x1728xbf16>
    %1 = vector.shape_cast %0 : vector<1x2x64x1728xbf16> to vector<128x1728xbf16>
    %c0_3 = arith.constant 0 : index
    %c0_4 = arith.constant 0 : index
    %2 = vector.load %arg3[%c0_3, %c0_4] : memref<1728x128xbf16, #tpu.memory_space<vmem>>, vector<1728x128xbf16>
    %cst = arith.constant dense<0.000000e+00> : vector<128x128xf32>
    %3 = tpu.matmul %1, %2, %cst {dimension_numbers = #tpu.dot_dimension_numbers<[1], [0], [0], [1], [0, 0, 1, 1], [], []>} : vector<128x1728xbf16>, vector<1728x128xbf16>, vector<128x128xf32> -> vector<128x128xf32>
    %c0_5 = arith.constant 0 : index
    %c0_6 = arith.constant 0 : index
    %4 = vector.load %arg4[%c0_5, %c0_6] : memref<1x128xf32, #tpu.memory_space<vmem>>, vector<1x128xf32>
    %5 = vector.broadcast %4 : vector<1x128xf32> to vector<128x128xf32>
    %6 = arith.addf %3, %5 : vector<128x128xf32>
    %cst_7 = arith.constant 0.000000e+00 : f32
    %7 = vector.broadcast %cst_7 : f32 to vector<128x128xf32>
    %8 = arith.maximumf %6, %7 : vector<128x128xf32>
    %9 = vector.extract_strided_slice %8 {offsets = [0, 0], sizes = [64, 128], strides = [1, 1]} : vector<128x128xf32> to vector<64x128xf32>
    %10 = vector.extract_strided_slice %8 {offsets = [64, 0], sizes = [64, 128], strides = [1, 1]} : vector<128x128xf32> to vector<64x128xf32>
    %11 = arith.maximumf %9, %10 : vector<64x128xf32>
    %12 = vector.shape_cast %11 : vector<64x128xf32> to vector<4x2x8x128xf32>
    %13 = vector.extract_strided_slice %12 {offsets = [0, 0, 0, 0], sizes = [4, 1, 8, 128], strides = [1, 1, 1, 1]} : vector<4x2x8x128xf32> to vector<4x1x8x128xf32>
    %14 = vector.shape_cast %13 : vector<4x1x8x128xf32> to vector<4x8x128xf32>
    %15 = vector.extract_strided_slice %12 {offsets = [0, 1, 0, 0], sizes = [4, 1, 8, 128], strides = [1, 1, 1, 1]} : vector<4x2x8x128xf32> to vector<4x1x8x128xf32>
    %16 = vector.shape_cast %15 : vector<4x1x8x128xf32> to vector<4x8x128xf32>
    %17 = arith.maximumf %14, %16 : vector<4x8x128xf32>
    %18 = vector.shape_cast %17 : vector<4x8x128xf32> to vector<16x2x128xf32>
    %19 = vector.extract_strided_slice %18 {offsets = [0, 0, 0], sizes = [16, 1, 128], strides = [1, 1, 1]} : vector<16x2x128xf32> to vector<16x1x128xf32>
    %20 = vector.shape_cast %19 : vector<16x1x128xf32> to vector<16x128xf32>
    %21 = vector.extract_strided_slice %18 {offsets = [0, 1, 0], sizes = [16, 1, 128], strides = [1, 1, 1]} : vector<16x2x128xf32> to vector<16x1x128xf32>
    %22 = vector.shape_cast %21 : vector<16x1x128xf32> to vector<16x128xf32>
    %23 = arith.maximumf %20, %22 : vector<16x128xf32>
    %24 = vector.shape_cast %23 : vector<16x128xf32> to vector<1x1x16x128xf32>
    %25 = arith.truncf %24 : vector<1x1x16x128xf32> to vector<1x1x16x128xbf16>
    %c0_8 = arith.constant 0 : index
    %c0_9 = arith.constant 0 : index
    %c0_10 = arith.constant 0 : index
    %c0_11 = arith.constant 0 : index
    %26 = vector.load %arg5[%c0_8, %c0_9, %c0_10, %c0_11] : memref<1x1x16x128xbf16, #tpu.memory_space<vmem>>, vector<1x1x16x128xbf16>
    tpu.vector_store %arg5[%c0_8, %c0_9, %c0_10, %c0_11], %25 {strides = array<i32>} : memref<1x1x16x128xbf16, #tpu.memory_space<vmem>>, vector<1x1x16x128xbf16>,
    return
  }
  func.func @transform_0(%arg0: i32, %arg1: i32) -> (i32, i32, i32, i32) {
    %c0_i32 = arith.constant 0 : i32
    %c0_i32_0 = arith.constant 0 : i32
    %c0_i32_1 = arith.constant 0 : i32
    return %arg0, %arg1, %c0_i32, %c0_i32_0 : i32, i32, i32, i32
  }
  func.func @transform_1(%arg0: i32, %arg1: i32) -> (i32, i32) {
    %c0_i32 = arith.constant 0 : i32
    %c0_i32_0 = arith.constant 0 : i32
    %c0_i32_1 = arith.constant 0 : i32
    return %c0_i32, %c0_i32_0 : i32, i32
  }
  func.func @transform_2(%arg0: i32, %arg1: i32) -> (i32, i32) {
    %c0_i32 = arith.constant 0 : i32
    %c0_i32_0 = arith.constant 0 : i32
    %c0_i32_1 = arith.constant 0 : i32
    return %c0_i32, %c0_i32_0 : i32, i32
  }
  func.func @transform_3(%arg0: i32, %arg1: i32) -> (i32, i32, i32, i32) {
    %c0_i32 = arith.constant 0 : i32
    %c0_i32_0 = arith.constant 0 : i32
    %c0_i32_1 = arith.constant 0 : i32
    return %arg0, %arg1, %c0_i32, %c0_i32_0 : i32, i32, i32, i32
  }
}

module attributes {stable_mosaic.version = 11 : i64} {
  func.func @kernel(%arg0: memref<2x2048xbf16, #tpu.memory_space<vmem>>, %arg1: memref<2048x256xbf16, #tpu.memory_space<vmem>>, %arg2: memref<1x256xf32, #tpu.memory_space<vmem>>, %arg3: memref<256x10xbf16, #tpu.memory_space<vmem>>, %arg4: memref<1x10xf32, #tpu.memory_space<vmem>>, %arg5: memref<2x10xf32, #tpu.memory_space<vmem>>) attributes {dimension_semantics = [], scalar_prefetch = 0 : i64, scratch_operands = 0 : i64, tpu.core_type = #tpu.core_type<tc>} {
    %c0 = arith.constant 0 : index
    %c0_0 = arith.constant 0 : index
    %0 = vector.load %arg0[%c0, %c0_0] : memref<2x2048xbf16, #tpu.memory_space<vmem>>, vector<2x2048xbf16>
    %c0_1 = arith.constant 0 : index
    %c0_2 = arith.constant 0 : index
    %1 = vector.load %arg1[%c0_1, %c0_2] : memref<2048x256xbf16, #tpu.memory_space<vmem>>, vector<2048x256xbf16>
    %cst = arith.constant dense<0.000000e+00> : vector<2x256xf32>
    %2 = tpu.matmul %0, %1, %cst {dimension_numbers = #tpu.dot_dimension_numbers<[1], [0], [0], [1], [0, 0, 1, 1], [], []>} : vector<2x2048xbf16>, vector<2048x256xbf16>, vector<2x256xf32> -> vector<2x256xf32>
    %c0_3 = arith.constant 0 : index
    %c0_4 = arith.constant 0 : index
    %3 = vector.load %arg2[%c0_3, %c0_4] : memref<1x256xf32, #tpu.memory_space<vmem>>, vector<1x256xf32>
    %4 = vector.broadcast %3 : vector<1x256xf32> to vector<2x256xf32>
    %5 = arith.addf %2, %4 : vector<2x256xf32>
    %cst_5 = arith.constant 0.000000e+00 : f32
    %6 = vector.broadcast %cst_5 : f32 to vector<2x256xf32>
    %7 = arith.maximumf %5, %6 : vector<2x256xf32>
    %8 = arith.truncf %7 : vector<2x256xf32> to vector<2x256xbf16>
    %c0_6 = arith.constant 0 : index
    %c0_7 = arith.constant 0 : index
    %9 = vector.load %arg3[%c0_6, %c0_7] : memref<256x10xbf16, #tpu.memory_space<vmem>>, vector<256x10xbf16>
    %cst_8 = arith.constant dense<0.000000e+00> : vector<2x10xf32>
    %10 = tpu.matmul %8, %9, %cst_8 {dimension_numbers = #tpu.dot_dimension_numbers<[1], [0], [0], [1], [0, 0, 1, 1], [], []>} : vector<2x256xbf16>, vector<256x10xbf16>, vector<2x10xf32> -> vector<2x10xf32>
    %c0_9 = arith.constant 0 : index
    %c0_10 = arith.constant 0 : index
    %11 = vector.load %arg4[%c0_9, %c0_10] : memref<1x10xf32, #tpu.memory_space<vmem>>, vector<1x10xf32>
    %12 = vector.broadcast %11 : vector<1x10xf32> to vector<2x10xf32>
    %13 = arith.addf %10, %12 : vector<2x10xf32>
    %c0_11 = arith.constant 0 : index
    %c0_12 = arith.constant 0 : index
    %14 = vector.load %arg5[%c0_11, %c0_12] : memref<2x10xf32, #tpu.memory_space<vmem>>, vector<2x10xf32>
    tpu.vector_store %arg5[%c0_11, %c0_12], %13 {strides = array<i32>} : memref<2x10xf32, #tpu.memory_space<vmem>>, vector<2x10xf32>,
    return
  }
}

</mosaic_0001>

<bundles_post_ra>
// kernel: c3d_forward.4
= control target key start
LH: loop header
LB: loop body
LE: loop exit
PB: predicated region body
PF: predicated region fallthrough
CT: control target
= control target key end

     0   :  { %s9236_s0 = inlined_call_operand.hbm [shape: bf16[2,4,1024,81], index: 0, kind: input, shape index: {}]   ;;  %s9237_s1 = inlined_call_operand.vmem [shape: bf16[81,32], index: 1, kind: input, shape index: {}]   ;;  %s9238_s2 = inlined_call_operand.hbm [shape: f32[1,32], index: 2, kind: input, shape index: {}]   ;;  %s9239_s3 = inlined_call_operand.vmem [shape: bf16[2,4,256,32], index: 3, kind: output, shape index: {}]  }
   0x1   :  { %9245 = sst [smem:[#allocation19_spill]] %s9238_s2 }
   0x2   :  { %8 = vsyncpa [#allocation3], 0 }
   0x3   :  { %10 = vsyncpa [#allocation3 + $0x1], 0 }
   0x4   :  { %11 = vsyncpa [#allocation5], 0  ;;  %s7499_s12 = smov 0   ;;  %s7501_s13 = smov 0  }
   0x5   :  { %s7503_s14 = smov 0   ;;  %s7505_s15 = smov 0  }
   0x6   :  { %s7507_s16 = smov 0   ;;  %s7509_s17 = smov 0  }
   0x7   :  { %s7511_s18 = smov 0   ;;  %s7513_s19 = smov 0  }
   0x8 LB: > { %s6041_s20 = sadd.s32 4294967295, %s7471_s19   ;;  %p45_p0 = scmp.ne.s32.totalorder %s7451_s14, %s7447_s13  ;;  %s7471_s19 = sphi %s7513_s19, %s17_s19   ;;  %s7467_s18 = sphi %s7511_s18, %s9359_s18   ;;  %s7463_s17 = sphi %s7509_s17, %s9358_s17   ;;  %s7459_s16 = sphi %s7507_s16, %s9357_s16   ;;  %s7455_s15 = sphi %s7505_s15, %s9356_s15   ;;  %s7451_s14 = sphi %s7503_s14, %s9355_s14   ;;  %s7447_s13 = sphi %s7501_s13, %s9354_s13   ;;  %s7443_s12 = sphi %s7499_s12, %s9353_s12  }
   0x9   : > { %p46_p1 = scmp.eq.s32.totalorder %s7471_s19, 0  ;;  %p51_p2 = scmp.ne.s32.totalorder %s7447_s13, %s7443_s12 }
   0xa   : > { %p7543_p3 = scmp.eq.s32.totalorder %s6041_s20, 0  ;;  %p6043_p5 = scmp.ge.s32.totalorder %s7471_s19, 1 }
   0xb   : > { %p47_p4 = por %p46_p1, %p45_p0  ;;  %p132_p7 = scmp.lt.s32.totalorder %s7471_s19, 9 }
   0xc   : > { %s9246_s22 = scalar_select %p7543_p3, 1, 0 }
   0xd   : > { %p7550_p6 = por %p7543_p3, %p51_p2  ;;  %p7555_p8 = pnand %p6043_p5, %p132_p7 }
   0xe   : > { %s7473_s25 = smov [#allocation4]   ;;  %p7198_p10 = scmp.lt.s32.totalorder %s7471_s19, 8 }
   0xf   : > { %s9247_s23 = scalar_select %p7550_p6, 1, 0 }
  0x10   : > { %s9248_s24 = scalar_select %p7555_p8, 1, 0 }
  0x11   : > { %s148_s26 = sshll.u32 %s7473_s25, 4  ;;  %p7189_p9 = pneg %p7555_p8  ;;  %s149_s26 = int_to_ptr.vmem [resolvable:$true] %s148_s26 }
  0x12   : > { %p7568_p12 = pnand %p7198_p10, %p47_p4  ;;  %s9251_s2 = sld [smem:[#allocation19_spill]] }
  0x13   : > { %p7564_p11 = pnand %p7189_p9, %p7543_p3 }
  0x14   : > { %s9250_s28 = scalar_select %p7568_p12, 1, 0 }
  0x15   : > { %p7345_p0 = pneg %p7564_p11 }
  0x18   : > { %s7343_s4 = scalar_lea.hbm %s9251_s2, 16 }
  0x19   : > { %p7344_p13 = scmp.ne.s32.totalorder %s9251_s2, %s7343_s4  ;;  %p7350_p5 = scmp.lt.u32.totalorder %s7343_s4, %s9251_s2 }
  0x1b   : > { %p7346_p1 = pnand %p7345_p0, %p7344_p13 }
  0x1d   : > { %p7347_p2 = pneg %p7346_p1 }
  0x1f   : > { %p7352_p4 = pnand %p7350_p5, %p7347_p2 }
  0x21   : > { %7355 = shalt.err (!%p7352_p4)
}
  0x22   : > { %s7356_s9 = scalar_lea.vmem %s149_s26, 16  ;;  %s7363_s10 = scalar_lea.vmem %s149_s26, 32 }
  0x23   : > { %p7357_p7 = scmp.ne.s32.totalorder %s149_s26, %s7356_s9  ;;  %p7364_p3 = scmp.lt.s32.totalorder %s149_s26, %s149_s26 }
  0x24   : > { %p7365_p6 = scmp.lt.s32.totalorder %s7363_s10, %s7356_s9 }
  0x25   : > { %p7359_p9 = pnand %p7357_p7, %p7345_p0 }
  0x26   : > { %p7366_p8 = por %p7365_p6, %p7364_p3 }
  0x27   : > { %p7360_p10 = pneg %p7359_p9 }
  0x29   : > { %p7367_p12 = pnand %p7366_p8, %p7360_p10 }
  0x2b   : > { %7370 = shalt.err (!%p7367_p12)
}
  0x2c   : > { %7192 = dma.hbm_to_vmem [thread:$0]  (!%p7564_p11), %s9251_s2, 16, %s149_s26, [#allocation5]  }
  0x2d   : > { %s26_s20 = sadd.s32 1, %s7463_s17  ;;  %s29_s25 = sadd.s32 1, %s7467_s18 }
  0x2e   : > { %p27_p13 = scmp.ge.s32.totalorder %s26_s20, 4  ;;  %s159_s29 = sand.u32 1, %s7451_s14  }
  0x2f   : > { %s6046_s30 = sshll.u32 %s159_s29, 9  ;;  %s6047_s4 = sshll.u32 %s7463_s17, 7 }
  0x30   : > { %s9361_s20 = smov (%p27_p13, %s26_s20), 0  ;;  %s9363_s25 = smov (!%p27_p13, %s29_s25), %s7467_s18 }
  0x31   : > { %s34_s27 = ssub.s32 %s7463_s17, %s9361_s20  ;;  %p31_p3 = scmp.ge.s32.totalorder %s9363_s25, 2 }
  0x32   : > { %s6048_s5 = sshll.u32 %s7467_s18, 9  ;;  %s163_s6 = scalar_lea.vmem [#allocation2], %s6046_s30 }
  0x33   : > { %s172_s26 = sshll.u32 %s163_s6, 4  ;;  %s9365_s25 = smov (%p31_p3, %s9363_s25), 0  ;;  %s7600_s26 = int_to_ptr.vmem [resolvable:$true] %s172_s26 }
  0x34   : > { %s169_s7 = sadd.s32 %s6048_s5, %s6047_s4  ;;  %s33_s8 = ssub.s32 %s7467_s18, %s9365_s25 }
  0x35   : > { %s6049_s9 = sshll.u32 %s169_s7, 6  ;;  %s35_s10 = sor.u32 %s34_s27, %s33_s8 }
  0x36   : > { %s7607_s21 = scalar_lea.hbm %s9236_s0, %s6049_s9  ;;  %p36_p6 = scmp.eq.s32.totalorder %s35_s10, 0 }
  0x37   : > { %s9252_s30 = sadd.s32 1, %s7451_s14  ;;  %s7614_s2 = scalar_lea.sflag [#allocation3], %s159_s29 }
  0x38   : > { %s7612_s6 = scalar_select %p36_p6, %s7451_s14, %s9252_s30  }
  0x39   : > { %s7371_s4 = scalar_lea.hbm %s7607_s21, 8192  ;;  %p9253_p11 = scmp.ne.s32.totalorder %s9250_s28, 0 }
  0x3a   : > { %p7372_p8 = scmp.ne.s32.totalorder %s7607_s21, %s7371_s4  ;;  %s7376_s7 = scalar_lea.hbm %s9236_s0, 65536 }
  0x3b   : > { %p7373_p12 = pneg %p9253_p11  ;;  %p7377_p2 = scmp.lt.u32.totalorder %s7607_s21, %s9236_s0 }
  0x3c   : > { %p7378_p5 = scmp.lt.u32.totalorder %s7376_s7, %s7371_s4  ;;  %p7380_p7 = scmp.lt.u32.totalorder %s7371_s4, %s7607_s21 }
  0x3d   : > { %p7374_p0 = pnand %p7373_p12, %p7372_p8 }
  0x3e   : > { %p7379_p4 = por %p7378_p5, %p7377_p2 }
  0x3f   : > { %p7375_p1 = pneg %p7374_p0 }
  0x40   : > { %p7381_p9 = por %p7380_p7, %p7379_p4 }
  0x42   : > { %p7382_p10 = pnand %p7381_p9, %p7375_p1 }
  0x44   : > { %7385 = shalt.err (!%p7382_p10)
}
  0x45   : > { %s7386_s29 = scalar_lea.vmem %s7600_s26, 8192  ;;  %s7474_s10 = smov [#allocation2]  }
  0x46   : > { %p7387_p13 = scmp.ne.s32.totalorder %s7600_s26, %s7386_s29  ;;  %s7391_s11 = sshll.u32 %s7474_s10, 4  ;;  %s7392_s11 = int_to_ptr.vmem [resolvable:$false] %s7391_s11 }
  0x47   : > { %s7393_s12 = scalar_lea.vmem %s7392_s11, 16384  ;;  %p7394_p8 = scmp.lt.s32.totalorder %s7600_s26, %s7392_s11 }
  0x48   : > { %p7389_p3 = pnand %p7387_p13, %p7373_p12  ;;  %p7395_p0 = scmp.lt.s32.totalorder %s7393_s12, %s7386_s29 }
  0x4a   : > { %p7390_p6 = pneg %p7389_p3  ;;  %p7396_p2 = por %p7395_p0, %p7394_p8 }
  0x4c   : > { %p7397_p5 = pnand %p7396_p2, %p7390_p6 }
  0x4e   : > { %7400 = shalt.err (!%p7397_p5)
}
  0x4f   : > { %s7475_s30 = smov 64   ;;  %s7476_s4 = smov 4  }
  0x50   : > { %7196 = dma.hbm_to_vmem [thread:$0]  (!%p9253_p11), %s7607_s21, 8192, %s7600_s26, %s7614_s2, %s7475_s30, %s7475_s30, %s7476_s4  }
  0x51   : > { %p9254_p12 = scmp.ne.s32.totalorder %s9248_s24, 0 }
  0x53   : > { %184 = sbr.rel (%p9254_p12) target bundleno = 887 (0x377), region = 32 }
  0x5a   : > { %s186_s27 = sand.u32 1, %s7447_s13   ;;  %p9255_p1 = scmp.ne.s32.totalorder %s9247_s23, 0 }
  0x5b   : > { %s6051_s5 = sshll.u32 %s186_s27, 9  ;;  %s187_s7 = scalar_lea.sflag [#allocation3], %s186_s27 }
  0x5c   : > { %s7645_s8 = scalar_lea.vmem [#allocation2], %s6051_s5 }
  0x5d   : > { %7434 = dma.done.wait (%p9255_p1), %s187_s7, 8192  }
  0x5e   : > { %7436 = vsyncadd (%p9255_p1), %s187_s7, 4294959104  ;;  %p9256_p4 = scmp.ne.s32.totalorder %s9246_s22, 0 }
  0x60   : > { %7438 = dma.done.wait (%p9256_p4), [#allocation5], 16  }
  0x61   : > { %7440 = vsyncadd (%p9256_p4), [#allocation5], 4294967280  ;;  %v7269_v0 = vld [vmem:[%s9237_s1] sm:$0xff]   ;;  %v7270_v1 = vld [vmem:[%s9237_s1 + $0x8] sm:$0xff]   ;;  %vm730_vm0 = vcmask 662528   ;;  %vm923_vm1 = vcmask 1040384  }
  0x62   : > { %7031 = vmatprep.subr.bf16.mxu0 %v7269_v0  ;;  %7171 = vmatprep.subr.bf16.mxu1 %v7269_v0  ;;  %v7271_v2 = vld [vmem:[%s9237_s1 + $0x10] sm:$0xff]   ;;  %v7275_v3 = vld [vmem:[%s7645_s8] sm:$0xff]   ;;  %v7272_v5 = vld [vmem:[%s9237_s1 + $0x18] sm:$0xff]   ;;  %v7477_v8 = vmov 0   ;;  %vm5379_vm2 = vcmask 1041409   ;;  %vm5382_vm3 = vcmask 1042434  }
  0x63   : > { %7032 = vmatpush3.bf16.msra.mxu0 %v7269_v0  ;;  %7177 = vmatpush3.bf16.msra.mxu1 %v7269_v0  ;;  %v7276_v4 = vld [vmem:[%s7645_s8 + $0x100] sm:$0xff]   ;;  %v7274_v6 = vld [vmem:[%s9237_s1 + $0x28] ss:$0 sps:$4 sm:$0x11]   ;;  %v925_v9 = vsel %vm923_vm1, 65535, %v7477_v8  ;;  %v7279_v13 = vld [vmem:[%s7645_s8 + $0x10] sm:$0xff]  }
  0x64   : > { %7033 = vmatprep.subr.bf16.mxu0 %v7270_v1  ;;  %7172 = vmatprep.subr.bf16.mxu1 %v7270_v1  ;;  %v7273_v7 = vld [vmem:[%s9237_s1 + $0x20] sm:$0xff]   ;;  %v927_v10 = vand.u32 %v7274_v6, %v925_v9  ;;  %v7277_v11 = vld [vmem:[%s7645_s8 + $0x8] sm:$0xff]   ;;  %v7280_v14 = vld [vmem:[%s7645_s8 + $0x110] sm:$0xff]   ;;  %v7478_v9 = vmov 1983009808   ;;  %vm5385_vm4 = vcmask 1043459  }
  0x65   : > { %7043 = vmatprep.mubr.msk.bf16.mxu0 %vm730_vm0, %v7275_v3  ;;  %7107 = vmatprep.mubr.msk.bf16.mxu1 %vm730_vm0, %v7276_v4  ;;  %v7278_v12 = vld [vmem:[%s7645_s8 + $0x108] sm:$0xff]   ;;  %v7281_v15 = vld [vmem:[%s7645_s8 + $0x18] sm:$0xff]   ;;  %v7283_v17 = vld [vmem:[%s7645_s8 + $0x20] sm:$0xff]   ;;  %p221_p11 = scmp.lt.s32.totalorder %s7459_s16, 1  ;;  %p223_p7 = scmp.lt.s32.totalorder %s7455_s15, 3  ;;  %vm5388_vm5 = vcmask 1044484  }
  0x66   : > { %v7282_v16 = vld [vmem:[%s7645_s8 + $0x118] sm:$0xff]   ;;  %v7284_v18 = vld [vmem:[%s7645_s8 + $0x120] sm:$0xff]   ;;  %v7285_v19 = vld [vmem:[%s7645_s8 + $0x28] sm:$0xff]   ;;  %vm5391_vm6 = vcmask 1045509   ;;  %vm5394_vm7 = vcmask 1046534   ;;  %vm5397_vm8 = vcmask 1047559  }
  0x67   : > { %7034 = vmatpush3.bf16.msra.mxu0 %v7270_v1  ;;  %7178 = vmatpush3.bf16.msra.mxu1 %v7270_v1  ;;  %v7286_v20 = vld [vmem:[%s7645_s8 + $0x128] sm:$0xff]   ;;  %v7287_v21 = vld [vmem:[%s7645_s8 + $0x30] sm:$0xff]   ;;  %v7289_v23 = vld [vmem:[%s7645_s8 + $0x38] sm:$0xff]   ;;  %s9367_s16 = smov (!%p221_p11, %s7459_s16), 1  ;;  %s9369_s15 = smov (!%p223_p7, %s7455_s15), 3  ;;  %vm5897_vm9 = vcmask 257024  }
  0x68   : > { %7035 = vmatprep.subr.bf16.mxu0 %v7271_v2  ;;  %7173 = vmatprep.subr.bf16.mxu1 %v7271_v2  ;;  %v7288_v22 = vld [vmem:[%s7645_s8 + $0x130] sm:$0xff]   ;;  %v7290_v24 = vld [vmem:[%s7645_s8 + $0x138] sm:$0xff]   ;;  %v7291_v25 = vld [vmem:[%s7645_s8 + $0x40] sm:$0xff]   ;;  %s6053_s30 = sshll.u32 %s9369_s15, 5  ;;  %s6054_s4 = sshll.u32 %s9367_s16, 7 }
  0x69   : > { %v7292_v26 = vld [vmem:[%s7645_s8 + $0x140] sm:$0xff]   ;;  %v7293_v27 = vld [vmem:[%s7645_s8 + $0x48] sm:$0xff]   ;;  %v7295_v29 = vld [vmem:[%s7645_s8 + $0x50] sm:$0xff]   ;;  %s7995_s27 = sadd.s32 %s6054_s4, %s6053_s30 }
  0x6a   : > { %v7294_v28 = vld [vmem:[%s7645_s8 + $0x148] sm:$0xff]   ;;  %v7296_v30 = vld [vmem:[%s7645_s8 + $0x150] sm:$0xff]   ;;  %v7297_v31 = vld [vmem:[%s7645_s8 + $0x58] sm:$0xff]   ;;  %s6055_s15 = sshll.u32 %s7995_s27, 2 }
  0x6b   : > { %7036 = vmatpush3.bf16.msra.mxu0 %v7271_v2  ;;  %7179 = vmatpush3.bf16.msra.mxu1 %v7271_v2  ;;  %v7298_v32 = vld [vmem:[%s7645_s8 + $0x158] sm:$0xff]   ;;  %v7299_v33 = vld [vmem:[%s7645_s8 + $0x60] sm:$0xff]   ;;  %v7301_v35 = vld [vmem:[%s7645_s8 + $0x68] sm:$0xff]   ;;  %s8013_s7 = scalar_lea.vmem %s9239_s3, %s6055_s15 }
  0x6c   : > { %7037 = vmatprep.subr.bf16.mxu0 %v7272_v5  ;;  %7174 = vmatprep.subr.bf16.mxu1 %v7272_v5  ;;  %v7300_v34 = vld [vmem:[%s7645_s8 + $0x160] sm:$0xff]   ;;  %v7302_v36 = vld [vmem:[%s7645_s8 + $0x168] sm:$0xff]   ;;  %v7303_v37 = vld [vmem:[%s7645_s8 + $0x70] sm:$0xff]  }
  0x6d   : > { %v7304_v38 = vld [vmem:[%s7645_s8 + $0x170] sm:$0xff]   ;;  %v7305_v39 = vld [vmem:[%s7645_s8 + $0x78] sm:$0xff]   ;;  %v7307_v41 = vld [vmem:[%s7645_s8 + $0x80] sm:$0xff]  }
  0x6e   : > { %v7306_v40 = vld [vmem:[%s7645_s8 + $0x178] sm:$0xff]   ;;  %v7308_v42 = vld [vmem:[%s7645_s8 + $0x180] sm:$0xff]   ;;  %v7309_v43 = vld [vmem:[%s7645_s8 + $0x88] sm:$0xff]  }
  0x6f   : > { %7038 = vmatpush3.bf16.msra.mxu0 %v7272_v5  ;;  %7180 = vmatpush3.bf16.msra.mxu1 %v7272_v5  ;;  %v7310_v44 = vld [vmem:[%s7645_s8 + $0x188] sm:$0xff]   ;;  %v7311_v45 = vld [vmem:[%s7645_s8 + $0x90] sm:$0xff]   ;;  %v7313_v47 = vld [vmem:[%s7645_s8 + $0x98] sm:$0xff]  }
  0x70   : > { %7039 = vmatprep.subr.bf16.mxu0 %v7273_v7  ;;  %7175 = vmatprep.subr.bf16.mxu1 %v7273_v7  ;;  %v7312_v46 = vld [vmem:[%s7645_s8 + $0x190] sm:$0xff]   ;;  %v7314_v48 = vld [vmem:[%s7645_s8 + $0x198] sm:$0xff]   ;;  %v7315_v49 = vld [vmem:[%s7645_s8 + $0xa0] sm:$0xff]  }
  0x71   : > { %v7316_v50 = vld [vmem:[%s7645_s8 + $0x1a0] sm:$0xff]   ;;  %v7317_v51 = vld [vmem:[%s7645_s8 + $0xa8] sm:$0xff]   ;;  %v7319_v53 = vld [vmem:[%s7645_s8 + $0xb0] sm:$0xff]  }
  0x72   : > { %v7318_v52 = vld [vmem:[%s7645_s8 + $0x1a8] sm:$0xff]   ;;  %v7320_v54 = vld [vmem:[%s7645_s8 + $0x1b0] sm:$0xff]   ;;  %v7321_v55 = vld [vmem:[%s7645_s8 + $0xb8] sm:$0xff]  }
  0x73   : > { %7040 = vmatpush3.bf16.msra.mxu0 %v7273_v7  ;;  %7181 = vmatpush3.bf16.msra.mxu1 %v7273_v7  ;;  %v7322_v56 = vld [vmem:[%s7645_s8 + $0x1b8] sm:$0xff]   ;;  %v7323_v57 = vld [vmem:[%s7645_s8 + $0xc0] sm:$0xff]   ;;  %v7325_v59 = vld [vmem:[%s7645_s8 + $0xc8] sm:$0xff]  }
  0x74   : > { %7041 = vmatprep.subr.bf16.mxu0 %v927_v10  ;;  %7176 = vmatprep.subr.bf16.mxu1 %v927_v10  ;;  %v7324_v58 = vld [vmem:[%s7645_s8 + $0x1c0] sm:$0xff]   ;;  %v7326_v60 = vld [vmem:[%s7645_s8 + $0x1c8] sm:$0xff]   ;;  %v7327_v61 = vld [vmem:[%s7645_s8 + $0xd0] sm:$0xff]  }
  0x75   : > { %v7328_v62 = vld [vmem:[%s7645_s8 + $0x1d0] sm:$0xff]   ;;  %v7329_v63 = vld [vmem:[%s7645_s8 + $0xd8] sm:$0xff]   ;;  %v7331_v1 = vld [vmem:[%s7645_s8 + $0xe0] sm:$0xff]  }
  0x76   : > { %v7330_v0 = vld [vmem:[%s7645_s8 + $0x1d8] sm:$0xff]   ;;  %v7332_v2 = vld [vmem:[%s7645_s8 + $0x1e0] sm:$0xff]   ;;  %v7333_v3 = vld [vmem:[%s7645_s8 + $0xe8] sm:$0xff]  }
  0x77   : > { %7042 = vmatpush3.bf16.msra.mxu0 %v927_v10  ;;  %7182 = vmatpush3.bf16.msra.mxu1 %v927_v10  ;;  %v7334_v4 = vld [vmem:[%s7645_s8 + $0x1e8] sm:$0xff]   ;;  %v7335_v5 = vld [vmem:[%s7645_s8 + $0xf0] sm:$0xff]   ;;  %v7337_v7 = vld [vmem:[%s7645_s8 + $0xf8] sm:$0xff]   ;;  %v1732_v10 = vunpack.c.l.s4 %v7478_v9 }
  0x78   : > { %v7336_v6 = vld [vmem:[%s7645_s8 + $0x1f0] sm:$0xff]   ;;  %v7338_v8 = vld [vmem:[%s7645_s8 + $0x1f8] sm:$0xff]  }
  0x7a   : > { %7044 = vmatmul.mubr.msk.bf16.vlgmr.msra.gmra.mrb[0].mxu0 %vm730_vm0, %v7277_v11  ;;  %7108 = vmatmul.mubr.msk.bf16.vlgmr.msra.gmra.mrb[0].mxu1 %vm730_vm0, %v7278_v12  ;;  %v1734_v11 = vlaneseq }
  0x7b   : > { %7047 = vmatprep.mubr.msk.bf16.mxu0 %vm730_vm0, %v7279_v13  ;;  %7111 = vmatprep.mubr.msk.bf16.mxu1 %vm730_vm0, %v7280_v14  ;;  %v7801_v14 = vld [vmem:[#allocation4] ss:$0 sm:$0xff] }
  0x82   : > { %7048 = vmatmul.mubr.msk.bf16.gmra.mrb[4].mxu0 %vm730_vm0, %v7281_v15  ;;  %7112 = vmatmul.mubr.msk.bf16.gmra.mrb[4].mxu1 %vm730_vm0, %v7282_v16 }
  0x83   : > { %7051 = vmatprep.mubr.msk.bf16.mxu0 %vm730_vm0, %v7283_v17  ;;  %7115 = vmatprep.mubr.msk.bf16.mxu1 %vm730_vm0, %v7284_v18 }
  0x8a   : > { %7052 = vmatmul.mubr.msk.bf16.gmra.mrb[8].mxu0 %vm730_vm0, %v7285_v19  ;;  %7116 = vmatmul.mubr.msk.bf16.gmra.mrb[8].mxu1 %vm730_vm0, %v7286_v20 }
  0x8b   : > { %7055 = vmatprep.mubr.msk.bf16.mxu0 %vm730_vm0, %v7287_v21  ;;  %7119 = vmatprep.mubr.msk.bf16.mxu1 %vm730_vm0, %v7288_v22  ;;  %v1733_v21 = vunpack.c.0.s8 %v1732_v10  ;;  %v1735_v22 = vshrl.u32 %v1734_v11, 7 }
  0x92   : > { %7056 = vmatmul.mubr.msk.bf16.gmra.mrb[12].mxu0 %vm730_vm0, %v7289_v23  ;;  %7120 = vmatmul.mubr.msk.bf16.gmra.mrb[12].mxu1 %vm730_vm0, %v7290_v24 }
  0x93   : > { %7059 = vmatprep.mubr.msk.bf16.mxu0 %vm730_vm0, %v7291_v25  ;;  %7123 = vmatprep.mubr.msk.bf16.mxu1 %vm730_vm0, %v7292_v26 }
  0x9a   : > { %7060 = vmatmul.mubr.msk.bf16.gmra.mrb[16].mxu0 %vm730_vm0, %v7293_v27  ;;  %7124 = vmatmul.mubr.msk.bf16.gmra.mrb[16].mxu1 %vm730_vm0, %v7294_v28 }
  0x9b   : > { %7063 = vmatprep.mubr.msk.bf16.mxu0 %vm730_vm0, %v7295_v29  ;;  %7127 = vmatprep.mubr.msk.bf16.mxu1 %vm730_vm0, %v7296_v30  ;;  %v7813_v29 = vsub.s32 %v1733_v21, %v1735_v22 }
  0xa2   : > { %7064 = vmatmul.mubr.msk.bf16.gmra.mrb[20].mxu0 %vm730_vm0, %v7297_v31  ;;  %7128 = vmatmul.mubr.msk.bf16.gmra.mrb[20].mxu1 %vm730_vm0, %v7298_v32 }
  0xa3   : > { %7067 = vmatprep.mubr.msk.bf16.mxu0 %vm730_vm0, %v7299_v33  ;;  %7131 = vmatprep.mubr.msk.bf16.mxu1 %vm730_vm0, %v7300_v34 }
  0xaa   : > { %7068 = vmatmul.mubr.msk.bf16.gmra.mrb[24].mxu0 %vm730_vm0, %v7301_v35  ;;  %7132 = vmatmul.mubr.msk.bf16.gmra.mrb[24].mxu1 %vm730_vm0, %v7302_v36 }
  0xab   : > { %7071 = vmatprep.mubr.msk.bf16.mxu0 %vm730_vm0, %v7303_v37  ;;  %7135 = vmatprep.mubr.msk.bf16.mxu1 %vm730_vm0, %v7304_v38 }
  0xb2   : > { %7072 = vmatmul.mubr.msk.bf16.gmra.mrb[28].mxu0 %vm730_vm0, %v7305_v39  ;;  %7136 = vmatmul.mubr.msk.bf16.gmra.mrb[28].mxu1 %vm730_vm0, %v7306_v40 }
  0xb3   : > { %7075 = vmatprep.mubr.msk.bf16.mxu0 %vm730_vm0, %v7307_v41  ;;  %7139 = vmatprep.mubr.msk.bf16.mxu1 %vm730_vm0, %v7308_v42 }
  0xba   : > { %7076 = vmatmul.mubr.msk.bf16.gmra.mrb[32].mxu0 %vm730_vm0, %v7309_v43  ;;  %7140 = vmatmul.mubr.msk.bf16.gmra.mrb[32].mxu1 %vm730_vm0, %v7310_v44 }
  0xbb   : > { %7079 = vmatprep.mubr.msk.bf16.mxu0 %vm730_vm0, %v7311_v45  ;;  %7143 = vmatprep.mubr.msk.bf16.mxu1 %vm730_vm0, %v7312_v46 }
  0xc2   : > { %7080 = vmatmul.mubr.msk.bf16.gmra.mrb[36].mxu0 %vm730_vm0, %v7313_v47  ;;  %7144 = vmatmul.mubr.msk.bf16.gmra.mrb[36].mxu1 %vm730_vm0, %v7314_v48 }
  0xc3   : > { %7083 = vmatprep.mubr.msk.bf16.mxu0 %vm730_vm0, %v7315_v49  ;;  %7147 = vmatprep.mubr.msk.bf16.mxu1 %vm730_vm0, %v7316_v50 }
  0xca   : > { %7084 = vmatmul.mubr.msk.bf16.gmra.mrb[40].mxu0 %vm730_vm0, %v7317_v51  ;;  %7148 = vmatmul.mubr.msk.bf16.gmra.mrb[40].mxu1 %vm730_vm0, %v7318_v52 }
  0xcb   : > { %7087 = vmatprep.mubr.msk.bf16.mxu0 %vm730_vm0, %v7319_v53  ;;  %7151 = vmatprep.mubr.msk.bf16.mxu1 %vm730_vm0, %v7320_v54 }
  0xd2   : > { %7088 = vmatmul.mubr.msk.bf16.gmra.mrb[44].mxu0 %vm730_vm0, %v7321_v55  ;;  %7152 = vmatmul.mubr.msk.bf16.gmra.mrb[44].mxu1 %vm730_vm0, %v7322_v56 }
  0xd3   : > { %7091 = vmatprep.mubr.msk.bf16.mxu0 %vm730_vm0, %v7323_v57  ;;  %7155 = vmatprep.mubr.msk.bf16.mxu1 %vm730_vm0, %v7324_v58 }
  0xda   : > { %7092 = vmatmul.mubr.msk.bf16.gmra.mrb[48].mxu0 %vm730_vm0, %v7325_v59  ;;  %7156 = vmatmul.mubr.msk.bf16.gmra.mrb[48].mxu1 %vm730_vm0, %v7326_v60 }
  0xdb   : > { %7095 = vmatprep.mubr.msk.bf16.mxu0 %vm730_vm0, %v7327_v61  ;;  %7159 = vmatprep.mubr.msk.bf16.mxu1 %vm730_vm0, %v7328_v62 }
  0xe2   : > { %7096 = vmatmul.mubr.msk.bf16.gmra.mrb[52].mxu0 %vm730_vm0, %v7329_v63  ;;  %7160 = vmatmul.mubr.msk.bf16.gmra.mrb[52].mxu1 %vm730_vm0, %v7330_v0 }
  0xe3   : > { %7099 = vmatprep.mubr.msk.bf16.mxu0 %vm730_vm0, %v7331_v1  ;;  %7163 = vmatprep.mubr.msk.bf16.mxu1 %vm730_vm0, %v7332_v2 }
  0xea   : > { %7100 = vmatmul.mubr.msk.bf16.gmra.mrb[56].mxu0 %vm730_vm0, %v7333_v3  ;;  %7164 = vmatmul.mubr.msk.bf16.gmra.mrb[56].mxu1 %vm730_vm0, %v7334_v4 }
  0xeb   : > { %7103 = vmatprep.mubr.msk.bf16.mxu0 %vm730_vm0, %v7335_v5  ;;  %7167 = vmatprep.mubr.msk.bf16.mxu1 %vm730_vm0, %v7336_v6 }
  0xf2   : > { %7104 = vmatmul.mubr.msk.bf16.gmra.mrb[60].mxu0 %vm730_vm0, %v7337_v7  ;;  %7168 = vmatmul.mubr.msk.bf16.gmra.mrb[60].mxu1 %vm730_vm0, %v7338_v8 }
 0x14d   : > { %v7045_v12 = vpop.f32.mrb[0].mxu0  ;;  %v7109_v13 = vpop.f32.mrb[0].mxu1 }
 0x14e   : > { %v963_v15 = vpop.f32.mrb[1].mxu0  ;;  %v1219_v16 = vpop.f32.mrb[1].mxu1  ;;  %v972_v23 = vadd.f32 %v7045_v12, %v7801_v14  ;;  %v1228_v24 = vadd.f32 %v7109_v13, %v7801_v14 }
 0x14f   : > { %v7046_v17 = vpop.f32.mrb[2].mxu0  ;;  %v7110_v18 = vpop.f32.mrb[2].mxu1  ;;  %v964_v25 = vadd.f32 %v7801_v14, %v963_v15  ;;  %v1220_v26 = vadd.f32 %v7801_v14, %v1219_v16 }
 0x150   : > { %v966_v19 = vpop.f32.mrb[3].mxu0  ;;  %v1222_v20 = vpop.f32.mrb[3].mxu1  ;;  %v7808_v27 = vadd.f32 %v7046_v17, %v7801_v14  ;;  %v7811_v28 = vadd.f32 %v7110_v18, %v7801_v14  ;;  %v1476_v30 = vmax.f32 %v972_v23, 0.0  ;;  %v1540_v31 = vmax.f32 %v1228_v24, 0.0 }
 0x151   : > { %v1474_v32 = vmax.f32 %v964_v25, 0.0  ;;  %v1538_v33 = vmax.f32 %v1220_v26, 0.0  ;;  %v7816_v36 = vadd.f32 %v7801_v14, %v966_v19  ;;  %v7819_v37 = vadd.f32 %v7801_v14, %v1222_v20 }
 0x152   : > { %v1477_v42 = vmax.f32 %v7808_v27, 0.0 }
 0x155   : > { %v7049_v34 = vpop.f32.mrb[4].mxu0  ;;  %v7113_v35 = vpop.f32.mrb[4].mxu1 }
 0x156   : > { %v988_v38 = vadd.f32 %v7049_v34, %v7801_v14  ;;  %v1244_v39 = vadd.f32 %v7113_v35, %v7801_v14  ;;  %v979_v40 = vpop.f32.mrb[5].mxu0  ;;  %v1235_v41 = vpop.f32.mrb[5].mxu1 }
 0x157   : > { %v980_v44 = vadd.f32 %v7801_v14, %v979_v40  ;;  %v1236_v45 = vadd.f32 %v7801_v14, %v1235_v41  ;;  %v7050_v46 = vpop.f32.mrb[6].mxu0  ;;  %v7114_v47 = vpop.f32.mrb[6].mxu1 }
 0x158   : > { %v1480_v48 = vmax.f32 %v988_v38, 0.0  ;;  %v1544_v49 = vmax.f32 %v1244_v39, 0.0  ;;  %v7828_v50 = vadd.f32 %v7050_v46, %v7801_v14  ;;  %v7831_v51 = vadd.f32 %v7114_v47, %v7801_v14  ;;  %v982_v52 = vpop.f32.mrb[7].mxu0  ;;  %v1238_v53 = vpop.f32.mrb[7].mxu1 }
 0x159   : > { %v1478_v54 = vmax.f32 %v980_v44, 0.0  ;;  %v1542_v55 = vmax.f32 %v1236_v45, 0.0  ;;  %v7834_v56 = vadd.f32 %v7801_v14, %v982_v52  ;;  %v7837_v57 = vadd.f32 %v7801_v14, %v1238_v53 }
 0x15a   : > { %v1604_v60 = vmax.f32 %v1476_v30, %v1480_v48  ;;  %v1636_v61 = vmax.f32 %v1540_v31, %v1544_v49  ;;  %v1481_v0 = vmax.f32 %v7828_v50, 0.0  ;;  %v1545_v1 = vmax.f32 %v7831_v51, 0.0 }
 0x15b   : > { %v1602_v62 = vmax.f32 %v1474_v32, %v1478_v54  ;;  %v7841_v63 = vmax.f32 %v1538_v33, %v1542_v55 }
 0x15c   : > { %v1764_v2 = vcombine.high %v1604_v60, %v1604_v60  ;;  %v1771_v3 = vrot.slane %v1604_v60, %v7813_v29  ;;  %v2308_v4 = vcombine.high %v1636_v61, %v1636_v61  ;;  %v2315_v5 = vrot.slane %v1636_v61, %v7813_v29 }
 0x15d   : > { %v1730_v6 = vcombine.high %v1602_v62, %v1602_v62  ;;  %v7848_v7 = vrot.slane %v1602_v62, %v7813_v29  ;;  %v7852_v10 = vpop.f32.mrb[8].mxu0  ;;  %v7854_v11 = vpop.f32.mrb[8].mxu1  ;;  %v2274_v22 = vcombine.high %v7841_v63, %v7841_v63 }
 0x15e   : > { %v1778_v12 = vrot.slane %v1764_v2, %v7813_v29  ;;  %v1779_v13 = vcombine.high %v1771_v3, %v1771_v3  ;;  %v6199_v15 = vrot.slane %v1771_v3, 9  ;;  %v2322_v16 = vrot.slane %v2308_v4, %v7813_v29  ;;  %v7858_v17 = vpop.f32.mrb[9].mxu0  ;;  %v7860_v18 = vpop.f32.mrb[9].mxu1 }
 0x15f   : > { %v2323_v19 = vcombine.high %v2315_v5, %v2315_v5  ;;  %v6327_v20 = vrot.slane %v2315_v5, 9  ;;  %v7863_v21 = vrot.slane %v1730_v6, %v7813_v29  ;;  %v7867_v23 = vpop.f32.mrb[10].mxu0  ;;  %v7869_v24 = vpop.f32.mrb[10].mxu1  ;;  %v1745_v49 = vcombine.high %v7848_v7, %v7848_v7 }
 0x160   : > { %v1780_v25 = vcombine.high %v1778_v12, %v1778_v12  ;;  %v6200_v26 = vrot.slane %v1779_v13, 9  ;;  %v6201_v30 = vrot.slane %v1778_v12, 9  ;;  %v3850_v31 = vmax.f32 %v1771_v3, %v6199_v15  ;;  %v7871_v32 = vpop.f32.mrb[11].mxu0  ;;  %v7873_v33 = vpop.f32.mrb[11].mxu1 }
 0x161   : > { %v2324_v34 = vcombine.high %v2322_v16, %v2322_v16  ;;  %v6328_v35 = vrot.slane %v2323_v19, 9  ;;  %v6329_v38 = vrot.slane %v2322_v16, 9  ;;  %v3978_v39 = vmax.f32 %v2315_v5, %v6327_v20 }
 0x162   : > { %v6202_v40 = vrot.slane %v1780_v25, 9  ;;  %v3851_v41 = vmax.f32 %v1779_v13, %v6200_v26  ;;  %v3852_v44 = vmax.f32 %v1778_v12, %v6201_v30  ;;  %v6713_v45 = vpack.c.bf16 %v3850_v31, %v3850_v31 }
 0x163   : > { %v6330_v46 = vrot.slane %v2324_v34, 9  ;;  %v3979_v47 = vmax.f32 %v2323_v19, %v6328_v35  ;;  %v3980_v48 = vmax.f32 %v2322_v16, %v6329_v38  ;;  %v6841_v55 = vpack.c.bf16 %v3978_v39, %v3978_v39 }
 0x164   : > { %v3853_v52 = vmax.f32 %v1780_v25, %v6202_v40  ;;  %v6714_v53 = vpack.c.bf16 %v3851_v41, %v3851_v41  ;;  %v6715_v54 = vpack.c.bf16 %v3852_v44, %v3852_v44  ;;  %v5130_v60 = vunpack.c.l.b16 %v6713_v45 }
 0x165   : > { %v3981_v61 = vmax.f32 %v2324_v34, %v6330_v46  ;;  %v6842_v62 = vpack.c.bf16 %v3979_v47, %v3979_v47  ;;  %v6843_v2 = vpack.c.bf16 %v3980_v48, %v3980_v48  ;;  %v7877_v3 = vpop.f32.mrb[12].mxu0  ;;  %v7879_v4 = vpop.f32.mrb[12].mxu1  ;;  %v1746_v13 = vcombine.high %v7863_v21, %v7863_v21 }
 0x166   : > { %v6716_v5 = vpack.c.bf16 %v3853_v52, %v3853_v52  ;;  %v5131_v6 = vunpack.c.l.b16 %v6714_v53  ;;  %v5132_v12 = vunpack.c.l.b16 %v6715_v54  ;;  %v7883_v15 = vpop.f32.mrb[13].mxu0  ;;  %v7885_v16 = vpop.f32.mrb[13].mxu1  ;;  %v6191_v26 = vrot.slane %v7848_v7, 9 }
 0x167   : > { %v6844_v19 = vpack.c.bf16 %v3981_v61, %v3981_v61  ;;  %v5259_v20 = vunpack.c.l.b16 %v6842_v62  ;;  %v7887_v25 = vunpack.c.l.b16 %v6843_v2  ;;  %v7890_v30 = vpop.f32.mrb[14].mxu0  ;;  %v7892_v31 = vpop.f32.mrb[14].mxu1  ;;  %v6192_v39 = vrot.slane %v1745_v49, 9 }
 0x168   : > { %v7894_v34 = vunpack.c.l.b16 %v6716_v5  ;;  %v5399_v35 = vrot.slane %v5131_v6, 7  ;;  %v5401_v38 = vrot.slane %v5132_v12, 6  ;;  %v7896_v40 = vpop.f32.mrb[15].mxu0  ;;  %v7898_v41 = vpop.f32.mrb[15].mxu1  ;;  %v5258_v44 = vunpack.c.l.b16 %v6841_v55 }
 0x169   : > { %v5623_v45 = vrot.slane %v5259_v20, 7  ;;  %v6193_v46 = vrot.slane %v7863_v21, 9  ;;  %v2281_v47 = vrot.slane %v7841_v63, %v7813_v29  ;;  %v7904_v52 = vunpack.c.l.b16 %v6844_v19 }
 0x16a   : > { %v5400_v48 = vsel %vm5379_vm2, %v5399_v35, %v5130_v60  ;;  %v6194_v53 = vrot.slane %v1746_v13, 9  ;;  %v3842_v54 = vmax.f32 %v7848_v7, %v6191_v26  ;;  %v5403_v62 = vrot.slane %v7894_v34, 5 }
 0x16b   : > { %v7908_v61 = vsel %vm5382_vm3, %v5401_v38, %v5400_v48  ;;  %v5625_v55 = vrot.slane %v7887_v25, 6  ;;  %v3843_v2 = vmax.f32 %v1745_v49, %v6192_v39  ;;  %v5624_v5 = vsel %vm5379_vm2, %v5623_v45, %v5258_v44 }
 0x16c   : > { %v3844_v6 = vmax.f32 %v7863_v21, %v6193_v46  ;;  %v3845_v12 = vmax.f32 %v1746_v13, %v6194_v53  ;;  %v6705_v20 = vpack.c.bf16 %v3842_v54, %v3842_v54  ;;  %v2288_v7 = vrot.slane %v2274_v22, %v7813_v29 }
 0x16d   : > { %v6706_v60 = vpack.c.bf16 %v3843_v2, %v3843_v2  ;;  %v2289_v19 = vcombine.high %v2281_v47, %v2281_v47  ;;  %v6319_v26 = vrot.slane %v2281_v47, 9  ;;  %v7918_v35 = vpop.f32.mrb[16].mxu0  ;;  %v7920_v38 = vpop.f32.mrb[16].mxu1  ;;  %v1605_v21 = vmax.f32 %v1477_v42, %v1481_v0 }
 0x16e   : > { %v6707_v49 = vpack.c.bf16 %v3844_v6, %v3844_v6  ;;  %v6708_v25 = vpack.c.bf16 %v3845_v12, %v3845_v12  ;;  %v5122_v39 = vunpack.c.l.b16 %v6705_v20  ;;  %v7926_v13 = vpop.f32.mrb[17].mxu0  ;;  %v7928_v44 = vpop.f32.mrb[17].mxu1  ;;  %v2290_v22 = vcombine.high %v2288_v7, %v2288_v7 }
 0x16f   : > { %v5123_v63 = vunpack.c.l.b16 %v6706_v60  ;;  %v6320_v45 = vrot.slane %v2289_v19, 9  ;;  %v6321_v46 = vrot.slane %v2288_v7, 9  ;;  %v7930_v48 = vpop.f32.mrb[18].mxu0  ;;  %v7932_v53 = vpop.f32.mrb[18].mxu1  ;;  %v3970_v50 = vmax.f32 %v2281_v47, %v6319_v26 }
 0x170   : > { %v5124_v54 = vunpack.c.l.b16 %v6707_v49  ;;  %v7934_v2 = vunpack.c.l.b16 %v6708_v25  ;;  %v1781_v27 = vcombine.high %v1605_v21, %v1605_v21  ;;  %v7937_v42 = vpop.f32.mrb[19].mxu0  ;;  %v7939_v0 = vpop.f32.mrb[19].mxu1  ;;  %v6322_v12 = vrot.slane %v2290_v22, 9 }
 0x171   : > { %v5378_v6 = vrot.slane %v5123_v63, 7  ;;  %v3971_v20 = vmax.f32 %v2289_v19, %v6320_v45  ;;  %v3972_v60 = vmax.f32 %v2288_v7, %v6321_v46  ;;  %v5627_v59 = vrot.slane %v7904_v52, 5 }
 0x172   : > { %v5381_v9 = vrot.slane %v5124_v54, 6  ;;  %v6833_v49 = vpack.c.bf16 %v3970_v50, %v3970_v50  ;;  %v1788_v47 = vrot.slane %v1605_v21, %v7813_v29  ;;  %v3973_v25 = vmax.f32 %v2290_v22, %v6322_v12 }
 0x173   : > { %v5380_v26 = vsel %vm5379_vm2, %v5378_v6, %v5122_v39  ;;  %v6834_v58 = vpack.c.bf16 %v3971_v20, %v3971_v20  ;;  %v6835_v8 = vpack.c.bf16 %v3972_v60, %v3972_v60  ;;  %v5626_v43 = vsel %vm5382_vm3, %v5625_v55, %v5624_v5 }
 0x174   : > { %v5384_v63 = vrot.slane %v7934_v2, 5  ;;  %v1795_v52 = vrot.slane %v1781_v27, %v7813_v29  ;;  %v1796_v7 = vcombine.high %v1788_v47, %v1788_v47  ;;  %v6836_v19 = vpack.c.bf16 %v3973_v25, %v3973_v25 }
 0x175   : > { %v5251_v45 = vunpack.c.l.b16 %v6834_v58  ;;  %v7953_v46 = vunpack.c.l.b16 %v6835_v8  ;;  %v6203_v39 = vrot.slane %v1788_v47, 9  ;;  %v7960_v21 = vpop.f32.mrb[20].mxu0  ;;  %v7962_v55 = vpop.f32.mrb[20].mxu1  ;;  %v5383_v5 = vsel %vm5382_vm3, %v5381_v9, %v5380_v26 }
 0x176   : > { %v1797_v22 = vcombine.high %v1795_v52, %v1795_v52  ;;  %v6204_v54 = vrot.slane %v1796_v7, 9  ;;  %v6205_v2 = vrot.slane %v1795_v52, 9  ;;  %v7965_v50 = vpop.f32.mrb[21].mxu0  ;;  %v7967_v58 = vpop.f32.mrb[21].mxu1  ;;  %v5250_v8 = vunpack.c.l.b16 %v6833_v49 }
 0x177   : > { %9257 = vst [vmem:[#allocation8_spill] sm:$0xff] %v7967_v58  ;;  %v5609_v27 = vrot.slane %v5251_v45, 7  ;;  %v3854_v6 = vmax.f32 %v1788_v47, %v6203_v39  ;;  %v5404_v12 = vsel %vm5385_vm4, %v5403_v62, %v7908_v61  ;;  %v7973_v9 = vpop.f32.mrb[22].mxu0  ;;  %v7975_v20 = vpop.f32.mrb[22].mxu1  ;;  %v9260_v58 = vmax.f32 %v7811_v28, 0.0 }
 0x178   : > { %9258 = vst [vmem:[#allocation9_spill] sm:$0xff] %v7973_v9  ;;  %9259 = vst [vmem:[#allocation10_spill] sm:$0xff] %v7975_v20  ;;  %v6206_v60 = vrot.slane %v1797_v22, 9  ;;  %v3855_v26 = vmax.f32 %v1796_v7, %v6204_v54  ;;  %v3856_v25 = vmax.f32 %v1795_v52, %v6205_v2  ;;  %v7981_v45 = vunpack.c.l.b16 %v6836_v19 }
 0x179   : > { %v1637_v49 = vmax.f32 %v9260_v58, %v1545_v1  ;;  %v7984_v47 = vsel %vm5379_vm2, %v5609_v27, %v5250_v8  ;;  %v6717_v61 = vpack.c.bf16 %v3854_v6, %v3854_v6  ;;  %v5628_v52 = vsel %vm5385_vm4, %v5627_v59, %v5626_v43 }
 0x17a   : > { %v3857_v62 = vmax.f32 %v1797_v22, %v6206_v60  ;;  %v6718_v39 = vpack.c.bf16 %v3855_v26, %v3855_v26  ;;  %v6719_v20 = vpack.c.bf16 %v3856_v25, %v3856_v25  ;;  %v9261_v1 = vmax.f32 %v7834_v56, 0.0  ;;  %v8001_v60 = vpop.f32.mrb[23].mxu0 }
 0x17b   : > { %v5134_v51 = vunpack.c.l.b16 %v6717_v61  ;;  %v2325_v7 = vcombine.high %v1637_v49, %v1637_v49  ;;  %v2332_v28 = vrot.slane %v1637_v49, %v7813_v29  ;;  %v9262_v19 = vmax.f32 %v7816_v36, 0.0  ;;  %9263 = vst [vmem:[#allocation11_spill] sm:$0xff] %v8001_v60 }
 0x17c   : > { %v6720_v2 = vpack.c.bf16 %v3857_v62, %v3857_v62  ;;  %v5135_v58 = vunpack.c.l.b16 %v6718_v39  ;;  %v5136_v22 = vunpack.c.l.b16 %v6719_v20  ;;  %v7998_v8 = vsel %vm5385_vm4, %v5384_v63, %v5383_v5 }
 0x17d   : > { %v1603_v54 = vmax.f32 %v9262_v19, %v9261_v1  ;;  %v5405_v27 = vrot.slane %v5134_v51, 4  ;;  %v2339_v43 = vrot.slane %v2325_v7, %v7813_v29  ;;  %v2340_v59 = vcombine.high %v2332_v28, %v2332_v28 }
 0x17e   : > { %v6331_v6 = vrot.slane %v2332_v28, 9  ;;  %v5137_v56 = vunpack.c.l.b16 %v6720_v2  ;;  %v5407_v26 = vrot.slane %v5135_v58, 3  ;;  %v5409_v36 = vrot.slane %v5136_v22, 2  ;;  %v8008_v58 = vpop.f32.mrb[23].mxu1 }
 0x17f   : > { %v1747_v25 = vcombine.high %v1603_v54, %v1603_v54  ;;  %v5406_v49 = vsel %vm5388_vm5, %v5405_v27, %v5404_v12  ;;  %v2341_v61 = vcombine.high %v2339_v43, %v2339_v43  ;;  %v6332_v62 = vrot.slane %v2340_v59, 9  ;;  %9264 = vst [vmem:[#allocation12_spill] sm:$0xff] %v8008_v58 }
 0x180   : > { %v6333_v20 = vrot.slane %v2339_v43, 9  ;;  %v5408_v63 = vsel %vm5391_vm6, %v5407_v26, %v5406_v49  ;;  %v5411_v5 = vrot.slane %v5137_v56, 1  ;;  %v3982_v39 = vmax.f32 %v2332_v28, %v6331_v6 }
 0x181   : > { %v1754_v51 = vrot.slane %v1603_v54, %v7813_v29  ;;  %v5410_v7 = vsel %vm5394_vm7, %v5409_v36, %v5408_v63  ;;  %v6334_v1 = vrot.slane %v2341_v61, 9  ;;  %v3983_v19 = vmax.f32 %v2340_v59, %v6332_v62 }
 0x182   : > { %v3984_v2 = vmax.f32 %v2339_v43, %v6333_v20  ;;  %v5412_v12 = vsel %vm5397_vm8, %v5411_v5, %v5410_v7  ;;  %v6845_v22 = vpack.c.bf16 %v3982_v39, %v3982_v39  ;;  %v1761_v28 = vrot.slane %v1747_v25, %v7813_v29 }
 0x183   : > { %v1762_v27 = vcombine.high %v1754_v51, %v1754_v51  ;;  %v5834_v54 = vpack.c.b16 %v5412_v12, %v5412_v12  ;;  %v3985_v6 = vmax.f32 %v2341_v61, %v6334_v1  ;;  %v6846_v56 = vpack.c.bf16 %v3983_v19, %v3983_v19 }
 0x184   : > { %v6847_v26 = vpack.c.bf16 %v3984_v2, %v3984_v2  ;;  %v5262_v59 = vunpack.c.l.b16 %v6845_v22  ;;  %v1763_v43 = vcombine.high %v1761_v28, %v1761_v28  ;;  %v6195_v36 = vrot.slane %v1754_v51, 9 }
 0x185   : > { %v6196_v49 = vrot.slane %v1762_v27, 9  ;;  %5899 = vst.msk [vmem:[%s8013_s7 + $0x4] sm:$0xf] %vm5897_vm9, %v5834_v54  ;;  %v6848_v62 = vpack.c.bf16 %v3985_v6, %v3985_v6  ;;  %v5263_v20 = vunpack.c.l.b16 %v6846_v56  ;;  %v6197_v34 = vrot.slane %v1761_v28, 9 }
 0x186   : > { %v5264_v63 = vunpack.c.l.b16 %v6847_v26  ;;  %v5629_v58 = vrot.slane %v5262_v59, 4  ;;  %v6198_v5 = vrot.slane %v1763_v43, 9  ;;  %v3846_v39 = vmax.f32 %v1754_v51, %v6195_v36 }
 0x187   : > { %v3847_v7 = vmax.f32 %v1762_v27, %v6196_v49  ;;  %v5265_v25 = vunpack.c.l.b16 %v6848_v62  ;;  %v5631_v60 = vrot.slane %v5263_v20, 3  ;;  %v3848_v61 = vmax.f32 %v1761_v28, %v6197_v34 }
 0x188   : > { %v5633_v12 = vrot.slane %v5264_v63, 2  ;;  %v5630_v1 = vsel %vm5388_vm5, %v5629_v58, %v5628_v52  ;;  %v3849_v19 = vmax.f32 %v1763_v43, %v6198_v5  ;;  %v6709_v2 = vpack.c.bf16 %v3846_v39, %v3846_v39 }
 0x189   : > { %v6710_v22 = vpack.c.bf16 %v3847_v7, %v3847_v7  ;;  %v5632_v9 = vsel %vm5391_vm6, %v5631_v60, %v5630_v1  ;;  %v5635_v54 = vrot.slane %v5265_v25, 1  ;;  %v6711_v6 = vpack.c.bf16 %v3848_v61, %v3848_v61 }
 0x18a   : > { %v9265_v56 = vmax.f32 %v7837_v57, 0.0  ;;  %v9266_v26 = vmax.f32 %v7819_v37, 0.0  ;;  %v5634_v51 = vsel %vm5394_vm7, %v5633_v12, %v5632_v9  ;;  %v6712_v27 = vpack.c.bf16 %v3849_v19, %v3849_v19 }
 0x18b   : > { %v5126_v36 = vunpack.c.l.b16 %v6709_v2  ;;  %v5127_v34 = vunpack.c.l.b16 %v6710_v22  ;;  %v5636_v52 = vsel %vm5397_vm8, %v5635_v54, %v5634_v51  ;;  %v5128_v58 = vunpack.c.l.b16 %v6711_v6  ;;  %v8044_v54 = vpop.f32.mrb[24].mxu0 }
 0x18c   : > { %v1635_v59 = vmax.f32 %v9266_v26, %v9265_v56  ;;  %v5613_v60 = vrot.slane %v7981_v45, 5  ;;  %v5850_v49 = vpack.c.b16 %v5636_v52, %v5636_v52  ;;  %v5129_v62 = vunpack.c.l.b16 %v6712_v27 }
 0x18d   : > { %v5387_v57 = vrot.slane %v5126_v36, 4  ;;  %v5390_v20 = vrot.slane %v5127_v34, 3  ;;  %v9267_v5 = vrot.slane %v7953_v46, 6  ;;  %v5393_v25 = vrot.slane %v5128_v58, 2 }
 0x18e   : > { %v2291_v28 = vcombine.high %v1635_v59, %v1635_v59  ;;  %v2298_v43 = vrot.slane %v1635_v59, %v7813_v29  ;;  %5915 = vst.msk [vmem:[%s8013_s7 + $0x44] sm:$0xf] %vm5897_vm9, %v5850_v49  ;;  %v5396_v45 = vrot.slane %v5129_v62, 1  ;;  %v1004_v46 = vadd.f32 %v7852_v10, %v7801_v14 }
 0x18f   : > { %v5612_v39 = vsel %vm5382_vm3, %v9267_v5, %v7984_v47  ;;  %v5389_v7 = vsel %vm5388_vm5, %v5387_v57, %v7998_v8  ;;  %v1260_v47 = vadd.f32 %v7854_v11, %v7801_v14  ;;  %v996_v36 = vadd.f32 %v7801_v14, %v7858_v17 }
 0x190   : > { %v2305_v37 = vrot.slane %v2291_v28, %v7813_v29  ;;  %v2306_v63 = vcombine.high %v2298_v43, %v2298_v43  ;;  %v6323_v9 = vrot.slane %v2298_v43, 9  ;;  %v5392_v12 = vsel %vm5391_vm6, %v5390_v20, %v5389_v7 }
 0x191   : > { %v5395_v2 = vsel %vm5394_vm7, %v5393_v25, %v5392_v12  ;;  %v5614_v27 = vsel %vm5385_vm4, %v5613_v60, %v5612_v39  ;;  %v1252_v11 = vadd.f32 %v7801_v14, %v7860_v18  ;;  %v1484_v28 = vmax.f32 %v1004_v46, 0.0  ;;  %v8060_v60 = vpop.f32.mrb[24].mxu1 }
 0x192   : > { %v2307_v61 = vcombine.high %v2305_v37, %v2305_v37  ;;  %v6324_v1 = vrot.slane %v2306_v63, 9  ;;  %v6325_v19 = vrot.slane %v2305_v37, 9  ;;  %v3974_v22 = vmax.f32 %v2298_v43, %v6323_v9 }
 0x193   : > { %v5398_v8 = vsel %vm5397_vm8, %v5396_v45, %v5395_v2  ;;  %v1007_v43 = vadd.f32 %v7867_v23, %v7801_v14  ;;  %v8058_v49 = vadd.f32 %v7869_v24, %v7801_v14  ;;  %v1548_v20 = vmax.f32 %v1260_v47, 0.0  ;;  %v8067_v24 = vpop.f32.mrb[25].mxu0 }
 0x194   : > { %v6326_v6 = vrot.slane %v2307_v61, 9  ;;  %v3975_v56 = vmax.f32 %v2306_v63, %v6324_v1  ;;  %v3976_v26 = vmax.f32 %v2305_v37, %v6325_v19  ;;  %v5833_v59 = vpack.c.b16 %v5398_v8, %v5398_v8  ;;  %v8074_v1 = vpop.f32.mrb[25].mxu1  ;;  %v8083_v46 = vpop.f32.mrb[26].mxu0 }
 0x195   : > { %v6837_v51 = vpack.c.bf16 %v3974_v22, %v3974_v22  ;;  %v1482_v63 = vmax.f32 %v996_v36, 0.0  ;;  %v1546_v18 = vmax.f32 %v1252_v11, 0.0  ;;  %v1485_v9 = vmax.f32 %v1007_v43, 0.0  ;;  %v8085_v47 = vpop.f32.mrb[26].mxu1 }
 0x196   : > { %v3977_v34 = vmax.f32 %v2307_v61, %v6326_v6  ;;  %v6838_v52 = vpack.c.bf16 %v3975_v56, %v3975_v56  ;;  %v6839_v10 = vpack.c.bf16 %v3976_v26, %v3976_v26  ;;  %5898 = vst.msk [vmem:[%s8013_s7] sm:$0xf] %vm5897_vm9, %v5833_v59  ;;  %v8065_v23 = vadd.f32 %v7801_v14, %v7871_v32  ;;  %v8097_v59 = vpop.f32.mrb[27].mxu0 }
 0x197   : > { %v5254_v58 = vunpack.c.l.b16 %v6837_v51  ;;  %v1020_v12 = vadd.f32 %v7877_v3, %v7801_v14  ;;  %v1276_v61 = vadd.f32 %v7879_v4, %v7801_v14  ;;  %v8079_v32 = vadd.f32 %v7801_v14, %v7873_v33 }
 0x198   : > { %v6840_v17 = vpack.c.bf16 %v3977_v34, %v3977_v34  ;;  %v5255_v62 = vunpack.c.l.b16 %v6838_v52  ;;  %v5256_v57 = vunpack.c.l.b16 %v6839_v10  ;;  %v1012_v22 = vadd.f32 %v7801_v14, %v7883_v15  ;;  %v8099_v52 = vpop.f32.mrb[27].mxu1 }
 0x199   : > { %v5615_v37 = vrot.slane %v5254_v58, 4  ;;  %v1488_v8 = vmax.f32 %v1020_v12, 0.0  ;;  %v1552_v4 = vmax.f32 %v1276_v61, 0.0  ;;  %v1268_v6 = vadd.f32 %v7801_v14, %v7885_v16  ;;  %9268 = vst [vmem:[#allocation13_spill] sm:$0xff] %v8099_v52 }
 0x19a   : > { %v5257_v5 = vunpack.c.l.b16 %v6840_v17  ;;  %v5617_v39 = vrot.slane %v5255_v62, 3  ;;  %v5619_v45 = vrot.slane %v5256_v57, 2  ;;  %v1486_v26 = vmax.f32 %v1012_v22, 0.0 }
 0x19b   : > { %v5616_v25 = vsel %vm5388_vm5, %v5615_v37, %v5614_v27  ;;  %v1023_v33 = vadd.f32 %v7890_v30, %v7801_v14  ;;  %v8095_v15 = vadd.f32 %v7892_v31, %v7801_v14  ;;  %v1608_v27 = vmax.f32 %v1484_v28, %v1488_v8 }
 0x19c   : > { %v5618_v19 = vsel %vm5391_vm6, %v5617_v39, %v5616_v25  ;;  %v5621_v2 = vrot.slane %v5257_v5, 1  ;;  %v1640_v36 = vmax.f32 %v1548_v20, %v1552_v4  ;;  %v1550_v34 = vmax.f32 %v1268_v6, 0.0 }
 0x19d   : > { %v5620_v3 = vsel %vm5394_vm7, %v5619_v45, %v5618_v19  ;;  %v1606_v11 = vmax.f32 %v1482_v63, %v1486_v26  ;;  %v1489_v58 = vmax.f32 %v1023_v33, 0.0  ;;  %v1832_v30 = vcombine.high %v1608_v27, %v1608_v27  ;;  %v8116_v19 = vpop.f32.mrb[28].mxu0 }
 0x19e   : > { %v5622_v56 = vsel %vm5397_vm8, %v5621_v2, %v5620_v3  ;;  %v1839_v31 = vrot.slane %v1608_v27, %v7813_v29  ;;  %v2376_v43 = vcombine.high %v1640_v36, %v1640_v36  ;;  %v2383_v17 = vrot.slane %v1640_v36, %v7813_v29  ;;  %v8120_v8 = vpop.f32.mrb[29].mxu0 }
 0x19f   : > { %v5849_v51 = vpack.c.b16 %v5622_v56, %v5622_v56  ;;  %v1798_v62 = vcombine.high %v1606_v11, %v1606_v11  ;;  %v8107_v28 = vmax.f32 %v1546_v18, %v1550_v34  ;;  %v8109_v57 = vmax.f32 %v1485_v9, %v1489_v58  ;;  %v8118_v18 = vpop.f32.mrb[28].mxu1  ;;  %9269 = vst [vmem:[#allocation14_spill] sm:$0xff] %v8120_v8 }
 0x1a0   : > { %v1846_v37 = vrot.slane %v1832_v30, %v7813_v29  ;;  %v1847_v5 = vcombine.high %v1839_v31, %v1839_v31  ;;  %v6215_v63 = vrot.slane %v1839_v31, 9  ;;  %v2390_v39 = vrot.slane %v2376_v43, %v7813_v29  ;;  %v8122_v8 = vpop.f32.mrb[29].mxu1 }
 0x1a1   : > { %5914 = vst.msk [vmem:[%s8013_s7 + $0x40] sm:$0xf] %vm5897_vm9, %v5849_v51  ;;  %v2391_v25 = vcombine.high %v2383_v17, %v2383_v17  ;;  %v6343_v45 = vrot.slane %v2383_v17, 9  ;;  %v1805_v12 = vrot.slane %v1606_v11, %v7813_v29  ;;  %v1812_v61 = vrot.slane %v1798_v62, %v7813_v29  ;;  %9270 = vst [vmem:[#allocation15_spill] sm:$0xff] %v8122_v8 }
 0x1a2   : > { %v1848_v9 = vcombine.high %v1846_v37, %v1846_v37  ;;  %v6216_v2 = vrot.slane %v1847_v5, 9  ;;  %v6217_v22 = vrot.slane %v1846_v37, 9  ;;  %v3866_v3 = vmax.f32 %v1839_v31, %v6215_v63 }
 0x1a3   : > { %v2392_v4 = vcombine.high %v2390_v39, %v2390_v39  ;;  %v6344_v6 = vrot.slane %v2391_v25, 9  ;;  %v6345_v56 = vrot.slane %v2390_v39, 9  ;;  %v3994_v26 = vmax.f32 %v2383_v17, %v6343_v45 }
 0x1a4   : > { %v6218_v33 = vrot.slane %v1848_v9, 9  ;;  %v3867_v51 = vmax.f32 %v1847_v5, %v6216_v2  ;;  %v3868_v27 = vmax.f32 %v1846_v37, %v6217_v22  ;;  %v6729_v36 = vpack.c.bf16 %v3866_v3, %v3866_v3 }
 0x1a5   : > { %v6346_v34 = vrot.slane %v2392_v4, 9  ;;  %v3995_v11 = vmax.f32 %v2391_v25, %v6344_v6  ;;  %v3996_v58 = vmax.f32 %v2390_v39, %v6345_v56  ;;  %v1813_v30 = vcombine.high %v1805_v12, %v1805_v12 }
 0x1a6   : > { %v3869_v43 = vmax.f32 %v1848_v9, %v6218_v33  ;;  %v6730_v62 = vpack.c.bf16 %v3867_v51, %v3867_v51  ;;  %v6731_v10 = vpack.c.bf16 %v3868_v27, %v3868_v27  ;;  %v6857_v16 = vpack.c.bf16 %v3994_v26, %v3994_v26 }
 0x1a7   : > { %v5146_v7 = vunpack.c.l.b16 %v6729_v36  ;;  %v3997_v31 = vmax.f32 %v2392_v4, %v6346_v34  ;;  %v6858_v63 = vpack.c.bf16 %v3995_v11, %v3995_v11  ;;  %v6859_v20 = vpack.c.bf16 %v3996_v58, %v3996_v58 }
 0x1a8   : > { %v6732_v52 = vpack.c.bf16 %v3869_v43, %v3869_v43  ;;  %v5147_v17 = vunpack.c.l.b16 %v6730_v62  ;;  %v5148_v45 = vunpack.c.l.b16 %v6731_v10  ;;  %v1814_v5 = vcombine.high %v1812_v61, %v1812_v61 }
 0x1a9   : > { %v6860_v37 = vpack.c.bf16 %v3997_v31, %v3997_v31  ;;  %v5275_v2 = vunpack.c.l.b16 %v6858_v63  ;;  %v5276_v22 = vunpack.c.l.b16 %v6859_v20  ;;  %v6207_v25 = vrot.slane %v1805_v12, 9 }
 0x1aa   : > { %v8124_v39 = vunpack.c.l.b16 %v6732_v52  ;;  %v5427_v9 = vrot.slane %v5147_v17, 7  ;;  %v5429_v3 = vrot.slane %v5148_v45, 6  ;;  %v6208_v6 = vrot.slane %v1813_v30, 9  ;;  %v8147_v45 = vpop.f32.mrb[30].mxu0 }
 0x1ab   : > { %v8126_v56 = vunpack.c.l.b16 %v6860_v37  ;;  %v5651_v4 = vrot.slane %v5275_v2, 7  ;;  %v6209_v26 = vrot.slane %v1812_v61, 9  ;;  %v8130_v33 = vadd.f32 %v7801_v14, %v7896_v40  ;;  %9271 = vst [vmem:[#allocation16_spill] sm:$0xff] %v8147_v45 }
 0x1ac   : > { %v5428_v10 = vsel %vm5379_vm2, %v5427_v9, %v5146_v7  ;;  %v5274_v51 = vunpack.c.l.b16 %v6857_v16  ;;  %v6210_v27 = vrot.slane %v1814_v5, 9  ;;  %v3858_v36 = vmax.f32 %v1805_v12, %v6207_v25 }
 0x1ad   : > { %v8134_v20 = vsel %vm5382_vm3, %v5429_v3, %v5428_v10  ;;  %v5653_v34 = vrot.slane %v5276_v22, 6  ;;  %v3859_v11 = vmax.f32 %v1813_v30, %v6208_v6  ;;  %v3860_v62 = vmax.f32 %v1812_v61, %v6209_v26  ;;  %v8152_v10 = vpop.f32.mrb[30].mxu1 }
 0x1ae   : > { %v5652_v58 = vsel %vm5379_vm2, %v5651_v4, %v5274_v51  ;;  %v3861_v31 = vmax.f32 %v1814_v5, %v6210_v27  ;;  %v2342_v40 = vcombine.high %v8107_v28, %v8107_v28  ;;  %v2349_v7 = vrot.slane %v8107_v28, %v7813_v29  ;;  %9272 = vst [vmem:[#allocation17_spill] sm:$0xff] %v8152_v10 }
 0x1af   : > { %v6722_v14 = vpack.c.bf16 %v3859_v11, %v3859_v11  ;;  %v1849_v16 = vcombine.high %v8109_v57, %v8109_v57  ;;  %v6721_v12 = vpack.c.bf16 %v3858_v36, %v3858_v36  ;;  %v6723_v63 = vpack.c.bf16 %v3860_v62, %v3860_v62 }
 0x1b0   : > { %v6724_v17 = vpack.c.bf16 %v3861_v31, %v3861_v31  ;;  %v1856_v30 = vrot.slane %v8109_v57, %v7813_v29  ;;  %v2356_v5 = vrot.slane %v2342_v40, %v7813_v29  ;;  %v2357_v37 = vcombine.high %v2349_v7, %v2349_v7 }
 0x1b1   : > { %v5139_v61 = vunpack.c.l.b16 %v6722_v14  ;;  %v6335_v2 = vrot.slane %v2349_v7, 9  ;;  %v5654_v22 = vsel %vm5382_vm3, %v5653_v34, %v5652_v58  ;;  %v5140_v25 = vunpack.c.l.b16 %v6723_v63 }
 0x1b2   : > { %v1863_v28 = vrot.slane %v1849_v16, %v7813_v29  ;;  %v1864_v9 = vcombine.high %v1856_v30, %v1856_v30  ;;  %v2358_v6 = vcombine.high %v2356_v5, %v2356_v5  ;;  %v6336_v4 = vrot.slane %v2357_v37, 9 }
 0x1b3   : > { %v5413_v3 = vrot.slane %v5139_v61, 7  ;;  %v6337_v26 = vrot.slane %v2356_v5, 9  ;;  %v5138_v57 = vunpack.c.l.b16 %v6721_v12  ;;  %v5141_v51 = vunpack.c.l.b16 %v6724_v17 }
 0x1b4   : > { %v3986_v27 = vmax.f32 %v2349_v7, %v6335_v2  ;;  %v1865_v36 = vcombine.high %v1863_v28, %v1863_v28  ;;  %v5415_v11 = vrot.slane %v5140_v25, 6  ;;  %v6338_v62 = vrot.slane %v2358_v6, 9 }
 0x1b5   : > { %v3987_v31 = vmax.f32 %v2357_v37, %v6336_v4  ;;  %v3988_v14 = vmax.f32 %v2356_v5, %v6337_v26  ;;  %v5414_v34 = vsel %vm5379_vm2, %v5413_v3, %v5138_v57  ;;  %v6219_v40 = vrot.slane %v1856_v30, 9 }
 0x1b6   : > { %v6849_v58 = vpack.c.bf16 %v3986_v27, %v3986_v27  ;;  %v6220_v16 = vrot.slane %v1864_v9, 9  ;;  %v3989_v63 = vmax.f32 %v2358_v6, %v6338_v62  ;;  %v6221_v52 = vrot.slane %v1863_v28, 9 }
 0x1b7   : > { %v6850_v61 = vpack.c.bf16 %v3987_v31, %v3987_v31  ;;  %v6851_v43 = vpack.c.bf16 %v3988_v14, %v3988_v14  ;;  %v5417_v45 = vrot.slane %v5141_v51, 5  ;;  %v6222_v8 = vrot.slane %v1865_v36, 9 }
 0x1b8   : > { %v3870_v10 = vmax.f32 %v1856_v30, %v6219_v40  ;;  %v3871_v12 = vmax.f32 %v1864_v9, %v6220_v16  ;;  %v6852_v17 = vpack.c.bf16 %v3989_v63, %v3989_v63  ;;  %v3872_v25 = vmax.f32 %v1863_v28, %v6221_v52 }
 0x1b9   : > { %v5267_v7 = vunpack.c.l.b16 %v6850_v61  ;;  %v8155_v2 = vunpack.c.l.b16 %v6851_v43  ;;  %v5416_v5 = vsel %vm5382_vm3, %v5415_v11, %v5414_v34  ;;  %v3873_v37 = vmax.f32 %v1865_v36, %v6222_v8 }
 0x1ba   : > { %v6733_v3 = vpack.c.bf16 %v3870_v10, %v3870_v10  ;;  %v6734_v4 = vpack.c.bf16 %v3871_v12, %v3871_v12  ;;  %v5266_v26 = vunpack.c.l.b16 %v6849_v58  ;;  %v8158_v57 = vunpack.c.l.b16 %v6852_v17  ;;  %v8179_v17 = vld [vmem:[#allocation4] ss:$0 sm:$0xff] }
 0x1bb   : > { %v5637_v6 = vrot.slane %v5267_v7, 7  ;;  %v6735_v27 = vpack.c.bf16 %v3872_v25, %v3872_v25  ;;  %v6736_v62 = vpack.c.bf16 %v3873_v37, %v3873_v37  ;;  %v9273_v30 = vmax.f32 %v8095_v15, 0.0  ;;  %v8183_v7 = vpop.f32.mrb[31].mxu0 }
 0x1bc   : > { %v5150_v51 = vunpack.c.l.b16 %v6733_v3  ;;  %v5151_v31 = vunpack.c.l.b16 %v6734_v4  ;;  %v9274_v9 = vmax.f32 %v8058_v49, 0.0  ;;  %v5639_v8 = vrot.slane %v8155_v2, 6 }
 0x1bd   : > { %v8165_v52 = vsel %vm5379_vm2, %v5637_v6, %v5266_v26  ;;  %v5152_v28 = vunpack.c.l.b16 %v6735_v27  ;;  %v9275_v10 = vrot.slane %v8124_v39, 5  ;;  %v5641_v11 = vrot.slane %v8158_v57, 5 }
 0x1be   : > { %v1641_v43 = vmax.f32 %v9274_v9, %v9273_v30  ;;  %v5153_v14 = vunpack.c.l.b16 %v6736_v62  ;;  %v5433_v34 = vrot.slane %v5150_v51, 4  ;;  %v9276_v15 = vrot.slane %v8126_v56, 5 }
 0x1bf   : > { %v5432_v36 = vsel %vm5385_vm4, %v9275_v10, %v8134_v20  ;;  %v5435_v58 = vrot.slane %v5151_v31, 3  ;;  %v1487_v63 = vmax.f32 %v8130_v33, 0.0  ;;  %v5437_v12 = vrot.slane %v5152_v28, 2  ;;  %v8193_v28 = vpop.f32.mrb[31].mxu1 }
 0x1c0   : > { %v5656_v49 = vsel %vm5385_vm4, %v9276_v15, %v5654_v22  ;;  %v2393_v40 = vcombine.high %v1641_v43, %v1641_v43  ;;  %v2400_v16 = vrot.slane %v1641_v43, %v7813_v29  ;;  %v5434_v61 = vsel %vm5388_vm5, %v5433_v34, %v5432_v36 }
 0x1c1   : > { %v5439_v39 = vrot.slane %v5153_v14, 1  ;;  %v1271_v20 = vadd.f32 %v8179_v17, %v7898_v41  ;;  %v5436_v56 = vsel %vm5391_vm6, %v5435_v58, %v5434_v61  ;;  %v9277_v33 = vmax.f32 %v8065_v23, 0.0 }
 0x1c2   : > { %v2407_v22 = vrot.slane %v2393_v40, %v7813_v29  ;;  %v2408_v25 = vcombine.high %v2400_v16, %v2400_v16  ;;  %v6347_v37 = vrot.slane %v2400_v16, 9  ;;  %v5438_v3 = vsel %vm5394_vm7, %v5437_v12, %v5436_v56 }
 0x1c3   : > { %v1607_v4 = vmax.f32 %v9277_v33, %v1487_v63  ;;  %v5418_v26 = vsel %vm5385_vm4, %v5417_v45, %v5416_v5  ;;  %v1551_v6 = vmax.f32 %v1271_v20, 0.0  ;;  %v5440_v27 = vsel %vm5397_vm8, %v5439_v39, %v5438_v3 }
 0x1c4   : > { %v2409_v41 = vcombine.high %v2407_v22, %v2407_v22  ;;  %v6348_v62 = vrot.slane %v2408_v25, 9  ;;  %v6349_v51 = vrot.slane %v2407_v22, 9  ;;  %v5836_v31 = vpack.c.b16 %v5440_v27, %v5440_v27 }
 0x1c5   : > { %v3998_v30 = vmax.f32 %v2400_v16, %v6347_v37  ;;  %v1815_v9 = vcombine.high %v1607_v4, %v1607_v4  ;;  %v1822_v43 = vrot.slane %v1607_v4, %v7813_v29  ;;  %v9278_v14 = vmax.f32 %v8079_v32, 0.0 }
 0x1c6   : > { %v6350_v10 = vrot.slane %v2409_v41, 9  ;;  %v3999_v36 = vmax.f32 %v2408_v25, %v6348_v62  ;;  %v4000_v23 = vmax.f32 %v2407_v22, %v6349_v51  ;;  %5901 = vst.msk [vmem:[%s8013_s7 + $0xc] sm:$0xf] %vm5897_vm9, %v5836_v31  ;;  %v1036_v2 = vadd.f32 %v8179_v17, %v7918_v35 }
 0x1c7   : > { %v1639_v34 = vmax.f32 %v9278_v14, %v1551_v6  ;;  %v6861_v45 = vpack.c.bf16 %v3998_v30, %v3998_v30  ;;  %v1829_v5 = vrot.slane %v1815_v9, %v7813_v29  ;;  %v1830_v15 = vcombine.high %v1822_v43, %v1822_v43 }
 0x1c8   : > { %v6211_v58 = vrot.slane %v1822_v43, 9  ;;  %v4001_v40 = vmax.f32 %v2409_v41, %v6350_v10  ;;  %v6862_v16 = vpack.c.bf16 %v3999_v36, %v3999_v36  ;;  %v6863_v63 = vpack.c.bf16 %v4000_v23, %v4000_v23 }
 0x1c9   : > { %v2359_v61 = vcombine.high %v1639_v34, %v1639_v34  ;;  %v5278_v12 = vunpack.c.l.b16 %v6861_v45  ;;  %v1831_v39 = vcombine.high %v1829_v5, %v1829_v5  ;;  %v6212_v20 = vrot.slane %v1830_v15, 9 }
 0x1ca   : > { %v6213_v56 = vrot.slane %v1829_v5, 9  ;;  %v6864_v25 = vpack.c.bf16 %v4001_v40, %v4001_v40  ;;  %v5279_v22 = vunpack.c.l.b16 %v6862_v16  ;;  %v5280_v37 = vunpack.c.l.b16 %v6863_v63 }
 0x1cb   : > { %v3862_v32 = vmax.f32 %v1822_v43, %v6211_v58  ;;  %v5657_v3 = vrot.slane %v5278_v12, 4  ;;  %v6214_v33 = vrot.slane %v1831_v39, 9  ;;  %v3863_v4 = vmax.f32 %v1830_v15, %v6212_v20 }
 0x1cc   : > { %v3864_v6 = vmax.f32 %v1829_v5, %v6213_v56  ;;  %v5281_v27 = vunpack.c.l.b16 %v6864_v25  ;;  %v5659_v62 = vrot.slane %v5279_v22, 3  ;;  %v5661_v51 = vrot.slane %v5280_v37, 2 }
 0x1cd   : > { %v6725_v31 = vpack.c.bf16 %v3862_v32, %v3862_v32  ;;  %v5658_v41 = vsel %vm5388_vm5, %v5657_v3, %v5656_v49  ;;  %v3865_v30 = vmax.f32 %v1831_v39, %v6214_v33  ;;  %v6726_v9 = vpack.c.bf16 %v3863_v4, %v3863_v4 }
 0x1ce   : > { %v6727_v10 = vpack.c.bf16 %v3864_v6, %v3864_v6  ;;  %v5660_v36 = vsel %vm5391_vm6, %v5659_v62, %v5658_v41  ;;  %v5663_v23 = vrot.slane %v5281_v27, 1  ;;  %v2366_v45 = vrot.slane %v1639_v34, %v7813_v29  ;;  %v8215_v62 = vpop.f32.mrb[32].mxu0 }
 0x1cf   : > { %v5142_v14 = vunpack.c.l.b16 %v6725_v31  ;;  %v5662_v43 = vsel %vm5394_vm7, %v5661_v51, %v5660_v36  ;;  %v6728_v58 = vpack.c.bf16 %v3865_v30, %v3865_v30  ;;  %v5143_v5 = vunpack.c.l.b16 %v6726_v9 }
 0x1d0   : > { %v5144_v15 = vunpack.c.l.b16 %v6727_v10  ;;  %v5664_v40 = vsel %vm5397_vm8, %v5663_v23, %v5662_v43  ;;  %v2373_v49 = vrot.slane %v2359_v61, %v7813_v29  ;;  %v2374_v63 = vcombine.high %v2366_v45, %v2366_v45 }
 0x1d1   : > { %v5419_v16 = vrot.slane %v5142_v14, 4  ;;  %v5852_v12 = vpack.c.b16 %v5664_v40, %v5664_v40  ;;  %v5145_v39 = vunpack.c.l.b16 %v6728_v58  ;;  %v5421_v20 = vrot.slane %v5143_v5, 3  ;;  %v8233_v58 = vpop.f32.mrb[32].mxu1 }
 0x1d2   : > { %v5423_v56 = vrot.slane %v5144_v15, 2  ;;  %v2375_v22 = vcombine.high %v2373_v49, %v2373_v49  ;;  %v6339_v34 = vrot.slane %v2366_v45, 9  ;;  %v6340_v37 = vrot.slane %v2374_v63, 9 }
 0x1d3   : > { %v5420_v25 = vsel %vm5388_vm5, %v5419_v16, %v5418_v26  ;;  %v5640_v32 = vsel %vm5382_vm3, %v5639_v8, %v8165_v52  ;;  %5917 = vst.msk [vmem:[%s8013_s7 + $0x4c] sm:$0xf] %vm5897_vm9, %v5852_v12  ;;  %v5425_v61 = vrot.slane %v5145_v39, 1  ;;  %v6341_v33 = vrot.slane %v2373_v49, 9 }
 0x1d4   : > { %v5422_v3 = vsel %vm5391_vm6, %v5421_v20, %v5420_v25  ;;  %v6342_v6 = vrot.slane %v2375_v22, 9  ;;  %v3990_v27 = vmax.f32 %v2366_v45, %v6339_v34  ;;  %v3991_v26 = vmax.f32 %v2374_v63, %v6340_v37  ;;  %v8240_v20 = vpop.f32.mrb[33].mxu0 }
 0x1d5   : > { %v5424_v4 = vsel %vm5394_vm7, %v5423_v56, %v5422_v3  ;;  %v3992_v31 = vmax.f32 %v2373_v49, %v6341_v33  ;;  %v1292_v52 = vadd.f32 %v8179_v17, %v7920_v38  ;;  %v5642_v36 = vsel %vm5385_vm4, %v5641_v11, %v5640_v32 }
 0x1d6   : > { %v5426_v51 = vsel %vm5397_vm8, %v5425_v61, %v5424_v4  ;;  %v3993_v41 = vmax.f32 %v2375_v22, %v6342_v6  ;;  %v6853_v30 = vpack.c.bf16 %v3990_v27, %v3990_v27  ;;  %v6854_v9 = vpack.c.bf16 %v3991_v26, %v3991_v26  ;;  %v8251_v22 = vpop.f32.mrb[33].mxu1  ;;  %v9279_v4 = vld [vmem:[#allocation8_spill] sm:$0xff] }
 0x1d7   : > { %v5835_v8 = vpack.c.b16 %v5426_v51, %v5426_v51  ;;  %v6855_v10 = vpack.c.bf16 %v3992_v31, %v3992_v31  ;;  %v1028_v23 = vadd.f32 %v8179_v17, %v7926_v13  ;;  %v1284_v14 = vadd.f32 %v8179_v17, %v7928_v44  ;;  %v8262_v61 = vpop.f32.mrb[34].mxu1  ;;  %v9281_v31 = vld [vmem:[#allocation10_spill] sm:$0xff] }
 0x1d8   : > { %v6856_v35 = vpack.c.bf16 %v3993_v41, %v3993_v41  ;;  %v5270_v45 = vunpack.c.l.b16 %v6853_v30  ;;  %v5271_v38 = vunpack.c.l.b16 %v6854_v9  ;;  %v1039_v43 = vadd.f32 %v8179_v17, %v7930_v48  ;;  %v8276_v9 = vpop.f32.mrb[35].mxu1 }
 0x1d9   : > { %5900 = vst.msk [vmem:[%s8013_s7 + $0x8] sm:$0xf] %vm5897_vm9, %v5835_v8  ;;  %v5272_v5 = vunpack.c.l.b16 %v6855_v10  ;;  %v1492_v57 = vmax.f32 %v1036_v2, 0.0  ;;  %v1556_v15 = vmax.f32 %v1292_v52, 0.0  ;;  %v8237_v11 = vadd.f32 %v8179_v17, %v7932_v53  ;;  %9282 = vst [vmem:[#allocation8_spill] sm:$0xff] %v8276_v9 }
 0x1da   : > { %v5273_v13 = vunpack.c.l.b16 %v6856_v35  ;;  %v5643_v40 = vrot.slane %v5270_v45, 4  ;;  %v1490_v44 = vmax.f32 %v1028_v23, 0.0  ;;  %v1554_v16 = vmax.f32 %v1284_v14, 0.0 }
 0x1db   : > { %v5645_v49 = vrot.slane %v5271_v38, 3  ;;  %v5647_v63 = vrot.slane %v5272_v5, 2  ;;  %v1493_v12 = vmax.f32 %v1039_v43, 0.0  ;;  %v8245_v56 = vadd.f32 %v8179_v17, %v7937_v42  ;;  %v8260_v42 = vpop.f32.mrb[34].mxu0 }
 0x1dc   : > { %v5644_v48 = vsel %vm5388_vm5, %v5643_v40, %v5642_v36  ;;  %v1052_v53 = vadd.f32 %v8179_v17, %v7960_v21  ;;  %v1308_v25 = vadd.f32 %v8179_v17, %v7962_v55  ;;  %v5649_v37 = vrot.slane %v5273_v13, 1  ;;  %v8274_v2 = vpop.f32.mrb[35].mxu0 }
 0x1dd   : > { %v5646_v34 = vsel %vm5391_vm6, %v5645_v49, %v5644_v48  ;;  %v8256_v32 = vadd.f32 %v8179_v17, %v7939_v0  ;;  %v1044_v3 = vadd.f32 %v8179_v17, %v7965_v50  ;;  %v1300_v6 = vadd.f32 %v8179_v17, %v9279_v4  ;;  %v9280_v0 = vld [vmem:[#allocation9_spill] sm:$0xff] }
 0x1de   : > { %v5648_v21 = vsel %vm5394_vm7, %v5647_v63, %v5646_v34  ;;  %v1496_v33 = vmax.f32 %v1052_v53, 0.0  ;;  %v1560_v55 = vmax.f32 %v1308_v25, 0.0  ;;  %v1055_v51 = vadd.f32 %v8179_v17, %v9280_v0 }
 0x1df   : > { %v5650_v27 = vsel %vm5397_vm8, %v5649_v37, %v5648_v21  ;;  %v1494_v26 = vmax.f32 %v1044_v3, 0.0  ;;  %v8272_v50 = vadd.f32 %v8179_v17, %v9281_v31  ;;  %v1558_v30 = vmax.f32 %v1300_v6, 0.0  ;;  %v8293_v37 = vpop.f32.mrb[36].mxu0 }
 0x1e0   : > { %v5851_v52 = vpack.c.b16 %v5650_v27, %v5650_v27  ;;  %v1612_v8 = vmax.f32 %v1492_v57, %v1496_v33  ;;  %v1644_v41 = vmax.f32 %v1556_v15, %v1560_v55  ;;  %v1497_v14 = vmax.f32 %v1055_v51, 0.0  ;;  %v8297_v55 = vpop.f32.mrb[37].mxu0 }
 0x1e1   : > { %v1610_v23 = vmax.f32 %v1490_v44, %v1494_v26  ;;  %v8284_v57 = vmax.f32 %v1554_v16, %v1558_v30  ;;  %v8295_v16 = vpop.f32.mrb[36].mxu1  ;;  %9283 = vst [vmem:[#allocation9_spill] sm:$0xff] %v8297_v55 }
 0x1e2   : > { %5916 = vst.msk [vmem:[%s8013_s7 + $0x48] sm:$0xf] %vm5897_vm9, %v5851_v52  ;;  %v1900_v35 = vcombine.high %v1612_v8, %v1612_v8  ;;  %v1907_v45 = vrot.slane %v1612_v8, %v7813_v29  ;;  %v2444_v38 = vcombine.high %v1644_v41, %v1644_v41  ;;  %v2451_v43 = vrot.slane %v1644_v41, %v7813_v29  ;;  %v8299_v39 = vpop.f32.mrb[37].mxu1 }
 0x1e3   : > { %v1866_v5 = vcombine.high %v1610_v23, %v1610_v23  ;;  %v8286_v15 = vmax.f32 %v1493_v12, %v1497_v14  ;;  %v1873_v25 = vrot.slane %v1610_v23, %v7813_v29  ;;  %9284 = vst [vmem:[#allocation10_spill] sm:$0xff] %v8299_v39 }
 0x1e4   : > { %v1914_v40 = vrot.slane %v1900_v35, %v7813_v29  ;;  %v1915_v49 = vcombine.high %v1907_v45, %v1907_v45  ;;  %v6231_v44 = vrot.slane %v1907_v45, 9  ;;  %v2458_v63 = vrot.slane %v2444_v38, %v7813_v29 }
 0x1e5   : > { %v2459_v48 = vcombine.high %v2451_v43, %v2451_v43  ;;  %v6359_v53 = vrot.slane %v2451_v43, 9  ;;  %v1880_v34 = vrot.slane %v1866_v5, %v7813_v29  ;;  %v1881_v23 = vcombine.high %v1873_v25, %v1873_v25 }
 0x1e6   : > { %v1916_v12 = vcombine.high %v1914_v40, %v1914_v40  ;;  %v6232_v3 = vrot.slane %v1915_v49, 9  ;;  %v6233_v21 = vrot.slane %v1914_v40, 9  ;;  %v3882_v33 = vmax.f32 %v1907_v45, %v6231_v44 }
 0x1e7   : > { %v2460_v4 = vcombine.high %v2458_v63, %v2458_v63  ;;  %v6360_v6 = vrot.slane %v2459_v48, 9  ;;  %v6361_v27 = vrot.slane %v2458_v63, 9  ;;  %v4010_v26 = vmax.f32 %v2451_v43, %v6359_v53 }
 0x1e8   : > { %v6234_v0 = vrot.slane %v1916_v12, 9  ;;  %v3883_v51 = vmax.f32 %v1915_v49, %v6232_v3  ;;  %v3884_v31 = vmax.f32 %v1914_v40, %v6233_v21  ;;  %v6745_v52 = vpack.c.bf16 %v3882_v33, %v3882_v33 }
 0x1e9   : > { %v6362_v8 = vrot.slane %v2460_v4, 9  ;;  %v4011_v41 = vmax.f32 %v2459_v48, %v6360_v6  ;;  %v4012_v30 = vmax.f32 %v2458_v63, %v6361_v27  ;;  %v6873_v5 = vpack.c.bf16 %v4010_v26, %v4010_v26 }
 0x1ea   : > { %v3885_v14 = vmax.f32 %v1916_v12, %v6234_v0  ;;  %v6746_v35 = vpack.c.bf16 %v3883_v51, %v3883_v51  ;;  %v6747_v38 = vpack.c.bf16 %v3884_v31, %v3884_v31  ;;  %v5162_v36 = vunpack.c.l.b16 %v6745_v52  ;;  %v9285_v0 = vld [vmem:[#allocation11_spill] sm:$0xff] }
 0x1eb   : > { %v4013_v45 = vmax.f32 %v2460_v4, %v6362_v8  ;;  %v6874_v44 = vpack.c.bf16 %v4011_v41, %v4011_v41  ;;  %v6875_v10 = vpack.c.bf16 %v4012_v30, %v4012_v30  ;;  %v1882_v49 = vcombine.high %v1880_v34, %v1880_v34 }
 0x1ec   : > { %v6748_v13 = vpack.c.bf16 %v3885_v14, %v3885_v14  ;;  %v5163_v43 = vunpack.c.l.b16 %v6746_v35  ;;  %v5164_v53 = vunpack.c.l.b16 %v6747_v38  ;;  %v6223_v48 = vrot.slane %v1873_v25, 9 }
 0x1ed   : > { %v6876_v40 = vpack.c.bf16 %v4013_v45, %v4013_v45  ;;  %v5291_v3 = vunpack.c.l.b16 %v6874_v44  ;;  %v5292_v21 = vunpack.c.l.b16 %v6875_v10  ;;  %v6224_v6 = vrot.slane %v1881_v23, 9 }
 0x1ee   : > { %v8301_v63 = vunpack.c.l.b16 %v6748_v13  ;;  %v5455_v12 = vrot.slane %v5163_v43, 7  ;;  %v5457_v33 = vrot.slane %v5164_v53, 6  ;;  %v6225_v26 = vrot.slane %v1880_v34, 9 }
 0x1ef   : > { %v8303_v27 = vunpack.c.l.b16 %v6876_v40  ;;  %v5679_v4 = vrot.slane %v5291_v3, 7  ;;  %v8307_v51 = vadd.f32 %v8179_v17, %v9285_v0  ;;  %v5290_v52 = vunpack.c.l.b16 %v6873_v5 }
 0x1f0   : > { %v5456_v31 = vsel %vm5379_vm2, %v5455_v12, %v5162_v36  ;;  %v6226_v8 = vrot.slane %v1882_v49, 9  ;;  %v3874_v41 = vmax.f32 %v1873_v25, %v6223_v48  ;;  %v5681_v30 = vrot.slane %v5292_v21, 6  ;;  %v8324_v21 = vpop.f32.mrb[38].mxu0 }
 0x1f1   : > { %v8311_v10 = vsel %vm5382_vm3, %v5457_v33, %v5456_v31  ;;  %v3875_v14 = vmax.f32 %v1881_v23, %v6224_v6  ;;  %v5680_v35 = vsel %vm5379_vm2, %v5679_v4, %v5290_v52  ;;  %v3876_v45 = vmax.f32 %v1880_v34, %v6225_v26  ;;  %9286 = vst [vmem:[#allocation11_spill] sm:$0xff] %v8324_v21 }
 0x1f2   : > { %v3877_v44 = vmax.f32 %v1882_v49, %v6226_v8  ;;  %v2410_v36 = vcombine.high %v8284_v57, %v8284_v57  ;;  %v2417_v25 = vrot.slane %v8284_v57, %v7813_v29  ;;  %v1917_v5 = vcombine.high %v8286_v15, %v8286_v15  ;;  %v8329_v8 = vpop.f32.mrb[38].mxu1 }
 0x1f3   : > { %v6738_v43 = vpack.c.bf16 %v3875_v14, %v3875_v14  ;;  %v6737_v53 = vpack.c.bf16 %v3874_v41, %v3874_v41  ;;  %v6739_v40 = vpack.c.bf16 %v3876_v45, %v3876_v45  ;;  %v1924_v23 = vrot.slane %v8286_v15, %v7813_v29  ;;  %9287 = vst [vmem:[#allocation18_spill] sm:$0xff] %v8329_v8 }
 0x1f4   : > { %v6740_v3 = vpack.c.bf16 %v3877_v44, %v3877_v44  ;;  %v2424_v49 = vrot.slane %v2410_v36, %v7813_v29  ;;  %v2425_v48 = vcombine.high %v2417_v25, %v2417_v25  ;;  %v6351_v12 = vrot.slane %v2417_v25, 9 }
 0x1f5   : > { %v5155_v34 = vunpack.c.l.b16 %v6738_v43  ;;  %v5682_v33 = vsel %vm5382_vm3, %v5681_v30, %v5680_v35  ;;  %v5156_v6 = vunpack.c.l.b16 %v6739_v40  ;;  %v1931_v57 = vrot.slane %v1917_v5, %v7813_v29 }
 0x1f6   : > { %v1932_v4 = vcombine.high %v1924_v23, %v1924_v23  ;;  %v2426_v0 = vcombine.high %v2424_v49, %v2424_v49  ;;  %v6352_v31 = vrot.slane %v2425_v48, 9  ;;  %v6353_v52 = vrot.slane %v2424_v49, 9 }
 0x1f7   : > { %v5441_v26 = vrot.slane %v5155_v34, 7  ;;  %v5154_v15 = vunpack.c.l.b16 %v6737_v53  ;;  %v5157_v41 = vunpack.c.l.b16 %v6740_v3  ;;  %v4002_v14 = vmax.f32 %v2417_v25, %v6351_v12 }
 0x1f8   : > { %v1933_v45 = vcombine.high %v1931_v57, %v1931_v57  ;;  %v5443_v44 = vrot.slane %v5156_v6, 6  ;;  %v6354_v43 = vrot.slane %v2426_v0, 9  ;;  %v4003_v36 = vmax.f32 %v2425_v48, %v6352_v31 }
 0x1f9   : > { %v4004_v38 = vmax.f32 %v2424_v49, %v6353_v52  ;;  %v5442_v30 = vsel %vm5379_vm2, %v5441_v26, %v5154_v15  ;;  %v6865_v35 = vpack.c.bf16 %v4002_v14, %v4002_v14  ;;  %v6235_v40 = vrot.slane %v1924_v23, 9 }
 0x1fa   : > { %v6236_v5 = vrot.slane %v1932_v4, 9  ;;  %v4005_v13 = vmax.f32 %v2426_v0, %v6354_v43  ;;  %v6866_v34 = vpack.c.bf16 %v4003_v36, %v4003_v36  ;;  %v6237_v39 = vrot.slane %v1931_v57, 9 }
 0x1fb   : > { %v6867_v21 = vpack.c.bf16 %v4004_v38, %v4004_v38  ;;  %v5445_v55 = vrot.slane %v5157_v41, 5  ;;  %v6238_v9 = vrot.slane %v1933_v45, 9  ;;  %v3886_v8 = vmax.f32 %v1924_v23, %v6235_v40 }
 0x1fc   : > { %v3887_v53 = vmax.f32 %v1932_v4, %v6236_v5  ;;  %v6868_v3 = vpack.c.bf16 %v4005_v13, %v4005_v13  ;;  %v5283_v25 = vunpack.c.l.b16 %v6866_v34  ;;  %v3888_v6 = vmax.f32 %v1931_v57, %v6237_v39 }
 0x1fd   : > { %v8332_v12 = vunpack.c.l.b16 %v6867_v21  ;;  %v5444_v49 = vsel %vm5382_vm3, %v5443_v44, %v5442_v30  ;;  %v3889_v48 = vmax.f32 %v1933_v45, %v6238_v9  ;;  %v6749_v26 = vpack.c.bf16 %v3886_v8, %v3886_v8 }
 0x1fe   : > { %v6750_v31 = vpack.c.bf16 %v3887_v53, %v3887_v53  ;;  %v5282_v52 = vunpack.c.l.b16 %v6865_v35  ;;  %v8335_v15 = vunpack.c.l.b16 %v6868_v3  ;;  %v5665_v0 = vrot.slane %v5283_v25, 7  ;;  %v9292_v3 = vld [vmem:[#allocation12_spill] sm:$0xff]  ;;  %v8358_v25 = vpop.f32.mrb[39].mxu0 }
 0x1ff   : > { %v6751_v38 = vpack.c.bf16 %v3888_v6, %v3888_v6  ;;  %v6752_v14 = vpack.c.bf16 %v3889_v48, %v3889_v48  ;;  %v5166_v41 = vunpack.c.l.b16 %v6749_v26  ;;  %v9288_v23 = vmax.f32 %v8272_v50, 0.0 }
 0x200   : > { %v5167_v43 = vunpack.c.l.b16 %v6750_v31  ;;  %v9289_v13 = vmax.f32 %v8237_v11, 0.0  ;;  %v8342_v39 = vsel %vm5379_vm2, %v5665_v0, %v5282_v52  ;;  %v5667_v9 = vrot.slane %v8332_v12, 6 }
 0x201   : > { %v5168_v57 = vunpack.c.l.b16 %v6751_v38  ;;  %v9290_v4 = vrot.slane %v8301_v63, 5  ;;  %v5669_v45 = vrot.slane %v8335_v15, 5  ;;  %v5169_v44 = vunpack.c.l.b16 %v6752_v14 }
 0x202   : > { %v1645_v21 = vmax.f32 %v9289_v13, %v9288_v23  ;;  %v5461_v36 = vrot.slane %v5166_v41, 4  ;;  %v9291_v50 = vrot.slane %v8303_v27, 5  ;;  %v5463_v30 = vrot.slane %v5167_v43, 3 }
 0x203   : > { %v5460_v8 = vsel %vm5385_vm4, %v9290_v4, %v8311_v10  ;;  %v1495_v5 = vmax.f32 %v8307_v51, 0.0  ;;  %v5465_v53 = vrot.slane %v5168_v57, 2  ;;  %v5467_v63 = vrot.slane %v5169_v44, 1  ;;  %v8368_v4 = vpop.f32.mrb[39].mxu1 }
 0x204   : > { %v5684_v11 = vsel %vm5385_vm4, %v9291_v50, %v5682_v33  ;;  %v2461_v35 = vcombine.high %v1645_v21, %v1645_v21  ;;  %v2468_v40 = vrot.slane %v1645_v21, %v7813_v29  ;;  %v5462_v34 = vsel %vm5388_vm5, %v5461_v36, %v5460_v8 }
 0x205   : > { %v1303_v10 = vadd.f32 %v8179_v17, %v9292_v3  ;;  %v5464_v6 = vsel %vm5391_vm6, %v5463_v30, %v5462_v34  ;;  %v9293_v31 = vmax.f32 %v8245_v56, 0.0  ;;  %v5446_v52 = vsel %vm5385_vm4, %v5445_v55, %v5444_v49 }
 0x206   : > { %v2475_v27 = vrot.slane %v2461_v35, %v7813_v29  ;;  %v2476_v33 = vcombine.high %v2468_v40, %v2468_v40  ;;  %v6363_v48 = vrot.slane %v2468_v40, 9  ;;  %v5466_v26 = vsel %vm5394_vm7, %v5465_v53, %v5464_v6 }
 0x207   : > { %v1611_v51 = vmax.f32 %v9293_v31, %v1495_v5  ;;  %v1559_v0 = vmax.f32 %v1303_v10, 0.0  ;;  %v5468_v38 = vsel %vm5397_vm8, %v5467_v63, %v5466_v26  ;;  %v9294_v36 = vmax.f32 %v8256_v32, 0.0 }
 0x208   : > { %v2477_v14 = vcombine.high %v2475_v27, %v2475_v27  ;;  %v6364_v41 = vrot.slane %v2476_v33, 9  ;;  %v6365_v43 = vrot.slane %v2475_v27, 9  ;;  %v5838_v23 = vpack.c.b16 %v5468_v38, %v5468_v38 }
 0x209   : > { %v4014_v13 = vmax.f32 %v2468_v40, %v6363_v48  ;;  %v1883_v21 = vcombine.high %v1611_v51, %v1611_v51  ;;  %v1890_v57 = vrot.slane %v1611_v51, %v7813_v29  ;;  %v1643_v50 = vmax.f32 %v9294_v36, %v1559_v0 }
 0x20a   : > { %v6366_v8 = vrot.slane %v2477_v14, 9  ;;  %v4015_v44 = vmax.f32 %v2476_v33, %v6364_v41  ;;  %v4016_v56 = vmax.f32 %v2475_v27, %v6365_v43  ;;  %5903 = vst.msk [vmem:[%s8013_s7 + $0x14] sm:$0xf] %vm5897_vm9, %v5838_v23  ;;  %v1068_v12 = vadd.f32 %v8179_v17, %v8044_v54 }
 0x20b   : > { %v6877_v55 = vpack.c.bf16 %v4014_v13, %v4014_v13  ;;  %v1897_v49 = vrot.slane %v1883_v21, %v7813_v29  ;;  %v1898_v30 = vcombine.high %v1890_v57, %v1890_v57  ;;  %v6227_v35 = vrot.slane %v1890_v57, 9 }
 0x20c   : > { %v4017_v5 = vmax.f32 %v2477_v14, %v6366_v8  ;;  %v6878_v40 = vpack.c.bf16 %v4015_v44, %v4015_v44  ;;  %v6879_v34 = vpack.c.bf16 %v4016_v56, %v4016_v56  ;;  %v2427_v53 = vcombine.high %v1643_v50, %v1643_v50 }
 0x20d   : > { %v5294_v63 = vunpack.c.l.b16 %v6877_v55  ;;  %v1899_v3 = vcombine.high %v1897_v49, %v1897_v49  ;;  %v6228_v10 = vrot.slane %v1898_v30, 9  ;;  %v6229_v6 = vrot.slane %v1897_v49, 9 }
 0x20e   : > { %v6880_v33 = vpack.c.bf16 %v4017_v5, %v4017_v5  ;;  %v5295_v27 = vunpack.c.l.b16 %v6878_v40  ;;  %v5296_v48 = vunpack.c.l.b16 %v6879_v34  ;;  %v3878_v32 = vmax.f32 %v1890_v57, %v6227_v35 }
 0x20f   : > { %v5685_v26 = vrot.slane %v5294_v63, 4  ;;  %v6230_v31 = vrot.slane %v1899_v3, 9  ;;  %v3879_v51 = vmax.f32 %v1898_v30, %v6228_v10  ;;  %v3880_v0 = vmax.f32 %v1897_v49, %v6229_v6 }
 0x210   : > { %v5297_v38 = vunpack.c.l.b16 %v6880_v33  ;;  %v5687_v41 = vrot.slane %v5295_v27, 3  ;;  %v5689_v43 = vrot.slane %v5296_v48, 2  ;;  %v6741_v23 = vpack.c.bf16 %v3878_v32, %v3878_v32 }
 0x211   : > { %v5686_v14 = vsel %vm5388_vm5, %v5685_v26, %v5684_v11  ;;  %v3881_v13 = vmax.f32 %v1899_v3, %v6230_v31  ;;  %v6742_v21 = vpack.c.bf16 %v3879_v51, %v3879_v51  ;;  %v6743_v8 = vpack.c.bf16 %v3880_v0, %v3880_v0 }
 0x212   : > { %v5688_v44 = vsel %vm5391_vm6, %v5687_v41, %v5686_v14  ;;  %v5691_v56 = vrot.slane %v5297_v38, 1  ;;  %v5158_v36 = vunpack.c.l.b16 %v6741_v23  ;;  %v2434_v55 = vrot.slane %v1643_v50, %v7813_v29  ;;  %v8390_v41 = vpop.f32.mrb[40].mxu0 }
 0x213   : > { %v5690_v57 = vsel %vm5394_vm7, %v5689_v43, %v5688_v44  ;;  %v6744_v35 = vpack.c.bf16 %v3881_v13, %v3881_v13  ;;  %v5159_v49 = vunpack.c.l.b16 %v6742_v21  ;;  %v5160_v30 = vunpack.c.l.b16 %v6743_v8 }
 0x214   : > { %v5692_v5 = vsel %vm5397_vm8, %v5691_v56, %v5690_v57  ;;  %v5447_v40 = vrot.slane %v5158_v36, 4  ;;  %v2441_v11 = vrot.slane %v2427_v53, %v7813_v29  ;;  %v2442_v34 = vcombine.high %v2434_v55, %v2434_v55 }
 0x215   : > { %v5854_v63 = vpack.c.b16 %v5692_v5, %v5692_v5  ;;  %v5161_v3 = vunpack.c.l.b16 %v6744_v35  ;;  %v5449_v10 = vrot.slane %v5159_v49, 3  ;;  %v5451_v6 = vrot.slane %v5160_v30, 2  ;;  %v8408_v35 = vpop.f32.mrb[40].mxu1 }
 0x216   : > { %v5448_v33 = vsel %vm5388_vm5, %v5447_v40, %v5446_v52  ;;  %v2443_v27 = vcombine.high %v2441_v11, %v2441_v11  ;;  %v6355_v50 = vrot.slane %v2434_v55, 9  ;;  %v6356_v48 = vrot.slane %v2442_v34, 9 }
 0x217   : > { %v5668_v32 = vsel %vm5382_vm3, %v5667_v9, %v8342_v39  ;;  %5919 = vst.msk [vmem:[%s8013_s7 + $0x54] sm:$0xf] %vm5897_vm9, %v5854_v63  ;;  %v5450_v26 = vsel %vm5391_vm6, %v5449_v10, %v5448_v33  ;;  %v5453_v53 = vrot.slane %v5161_v3, 1  ;;  %v6357_v31 = vrot.slane %v2441_v11, 9  ;;  %v8415_v10 = vpop.f32.mrb[41].mxu0 }
 0x218   : > { %v5452_v51 = vsel %vm5394_vm7, %v5451_v6, %v5450_v26  ;;  %v6358_v0 = vrot.slane %v2443_v27, 9  ;;  %v4006_v38 = vmax.f32 %v2434_v55, %v6355_v50  ;;  %v4007_v52 = vmax.f32 %v2442_v34, %v6356_v48 }
 0x219   : > { %v5454_v43 = vsel %vm5397_vm8, %v5453_v53, %v5452_v51  ;;  %v4008_v23 = vmax.f32 %v2441_v11, %v6357_v31  ;;  %v1324_v39 = vadd.f32 %v8179_v17, %v8060_v60  ;;  %v5670_v44 = vsel %vm5385_vm4, %v5669_v45, %v5668_v32  ;;  %v9295_v32 = vld [vmem:[#allocation13_spill] sm:$0xff]  ;;  %v9296_v53 = vld [vmem:[#allocation14_spill] sm:$0xff] }
 0x21a   : > { %v5837_v9 = vpack.c.b16 %v5454_v43, %v5454_v43  ;;  %v4009_v14 = vmax.f32 %v2443_v27, %v6358_v0  ;;  %v6869_v13 = vpack.c.bf16 %v4006_v38, %v4006_v38  ;;  %v6870_v21 = vpack.c.bf16 %v4007_v52, %v4007_v52  ;;  %v8426_v27 = vpop.f32.mrb[41].mxu1  ;;  %v9297_v38 = vld [vmem:[#allocation15_spill] sm:$0xff] }
 0x21b   : > { %v6871_v8 = vpack.c.bf16 %v4008_v23, %v4008_v23  ;;  %v1060_v56 = vadd.f32 %v8179_v17, %v8067_v24  ;;  %v1316_v36 = vadd.f32 %v8179_v17, %v8074_v1  ;;  %v1071_v57 = vadd.f32 %v8179_v17, %v8083_v46  ;;  %v8437_v51 = vpop.f32.mrb[42].mxu1 }
 0x21c   : > { %5902 = vst.msk [vmem:[%s8013_s7 + $0x10] sm:$0xf] %vm5897_vm9, %v5837_v9  ;;  %v6872_v54 = vpack.c.bf16 %v4009_v14, %v4009_v14  ;;  %v5286_v55 = vunpack.c.l.b16 %v6869_v13  ;;  %v5287_v60 = vunpack.c.l.b16 %v6870_v21  ;;  %v1500_v15 = vmax.f32 %v1068_v12, 0.0  ;;  %v9298_v12 = vld [vmem:[#allocation16_spill] sm:$0xff]  ;;  %v9299_v9 = vld [vmem:[#allocation17_spill] sm:$0xff] }
 0x21d   : > { %v5288_v49 = vunpack.c.l.b16 %v6871_v8  ;;  %v1564_v30 = vmax.f32 %v1324_v39, 0.0  ;;  %v8412_v45 = vadd.f32 %v8179_v17, %v8085_v47  ;;  %v1498_v1 = vmax.f32 %v1060_v56, 0.0 }
 0x21e   : > { %v5289_v24 = vunpack.c.l.b16 %v6872_v54  ;;  %v5671_v5 = vrot.slane %v5286_v55, 4  ;;  %v1562_v40 = vmax.f32 %v1316_v36, 0.0  ;;  %v5673_v11 = vrot.slane %v5287_v60, 3  ;;  %v8451_v36 = vpop.f32.mrb[43].mxu1 }
 0x21f   : > { %v5675_v34 = vrot.slane %v5288_v49, 2  ;;  %v1501_v63 = vmax.f32 %v1071_v57, 0.0  ;;  %v8420_v6 = vadd.f32 %v8179_v17, %v8097_v59  ;;  %v1084_v47 = vadd.f32 %v8179_v17, %v8116_v19  ;;  %v8435_v59 = vpop.f32.mrb[42].mxu0  ;;  %9300 = vst [vmem:[#allocation12_spill] sm:$0xff] %v8451_v36 }
 0x220   : > { %v5672_v46 = vsel %vm5388_vm5, %v5671_v5, %v5670_v44  ;;  %v1340_v33 = vadd.f32 %v8179_v17, %v8118_v18  ;;  %v5677_v48 = vrot.slane %v5289_v24, 1  ;;  %v8431_v26 = vadd.f32 %v8179_v17, %v9295_v32  ;;  %v8449_v13 = vpop.f32.mrb[43].mxu0 }
 0x221   : > { %v5674_v50 = vsel %vm5391_vm6, %v5673_v11, %v5672_v46  ;;  %v1076_v31 = vadd.f32 %v8179_v17, %v9296_v53  ;;  %v1504_v0 = vmax.f32 %v1084_v47, 0.0  ;;  %v1332_v52 = vadd.f32 %v8179_v17, %v9297_v38 }
 0x222   : > { %v5676_v19 = vsel %vm5394_vm7, %v5675_v34, %v5674_v50  ;;  %v1568_v18 = vmax.f32 %v1340_v33, 0.0  ;;  %v1087_v39 = vadd.f32 %v8179_v17, %v9298_v12  ;;  %v8447_v14 = vadd.f32 %v8179_v17, %v9299_v9 }
 0x223   : > { %v5678_v43 = vsel %vm5397_vm8, %v5677_v48, %v5676_v19  ;;  %v1502_v23 = vmax.f32 %v1076_v31, 0.0  ;;  %v1616_v8 = vmax.f32 %v1500_v15, %v1504_v0  ;;  %v1566_v56 = vmax.f32 %v1332_v52, 0.0  ;;  %v8468_v19 = vpop.f32.mrb[44].mxu0 }
 0x224   : > { %v5853_v21 = vpack.c.b16 %v5678_v43, %v5678_v43  ;;  %v1648_v44 = vmax.f32 %v1564_v30, %v1568_v18  ;;  %v1505_v57 = vmax.f32 %v1087_v39, 0.0  ;;  %v8472_v52 = vpop.f32.mrb[45].mxu0 }
 0x225   : > { %v1614_v60 = vmax.f32 %v1498_v1, %v1502_v23  ;;  %v1968_v49 = vcombine.high %v1616_v8, %v1616_v8  ;;  %v1975_v24 = vrot.slane %v1616_v8, %v7813_v29  ;;  %v8459_v15 = vmax.f32 %v1562_v40, %v1566_v56  ;;  %v8470_v40 = vpop.f32.mrb[44].mxu1  ;;  %9301 = vst [vmem:[#allocation13_spill] sm:$0xff] %v8472_v52 }
 0x226   : > { %5918 = vst.msk [vmem:[%s8013_s7 + $0x50] sm:$0xf] %vm5897_vm9, %v5853_v21  ;;  %v2512_v5 = vcombine.high %v1648_v44, %v1648_v44  ;;  %v2519_v11 = vrot.slane %v1648_v44, %v7813_v29  ;;  %v8461_v30 = vmax.f32 %v1501_v63, %v1505_v57  ;;  %v8474_v52 = vpop.f32.mrb[45].mxu1 }
 0x227   : > { %v1934_v34 = vcombine.high %v1614_v60, %v1614_v60  ;;  %v1982_v47 = vrot.slane %v1968_v49, %v7813_v29  ;;  %v1983_v33 = vcombine.high %v1975_v24, %v1975_v24  ;;  %v6247_v1 = vrot.slane %v1975_v24, 9  ;;  %9302 = vst [vmem:[#allocation14_spill] sm:$0xff] %v8474_v52 }
 0x228   : > { %v2526_v50 = vrot.slane %v2512_v5, %v7813_v29  ;;  %v2527_v48 = vcombine.high %v2519_v11, %v2519_v11  ;;  %v6375_v32 = vrot.slane %v2519_v11, 9  ;;  %v1941_v53 = vrot.slane %v1614_v60, %v7813_v29 }
 0x229   : > { %v1948_v31 = vrot.slane %v1934_v34, %v7813_v29  ;;  %v1984_v63 = vcombine.high %v1982_v47, %v1982_v47  ;;  %v6248_v0 = vrot.slane %v1983_v33, 9  ;;  %v6249_v18 = vrot.slane %v1982_v47, 9 }
 0x22a   : > { %v3898_v38 = vmax.f32 %v1975_v24, %v6247_v1  ;;  %v2528_v43 = vcombine.high %v2526_v50, %v2526_v50  ;;  %v6376_v23 = vrot.slane %v2527_v48, 9  ;;  %v6377_v12 = vrot.slane %v2526_v50, 9 }
 0x22b   : > { %v4026_v39 = vmax.f32 %v2519_v11, %v6375_v32  ;;  %v6250_v9 = vrot.slane %v1984_v63, 9  ;;  %v3899_v21 = vmax.f32 %v1983_v33, %v6248_v0  ;;  %v3900_v8 = vmax.f32 %v1982_v47, %v6249_v18 }
 0x22c   : > { %v6761_v44 = vpack.c.bf16 %v3898_v38, %v3898_v38  ;;  %v6378_v56 = vrot.slane %v2528_v43, 9  ;;  %v4027_v60 = vmax.f32 %v2527_v48, %v6376_v23  ;;  %v4028_v57 = vmax.f32 %v2526_v50, %v6377_v12 }
 0x22d   : > { %v1949_v49 = vcombine.high %v1941_v53, %v1941_v53  ;;  %v3901_v5 = vmax.f32 %v1984_v63, %v6250_v9  ;;  %v6762_v34 = vpack.c.bf16 %v3899_v21, %v3899_v21  ;;  %v6763_v55 = vpack.c.bf16 %v3900_v8, %v3900_v8 }
 0x22e   : > { %v6889_v54 = vpack.c.bf16 %v4026_v39, %v4026_v39  ;;  %v5178_v3 = vunpack.c.l.b16 %v6761_v44  ;;  %v4029_v24 = vmax.f32 %v2528_v43, %v6378_v56  ;;  %v6890_v1 = vpack.c.bf16 %v4027_v60, %v4027_v60 }
 0x22f   : > { %v6891_v46 = vpack.c.bf16 %v4028_v57, %v4028_v57  ;;  %v6764_v36 = vpack.c.bf16 %v3901_v5, %v3901_v5  ;;  %v5179_v11 = vunpack.c.l.b16 %v6762_v34  ;;  %v5180_v32 = vunpack.c.l.b16 %v6763_v55 }
 0x230   : > { %v1950_v33 = vcombine.high %v1948_v31, %v1948_v31  ;;  %v6892_v47 = vpack.c.bf16 %v4029_v24, %v4029_v24  ;;  %v5307_v0 = vunpack.c.l.b16 %v6890_v1  ;;  %v6239_v48 = vrot.slane %v1941_v53, 9 }
 0x231   : > { %v5308_v18 = vunpack.c.l.b16 %v6891_v46  ;;  %v8476_v50 = vunpack.c.l.b16 %v6764_v36  ;;  %v5483_v63 = vrot.slane %v5179_v11, 7  ;;  %v5485_v38 = vrot.slane %v5180_v32, 6  ;;  %v8499_v32 = vpop.f32.mrb[46].mxu0 }
 0x232   : > { %v6240_v23 = vrot.slane %v1949_v49, 9  ;;  %v8478_v12 = vunpack.c.l.b16 %v6892_v47  ;;  %v5707_v43 = vrot.slane %v5307_v0, 7  ;;  %v6241_v39 = vrot.slane %v1948_v31, 9  ;;  %9303 = vst [vmem:[#allocation15_spill] sm:$0xff] %v8499_v32 }
 0x233   : > { %v8482_v9 = vadd.f32 %v8179_v17, %v8183_v7  ;;  %v5484_v55 = vsel %vm5379_vm2, %v5483_v63, %v5178_v3  ;;  %v5306_v21 = vunpack.c.l.b16 %v6889_v54  ;;  %v6242_v8 = vrot.slane %v1950_v33, 9 }
 0x234   : > { %v3890_v44 = vmax.f32 %v1941_v53, %v6239_v48  ;;  %v8486_v46 = vsel %vm5382_vm3, %v5485_v38, %v5484_v55  ;;  %v5709_v56 = vrot.slane %v5308_v18, 6  ;;  %v3891_v60 = vmax.f32 %v1949_v49, %v6240_v23  ;;  %v8504_v55 = vpop.f32.mrb[46].mxu1 }
 0x235   : > { %v5708_v57 = vsel %vm5379_vm2, %v5707_v43, %v5306_v21  ;;  %v3892_v34 = vmax.f32 %v1948_v31, %v6241_v39  ;;  %v3893_v24 = vmax.f32 %v1950_v33, %v6242_v8  ;;  %v2478_v7 = vcombine.high %v8459_v15, %v8459_v15  ;;  %9304 = vst [vmem:[#allocation16_spill] sm:$0xff] %v8504_v55 }
 0x236   : > { %v6754_v17 = vpack.c.bf16 %v3891_v60, %v3891_v60  ;;  %v2485_v3 = vrot.slane %v8459_v15, %v7813_v29  ;;  %v1985_v54 = vcombine.high %v8461_v30, %v8461_v30  ;;  %v6753_v53 = vpack.c.bf16 %v3890_v44, %v3890_v44 }
 0x237   : > { %v6755_v1 = vpack.c.bf16 %v3892_v34, %v3892_v34  ;;  %v6756_v11 = vpack.c.bf16 %v3893_v24, %v3893_v24  ;;  %v1992_v49 = vrot.slane %v8461_v30, %v7813_v29  ;;  %v2492_v33 = vrot.slane %v2478_v7, %v7813_v29 }
 0x238   : > { %v5171_v31 = vunpack.c.l.b16 %v6754_v17  ;;  %v2493_v47 = vcombine.high %v2485_v3, %v2485_v3  ;;  %v6367_v0 = vrot.slane %v2485_v3, 9  ;;  %v5710_v18 = vsel %vm5382_vm3, %v5709_v56, %v5708_v57 }
 0x239   : > { %v5172_v48 = vunpack.c.l.b16 %v6755_v1  ;;  %v1999_v15 = vrot.slane %v1985_v54, %v7813_v29  ;;  %v2000_v63 = vcombine.high %v1992_v49, %v1992_v49  ;;  %v2494_v23 = vcombine.high %v2492_v33, %v2492_v33 }
 0x23a   : > { %v5469_v38 = vrot.slane %v5171_v31, 7  ;;  %v6368_v43 = vrot.slane %v2493_v47, 9  ;;  %v6369_v39 = vrot.slane %v2492_v33, 9  ;;  %v5170_v30 = vunpack.c.l.b16 %v6753_v53 }
 0x23b   : > { %v5173_v21 = vunpack.c.l.b16 %v6756_v11  ;;  %v4018_v8 = vmax.f32 %v2485_v3, %v6367_v0  ;;  %v2001_v44 = vcombine.high %v1999_v15, %v1999_v15  ;;  %v5471_v60 = vrot.slane %v5172_v48, 6 }
 0x23c   : > { %v6370_v34 = vrot.slane %v2494_v23, 9  ;;  %v4019_v24 = vmax.f32 %v2493_v47, %v6368_v43  ;;  %v4020_v17 = vmax.f32 %v2492_v33, %v6369_v39  ;;  %v5470_v56 = vsel %vm5379_vm2, %v5469_v38, %v5170_v30 }
 0x23d   : > { %v6881_v57 = vpack.c.bf16 %v4018_v8, %v4018_v8  ;;  %v6251_v7 = vrot.slane %v1992_v49, 9  ;;  %v6252_v54 = vrot.slane %v2000_v63, 9  ;;  %v6253_v36 = vrot.slane %v1999_v15, 9 }
 0x23e   : > { %v4021_v1 = vmax.f32 %v2494_v23, %v6370_v34  ;;  %v6882_v31 = vpack.c.bf16 %v4019_v24, %v4019_v24  ;;  %v6883_v5 = vpack.c.bf16 %v4020_v17, %v4020_v17  ;;  %v5473_v32 = vrot.slane %v5173_v21, 5 }
 0x23f   : > { %v6254_v52 = vrot.slane %v2001_v44, 9  ;;  %v3902_v55 = vmax.f32 %v1992_v49, %v6251_v7  ;;  %v3903_v53 = vmax.f32 %v2000_v63, %v6252_v54  ;;  %v3904_v48 = vmax.f32 %v1999_v15, %v6253_v36 }
 0x240   : > { %v6884_v11 = vpack.c.bf16 %v4021_v1, %v4021_v1  ;;  %v5299_v3 = vunpack.c.l.b16 %v6882_v31  ;;  %v8507_v0 = vunpack.c.l.b16 %v6883_v5  ;;  %v5472_v33 = vsel %vm5382_vm3, %v5471_v60, %v5470_v56 }
 0x241   : > { %v3905_v47 = vmax.f32 %v2001_v44, %v6254_v52  ;;  %v6765_v38 = vpack.c.bf16 %v3902_v55, %v3902_v55  ;;  %v6766_v43 = vpack.c.bf16 %v3903_v53, %v3903_v53  ;;  %v5298_v39 = vunpack.c.l.b16 %v6881_v57 }
 0x242   : > { %v8510_v30 = vunpack.c.l.b16 %v6884_v11  ;;  %v5693_v23 = vrot.slane %v5299_v3, 7  ;;  %v6767_v8 = vpack.c.bf16 %v3904_v48, %v3904_v48  ;;  %v9305_v49 = vmax.f32 %v8447_v14, 0.0  ;;  %v8531_v11 = vld [vmem:[#allocation4] ss:$0 sm:$0xff]  ;;  %v8535_v3 = vpop.f32.mrb[47].mxu0 }
 0x243   : > { %v6768_v34 = vpack.c.bf16 %v3905_v47, %v3905_v47  ;;  %v5182_v21 = vunpack.c.l.b16 %v6765_v38  ;;  %v5183_v24 = vunpack.c.l.b16 %v6766_v43  ;;  %v9306_v63 = vmax.f32 %v8412_v45, 0.0 }
 0x244   : > { %v8517_v36 = vsel %vm5379_vm2, %v5693_v23, %v5298_v39  ;;  %v5695_v52 = vrot.slane %v8507_v0, 6  ;;  %v5184_v15 = vunpack.c.l.b16 %v6767_v8  ;;  %v9307_v55 = vrot.slane %v8476_v50, 5 }
 0x245   : > { %v1649_v5 = vmax.f32 %v9306_v63, %v9305_v49  ;;  %v5697_v60 = vrot.slane %v8510_v30, 5  ;;  %v5185_v17 = vunpack.c.l.b16 %v6768_v34  ;;  %v5489_v56 = vrot.slane %v5182_v21, 4 }
 0x246   : > { %v5488_v44 = vsel %vm5385_vm4, %v9307_v55, %v8486_v46  ;;  %v9308_v14 = vrot.slane %v8478_v12, 5  ;;  %v5491_v57 = vrot.slane %v5183_v24, 3  ;;  %v1503_v1 = vmax.f32 %v8482_v9, 0.0 }
 0x247   : > { %v2529_v7 = vcombine.high %v1649_v5, %v1649_v5  ;;  %v2536_v54 = vrot.slane %v1649_v5, %v7813_v29  ;;  %v5490_v31 = vsel %vm5388_vm5, %v5489_v56, %v5488_v44  ;;  %v5493_v53 = vrot.slane %v5184_v15, 2  ;;  %v8545_v15 = vpop.f32.mrb[47].mxu1 }
 0x248   : > { %v5712_v45 = vsel %vm5385_vm4, %v9308_v14, %v5710_v18  ;;  %v5495_v50 = vrot.slane %v5185_v17, 1  ;;  %v1335_v46 = vadd.f32 %v8531_v11, %v8193_v28  ;;  %v5492_v12 = vsel %vm5391_vm6, %v5491_v57, %v5490_v31 }
 0x249   : > { %v2543_v18 = vrot.slane %v2529_v7, %v7813_v29  ;;  %v2544_v48 = vcombine.high %v2536_v54, %v2536_v54  ;;  %v6379_v47 = vrot.slane %v2536_v54, 9  ;;  %v5494_v38 = vsel %vm5394_vm7, %v5493_v53, %v5492_v12 }
 0x24a   : > { %v9309_v9 = vmax.f32 %v8420_v6, 0.0  ;;  %v5474_v39 = vsel %vm5385_vm4, %v5473_v32, %v5472_v33  ;;  %v1567_v23 = vmax.f32 %v1335_v46, 0.0  ;;  %v5496_v8 = vsel %vm5397_vm8, %v5495_v50, %v5494_v38 }
 0x24b   : > { %v2545_v28 = vcombine.high %v2543_v18, %v2543_v18  ;;  %v6380_v34 = vrot.slane %v2544_v48, 9  ;;  %v6381_v21 = vrot.slane %v2543_v18, 9  ;;  %v5840_v24 = vpack.c.b16 %v5496_v8, %v5496_v8 }
 0x24c   : > { %v1615_v43 = vmax.f32 %v9309_v9, %v1503_v1  ;;  %v4030_v49 = vmax.f32 %v2536_v54, %v6379_v47  ;;  %v9310_v17 = vmax.f32 %v8431_v26, 0.0  ;;  %v1100_v0 = vadd.f32 %v8531_v11, %v8215_v62 }
 0x24d   : > { %v6382_v55 = vrot.slane %v2545_v28, 9  ;;  %v4031_v44 = vmax.f32 %v2544_v48, %v6380_v34  ;;  %v4032_v6 = vmax.f32 %v2543_v18, %v6381_v21  ;;  %5905 = vst.msk [vmem:[%s8013_s7 + $0x1c] sm:$0xf] %vm5897_vm9, %v5840_v24 }
 0x24e   : > { %v1951_v63 = vcombine.high %v1615_v43, %v1615_v43  ;;  %v1958_v5 = vrot.slane %v1615_v43, %v7813_v29  ;;  %v1647_v56 = vmax.f32 %v9310_v17, %v1567_v23  ;;  %v6893_v32 = vpack.c.bf16 %v4030_v49, %v4030_v49 }
 0x24f   : > { %v4033_v7 = vmax.f32 %v2545_v28, %v6382_v55  ;;  %v6894_v54 = vpack.c.bf16 %v4031_v44, %v4031_v44  ;;  %v6895_v1 = vpack.c.bf16 %v4032_v6, %v4032_v6  ;;  %v1508_v30 = vmax.f32 %v1100_v0, 0.0  ;;  %v9314_v0 = vld [vmem:[#allocation11_spill] sm:$0xff] }
 0x250   : > { %v1965_v33 = vrot.slane %v1951_v63, %v7813_v29  ;;  %v1966_v14 = vcombine.high %v1958_v5, %v1958_v5  ;;  %v6243_v57 = vrot.slane %v1958_v5, 9  ;;  %v2495_v31 = vcombine.high %v1647_v56, %v1647_v56 }
 0x251   : > { %v5310_v53 = vunpack.c.l.b16 %v6893_v32  ;;  %v6896_v48 = vpack.c.bf16 %v4033_v7, %v4033_v7  ;;  %v5311_v18 = vunpack.c.l.b16 %v6894_v54  ;;  %v5312_v47 = vunpack.c.l.b16 %v6895_v1 }
 0x252   : > { %v1967_v50 = vcombine.high %v1965_v33, %v1965_v33  ;;  %v6244_v46 = vrot.slane %v1966_v14, 9  ;;  %v6245_v12 = vrot.slane %v1965_v33, 9  ;;  %v3894_v26 = vmax.f32 %v1958_v5, %v6243_v57 }
 0x253   : > { %v5713_v38 = vrot.slane %v5310_v53, 4  ;;  %v5313_v8 = vunpack.c.l.b16 %v6896_v48  ;;  %v5715_v34 = vrot.slane %v5311_v18, 3  ;;  %v5717_v21 = vrot.slane %v5312_v47, 2 }
 0x254   : > { %v6246_v9 = vrot.slane %v1967_v50, 9  ;;  %v3895_v43 = vmax.f32 %v1966_v14, %v6244_v46  ;;  %v3896_v23 = vmax.f32 %v1965_v33, %v6245_v12  ;;  %v6757_v24 = vpack.c.bf16 %v3894_v26, %v3894_v26 }
 0x255   : > { %v5714_v28 = vsel %vm5388_vm5, %v5713_v38, %v5712_v45  ;;  %v5719_v6 = vrot.slane %v5313_v8, 1  ;;  %v2502_v32 = vrot.slane %v1647_v56, %v7813_v29  ;;  %v2509_v45 = vrot.slane %v2495_v31, %v7813_v29 }
 0x256   : > { %v3897_v49 = vmax.f32 %v1967_v50, %v6246_v9  ;;  %v6758_v63 = vpack.c.bf16 %v3895_v43, %v3895_v43  ;;  %v6759_v55 = vpack.c.bf16 %v3896_v23, %v3896_v23  ;;  %v5716_v44 = vsel %vm5391_vm6, %v5715_v34, %v5714_v28  ;;  %v8567_v34 = vpop.f32.mrb[48].mxu0 }
 0x257   : > { %v5174_v17 = vunpack.c.l.b16 %v6757_v24  ;;  %v5718_v5 = vsel %vm5394_vm7, %v5717_v21, %v5716_v44  ;;  %v2510_v1 = vcombine.high %v2502_v32, %v2502_v32  ;;  %v2511_v18 = vcombine.high %v2509_v45, %v2509_v45 }
 0x258   : > { %v6760_v57 = vpack.c.bf16 %v3897_v49, %v3897_v49  ;;  %v5175_v33 = vunpack.c.l.b16 %v6758_v63  ;;  %v5176_v14 = vunpack.c.l.b16 %v6759_v55  ;;  %v5720_v7 = vsel %vm5397_vm8, %v5719_v6, %v5718_v5 }
 0x259   : > { %v5475_v54 = vrot.slane %v5174_v17, 4  ;;  %v5856_v53 = vpack.c.b16 %v5720_v7, %v5720_v7  ;;  %v6371_v56 = vrot.slane %v2502_v32, 9  ;;  %v6372_v47 = vrot.slane %v2510_v1, 9 }
 0x25a   : > { %v5177_v50 = vunpack.c.l.b16 %v6760_v57  ;;  %v5477_v46 = vrot.slane %v5175_v33, 3  ;;  %v5479_v12 = vrot.slane %v5176_v14, 2  ;;  %v5696_v26 = vsel %vm5382_vm3, %v5695_v52, %v8517_v36  ;;  %v8585_v57 = vpop.f32.mrb[48].mxu1 }
 0x25b   : > { %v5476_v48 = vsel %vm5388_vm5, %v5475_v54, %v5474_v39  ;;  %5921 = vst.msk [vmem:[%s8013_s7 + $0x5c] sm:$0xf] %vm5897_vm9, %v5856_v53  ;;  %v6373_v9 = vrot.slane %v2509_v45, 9  ;;  %v6374_v23 = vrot.slane %v2511_v18, 9  ;;  %v4022_v8 = vmax.f32 %v2502_v32, %v6371_v56 }
 0x25c   : > { %v5478_v38 = vsel %vm5391_vm6, %v5477_v46, %v5476_v48  ;;  %v5481_v31 = vrot.slane %v5177_v50, 1  ;;  %v4023_v39 = vmax.f32 %v2510_v1, %v6372_v47  ;;  %v1356_v36 = vadd.f32 %v8531_v11, %v8233_v58  ;;  %v8592_v46 = vpop.f32.mrb[49].mxu0 }
 0x25d   : > { %v5480_v43 = vsel %vm5394_vm7, %v5479_v12, %v5478_v38  ;;  %v4024_v24 = vmax.f32 %v2509_v45, %v6373_v9  ;;  %v4025_v28 = vmax.f32 %v2511_v18, %v6374_v23  ;;  %v6885_v49 = vpack.c.bf16 %v4022_v8, %v4022_v8  ;;  %v8603_v18 = vpop.f32.mrb[49].mxu1  ;;  %v9313_v8 = vld [vmem:[#allocation10_spill] sm:$0xff] }
 0x25e   : > { %v5482_v21 = vsel %vm5397_vm8, %v5481_v31, %v5480_v43  ;;  %v6886_v63 = vpack.c.bf16 %v4023_v39, %v4023_v39  ;;  %v5698_v44 = vsel %vm5385_vm4, %v5697_v60, %v5696_v26  ;;  %v1092_v6 = vadd.f32 %v8531_v11, %v8240_v20  ;;  %v9311_v26 = vld [vmem:[#allocation8_spill] sm:$0xff]  ;;  %v9312_v31 = vld [vmem:[#allocation9_spill] sm:$0xff]  ;;  %v8614_v43 = vpop.f32.mrb[50].mxu1 }
 0x25f   : > { %v5839_v52 = vpack.c.b16 %v5482_v21, %v5482_v21  ;;  %v6887_v55 = vpack.c.bf16 %v4024_v24, %v4024_v24  ;;  %v1348_v17 = vadd.f32 %v8531_v11, %v8251_v22  ;;  %v6888_v62 = vpack.c.bf16 %v4025_v28, %v4025_v28 }
 0x260   : > { %v5302_v32 = vunpack.c.l.b16 %v6885_v49  ;;  %v5303_v58 = vunpack.c.l.b16 %v6886_v63  ;;  %v1103_v5 = vadd.f32 %v8531_v11, %v8260_v42  ;;  %v1572_v14 = vmax.f32 %v1356_v36, 0.0 }
 0x261   : > { %5904 = vst.msk [vmem:[%s8013_s7 + $0x18] sm:$0xf] %vm5897_vm9, %v5839_v52  ;;  %v5304_v33 = vunpack.c.l.b16 %v6887_v55  ;;  %v8589_v60 = vadd.f32 %v8531_v11, %v8262_v61  ;;  %v5305_v20 = vunpack.c.l.b16 %v6888_v62  ;;  %v1506_v22 = vmax.f32 %v1092_v6, 0.0  ;;  %v9315_v52 = vld [vmem:[#allocation18_spill] sm:$0xff] }
 0x262   : > { %v5699_v7 = vrot.slane %v5302_v32, 4  ;;  %v1570_v54 = vmax.f32 %v1348_v17, 0.0  ;;  %v5701_v45 = vrot.slane %v5303_v58, 3  ;;  %v1509_v53 = vmax.f32 %v1103_v5, 0.0  ;;  %v8628_v17 = vpop.f32.mrb[51].mxu1 }
 0x263   : > { %v5703_v1 = vrot.slane %v5304_v33, 2  ;;  %v8597_v12 = vadd.f32 %v8531_v11, %v8274_v2  ;;  %v1116_v61 = vadd.f32 %v8531_v11, %v8293_v37  ;;  %v1372_v48 = vadd.f32 %v8531_v11, %v8295_v16  ;;  %v8612_v2 = vpop.f32.mrb[50].mxu0  ;;  %9316 = vst [vmem:[#allocation17_spill] sm:$0xff] %v8628_v17 }
 0x264   : > { %v5700_v42 = vsel %vm5388_vm5, %v5699_v7, %v5698_v44  ;;  %v5705_v47 = vrot.slane %v5305_v20, 1  ;;  %v8608_v38 = vadd.f32 %v8531_v11, %v9311_v26  ;;  %v1108_v9 = vadd.f32 %v8531_v11, %v9312_v31  ;;  %v8626_v49 = vpop.f32.mrb[51].mxu0 }
 0x265   : > { %v5702_v56 = vsel %vm5391_vm6, %v5701_v45, %v5700_v42  ;;  %v1512_v23 = vmax.f32 %v1116_v61, 0.0  ;;  %v1576_v16 = vmax.f32 %v1372_v48, 0.0  ;;  %v1364_v39 = vadd.f32 %v8531_v11, %v9313_v8 }
 0x266   : > { %v5704_v37 = vsel %vm5394_vm7, %v5703_v1, %v5702_v56  ;;  %v1510_v24 = vmax.f32 %v1108_v9, 0.0  ;;  %v1119_v36 = vadd.f32 %v8531_v11, %v9314_v0  ;;  %v8624_v28 = vadd.f32 %v8531_v11, %v9315_v52 }
 0x267   : > { %v5706_v21 = vsel %vm5397_vm8, %v5705_v47, %v5704_v37  ;;  %v1620_v55 = vmax.f32 %v1508_v30, %v1512_v23  ;;  %v1652_v44 = vmax.f32 %v1572_v14, %v1576_v16  ;;  %v1574_v6 = vmax.f32 %v1364_v39, 0.0  ;;  %v8645_v37 = vpop.f32.mrb[52].mxu0 }
 0x268   : > { %v5855_v63 = vpack.c.b16 %v5706_v21, %v5706_v21  ;;  %v1618_v58 = vmax.f32 %v1506_v22, %v1510_v24  ;;  %v1513_v5 = vmax.f32 %v1119_v36, 0.0  ;;  %v8649_v39 = vpop.f32.mrb[53].mxu0 }
 0x269   : > { %v2036_v33 = vcombine.high %v1620_v55, %v1620_v55  ;;  %v2043_v20 = vrot.slane %v1620_v55, %v7813_v29  ;;  %v2580_v7 = vcombine.high %v1652_v44, %v1652_v44  ;;  %v2587_v45 = vrot.slane %v1652_v44, %v7813_v29  ;;  %9318 = vst [vmem:[#allocation9_spill] sm:$0xff] %v8649_v39 }
 0x26a   : > { %5920 = vst.msk [vmem:[%s8013_s7 + $0x58] sm:$0xf] %vm5897_vm9, %v5855_v63  ;;  %v2002_v1 = vcombine.high %v1618_v58, %v1618_v58  ;;  %v8636_v30 = vmax.f32 %v1570_v54, %v1574_v6  ;;  %v8638_v14 = vmax.f32 %v1509_v53, %v1513_v5  ;;  %v2009_v31 = vrot.slane %v1618_v58, %v7813_v29  ;;  %v8647_v54 = vpop.f32.mrb[52].mxu1 }
 0x26b   : > { %v2050_v61 = vrot.slane %v2036_v33, %v7813_v29  ;;  %v2051_v48 = vcombine.high %v2043_v20, %v2043_v20  ;;  %v6263_v22 = vrot.slane %v2043_v20, 9  ;;  %v2594_v56 = vrot.slane %v2580_v7, %v7813_v29  ;;  %9317 = vst [vmem:[#allocation8_spill] sm:$0xff] %v8647_v54  ;;  %v8651_v39 = vpop.f32.mrb[53].mxu1 }
 0x26c   : > { %v2595_v47 = vcombine.high %v2587_v45, %v2587_v45  ;;  %v6391_v26 = vrot.slane %v2587_v45, 9  ;;  %v2016_v9 = vrot.slane %v2002_v1, %v7813_v29  ;;  %v2017_v33 = vcombine.high %v2009_v31, %v2009_v31  ;;  %9319 = vst [vmem:[#allocation10_spill] sm:$0xff] %v8651_v39 }
 0x26d   : > { %v2052_v53 = vcombine.high %v2050_v61, %v2050_v61  ;;  %v6264_v23 = vrot.slane %v2051_v48, 9  ;;  %v6265_v16 = vrot.slane %v2050_v61, 9  ;;  %v3914_v8 = vmax.f32 %v2043_v20, %v6263_v22 }
 0x26e   : > { %v2596_v21 = vcombine.high %v2594_v56, %v2594_v56  ;;  %v6392_v24 = vrot.slane %v2595_v47, 9  ;;  %v6393_v0 = vrot.slane %v2594_v56, 9  ;;  %v4042_v36 = vmax.f32 %v2587_v45, %v6391_v26 }
 0x26f   : > { %v6266_v52 = vrot.slane %v2052_v53, 9  ;;  %v3915_v63 = vmax.f32 %v2051_v48, %v6264_v23  ;;  %v3916_v55 = vmax.f32 %v2050_v61, %v6265_v16  ;;  %v6777_v44 = vpack.c.bf16 %v3914_v8, %v3914_v8 }
 0x270   : > { %v6394_v6 = vrot.slane %v2596_v21, 9  ;;  %v4043_v58 = vmax.f32 %v2595_v47, %v6392_v24  ;;  %v4044_v5 = vmax.f32 %v2594_v56, %v6393_v0  ;;  %v6905_v62 = vpack.c.bf16 %v4042_v36, %v4042_v36 }
 0x271   : > { %v3917_v7 = vmax.f32 %v2052_v53, %v6266_v52  ;;  %v6778_v1 = vpack.c.bf16 %v3915_v63, %v3915_v63  ;;  %v6779_v32 = vpack.c.bf16 %v3916_v55, %v3916_v55  ;;  %v5194_v50 = vunpack.c.l.b16 %v6777_v44 }
 0x272   : > { %v4045_v20 = vmax.f32 %v2596_v21, %v6394_v6  ;;  %v6906_v22 = vpack.c.bf16 %v4043_v58, %v4043_v58  ;;  %v6907_v42 = vpack.c.bf16 %v4044_v5, %v4044_v5  ;;  %v2018_v48 = vcombine.high %v2016_v9, %v2016_v9 }
 0x273   : > { %v6780_v17 = vpack.c.bf16 %v3917_v7, %v3917_v7  ;;  %v5195_v45 = vunpack.c.l.b16 %v6778_v1  ;;  %v5196_v26 = vunpack.c.l.b16 %v6779_v32  ;;  %v6255_v47 = vrot.slane %v2009_v31, 9 }
 0x274   : > { %v6908_v61 = vpack.c.bf16 %v4045_v20, %v4045_v20  ;;  %v5323_v23 = vunpack.c.l.b16 %v6906_v22  ;;  %v5324_v16 = vunpack.c.l.b16 %v6907_v42  ;;  %v6256_v24 = vrot.slane %v2017_v33, 9 }
 0x275   : > { %v8653_v56 = vunpack.c.l.b16 %v6780_v17  ;;  %v5511_v53 = vrot.slane %v5195_v45, 7  ;;  %v5513_v8 = vrot.slane %v5196_v26, 6  ;;  %v6257_v36 = vrot.slane %v2016_v9, 9 }
 0x276   : > { %v8655_v0 = vunpack.c.l.b16 %v6908_v61  ;;  %v5735_v21 = vrot.slane %v5323_v23, 7  ;;  %v8659_v52 = vadd.f32 %v8531_v11, %v8358_v25  ;;  %v5322_v63 = vunpack.c.l.b16 %v6905_v62  ;;  %v8676_v61 = vpop.f32.mrb[54].mxu0 }
 0x277   : > { %v5512_v32 = vsel %vm5379_vm2, %v5511_v53, %v5194_v50  ;;  %v6258_v55 = vrot.slane %v2018_v48, 9  ;;  %v3906_v44 = vmax.f32 %v2009_v31, %v6255_v47  ;;  %v5737_v6 = vrot.slane %v5324_v16, 6  ;;  %9320 = vst [vmem:[#allocation11_spill] sm:$0xff] %v8676_v61 }
 0x278   : > { %v8663_v42 = vsel %vm5382_vm3, %v5513_v8, %v5512_v32  ;;  %v3907_v58 = vmax.f32 %v2017_v33, %v6256_v24  ;;  %v5736_v5 = vsel %vm5379_vm2, %v5735_v21, %v5322_v63  ;;  %v3908_v1 = vmax.f32 %v2016_v9, %v6257_v36  ;;  %v8681_v63 = vpop.f32.mrb[54].mxu1 }
 0x279   : > { %v3909_v20 = vmax.f32 %v2018_v48, %v6258_v55  ;;  %v2546_v50 = vcombine.high %v8636_v30, %v8636_v30  ;;  %v2553_v62 = vrot.slane %v8636_v30, %v7813_v29  ;;  %v2053_v31 = vcombine.high %v8638_v14, %v8638_v14  ;;  %9321 = vst [vmem:[#allocation18_spill] sm:$0xff] %v8681_v63 }
 0x27a   : > { %v6770_v25 = vpack.c.bf16 %v3907_v58, %v3907_v58  ;;  %v6769_v22 = vpack.c.bf16 %v3906_v44, %v3906_v44  ;;  %v6771_v45 = vpack.c.bf16 %v3908_v1, %v3908_v1  ;;  %v2060_v33 = vrot.slane %v8638_v14, %v7813_v29 }
 0x27b   : > { %v6772_v26 = vpack.c.bf16 %v3909_v20, %v3909_v20  ;;  %v2560_v48 = vrot.slane %v2546_v50, %v7813_v29  ;;  %v2561_v23 = vcombine.high %v2553_v62, %v2553_v62  ;;  %v6383_v16 = vrot.slane %v2553_v62, 9 }
 0x27c   : > { %v5187_v9 = vunpack.c.l.b16 %v6770_v25  ;;  %v5738_v47 = vsel %vm5382_vm3, %v5737_v6, %v5736_v5  ;;  %v5188_v53 = vunpack.c.l.b16 %v6771_v45  ;;  %v2067_v30 = vrot.slane %v2053_v31, %v7813_v29 }
 0x27d   : > { %v2068_v8 = vcombine.high %v2060_v33, %v2060_v33  ;;  %v2562_v21 = vcombine.high %v2560_v48, %v2560_v48  ;;  %v6384_v36 = vrot.slane %v2561_v23, 9  ;;  %v6385_v32 = vrot.slane %v2560_v48, 9 }
 0x27e   : > { %v5497_v24 = vrot.slane %v5187_v9, 7  ;;  %v5186_v14 = vunpack.c.l.b16 %v6769_v22  ;;  %v5189_v55 = vunpack.c.l.b16 %v6772_v26  ;;  %v4034_v44 = vmax.f32 %v2553_v62, %v6383_v16 }
 0x27f   : > { %v2069_v58 = vcombine.high %v2067_v30, %v2067_v30  ;;  %v5499_v1 = vrot.slane %v5188_v53, 6  ;;  %v6386_v20 = vrot.slane %v2562_v21, 9  ;;  %v4035_v25 = vmax.f32 %v2561_v23, %v6384_v36 }
 0x280   : > { %v4036_v50 = vmax.f32 %v2560_v48, %v6385_v32  ;;  %v5498_v6 = vsel %vm5379_vm2, %v5497_v24, %v5186_v14  ;;  %v6897_v5 = vpack.c.bf16 %v4034_v44, %v4034_v44  ;;  %v6267_v45 = vrot.slane %v2060_v33, 9 }
 0x281   : > { %v6268_v31 = vrot.slane %v2068_v8, 9  ;;  %v4037_v7 = vmax.f32 %v2562_v21, %v6386_v20  ;;  %v6898_v9 = vpack.c.bf16 %v4035_v25, %v4035_v25  ;;  %v6269_v61 = vrot.slane %v2067_v30, 9 }
 0x282   : > { %v6899_v17 = vpack.c.bf16 %v4036_v50, %v4036_v50  ;;  %v5501_v39 = vrot.slane %v5189_v55, 5  ;;  %v6270_v54 = vrot.slane %v2069_v58, 9  ;;  %v3918_v63 = vmax.f32 %v2060_v33, %v6267_v45 }
 0x283   : > { %v3919_v22 = vmax.f32 %v2068_v8, %v6268_v31  ;;  %v6900_v26 = vpack.c.bf16 %v4037_v7, %v4037_v7  ;;  %v5315_v62 = vunpack.c.l.b16 %v6898_v9  ;;  %v3920_v53 = vmax.f32 %v2067_v30, %v6269_v61 }
 0x284   : > { %v8684_v16 = vunpack.c.l.b16 %v6899_v17  ;;  %v5500_v48 = vsel %vm5382_vm3, %v5499_v1, %v5498_v6  ;;  %v3921_v23 = vmax.f32 %v2069_v58, %v6270_v54  ;;  %v6781_v24 = vpack.c.bf16 %v3918_v63, %v3918_v63 }
 0x285   : > { %v6782_v36 = vpack.c.bf16 %v3919_v22, %v3919_v22  ;;  %v5314_v32 = vunpack.c.l.b16 %v6897_v5  ;;  %v8687_v14 = vunpack.c.l.b16 %v6900_v26  ;;  %v5721_v21 = vrot.slane %v5315_v62, 7  ;;  %v8710_v26 = vpop.f32.mrb[55].mxu0 }
 0x286   : > { %v6783_v44 = vpack.c.bf16 %v3920_v53, %v3920_v53  ;;  %v6784_v20 = vpack.c.bf16 %v3921_v23, %v3921_v23  ;;  %v5198_v55 = vunpack.c.l.b16 %v6781_v24  ;;  %v9322_v33 = vmax.f32 %v8624_v28, 0.0 }
 0x287   : > { %v5199_v25 = vunpack.c.l.b16 %v6782_v36  ;;  %v9323_v7 = vmax.f32 %v8589_v60, 0.0  ;;  %v8694_v61 = vsel %vm5379_vm2, %v5721_v21, %v5314_v32  ;;  %v5723_v54 = vrot.slane %v8684_v16, 6 }
 0x288   : > { %v5200_v30 = vunpack.c.l.b16 %v6783_v44  ;;  %v9324_v8 = vrot.slane %v8653_v56, 5  ;;  %v5725_v58 = vrot.slane %v8687_v14, 5  ;;  %v5201_v1 = vunpack.c.l.b16 %v6784_v20 }
 0x289   : > { %v1653_v17 = vmax.f32 %v9323_v7, %v9322_v33  ;;  %v5517_v50 = vrot.slane %v5198_v55, 4  ;;  %v9325_v28 = vrot.slane %v8655_v0, 5  ;;  %v5519_v6 = vrot.slane %v5199_v25, 3 }
 0x28a   : > { %v5516_v63 = vsel %vm5385_vm4, %v9324_v8, %v8663_v42  ;;  %v1511_v31 = vmax.f32 %v8659_v52, 0.0  ;;  %v5521_v22 = vrot.slane %v5200_v30, 2  ;;  %v5523_v56 = vrot.slane %v5201_v1, 1 }
 0x28b   : > { %v5740_v60 = vsel %vm5385_vm4, %v9325_v28, %v5738_v47  ;;  %v2597_v5 = vcombine.high %v1653_v17, %v1653_v17  ;;  %v2604_v45 = vrot.slane %v1653_v17, %v7813_v29  ;;  %v5518_v9 = vsel %vm5388_vm5, %v5517_v50, %v5516_v63  ;;  %v8720_v17 = vpop.f32.mrb[55].mxu1 }
 0x28c   : > { %v1367_v42 = vadd.f32 %v8531_v11, %v8368_v4  ;;  %v5520_v62 = vsel %vm5391_vm6, %v5519_v6, %v5518_v9  ;;  %v9326_v24 = vmax.f32 %v8597_v12, 0.0  ;;  %v5502_v36 = vsel %vm5385_vm4, %v5501_v39, %v5500_v48 }
 0x28d   : > { %v2611_v0 = vrot.slane %v2597_v5, %v7813_v29  ;;  %v2612_v47 = vcombine.high %v2604_v45, %v2604_v45  ;;  %v6395_v53 = vrot.slane %v2604_v45, 9  ;;  %v5522_v23 = vsel %vm5394_vm7, %v5521_v22, %v5520_v62 }
 0x28e   : > { %v1619_v52 = vmax.f32 %v9326_v24, %v1511_v31  ;;  %v1575_v32 = vmax.f32 %v1367_v42, 0.0  ;;  %v5524_v21 = vsel %vm5397_vm8, %v5523_v56, %v5522_v23  ;;  %v9327_v63 = vmax.f32 %v8608_v38, 0.0 }
 0x28f   : > { %v2613_v4 = vcombine.high %v2611_v0, %v2611_v0  ;;  %v6396_v44 = vrot.slane %v2612_v47, 9  ;;  %v6397_v20 = vrot.slane %v2611_v0, 9  ;;  %v5842_v55 = vpack.c.b16 %v5524_v21, %v5524_v21 }
 0x290   : > { %v4046_v25 = vmax.f32 %v2604_v45, %v6395_v53  ;;  %v2019_v33 = vcombine.high %v1619_v52, %v1619_v52  ;;  %v2026_v7 = vrot.slane %v1619_v52, %v7813_v29  ;;  %v1651_v1 = vmax.f32 %v9327_v63, %v1575_v32 }
 0x291   : > { %v6398_v30 = vrot.slane %v2613_v4, 9  ;;  %v4047_v8 = vmax.f32 %v2612_v47, %v6396_v44  ;;  %v4048_v12 = vmax.f32 %v2611_v0, %v6397_v20  ;;  %5907 = vst.msk [vmem:[%s8013_s7 + $0x24] sm:$0xf] %vm5897_vm9, %v5842_v55  ;;  %v1132_v16 = vadd.f32 %v8531_v11, %v8390_v41 }
 0x292   : > { %v6909_v39 = vpack.c.bf16 %v4046_v25, %v4046_v25  ;;  %v2033_v48 = vrot.slane %v2019_v33, %v7813_v29  ;;  %v2034_v50 = vcombine.high %v2026_v7, %v2026_v7  ;;  %v6259_v28 = vrot.slane %v2026_v7, 9 }
 0x293   : > { %v4049_v6 = vmax.f32 %v2613_v4, %v6398_v30  ;;  %v6910_v5 = vpack.c.bf16 %v4047_v8, %v4047_v8  ;;  %v6911_v45 = vpack.c.bf16 %v4048_v12, %v4048_v12  ;;  %v2563_v31 = vcombine.high %v1651_v1, %v1651_v1 }
 0x294   : > { %v5326_v9 = vunpack.c.l.b16 %v6909_v39  ;;  %v2035_v22 = vcombine.high %v2033_v48, %v2033_v48  ;;  %v6260_v56 = vrot.slane %v2034_v50, 9  ;;  %v6261_v42 = vrot.slane %v2033_v48, 9 }
 0x295   : > { %v6912_v62 = vpack.c.bf16 %v4049_v6, %v4049_v6  ;;  %v5327_v0 = vunpack.c.l.b16 %v6910_v5  ;;  %v5328_v47 = vunpack.c.l.b16 %v6911_v45  ;;  %v3910_v38 = vmax.f32 %v2026_v7, %v6259_v28 }
 0x296   : > { %v5741_v53 = vrot.slane %v5326_v9, 4  ;;  %v6262_v23 = vrot.slane %v2035_v22, 9  ;;  %v3911_v24 = vmax.f32 %v2034_v50, %v6260_v56  ;;  %v3912_v52 = vmax.f32 %v2033_v48, %v6261_v42 }
 0x297   : > { %v5329_v32 = vunpack.c.l.b16 %v6912_v62  ;;  %v5743_v21 = vrot.slane %v5327_v0, 3  ;;  %v5745_v44 = vrot.slane %v5328_v47, 2  ;;  %v6773_v20 = vpack.c.bf16 %v3910_v38, %v3910_v38 }
 0x298   : > { %v5742_v4 = vsel %vm5388_vm5, %v5741_v53, %v5740_v60  ;;  %v3913_v55 = vmax.f32 %v2035_v22, %v6262_v23  ;;  %v6774_v25 = vpack.c.bf16 %v3911_v24, %v3911_v24  ;;  %v6775_v33 = vpack.c.bf16 %v3912_v52, %v3912_v52 }
 0x299   : > { %v5744_v30 = vsel %vm5391_vm6, %v5743_v21, %v5742_v4  ;;  %v5747_v8 = vrot.slane %v5329_v32, 1  ;;  %v5190_v12 = vunpack.c.l.b16 %v6773_v20  ;;  %v2570_v63 = vrot.slane %v1651_v1, %v7813_v29  ;;  %v8742_v32 = vpop.f32.mrb[56].mxu0 }
 0x29a   : > { %v5746_v7 = vsel %vm5394_vm7, %v5745_v44, %v5744_v30  ;;  %v6776_v39 = vpack.c.bf16 %v3913_v55, %v3913_v55  ;;  %v5191_v48 = vunpack.c.l.b16 %v6774_v25  ;;  %v5192_v50 = vunpack.c.l.b16 %v6775_v33 }
 0x29b   : > { %v5748_v28 = vsel %vm5397_vm8, %v5747_v8, %v5746_v7  ;;  %v5503_v6 = vrot.slane %v5190_v12, 4  ;;  %v2577_v60 = vrot.slane %v2563_v31, %v7813_v29  ;;  %v2578_v5 = vcombine.high %v2570_v63, %v2570_v63  ;;  %v8760_v7 = vpop.f32.mrb[56].mxu1 }
 0x29c   : > { %v5858_v45 = vpack.c.b16 %v5748_v28, %v5748_v28  ;;  %v5193_v9 = vunpack.c.l.b16 %v6776_v39  ;;  %v5505_v22 = vrot.slane %v5191_v48, 3  ;;  %v5507_v56 = vrot.slane %v5192_v50, 2 }
 0x29d   : > { %v5504_v42 = vsel %vm5388_vm5, %v5503_v6, %v5502_v36  ;;  %v2579_v62 = vcombine.high %v2577_v60, %v2577_v60  ;;  %v6387_v1 = vrot.slane %v2570_v63, 9  ;;  %v6388_v0 = vrot.slane %v2578_v5, 9 }
 0x29e   : > { %v5724_v47 = vsel %vm5382_vm3, %v5723_v54, %v8694_v61  ;;  %5923 = vst.msk [vmem:[%s8013_s7 + $0x64] sm:$0xf] %vm5897_vm9, %v5858_v45  ;;  %v5506_v38 = vsel %vm5391_vm6, %v5505_v22, %v5504_v42  ;;  %v5509_v31 = vrot.slane %v5193_v9, 1  ;;  %v6389_v53 = vrot.slane %v2577_v60, 9  ;;  %v8767_v9 = vpop.f32.mrb[57].mxu0  ;;  %v8778_v42 = vpop.f32.mrb[57].mxu1 }
 0x29f   : > { %v5508_v23 = vsel %vm5394_vm7, %v5507_v56, %v5506_v38  ;;  %v6390_v24 = vrot.slane %v2579_v62, 9  ;;  %v4038_v52 = vmax.f32 %v2570_v63, %v6387_v1  ;;  %v4039_v36 = vmax.f32 %v2578_v5, %v6388_v0  ;;  %v9328_v0 = vld [vmem:[#allocation12_spill] sm:$0xff]  ;;  %v9329_v38 = vld [vmem:[#allocation13_spill] sm:$0xff] }
 0x2a0   : > { %v5510_v21 = vsel %vm5397_vm8, %v5509_v31, %v5508_v23  ;;  %v4040_v44 = vmax.f32 %v2577_v60, %v6389_v53  ;;  %v1388_v61 = vadd.f32 %v8531_v11, %v8408_v35  ;;  %v5726_v33 = vsel %vm5385_vm4, %v5725_v58, %v5724_v47  ;;  %v8789_v53 = vpop.f32.mrb[58].mxu1 }
 0x2a1   : > { %v5841_v54 = vpack.c.b16 %v5510_v21, %v5510_v21  ;;  %v4041_v20 = vmax.f32 %v2579_v62, %v6390_v24  ;;  %v6901_v4 = vpack.c.bf16 %v4038_v52, %v4038_v52  ;;  %v6902_v55 = vpack.c.bf16 %v4039_v36, %v4039_v36  ;;  %v9330_v24 = vld [vmem:[#allocation14_spill] sm:$0xff] }
 0x2a2   : > { %v6903_v25 = vpack.c.bf16 %v4040_v44, %v4040_v44  ;;  %v1124_v30 = vadd.f32 %v8531_v11, %v8415_v10  ;;  %v1380_v8 = vadd.f32 %v8531_v11, %v8426_v27  ;;  %v1135_v63 = vadd.f32 %v8531_v11, %v8435_v59  ;;  %v9331_v44 = vld [vmem:[#allocation15_spill] sm:$0xff] }
 0x2a3   : > { %5906 = vst.msk [vmem:[%s8013_s7 + $0x20] sm:$0xf] %vm5897_vm9, %v5841_v54  ;;  %v6904_v41 = vpack.c.bf16 %v4041_v20, %v4041_v20  ;;  %v5318_v12 = vunpack.c.l.b16 %v6901_v4  ;;  %v5319_v35 = vunpack.c.l.b16 %v6902_v55  ;;  %v1516_v14 = vmax.f32 %v1132_v16, 0.0 }
 0x2a4   : > { %v5320_v39 = vunpack.c.l.b16 %v6903_v25  ;;  %v1580_v48 = vmax.f32 %v1388_v61, 0.0  ;;  %v8764_v58 = vadd.f32 %v8531_v11, %v8437_v51  ;;  %v1514_v27 = vmax.f32 %v1124_v30, 0.0  ;;  %v9332_v61 = vld [vmem:[#allocation16_spill] sm:$0xff]  ;;  %v8803_v30 = vpop.f32.mrb[59].mxu1 }
 0x2a5   : > { %v5321_v10 = vunpack.c.l.b16 %v6904_v41  ;;  %v5727_v50 = vrot.slane %v5318_v12, 4  ;;  %v1578_v28 = vmax.f32 %v1380_v8, 0.0  ;;  %v5729_v6 = vrot.slane %v5319_v35, 3 }
 0x2a6   : > { %v5731_v60 = vrot.slane %v5320_v39, 2  ;;  %v1517_v5 = vmax.f32 %v1135_v63, 0.0  ;;  %v8772_v22 = vadd.f32 %v8531_v11, %v8449_v13  ;;  %v1148_v51 = vadd.f32 %v8531_v11, %v8468_v19  ;;  %v8787_v13 = vpop.f32.mrb[58].mxu0 }
 0x2a7   : > { %v5728_v59 = vsel %vm5388_vm5, %v5727_v50, %v5726_v33  ;;  %v1404_v56 = vadd.f32 %v8531_v11, %v8470_v40  ;;  %v5733_v1 = vrot.slane %v5321_v10, 1  ;;  %v8783_v47 = vadd.f32 %v8531_v11, %v9328_v0  ;;  %v8801_v20 = vpop.f32.mrb[59].mxu0 }
 0x2a8   : > { %v5730_v62 = vsel %vm5391_vm6, %v5729_v6, %v5728_v59  ;;  %v1140_v31 = vadd.f32 %v8531_v11, %v9329_v38  ;;  %v1520_v23 = vmax.f32 %v1148_v51, 0.0  ;;  %v1396_v52 = vadd.f32 %v8531_v11, %v9330_v24 }
 0x2a9   : > { %v5732_v19 = vsel %vm5394_vm7, %v5731_v60, %v5730_v62  ;;  %v1584_v40 = vmax.f32 %v1404_v56, 0.0  ;;  %v1151_v16 = vadd.f32 %v8531_v11, %v9331_v44  ;;  %v8799_v54 = vadd.f32 %v8531_v11, %v9332_v61 }
 0x2aa   : > { %v5734_v36 = vsel %vm5397_vm8, %v5733_v1, %v5732_v19  ;;  %v1518_v21 = vmax.f32 %v1140_v31, 0.0  ;;  %v1624_v55 = vmax.f32 %v1516_v14, %v1520_v23  ;;  %v1582_v33 = vmax.f32 %v1396_v52, 0.0  ;;  %v8820_v31 = vpop.f32.mrb[60].mxu0 }
 0x2ab   : > { %v5857_v4 = vpack.c.b16 %v5734_v36, %v5734_v36  ;;  %v1656_v25 = vmax.f32 %v1580_v48, %v1584_v40  ;;  %v1521_v35 = vmax.f32 %v1151_v16, 0.0  ;;  %v8824_v24 = vpop.f32.mrb[61].mxu0 }
 0x2ac   : > { %v1622_v12 = vmax.f32 %v1514_v27, %v1518_v21  ;;  %v2104_v63 = vcombine.high %v1624_v55, %v1624_v55  ;;  %v2111_v39 = vrot.slane %v1624_v55, %v7813_v29  ;;  %v8811_v14 = vmax.f32 %v1578_v28, %v1582_v33  ;;  %v8822_v28 = vpop.f32.mrb[60].mxu1  ;;  %9333 = vst [vmem:[#allocation12_spill] sm:$0xff] %v8824_v24 }
 0x2ad   : > { %5922 = vst.msk [vmem:[%s8013_s7 + $0x60] sm:$0xf] %vm5897_vm9, %v5857_v4  ;;  %v2648_v10 = vcombine.high %v1656_v25, %v1656_v25  ;;  %v2655_v50 = vrot.slane %v1656_v25, %v7813_v29  ;;  %v8813_v48 = vmax.f32 %v1517_v5, %v1521_v35  ;;  %v8826_v60 = vpop.f32.mrb[61].mxu1 }
 0x2ae   : > { %v2070_v6 = vcombine.high %v1622_v12, %v1622_v12  ;;  %v2118_v59 = vrot.slane %v2104_v63, %v7813_v29  ;;  %v2119_v51 = vcombine.high %v2111_v39, %v2111_v39  ;;  %v6279_v27 = vrot.slane %v2111_v39, 9  ;;  %9334 = vst [vmem:[#allocation13_spill] sm:$0xff] %v8826_v60 }
 0x2af   : > { %v2662_v56 = vrot.slane %v2648_v10, %v7813_v29  ;;  %v2663_v62 = vcombine.high %v2655_v50, %v2655_v50  ;;  %v6407_v1 = vrot.slane %v2655_v50, 9  ;;  %v2077_v0 = vrot.slane %v1622_v12, %v7813_v29 }
 0x2b0   : > { %v2084_v38 = vrot.slane %v2070_v6, %v7813_v29  ;;  %v2120_v5 = vcombine.high %v2118_v59, %v2118_v59  ;;  %v6280_v19 = vrot.slane %v2119_v51, 9  ;;  %v6281_v23 = vrot.slane %v2118_v59, 9 }
 0x2b1   : > { %v3930_v40 = vmax.f32 %v2111_v39, %v6279_v27  ;;  %v2664_v52 = vcombine.high %v2662_v56, %v2662_v56  ;;  %v6408_v36 = vrot.slane %v2663_v62, 9  ;;  %v6409_v21 = vrot.slane %v2662_v56, 9 }
 0x2b2   : > { %v4058_v44 = vmax.f32 %v2655_v50, %v6407_v1  ;;  %v6282_v16 = vrot.slane %v2120_v5, 9  ;;  %v3931_v61 = vmax.f32 %v2119_v51, %v6280_v19  ;;  %v3932_v4 = vmax.f32 %v2118_v59, %v6281_v23 }
 0x2b3   : > { %v6793_v55 = vpack.c.bf16 %v3930_v40, %v3930_v40  ;;  %v6410_v25 = vrot.slane %v2664_v52, 9  ;;  %v4059_v33 = vmax.f32 %v2663_v62, %v6408_v36  ;;  %v4060_v12 = vmax.f32 %v2662_v56, %v6409_v21 }
 0x2b4   : > { %v2085_v35 = vcombine.high %v2077_v0, %v2077_v0  ;;  %v3933_v63 = vmax.f32 %v2120_v5, %v6282_v16  ;;  %v6794_v10 = vpack.c.bf16 %v3931_v61, %v3931_v61  ;;  %v6795_v6 = vpack.c.bf16 %v3932_v4, %v3932_v4 }
 0x2b5   : > { %v6921_v41 = vpack.c.bf16 %v4058_v44, %v4058_v44  ;;  %v5210_v8 = vunpack.c.l.b16 %v6793_v55  ;;  %v4061_v39 = vmax.f32 %v2664_v52, %v6410_v25  ;;  %v6922_v27 = vpack.c.bf16 %v4059_v33, %v4059_v33 }
 0x2b6   : > { %v6923_v45 = vpack.c.bf16 %v4060_v12, %v4060_v12  ;;  %v6796_v24 = vpack.c.bf16 %v3933_v63, %v3933_v63  ;;  %v5211_v50 = vunpack.c.l.b16 %v6794_v10  ;;  %v5212_v1 = vunpack.c.l.b16 %v6795_v6 }
 0x2b7   : > { %v2086_v51 = vcombine.high %v2084_v38, %v2084_v38  ;;  %v6924_v59 = vpack.c.bf16 %v4061_v39, %v4061_v39  ;;  %v5339_v19 = vunpack.c.l.b16 %v6922_v27  ;;  %v6271_v62 = vrot.slane %v2077_v0, 9 }
 0x2b8   : > { %v5340_v23 = vunpack.c.l.b16 %v6923_v45  ;;  %v8828_v56 = vunpack.c.l.b16 %v6796_v24  ;;  %v5539_v5 = vrot.slane %v5211_v50, 7  ;;  %v5541_v40 = vrot.slane %v5212_v1, 6  ;;  %v8851_v1 = vpop.f32.mrb[62].mxu0 }
 0x2b9   : > { %v6272_v36 = vrot.slane %v2085_v35, 9  ;;  %v8830_v21 = vunpack.c.l.b16 %v6924_v59  ;;  %v5763_v52 = vrot.slane %v5339_v19, 7  ;;  %v6273_v44 = vrot.slane %v2084_v38, 9  ;;  %9335 = vst [vmem:[#allocation14_spill] sm:$0xff] %v8851_v1 }
 0x2ba   : > { %v8834_v16 = vadd.f32 %v8531_v11, %v8535_v3  ;;  %v5540_v61 = vsel %vm5379_vm2, %v5539_v5, %v5210_v8  ;;  %v5338_v4 = vunpack.c.l.b16 %v6921_v41  ;;  %v6274_v55 = vrot.slane %v2086_v51, 9 }
 0x2bb   : > { %v3922_v25 = vmax.f32 %v2077_v0, %v6271_v62  ;;  %v8838_v45 = vsel %vm5382_vm3, %v5541_v40, %v5540_v61  ;;  %v5765_v33 = vrot.slane %v5340_v23, 6  ;;  %v3923_v12 = vmax.f32 %v2085_v35, %v6272_v36  ;;  %v8856_v61 = vpop.f32.mrb[62].mxu1 }
 0x2bc   : > { %v5764_v63 = vsel %vm5379_vm2, %v5763_v52, %v5338_v4  ;;  %v3924_v6 = vmax.f32 %v2084_v38, %v6273_v44  ;;  %v3925_v39 = vmax.f32 %v2086_v51, %v6274_v55  ;;  %v2614_v3 = vcombine.high %v8811_v14, %v8811_v14  ;;  %9336 = vst [vmem:[#allocation15_spill] sm:$0xff] %v8856_v61 }
 0x2bd   : > { %v6786_v11 = vpack.c.bf16 %v3923_v12, %v3923_v12  ;;  %v2621_v8 = vrot.slane %v8811_v14, %v7813_v29  ;;  %v2121_v41 = vcombine.high %v8813_v48, %v8813_v48  ;;  %v6785_v0 = vpack.c.bf16 %v3922_v25, %v3922_v25 }
 0x2be   : > { %v6787_v27 = vpack.c.bf16 %v3924_v6, %v3924_v6  ;;  %v6788_v50 = vpack.c.bf16 %v3925_v39, %v3925_v39  ;;  %v2128_v35 = vrot.slane %v8813_v48, %v7813_v29  ;;  %v2628_v51 = vrot.slane %v2614_v3, %v7813_v29 }
 0x2bf   : > { %v5203_v38 = vunpack.c.l.b16 %v6786_v11  ;;  %v2629_v59 = vcombine.high %v2621_v8, %v2621_v8  ;;  %v6399_v19 = vrot.slane %v2621_v8, 9  ;;  %v5766_v23 = vsel %vm5382_vm3, %v5765_v33, %v5764_v63 }
 0x2c0   : > { %v5204_v62 = vunpack.c.l.b16 %v6787_v27  ;;  %v2135_v14 = vrot.slane %v2121_v41, %v7813_v29  ;;  %v2136_v5 = vcombine.high %v2128_v35, %v2128_v35  ;;  %v2630_v36 = vcombine.high %v2628_v51, %v2628_v51 }
 0x2c1   : > { %v5525_v40 = vrot.slane %v5203_v38, 7  ;;  %v6400_v52 = vrot.slane %v2629_v59, 9  ;;  %v6401_v44 = vrot.slane %v2628_v51, 9  ;;  %v5202_v48 = vunpack.c.l.b16 %v6785_v0 }
 0x2c2   : > { %v5205_v4 = vunpack.c.l.b16 %v6788_v50  ;;  %v4050_v55 = vmax.f32 %v2621_v8, %v6399_v19  ;;  %v2137_v25 = vcombine.high %v2135_v14, %v2135_v14  ;;  %v5527_v12 = vrot.slane %v5204_v62, 6 }
 0x2c3   : > { %v6402_v6 = vrot.slane %v2630_v36, 9  ;;  %v4051_v39 = vmax.f32 %v2629_v59, %v6400_v52  ;;  %v4052_v11 = vmax.f32 %v2628_v51, %v6401_v44  ;;  %v5526_v33 = vsel %vm5379_vm2, %v5525_v40, %v5202_v48 }
 0x2c4   : > { %v6913_v63 = vpack.c.bf16 %v4050_v55, %v4050_v55  ;;  %v6283_v3 = vrot.slane %v2128_v35, 9  ;;  %v6284_v41 = vrot.slane %v2136_v5, 9  ;;  %v6285_v24 = vrot.slane %v2135_v14, 9 }
 0x2c5   : > { %v4053_v27 = vmax.f32 %v2630_v36, %v6402_v6  ;;  %v6914_v38 = vpack.c.bf16 %v4051_v39, %v4051_v39  ;;  %v6915_v10 = vpack.c.bf16 %v4052_v11, %v4052_v11  ;;  %v5529_v1 = vrot.slane %v5205_v4, 5 }
 0x2c6   : > { %v6286_v60 = vrot.slane %v2137_v25, 9  ;;  %v3934_v61 = vmax.f32 %v2128_v35, %v6283_v3  ;;  %v3935_v0 = vmax.f32 %v2136_v5, %v6284_v41  ;;  %v3936_v62 = vmax.f32 %v2135_v14, %v6285_v24 }
 0x2c7   : > { %v6916_v50 = vpack.c.bf16 %v4053_v27, %v4053_v27  ;;  %v5331_v8 = vunpack.c.l.b16 %v6914_v38  ;;  %v8859_v19 = vunpack.c.l.b16 %v6915_v10  ;;  %v5528_v51 = vsel %vm5382_vm3, %v5527_v12, %v5526_v33 }
 0x2c8   : > { %v3937_v59 = vmax.f32 %v2137_v25, %v6286_v60  ;;  %v6797_v40 = vpack.c.bf16 %v3934_v61, %v3934_v61  ;;  %v6798_v52 = vpack.c.bf16 %v3935_v0, %v3935_v0  ;;  %v5330_v44 = vunpack.c.l.b16 %v6913_v63 }
 0x2c9   : > { %v8862_v48 = vunpack.c.l.b16 %v6916_v50  ;;  %v5749_v36 = vrot.slane %v5331_v8, 7  ;;  %v6799_v55 = vpack.c.bf16 %v3936_v62, %v3936_v62  ;;  %v9337_v35 = vmax.f32 %v8799_v54, 0.0  ;;  %v8883_v50 = vld [vmem:[#allocation4] ss:$0 sm:$0xff]  ;;  %v8887_v8 = vpop.f32.mrb[63].mxu0 }
 0x2ca   : > { %v6800_v6 = vpack.c.bf16 %v3937_v59, %v3937_v59  ;;  %v5214_v4 = vunpack.c.l.b16 %v6797_v40  ;;  %v5215_v39 = vunpack.c.l.b16 %v6798_v52  ;;  %v9338_v5 = vmax.f32 %v8764_v58, 0.0 }
 0x2cb   : > { %v8869_v24 = vsel %vm5379_vm2, %v5749_v36, %v5330_v44  ;;  %v5751_v60 = vrot.slane %v8859_v19, 6  ;;  %v5216_v14 = vunpack.c.l.b16 %v6799_v55  ;;  %v9339_v61 = vrot.slane %v8828_v56, 5 }
 0x2cc   : > { %v1657_v10 = vmax.f32 %v9338_v5, %v9337_v35  ;;  %v5753_v12 = vrot.slane %v8862_v48, 5  ;;  %v5217_v11 = vunpack.c.l.b16 %v6800_v6  ;;  %v5545_v33 = vrot.slane %v5214_v4, 4 }
 0x2cd   : > { %v5544_v25 = vsel %vm5385_vm4, %v9339_v61, %v8838_v45  ;;  %v9340_v54 = vrot.slane %v8830_v21, 5  ;;  %v5547_v63 = vrot.slane %v5215_v39, 3  ;;  %v1519_v27 = vmax.f32 %v8834_v16, 0.0 }
 0x2ce   : > { %v2665_v3 = vcombine.high %v1657_v10, %v1657_v10  ;;  %v2672_v41 = vrot.slane %v1657_v10, %v7813_v29  ;;  %v5546_v38 = vsel %vm5388_vm5, %v5545_v33, %v5544_v25  ;;  %v5549_v0 = vrot.slane %v5216_v14, 2  ;;  %v8897_v14 = vpop.f32.mrb[63].mxu1 }
 0x2cf   : > { %v5768_v58 = vsel %vm5385_vm4, %v9340_v54, %v5766_v23  ;;  %v5551_v56 = vrot.slane %v5217_v11, 1  ;;  %v1399_v45 = vadd.f32 %v8883_v50, %v8545_v15  ;;  %v5548_v21 = vsel %vm5391_vm6, %v5547_v63, %v5546_v38 }
 0x2d0   : > { %v2679_v23 = vrot.slane %v2665_v3, %v7813_v29  ;;  %v2680_v62 = vcombine.high %v2672_v41, %v2672_v41  ;;  %v6411_v59 = vrot.slane %v2672_v41, 9  ;;  %v5550_v40 = vsel %vm5394_vm7, %v5549_v0, %v5548_v21 }
 0x2d1   : > { %v9341_v16 = vmax.f32 %v8772_v22, 0.0  ;;  %v5530_v44 = vsel %vm5385_vm4, %v5529_v1, %v5528_v51  ;;  %v1583_v36 = vmax.f32 %v1399_v45, 0.0  ;;  %v5552_v55 = vsel %vm5397_vm8, %v5551_v56, %v5550_v40 }
 0x2d2   : > { %v2681_v15 = vcombine.high %v2679_v23, %v2679_v23  ;;  %v6412_v6 = vrot.slane %v2680_v62, 9  ;;  %v6413_v4 = vrot.slane %v2679_v23, 9  ;;  %v5844_v39 = vpack.c.b16 %v5552_v55, %v5552_v55 }
 0x2d3   : > { %v1623_v52 = vmax.f32 %v9341_v16, %v1519_v27  ;;  %v4062_v35 = vmax.f32 %v2672_v41, %v6411_v59  ;;  %v9342_v11 = vmax.f32 %v8783_v47, 0.0  ;;  %v1164_v19 = vadd.f32 %v8883_v50, %v8567_v34 }
 0x2d4   : > { %v6414_v61 = vrot.slane %v2681_v15, 9  ;;  %v4063_v25 = vmax.f32 %v2680_v62, %v6412_v6  ;;  %v4064_v22 = vmax.f32 %v2679_v23, %v6413_v4  ;;  %5909 = vst.msk [vmem:[%s8013_s7 + $0x2c] sm:$0xf] %vm5897_vm9, %v5844_v39  ;;  %v8937_v48 = vadd.f32 %v8883_v50, %v8614_v43  ;;  %v9343_v43 = vld [vmem:[#allocation8_spill] sm:$0xff] }
 0x2d5   : > { %v2087_v5 = vcombine.high %v1623_v52, %v1623_v52  ;;  %v2094_v10 = vrot.slane %v1623_v52, %v7813_v29  ;;  %v1655_v33 = vmax.f32 %v9342_v11, %v1583_v36  ;;  %v6925_v1 = vpack.c.bf16 %v4062_v35, %v4062_v35 }
 0x2d6   : > { %v4065_v3 = vmax.f32 %v2681_v15, %v6414_v61  ;;  %v6926_v41 = vpack.c.bf16 %v4063_v25, %v4063_v25  ;;  %v6927_v27 = vpack.c.bf16 %v4064_v22, %v4064_v22 }
 0x2d7   : > { %v2101_v51 = vrot.slane %v2087_v5, %v7813_v29  ;;  %v2102_v54 = vcombine.high %v2094_v10, %v2094_v10  ;;  %v6275_v63 = vrot.slane %v2094_v10, 9  ;;  %v2631_v38 = vcombine.high %v1655_v33, %v1655_v33 }
 0x2d8   : > { %v5342_v0 = vunpack.c.l.b16 %v6925_v1  ;;  %v6928_v62 = vpack.c.bf16 %v4065_v3, %v4065_v3  ;;  %v5343_v23 = vunpack.c.l.b16 %v6926_v41  ;;  %v5344_v59 = vunpack.c.l.b16 %v6927_v27 }
 0x2d9   : > { %v2103_v56 = vcombine.high %v2101_v51, %v2101_v51  ;;  %v6276_v45 = vrot.slane %v2102_v54, 9  ;;  %v6277_v21 = vrot.slane %v2101_v51, 9  ;;  %v3926_v47 = vmax.f32 %v2094_v10, %v6275_v63 }
 0x2da   : > { %v5769_v40 = vrot.slane %v5342_v0, 4  ;;  %v5345_v55 = vunpack.c.l.b16 %v6928_v62  ;;  %v5771_v6 = vrot.slane %v5343_v23, 3  ;;  %v5773_v4 = vrot.slane %v5344_v59, 2 }
 0x2db   : > { %v6278_v16 = vrot.slane %v2103_v56, 9  ;;  %v3927_v52 = vmax.f32 %v2102_v54, %v6276_v45  ;;  %v3928_v36 = vmax.f32 %v2101_v51, %v6277_v21  ;;  %v6789_v39 = vpack.c.bf16 %v3926_v47, %v3926_v47 }
 0x2dc   : > { %v5770_v15 = vsel %vm5388_vm5, %v5769_v40, %v5768_v58  ;;  %v5775_v22 = vrot.slane %v5345_v55, 1  ;;  %v2638_v1 = vrot.slane %v1655_v33, %v7813_v29  ;;  %v2645_v58 = vrot.slane %v2631_v38, %v7813_v29 }
 0x2dd   : > { %v3929_v35 = vmax.f32 %v2103_v56, %v6278_v16  ;;  %v6790_v5 = vpack.c.bf16 %v3927_v52, %v3927_v52  ;;  %v6791_v61 = vpack.c.bf16 %v3928_v36, %v3928_v36  ;;  %v5772_v25 = vsel %vm5391_vm6, %v5771_v6, %v5770_v15 }
 0x2de   : > { %v5206_v11 = vunpack.c.l.b16 %v6789_v39  ;;  %v5774_v10 = vsel %vm5394_vm7, %v5773_v4, %v5772_v25  ;;  %v2646_v27 = vcombine.high %v2638_v1, %v2638_v1  ;;  %v2647_v23 = vcombine.high %v2645_v58, %v2645_v58 }
 0x2df   : > { %v6792_v63 = vpack.c.bf16 %v3929_v35, %v3929_v35  ;;  %v5207_v51 = vunpack.c.l.b16 %v6790_v5  ;;  %v5208_v54 = vunpack.c.l.b16 %v6791_v61  ;;  %v5776_v3 = vsel %vm5397_vm8, %v5775_v22, %v5774_v10 }
 0x2e0   : > { %v5531_v41 = vrot.slane %v5206_v11, 4  ;;  %v5860_v0 = vpack.c.b16 %v5776_v3, %v5776_v3  ;;  %v6403_v33 = vrot.slane %v2638_v1, 9  ;;  %v6404_v59 = vrot.slane %v2646_v27, 9 }
 0x2e1   : > { %v5209_v56 = vunpack.c.l.b16 %v6792_v63  ;;  %v5533_v45 = vrot.slane %v5207_v51, 3  ;;  %v5535_v21 = vrot.slane %v5208_v54, 2  ;;  %v5752_v47 = vsel %vm5382_vm3, %v5751_v60, %v8869_v24 }
 0x2e2   : > { %v5532_v62 = vsel %vm5388_vm5, %v5531_v41, %v5530_v44  ;;  %5925 = vst.msk [vmem:[%s8013_s7 + $0x6c] sm:$0xf] %vm5897_vm9, %v5860_v0  ;;  %v6405_v16 = vrot.slane %v2645_v58, 9  ;;  %v6406_v36 = vrot.slane %v2647_v23, 9  ;;  %v4054_v55 = vmax.f32 %v2638_v1, %v6403_v33 }
 0x2e3   : > { %v5534_v40 = vsel %vm5391_vm6, %v5533_v45, %v5532_v62  ;;  %v5537_v38 = vrot.slane %v5209_v56, 1  ;;  %v4055_v44 = vmax.f32 %v2646_v27, %v6404_v59  ;;  %v1420_v24 = vadd.f32 %v8883_v50, %v8585_v57  ;;  %v9345_v59 = vld [vmem:[#allocation9_spill] sm:$0xff] }
 0x2e4   : > { %v5536_v52 = vsel %vm5394_vm7, %v5535_v21, %v5534_v40  ;;  %v4056_v4 = vmax.f32 %v2645_v58, %v6405_v16  ;;  %v4057_v39 = vmax.f32 %v2647_v23, %v6406_v36  ;;  %v6917_v15 = vpack.c.bf16 %v4054_v55, %v4054_v55  ;;  %v9344_v23 = vld [vmem:[#allocation17_spill] sm:$0xff]  ;;  %v9346_v16 = vld [vmem:[#allocation10_spill] sm:$0xff]  ;;  %v9347_v55 = vld [vmem:[#allocation11_spill] sm:$0xff] }
 0x2e5   : > { %v5538_v6 = vsel %vm5397_vm8, %v5537_v38, %v5536_v52  ;;  %v6918_v35 = vpack.c.bf16 %v4055_v44, %v4055_v44  ;;  %v5754_v61 = vsel %vm5385_vm4, %v5753_v12, %v5752_v47  ;;  %v1156_v25 = vadd.f32 %v8883_v50, %v8592_v46 }
 0x2e6   : > { %v5843_v60 = vpack.c.b16 %v5538_v6, %v5538_v6  ;;  %v6919_v5 = vpack.c.bf16 %v4056_v4, %v4056_v4  ;;  %v1412_v22 = vadd.f32 %v8883_v50, %v8603_v18  ;;  %v6920_v34 = vpack.c.bf16 %v4057_v39, %v4057_v39  ;;  %v9348_v6 = vld [vmem:[#allocation18_spill] sm:$0xff] }
 0x2e7   : > { %v5334_v11 = vunpack.c.l.b16 %v6917_v15  ;;  %v5335_v57 = vunpack.c.l.b16 %v6918_v35  ;;  %v1167_v1 = vadd.f32 %v8883_v50, %v8612_v2  ;;  %v1524_v63 = vmax.f32 %v1164_v19, 0.0 }
 0x2e8   : > { %5908 = vst.msk [vmem:[%s8013_s7 + $0x28] sm:$0xf] %vm5897_vm9, %v5843_v60  ;;  %v5336_v10 = vunpack.c.l.b16 %v6919_v5  ;;  %v1588_v51 = vmax.f32 %v1420_v24, 0.0  ;;  %v5337_v12 = vunpack.c.l.b16 %v6920_v34  ;;  %v1522_v54 = vmax.f32 %v1156_v25, 0.0 }
 0x2e9   : > { %v5755_v46 = vrot.slane %v5334_v11, 4  ;;  %v1586_v3 = vmax.f32 %v1412_v22, 0.0  ;;  %v5757_v18 = vrot.slane %v5335_v57, 3  ;;  %v1525_v58 = vmax.f32 %v1167_v1, 0.0 }
 0x2ea   : > { %v5759_v41 = vrot.slane %v5336_v10, 2  ;;  %v1589_v27 = vmax.f32 %v8937_v48, 0.0  ;;  %v8943_v2 = vadd.f32 %v8883_v50, %v8626_v49  ;;  %v1180_v56 = vadd.f32 %v8883_v50, %v8645_v37 }
 0x2eb   : > { %v5756_v0 = vsel %vm5388_vm5, %v5755_v46, %v5754_v61  ;;  %v1436_v45 = vadd.f32 %v8883_v50, %v9343_v43  ;;  %v5761_v62 = vrot.slane %v5337_v12, 1  ;;  %v8952_v33 = vadd.f32 %v8883_v50, %v9344_v23 }
 0x2ec   : > { %v5758_v21 = vsel %vm5391_vm6, %v5757_v18, %v5756_v0  ;;  %v1172_v47 = vadd.f32 %v8883_v50, %v9345_v59  ;;  %v1528_v49 = vmax.f32 %v1180_v56, 0.0  ;;  %v1428_v37 = vadd.f32 %v8883_v50, %v9346_v16 }
 0x2ed   : > { %v5760_v40 = vsel %vm5394_vm7, %v5759_v41, %v5758_v21  ;;  %v1592_v38 = vmax.f32 %v1436_v45, 0.0  ;;  %v1183_v44 = vadd.f32 %v8883_v50, %v9347_v55  ;;  %v8964_v4 = vadd.f32 %v8883_v50, %v9348_v6 }
 0x2ee   : > { %v5762_v52 = vsel %vm5397_vm8, %v5761_v62, %v5760_v40  ;;  %v1526_v36 = vmax.f32 %v1172_v47, 0.0  ;;  %v1628_v24 = vmax.f32 %v1524_v63, %v1528_v49  ;;  %v1590_v39 = vmax.f32 %v1428_v37, 0.0 }
 0x2ef   : > { %v5859_v19 = vpack.c.b16 %v5762_v52, %v5762_v52  ;;  %v1660_v60 = vmax.f32 %v1588_v51, %v1592_v38  ;;  %v1523_v15 = vmax.f32 %v8943_v2, 0.0  ;;  %v1587_v35 = vmax.f32 %v8952_v33, 0.0 }
 0x2f0   : > { %v1626_v5 = vmax.f32 %v1522_v54, %v1526_v36  ;;  %v1529_v61 = vmax.f32 %v1183_v44, 0.0  ;;  %v2172_v25 = vcombine.high %v1628_v24, %v1628_v24  ;;  %v2179_v22 = vrot.slane %v1628_v24, %v7813_v29 }
 0x2f1   : > { %5924 = vst.msk [vmem:[%s8013_s7 + $0x68] sm:$0xf] %vm5897_vm9, %v5859_v19  ;;  %v2716_v34 = vcombine.high %v1660_v60, %v1660_v60  ;;  %v2723_v11 = vrot.slane %v1660_v60, %v7813_v29  ;;  %v8972_v1 = vmax.f32 %v1586_v3, %v1590_v39  ;;  %v1593_v63 = vmax.f32 %v8964_v4, 0.0 }
 0x2f2   : > { %v2138_v57 = vcombine.high %v1626_v5, %v1626_v5  ;;  %v8974_v10 = vmax.f32 %v1525_v58, %v1529_v61  ;;  %v2186_v51 = vrot.slane %v2172_v25, %v7813_v29  ;;  %v2187_v12 = vcombine.high %v2179_v22, %v2179_v22 }
 0x2f3   : > { %v6295_v46 = vrot.slane %v2179_v22, 9  ;;  %v2730_v54 = vrot.slane %v2716_v34, %v7813_v29  ;;  %v2731_v18 = vcombine.high %v2723_v11, %v2723_v11  ;;  %v6423_v41 = vrot.slane %v2723_v11, 9 }
 0x2f4   : > { %v2145_v0 = vrot.slane %v1626_v5, %v7813_v29  ;;  %v2152_v56 = vrot.slane %v2138_v57, %v7813_v29  ;;  %v2188_v43 = vcombine.high %v2186_v51, %v2186_v51  ;;  %v6296_v45 = vrot.slane %v2187_v12, 9 }
 0x2f5   : > { %v6297_v3 = vrot.slane %v2186_v51, 9  ;;  %v3946_v21 = vmax.f32 %v2179_v22, %v6295_v46  ;;  %v2732_v58 = vcombine.high %v2730_v54, %v2730_v54  ;;  %v6424_v62 = vrot.slane %v2731_v18, 9 }
 0x2f6   : > { %v6425_v23 = vrot.slane %v2730_v54, 9  ;;  %v4074_v59 = vmax.f32 %v2723_v11, %v6423_v41  ;;  %v6298_v47 = vrot.slane %v2188_v43, 9  ;;  %v3947_v40 = vmax.f32 %v2187_v12, %v6296_v45 }
 0x2f7   : > { %v3948_v49 = vmax.f32 %v2186_v51, %v6297_v3  ;;  %v6809_v38 = vpack.c.bf16 %v3946_v21, %v3946_v21  ;;  %v6426_v16 = vrot.slane %v2732_v58, 9  ;;  %v4075_v37 = vmax.f32 %v2731_v18, %v6424_v62 }
 0x2f8   : > { %v4076_v52 = vmax.f32 %v2730_v54, %v6425_v23  ;;  %v2153_v36 = vcombine.high %v2145_v0, %v2145_v0  ;;  %v3949_v55 = vmax.f32 %v2188_v43, %v6298_v47  ;;  %v6810_v44 = vpack.c.bf16 %v3947_v40, %v3947_v40 }
 0x2f9   : > { %v6811_v6 = vpack.c.bf16 %v3948_v49, %v3948_v49  ;;  %v6937_v19 = vpack.c.bf16 %v4074_v59, %v4074_v59  ;;  %v5226_v24 = vunpack.c.l.b16 %v6809_v38  ;;  %v4077_v60 = vmax.f32 %v2732_v58, %v6426_v16 }
 0x2fa   : > { %v6938_v39 = vpack.c.bf16 %v4075_v37, %v4075_v37  ;;  %v6939_v5 = vpack.c.bf16 %v4076_v52, %v4076_v52  ;;  %v6812_v61 = vpack.c.bf16 %v3949_v55, %v3949_v55  ;;  %v5227_v25 = vunpack.c.l.b16 %v6810_v44 }
 0x2fb   : > { %v5228_v22 = vunpack.c.l.b16 %v6811_v6  ;;  %v2154_v34 = vcombine.high %v2152_v56, %v2152_v56  ;;  %v6940_v11 = vpack.c.bf16 %v4077_v60, %v4077_v60  ;;  %v6287_v12 = vrot.slane %v2145_v0, 9 }
 0x2fc   : > { %v5355_v57 = vunpack.c.l.b16 %v6938_v39  ;;  %v5356_v51 = vunpack.c.l.b16 %v6939_v5  ;;  %v8981_v46 = vunpack.c.l.b16 %v6812_v61  ;;  %v5567_v54 = vrot.slane %v5227_v25, 7 }
 0x2fd   : > { %v5569_v18 = vrot.slane %v5228_v22, 6  ;;  %v6288_v41 = vrot.slane %v2153_v36, 9  ;;  %v8983_v43 = vunpack.c.l.b16 %v6940_v11  ;;  %v6289_v3 = vrot.slane %v2152_v56, 9 }
 0x2fe   : > { %v5791_v45 = vrot.slane %v5355_v57, 7  ;;  %v8987_v21 = vadd.f32 %v8883_v50, %v8710_v26  ;;  %v5568_v58 = vsel %vm5379_vm2, %v5567_v54, %v5226_v24  ;;  %v5354_v62 = vunpack.c.l.b16 %v6937_v19 }
 0x2ff   : > { %v6290_v23 = vrot.slane %v2154_v34, 9  ;;  %v3938_v59 = vmax.f32 %v2145_v0, %v6287_v12  ;;  %v8991_v47 = vsel %vm5382_vm3, %v5569_v18, %v5568_v58  ;;  %v5571_v40 = vrot.slane %v8981_v46, 5 }
 0x300   : > { %v5793_v49 = vrot.slane %v5356_v51, 6  ;;  %v3939_v38 = vmax.f32 %v2153_v36, %v6288_v41  ;;  %v5792_v16 = vsel %vm5379_vm2, %v5791_v45, %v5354_v62  ;;  %v5795_v37 = vrot.slane %v8983_v43, 5 }
 0x301   : > { %v3940_v52 = vmax.f32 %v2152_v56, %v6289_v3  ;;  %v3941_v55 = vmax.f32 %v2154_v34, %v6290_v23  ;;  %v2682_v44 = vcombine.high %v8972_v1, %v8972_v1  ;;  %v2689_v0 = vrot.slane %v8972_v1, %v7813_v29 }
 0x302   : > { %v6802_v26 = vpack.c.bf16 %v3939_v38, %v3939_v38  ;;  %v2189_v6 = vcombine.high %v8974_v10, %v8974_v10  ;;  %v6801_v19 = vpack.c.bf16 %v3938_v59, %v3938_v59  ;;  %v2196_v36 = vrot.slane %v8974_v10, %v7813_v29 }
 0x303   : > { %v6803_v24 = vpack.c.bf16 %v3940_v52, %v3940_v52  ;;  %v6804_v60 = vpack.c.bf16 %v3941_v55, %v3941_v55  ;;  %v2696_v56 = vrot.slane %v2682_v44, %v7813_v29  ;;  %v2697_v5 = vcombine.high %v2689_v0, %v2689_v0 }
 0x304   : > { %v5219_v39 = vunpack.c.l.b16 %v6802_v26  ;;  %v6415_v61 = vrot.slane %v2689_v0, 9  ;;  %v5794_v25 = vsel %vm5382_vm3, %v5793_v49, %v5792_v16  ;;  %v2203_v34 = vrot.slane %v2189_v6, %v7813_v29 }
 0x305   : > { %v5220_v22 = vunpack.c.l.b16 %v6803_v24  ;;  %v2204_v1 = vcombine.high %v2196_v36, %v2196_v36  ;;  %v2698_v57 = vcombine.high %v2696_v56, %v2696_v56  ;;  %v6416_v51 = vrot.slane %v2697_v5, 9 }
 0x306   : > { %v5553_v11 = vrot.slane %v5219_v39, 7  ;;  %v6417_v12 = vrot.slane %v2696_v56, 9  ;;  %v5218_v54 = vunpack.c.l.b16 %v6801_v19  ;;  %v5221_v18 = vunpack.c.l.b16 %v6804_v60 }
 0x307   : > { %v4066_v41 = vmax.f32 %v2689_v0, %v6415_v61  ;;  %v2205_v45 = vcombine.high %v2203_v34, %v2203_v34  ;;  %v5555_v10 = vrot.slane %v5220_v22, 6  ;;  %v6418_v3 = vrot.slane %v2698_v57, 9 }
 0x308   : > { %v4067_v58 = vmax.f32 %v2697_v5, %v6416_v51  ;;  %v4068_v62 = vmax.f32 %v2696_v56, %v6417_v12  ;;  %v5554_v23 = vsel %vm5379_vm2, %v5553_v11, %v5218_v54  ;;  %v6299_v49 = vrot.slane %v2196_v36, 9 }
 0x309   : > { %v6929_v59 = vpack.c.bf16 %v4066_v41, %v4066_v41  ;;  %v6300_v38 = vrot.slane %v2204_v1, 9  ;;  %v4069_v16 = vmax.f32 %v2698_v57, %v6418_v3  ;;  %v6301_v26 = vrot.slane %v2203_v34, 9 }
 0x30a   : > { %v6930_v52 = vpack.c.bf16 %v4067_v58, %v4067_v58  ;;  %v6931_v55 = vpack.c.bf16 %v4068_v62, %v4068_v62  ;;  %v5557_v44 = vrot.slane %v5221_v18, 5  ;;  %v6302_v6 = vrot.slane %v2205_v45, 9 }
 0x30b   : > { %v3950_v24 = vmax.f32 %v2196_v36, %v6299_v49  ;;  %v3951_v19 = vmax.f32 %v2204_v1, %v6300_v38  ;;  %v6932_v60 = vpack.c.bf16 %v4069_v16, %v4069_v16  ;;  %v3952_v61 = vmax.f32 %v2203_v34, %v6301_v26 }
 0x30c   : > { %v5347_v0 = vunpack.c.l.b16 %v6930_v52  ;;  %v9008_v39 = vunpack.c.l.b16 %v6931_v55  ;;  %v5556_v56 = vsel %vm5382_vm3, %v5555_v10, %v5554_v23  ;;  %v3953_v5 = vmax.f32 %v2205_v45, %v6302_v6 }
 0x30d   : > { %v6813_v22 = vpack.c.bf16 %v3950_v24, %v3950_v24  ;;  %v6814_v11 = vpack.c.bf16 %v3951_v19, %v3951_v19  ;;  %v5346_v51 = vunpack.c.l.b16 %v6929_v59  ;;  %v9011_v12 = vunpack.c.l.b16 %v6932_v60 }
 0x30e   : > { %v5777_v57 = vrot.slane %v5347_v0, 7  ;;  %v6815_v54 = vpack.c.bf16 %v3952_v61, %v3952_v61  ;;  %v6816_v41 = vpack.c.bf16 %v3953_v5, %v3953_v5  ;;  %v1661_v36 = vmax.f32 %v1589_v27, %v1593_v63 }
 0x30f   : > { %v5230_v18 = vunpack.c.l.b16 %v6813_v22  ;;  %v5231_v3 = vunpack.c.l.b16 %v6814_v11  ;;  %v5779_v1 = vrot.slane %v9008_v39, 6  ;;  %v5572_v10 = vsel %vm5385_vm4, %v5571_v40, %v8991_v47 }
 0x310   : > { %v9018_v34 = vsel %vm5379_vm2, %v5777_v57, %v5346_v51  ;;  %v5232_v45 = vunpack.c.l.b16 %v6815_v54  ;;  %v5781_v58 = vrot.slane %v9011_v12, 5  ;;  %v5233_v62 = vunpack.c.l.b16 %v6816_v41 }
 0x311   : > { %v5573_v23 = vrot.slane %v5230_v18, 4  ;;  %v5796_v48 = vsel %vm5385_vm4, %v5795_v37, %v5794_v25  ;;  %v5575_v27 = vrot.slane %v5231_v3, 3  ;;  %v2733_v4 = vcombine.high %v1661_v36, %v1661_v36 }
 0x312   : > { %v2740_v63 = vrot.slane %v1661_v36, %v7813_v29  ;;  %v1527_v59 = vmax.f32 %v8987_v21, 0.0  ;;  %v5577_v38 = vrot.slane %v5232_v45, 2  ;;  %v5579_v46 = vrot.slane %v5233_v62, 1 }
 0x313   : > { %v5574_v49 = vsel %vm5388_vm5, %v5573_v23, %v5572_v10  ;;  %v1431_v47 = vadd.f32 %v8883_v50, %v8720_v17  ;;  %v2747_v16 = vrot.slane %v2733_v4, %v7813_v29  ;;  %v5558_v21 = vsel %vm5385_vm4, %v5557_v44, %v5556_v56 }
 0x314   : > { %v5576_v40 = vsel %vm5391_vm6, %v5575_v27, %v5574_v49  ;;  %v2748_v43 = vcombine.high %v2740_v63, %v2740_v63  ;;  %v6427_v52 = vrot.slane %v2740_v63, 9  ;;  %v1627_v25 = vmax.f32 %v1523_v15, %v1527_v59 }
 0x315   : > { %v5578_v37 = vsel %vm5394_vm7, %v5577_v38, %v5576_v40  ;;  %v1591_v55 = vmax.f32 %v1431_v47, 0.0  ;;  %v2749_v6 = vcombine.high %v2747_v16, %v2747_v16  ;;  %v6429_v17 = vrot.slane %v2747_v16, 9 }
 0x316   : > { %v5580_v26 = vsel %vm5397_vm8, %v5579_v46, %v5578_v37  ;;  %v6428_v24 = vrot.slane %v2748_v43, 9  ;;  %v4078_v60 = vmax.f32 %v2740_v63, %v6427_v52  ;;  %v2155_v0 = vcombine.high %v1627_v25, %v1627_v25 }
 0x317   : > { %v5846_v19 = vpack.c.b16 %v5580_v26, %v5580_v26  ;;  %v2162_v61 = vrot.slane %v1627_v25, %v7813_v29  ;;  %v6430_v5 = vrot.slane %v2749_v6, 9  ;;  %v4080_v11 = vmax.f32 %v2747_v16, %v6429_v17 }
 0x318   : > { %v4079_v22 = vmax.f32 %v2748_v43, %v6428_v24  ;;  %v1659_v2 = vmax.f32 %v1587_v35, %v1591_v55  ;;  %v6941_v15 = vpack.c.bf16 %v4078_v60, %v4078_v60  ;;  %v2169_v44 = vrot.slane %v2155_v0, %v7813_v29 }
 0x319   : > { %5911 = vst.msk [vmem:[%s8013_s7 + $0x34] sm:$0xf] %vm5897_vm9, %v5846_v19  ;;  %v2170_v56 = vcombine.high %v2162_v61, %v2162_v61  ;;  %v6291_v51 = vrot.slane %v2162_v61, 9  ;;  %v4081_v57 = vmax.f32 %v2749_v6, %v6430_v5  ;;  %v6943_v41 = vpack.c.bf16 %v4080_v11, %v4080_v11 }
 0x31a   : > { %v6942_v54 = vpack.c.bf16 %v4079_v22, %v4079_v22  ;;  %v2699_v18 = vcombine.high %v1659_v2, %v1659_v2  ;;  %v5358_v3 = vunpack.c.l.b16 %v6941_v15  ;;  %v2171_v36 = vcombine.high %v2169_v44, %v2169_v44 }
 0x31b   : > { %v6292_v45 = vrot.slane %v2170_v56, 9  ;;  %v6293_v10 = vrot.slane %v2169_v44, 9  ;;  %v6944_v62 = vpack.c.bf16 %v4081_v57, %v4081_v57  ;;  %v5360_v27 = vunpack.c.l.b16 %v6943_v41 }
 0x31c   : > { %v5359_v23 = vunpack.c.l.b16 %v6942_v54  ;;  %v3942_v33 = vmax.f32 %v2162_v61, %v6291_v51  ;;  %v5797_v35 = vrot.slane %v5358_v3, 4  ;;  %v6294_v4 = vrot.slane %v2171_v36, 9 }
 0x31d   : > { %v3943_v63 = vmax.f32 %v2170_v56, %v6292_v45  ;;  %v3944_v59 = vmax.f32 %v2169_v44, %v6293_v10  ;;  %v5361_v49 = vunpack.c.l.b16 %v6944_v62  ;;  %v5801_v46 = vrot.slane %v5360_v27, 2 }
 0x31e   : > { %v5799_v38 = vrot.slane %v5359_v23, 3  ;;  %v6805_v47 = vpack.c.bf16 %v3942_v33, %v3942_v33  ;;  %v5798_v40 = vsel %vm5388_vm5, %v5797_v35, %v5796_v48  ;;  %v3945_v16 = vmax.f32 %v2171_v36, %v6294_v4 }
 0x31f   : > { %v6806_v43 = vpack.c.bf16 %v3943_v63, %v3943_v63  ;;  %v6807_v52 = vpack.c.bf16 %v3944_v59, %v3944_v59  ;;  %v5803_v25 = vrot.slane %v5361_v49, 1  ;;  %v2706_v26 = vrot.slane %v1659_v2, %v7813_v29 }
 0x320   : > { %v5800_v37 = vsel %vm5391_vm6, %v5799_v38, %v5798_v40  ;;  %v5222_v55 = vunpack.c.l.b16 %v6805_v47  ;;  %v6808_v24 = vpack.c.bf16 %v3945_v16, %v3945_v16  ;;  %v2713_v48 = vrot.slane %v2699_v18, %v7813_v29 }
 0x321   : > { %v5802_v6 = vsel %vm5394_vm7, %v5801_v46, %v5800_v37  ;;  %v5223_v17 = vunpack.c.l.b16 %v6806_v43  ;;  %v5224_v19 = vunpack.c.l.b16 %v6807_v52  ;;  %v2714_v61 = vcombine.high %v2706_v26, %v2706_v26 }
 0x322   : > { %v5804_v60 = vsel %vm5397_vm8, %v5803_v25, %v5802_v6  ;;  %v5559_v0 = vrot.slane %v5222_v55, 4  ;;  %v5225_v22 = vunpack.c.l.b16 %v6808_v24  ;;  %v2715_v56 = vcombine.high %v2713_v48, %v2713_v48 }
 0x323   : > { %v5862_v5 = vpack.c.b16 %v5804_v60, %v5804_v60  ;;  %v5561_v11 = vrot.slane %v5223_v17, 3  ;;  %v5563_v15 = vrot.slane %v5224_v19, 2  ;;  %v6419_v2 = vrot.slane %v2706_v26, 9 }
 0x324   : > { %v5560_v44 = vsel %vm5388_vm5, %v5559_v0, %v5558_v21  ;;  %v6420_v51 = vrot.slane %v2714_v61, 9  ;;  %v5780_v57 = vsel %vm5382_vm3, %v5779_v1, %v9018_v34  ;;  %v5565_v41 = vrot.slane %v5225_v22, 1  ;;  %v9351_v22 = vld [vmem:[#allocation14_spill] sm:$0xff] }
 0x325   : > { %5927 = vst.msk [vmem:[%s8013_s7 + $0x74] sm:$0xf] %vm5897_vm9, %v5862_v5  ;;  %v5562_v54 = vsel %vm5391_vm6, %v5561_v11, %v5560_v44  ;;  %v6421_v18 = vrot.slane %v2713_v48, 9  ;;  %v6422_v36 = vrot.slane %v2715_v56, 9  ;;  %v4070_v45 = vmax.f32 %v2706_v26, %v6419_v2 }
 0x326   : > { %v5564_v3 = vsel %vm5394_vm7, %v5563_v15, %v5562_v54  ;;  %v4071_v21 = vmax.f32 %v2714_v61, %v6420_v51  ;;  %v1196_v39 = vadd.f32 %v8883_v50, %v8742_v32  ;;  %v1452_v34 = vadd.f32 %v8883_v50, %v8760_v7 }
 0x327   : > { %v5566_v10 = vsel %vm5397_vm8, %v5565_v41, %v5564_v3  ;;  %v4072_v62 = vmax.f32 %v2713_v48, %v6421_v18  ;;  %v4073_v23 = vmax.f32 %v2715_v56, %v6422_v36  ;;  %v6933_v27 = vpack.c.bf16 %v4070_v45, %v4070_v45  ;;  %v9350_v48 = vld [vmem:[#allocation13_spill] sm:$0xff] }
 0x328   : > { %v5845_v1 = vpack.c.b16 %v5566_v10, %v5566_v10  ;;  %v6934_v33 = vpack.c.bf16 %v4071_v21, %v4071_v21  ;;  %v1188_v4 = vadd.f32 %v8883_v50, %v8767_v9  ;;  %v1444_v63 = vadd.f32 %v8883_v50, %v8778_v42 }
 0x329   : > { %v6935_v35 = vpack.c.bf16 %v4072_v62, %v4072_v62  ;;  %v6936_v59 = vpack.c.bf16 %v4073_v23, %v4073_v23  ;;  %v5350_v49 = vunpack.c.l.b16 %v6933_v27  ;;  %v1199_v32 = vadd.f32 %v8883_v50, %v8787_v13  ;;  %v9352_v62 = vld [vmem:[#allocation15_spill] sm:$0xff] }
 0x32a   : > { %5910 = vst.msk [vmem:[%s8013_s7 + $0x30] sm:$0xf] %vm5897_vm9, %v5845_v1  ;;  %v5351_v38 = vunpack.c.l.b16 %v6934_v33  ;;  %v5782_v46 = vsel %vm5385_vm4, %v5781_v58, %v5780_v57  ;;  %v1532_v47 = vmax.f32 %v1196_v39, 0.0  ;;  %v1596_v40 = vmax.f32 %v1452_v34, 0.0 }
 0x32b   : > { %v5352_v7 = vunpack.c.l.b16 %v6935_v35  ;;  %v5353_v16 = vunpack.c.l.b16 %v6936_v59  ;;  %v5783_v9 = vrot.slane %v5350_v49, 4  ;;  %v1530_v43 = vmax.f32 %v1188_v4, 0.0 }
 0x32c   : > { %v1594_v52 = vmax.f32 %v1444_v63, 0.0  ;;  %v5785_v42 = vrot.slane %v5351_v38, 3  ;;  %v1533_v25 = vmax.f32 %v1199_v32, 0.0  ;;  %v9080_v55 = vadd.f32 %v8883_v50, %v8789_v53  ;;  %v9349_v53 = vld [vmem:[#allocation12_spill] sm:$0xff] }
 0x32d   : > { %v5787_v37 = vrot.slane %v5352_v7, 2  ;;  %v5784_v13 = vsel %vm5388_vm5, %v5783_v9, %v5782_v46  ;;  %v9085_v12 = vadd.f32 %v8883_v50, %v8801_v20  ;;  %v1212_v58 = vadd.f32 %v8883_v50, %v8820_v31 }
 0x32e   : > { %v1468_v26 = vadd.f32 %v8883_v50, %v8822_v28  ;;  %v5786_v6 = vsel %vm5391_vm6, %v5785_v42, %v5784_v13  ;;  %v5789_v24 = vrot.slane %v5353_v16, 1  ;;  %v9094_v17 = vadd.f32 %v8883_v50, %v8803_v30 }
 0x32f   : > { %v1204_v19 = vadd.f32 %v8883_v50, %v9349_v53  ;;  %v5788_v60 = vsel %vm5394_vm7, %v5787_v37, %v5786_v6  ;;  %v1536_v20 = vmax.f32 %v1212_v58, 0.0  ;;  %v1460_v31 = vadd.f32 %v8883_v50, %v9350_v48 }
 0x330   : > { %v1600_v0 = vmax.f32 %v1468_v26, 0.0  ;;  %v5790_v28 = vsel %vm5397_vm8, %v5789_v24, %v5788_v60  ;;  %v1597_v61 = vmax.f32 %v9080_v55, 0.0  ;;  %v1215_v30 = vadd.f32 %v8883_v50, %v9351_v22 }
 0x331   : > { %v1534_v5 = vmax.f32 %v1204_v19, 0.0  ;;  %v5861_v11 = vpack.c.b16 %v5790_v28, %v5790_v28  ;;  %v1632_v15 = vmax.f32 %v1532_v47, %v1536_v20  ;;  %v1598_v56 = vmax.f32 %v1460_v31, 0.0 }
 0x332   : > { %v1664_v44 = vmax.f32 %v1596_v40, %v1600_v0  ;;  %v1531_v2 = vmax.f32 %v9085_v12, 0.0  ;;  %v1595_v51 = vmax.f32 %v9094_v17, 0.0  ;;  %v1537_v54 = vmax.f32 %v1215_v30, 0.0 }
 0x333   : > { %v1630_v57 = vmax.f32 %v1530_v43, %v1534_v5  ;;  %5926 = vst.msk [vmem:[%s8013_s7 + $0x70] sm:$0xf] %vm5897_vm9, %v5861_v11  ;;  %v2240_v41 = vcombine.high %v1632_v15, %v1632_v15  ;;  %v2247_v18 = vrot.slane %v1632_v15, %v7813_v29  ;;  %v9111_v21 = vmax.f32 %v1594_v52, %v1598_v56 }
 0x334   : > { %v2784_v3 = vcombine.high %v1664_v44, %v1664_v44  ;;  %v2791_v36 = vrot.slane %v1664_v44, %v7813_v29  ;;  %v9113_v10 = vmax.f32 %v1533_v25, %v1537_v54  ;;  %v9117_v39 = vadd.f32 %v8883_v50, %v9352_v62 }
 0x335   : > { %v2206_v45 = vcombine.high %v1630_v57, %v1630_v57  ;;  %v2254_v34 = vrot.slane %v2240_v41, %v7813_v29  ;;  %v2255_v1 = vcombine.high %v2247_v18, %v2247_v18  ;;  %v6311_v23 = vrot.slane %v2247_v18, 9 }
 0x336   : > { %v2798_v27 = vrot.slane %v2784_v3, %v7813_v29  ;;  %v2799_v33 = vcombine.high %v2791_v36, %v2791_v36  ;;  %v6439_v35 = vrot.slane %v2791_v36, 9  ;;  %v2213_v4 = vrot.slane %v1630_v57, %v7813_v29 }
 0x337   : > { %v2220_v63 = vrot.slane %v2206_v45, %v7813_v29  ;;  %v2256_v59 = vcombine.high %v2254_v34, %v2254_v34  ;;  %v6312_v49 = vrot.slane %v2255_v1, 9  ;;  %v6313_v38 = vrot.slane %v2254_v34, 9 }
 0x338   : > { %v3962_v32 = vmax.f32 %v2247_v18, %v6311_v23  ;;  %v2800_v7 = vcombine.high %v2798_v27, %v2798_v27  ;;  %v6440_v46 = vrot.slane %v2799_v33, 9  ;;  %v6441_v47 = vrot.slane %v2798_v27, 9 }
 0x339   : > { %v4090_v40 = vmax.f32 %v2791_v36, %v6439_v35  ;;  %v6314_v16 = vrot.slane %v2256_v59, 9  ;;  %v3963_v9 = vmax.f32 %v2255_v1, %v6312_v49  ;;  %v3964_v43 = vmax.f32 %v2254_v34, %v6313_v38 }
 0x33a   : > { %v6825_v52 = vpack.c.bf16 %v3962_v32, %v3962_v32  ;;  %v6442_v42 = vrot.slane %v2800_v7, 9  ;;  %v4091_v37 = vmax.f32 %v2799_v33, %v6440_v46  ;;  %v4092_v25 = vmax.f32 %v2798_v27, %v6441_v47 }
 0x33b   : > { %v2221_v13 = vcombine.high %v2213_v4, %v2213_v4  ;;  %v3965_v58 = vmax.f32 %v2256_v59, %v6314_v16  ;;  %v6826_v26 = vpack.c.bf16 %v3963_v9, %v3963_v9  ;;  %v6827_v6 = vpack.c.bf16 %v3964_v43, %v3964_v43 }
 0x33c   : > { %v6953_v24 = vpack.c.bf16 %v4090_v40, %v4090_v40  ;;  %v5242_v53 = vunpack.c.l.b16 %v6825_v52  ;;  %v4093_v19 = vmax.f32 %v2800_v7, %v6442_v42  ;;  %v6954_v60 = vpack.c.bf16 %v4091_v37, %v4091_v37 }
 0x33d   : > { %v6955_v20 = vpack.c.bf16 %v4092_v25, %v4092_v25  ;;  %v6828_v0 = vpack.c.bf16 %v3965_v58, %v3965_v58  ;;  %v5243_v48 = vunpack.c.l.b16 %v6826_v26  ;;  %v5244_v31 = vunpack.c.l.b16 %v6827_v6 }
 0x33e   : > { %v2222_v28 = vcombine.high %v2220_v63, %v2220_v63  ;;  %v6956_v5 = vpack.c.bf16 %v4093_v19, %v4093_v19  ;;  %v5371_v22 = vunpack.c.l.b16 %v6954_v60  ;;  %v6303_v11 = vrot.slane %v2213_v4, 9 }
 0x33f   : > { %v5372_v30 = vunpack.c.l.b16 %v6955_v20  ;;  %v9123_v15 = vunpack.c.l.b16 %v6828_v0  ;;  %v5595_v44 = vrot.slane %v5243_v48, 7  ;;  %v5597_v56 = vrot.slane %v5244_v31, 6 }
 0x340   : > { %v6304_v57 = vrot.slane %v2221_v13, 9  ;;  %v5819_v54 = vrot.slane %v5371_v22, 7  ;;  %v6305_v41 = vrot.slane %v2220_v63, 9  ;;  %v1601_v18 = vmax.f32 %v9117_v39, 0.0 }
 0x341   : > { %v9128_v3 = vadd.f32 %v8883_v50, %v8887_v8  ;;  %v5596_v36 = vsel %vm5379_vm2, %v5595_v44, %v5242_v53  ;;  %v5370_v45 = vunpack.c.l.b16 %v6953_v24  ;;  %v6306_v62 = vrot.slane %v2222_v28, 9 }
 0x342   : > { %v3954_v34 = vmax.f32 %v2213_v4, %v6303_v11  ;;  %v5599_v1 = vrot.slane %v9123_v15, 5  ;;  %v9132_v23 = vunpack.c.l.b16 %v6956_v5  ;;  %v5821_v27 = vrot.slane %v5372_v30, 6  ;;  %v7342_v15 = vld [vmem:[#allocation4] ss:$0 sm:$0xff] }
 0x343   : > { %v3955_v33 = vmax.f32 %v2221_v13, %v6304_v57  ;;  %v9135_v35 = vsel %vm5382_vm3, %v5597_v56, %v5596_v36  ;;  %v5820_v59 = vsel %vm5379_vm2, %v5819_v54, %v5370_v45  ;;  %v3956_v49 = vmax.f32 %v2220_v63, %v6305_v41 }
 0x344   : > { %v3957_v38 = vmax.f32 %v2222_v28, %v6306_v62  ;;  %v2750_v8 = vcombine.high %v9111_v21, %v9111_v21  ;;  %v2757_v4 = vrot.slane %v9111_v21, %v7813_v29  ;;  %v2257_v32 = vcombine.high %v9113_v10, %v9113_v10 }
 0x345   : > { %v6818_v50 = vpack.c.bf16 %v3955_v33, %v3955_v33  ;;  %v6817_v7 = vpack.c.bf16 %v3954_v34, %v3954_v34  ;;  %v6819_v46 = vpack.c.bf16 %v3956_v49, %v3956_v49  ;;  %v2264_v40 = vrot.slane %v9113_v10, %v7813_v29 }
 0x346   : > { %v6820_v47 = vpack.c.bf16 %v3957_v38, %v3957_v38  ;;  %v2764_v63 = vrot.slane %v2750_v8, %v7813_v29  ;;  %v2765_v9 = vcombine.high %v2757_v4, %v2757_v4  ;;  %v6431_v43 = vrot.slane %v2757_v4, 9 }
 0x347   : > { %v5235_v16 = vunpack.c.l.b16 %v6818_v50  ;;  %v5823_v52 = vrot.slane %v9132_v23, 5  ;;  %v5236_v42 = vunpack.c.l.b16 %v6819_v46  ;;  %v2271_v37 = vrot.slane %v2257_v32, %v7813_v29 }
 0x348   : > { %v2272_v21 = vcombine.high %v2264_v40, %v2264_v40  ;;  %v5822_v25 = vsel %vm5382_vm3, %v5821_v27, %v5820_v59  ;;  %v2766_v13 = vcombine.high %v2764_v63, %v2764_v63  ;;  %v6432_v58 = vrot.slane %v2765_v9, 9 }
 0x349   : > { %v6433_v26 = vrot.slane %v2764_v63, 9  ;;  %v5234_v6 = vunpack.c.l.b16 %v6817_v7  ;;  %v5581_v24 = vrot.slane %v5235_v16, 7  ;;  %v4082_v53 = vmax.f32 %v2757_v4, %v6431_v43 }
 0x34a   : > { %v2273_v10 = vcombine.high %v2271_v37, %v2271_v37  ;;  %v5237_v19 = vunpack.c.l.b16 %v6820_v47  ;;  %v6434_v60 = vrot.slane %v2766_v13, 9  ;;  %v4083_v20 = vmax.f32 %v2765_v9, %v6432_v58 }
 0x34b   : > { %v4084_v0 = vmax.f32 %v2764_v63, %v6433_v26  ;;  %v5583_v48 = vrot.slane %v5236_v42, 6  ;;  %v6945_v31 = vpack.c.bf16 %v4082_v53, %v4082_v53  ;;  %v6315_v28 = vrot.slane %v2264_v40, 9 }
 0x34c   : > { %v6316_v5 = vrot.slane %v2272_v21, 9  ;;  %v4085_v22 = vmax.f32 %v2766_v13, %v6434_v60  ;;  %v6946_v30 = vpack.c.bf16 %v4083_v20, %v4083_v20  ;;  %v6317_v44 = vrot.slane %v2271_v37, 9 }
 0x34d   : > { %v6947_v11 = vpack.c.bf16 %v4084_v0, %v4084_v0  ;;  %v5582_v56 = vsel %vm5379_vm2, %v5581_v24, %v5234_v6  ;;  %v6318_v57 = vrot.slane %v2273_v10, 9  ;;  %v3966_v54 = vmax.f32 %v2264_v40, %v6315_v28 }
 0x34e   : > { %v3967_v41 = vmax.f32 %v2272_v21, %v6316_v5  ;;  %v6948_v36 = vpack.c.bf16 %v4085_v22, %v4085_v22  ;;  %v5363_v45 = vunpack.c.l.b16 %v6946_v30  ;;  %v3968_v34 = vmax.f32 %v2271_v37, %v6317_v44 }
 0x34f   : > { %v9151_v62 = vunpack.c.l.b16 %v6947_v11  ;;  %v5585_v23 = vrot.slane %v5237_v19, 5  ;;  %v3969_v27 = vmax.f32 %v2273_v10, %v6318_v57  ;;  %v6829_v33 = vpack.c.bf16 %v3966_v54, %v3966_v54 }
 0x350   : > { %v6830_v59 = vpack.c.bf16 %v3967_v41, %v3967_v41  ;;  %v5584_v49 = vsel %vm5382_vm3, %v5583_v48, %v5582_v56  ;;  %v5362_v38 = vunpack.c.l.b16 %v6945_v31  ;;  %v5805_v50 = vrot.slane %v5363_v45, 7 }
 0x351   : > { %v6831_v8 = vpack.c.bf16 %v3968_v34, %v3968_v34  ;;  %v6832_v4 = vpack.c.bf16 %v3969_v27, %v3969_v27  ;;  %v5246_v32 = vunpack.c.l.b16 %v6829_v33  ;;  %v1665_v46 = vmax.f32 %v1597_v61, %v1601_v18 }
 0x352   : > { %v5247_v7 = vunpack.c.l.b16 %v6830_v59  ;;  %v9158_v47 = vunpack.c.l.b16 %v6948_v36  ;;  %v5807_v40 = vrot.slane %v9151_v62, 6  ;;  %v5600_v63 = vsel %vm5385_vm4, %v5599_v1, %v9135_v35 }
 0x353   : > { %v5248_v16 = vunpack.c.l.b16 %v6831_v8  ;;  %v9166_v9 = vsel %vm5379_vm2, %v5805_v50, %v5362_v38  ;;  %v5249_v43 = vunpack.c.l.b16 %v6832_v4  ;;  %v5601_v42 = vrot.slane %v5246_v32, 4 }
 0x354   : > { %v5824_v39 = vsel %vm5385_vm4, %v5823_v52, %v5822_v25  ;;  %v5603_v37 = vrot.slane %v5247_v7, 3  ;;  %v2801_v55 = vcombine.high %v1665_v46, %v1665_v46  ;;  %v2808_v61 = vrot.slane %v1665_v46, %v7813_v29 }
 0x355   : > { %v1535_v18 = vmax.f32 %v9128_v3, 0.0  ;;  %v5602_v21 = vsel %vm5388_vm5, %v5601_v42, %v5600_v63  ;;  %v5605_v13 = vrot.slane %v5248_v16, 2  ;;  %v5607_v58 = vrot.slane %v5249_v43, 1 }
 0x356   : > { %v1463_v1 = vadd.f32 %v7342_v15, %v8897_v14  ;;  %v5604_v35 = vsel %vm5391_vm6, %v5603_v37, %v5602_v21  ;;  %v2815_v26 = vrot.slane %v2801_v55, %v7813_v29  ;;  %v2816_v6 = vcombine.high %v2808_v61, %v2808_v61 }
 0x357   : > { %v6443_v24 = vrot.slane %v2808_v61, 9  ;;  %v5606_v52 = vsel %vm5394_vm7, %v5605_v13, %v5604_v35  ;;  %v1631_v25 = vmax.f32 %v1531_v2, %v1535_v18  ;;  %v5586_v3 = vsel %vm5385_vm4, %v5585_v23, %v5584_v49 }
 0x358   : > { %v1599_v53 = vmax.f32 %v1463_v1, 0.0  ;;  %v5608_v10 = vsel %vm5397_vm8, %v5607_v58, %v5606_v52  ;;  %v2817_v19 = vcombine.high %v2815_v26, %v2815_v26  ;;  %v6444_v60 = vrot.slane %v2816_v6, 9 }
 0x359   : > { %v6445_v14 = vrot.slane %v2815_v26, 9  ;;  %v5848_v20 = vpack.c.b16 %v5608_v10, %v5608_v10  ;;  %v4094_v0 = vmax.f32 %v2808_v61, %v6443_v24  ;;  %v2223_v48 = vcombine.high %v1631_v25, %v1631_v25 }
 0x35a   : > { %v2230_v31 = vrot.slane %v1631_v25, %v7813_v29  ;;  %v6446_v28 = vrot.slane %v2817_v19, 9  ;;  %v4095_v5 = vmax.f32 %v2816_v6, %v6444_v60  ;;  %v1663_v12 = vmax.f32 %v1595_v51, %v1599_v53 }
 0x35b   : > { %v4096_v22 = vmax.f32 %v2815_v26, %v6445_v14  ;;  %5913 = vst.msk [vmem:[%s8013_s7 + $0x3c] sm:$0xf] %vm5897_vm9, %v5848_v20  ;;  %v6957_v2 = vpack.c.bf16 %v4094_v0, %v4094_v0  ;;  %v2237_v30 = vrot.slane %v2223_v48, %v7813_v29 }
 0x35c   : > { %v2238_v11 = vcombine.high %v2230_v31, %v2230_v31  ;;  %v6307_v44 = vrot.slane %v2230_v31, 9  ;;  %v4097_v56 = vmax.f32 %v2817_v19, %v6446_v28  ;;  %v6958_v57 = vpack.c.bf16 %v4095_v5, %v4095_v5 }
 0x35d   : > { %v6959_v54 = vpack.c.bf16 %v4096_v22, %v4096_v22  ;;  %v2767_v41 = vcombine.high %v1663_v12, %v1663_v12  ;;  %v5374_v36 = vunpack.c.l.b16 %v6957_v2  ;;  %v2239_v45 = vcombine.high %v2237_v30, %v2237_v30 }
 0x35e   : > { %v6308_v34 = vrot.slane %v2238_v11, 9  ;;  %v6309_v23 = vrot.slane %v2237_v30, 9  ;;  %v6960_v27 = vpack.c.bf16 %v4097_v56, %v4097_v56  ;;  %v5375_v33 = vunpack.c.l.b16 %v6958_v57 }
 0x35f   : > { %v5376_v59 = vunpack.c.l.b16 %v6959_v54  ;;  %v3958_v17 = vmax.f32 %v2230_v31, %v6307_v44  ;;  %v5825_v51 = vrot.slane %v5374_v36, 4  ;;  %v6310_v49 = vrot.slane %v2239_v45, 9 }
 0x360   : > { %v3959_v38 = vmax.f32 %v2238_v11, %v6308_v34  ;;  %v3960_v50 = vmax.f32 %v2237_v30, %v6309_v23  ;;  %v5377_v8 = vunpack.c.l.b16 %v6960_v27  ;;  %v5827_v4 = vrot.slane %v5375_v33, 3 }
 0x361   : > { %v5829_v32 = vrot.slane %v5376_v59, 2  ;;  %v6821_v7 = vpack.c.bf16 %v3958_v17, %v3958_v17  ;;  %v5826_v46 = vsel %vm5388_vm5, %v5825_v51, %v5824_v39  ;;  %v3961_v16 = vmax.f32 %v2239_v45, %v6310_v49 }
 0x362   : > { %v6822_v63 = vpack.c.bf16 %v3959_v38, %v3959_v38  ;;  %v6823_v43 = vpack.c.bf16 %v3960_v50, %v3960_v50  ;;  %v5828_v42 = vsel %vm5391_vm6, %v5827_v4, %v5826_v46  ;;  %v5831_v37 = vrot.slane %v5377_v8, 1 }
 0x363   : > { %v5238_v55 = vunpack.c.l.b16 %v6821_v7  ;;  %v2774_v61 = vrot.slane %v1663_v12, %v7813_v29  ;;  %v5830_v18 = vsel %vm5394_vm7, %v5829_v32, %v5828_v42  ;;  %v6824_v21 = vpack.c.bf16 %v3961_v16, %v3961_v16 }
 0x364   : > { %v5239_v13 = vunpack.c.l.b16 %v6822_v63  ;;  %v5240_v58 = vunpack.c.l.b16 %v6823_v43  ;;  %v5832_v15 = vsel %vm5397_vm8, %v5831_v37, %v5830_v18  ;;  %v2781_v39 = vrot.slane %v2767_v41, %v7813_v29 }
 0x365   : > { %v5587_v1 = vrot.slane %v5238_v55, 4  ;;  %v2782_v35 = vcombine.high %v2774_v61, %v2774_v61  ;;  %v5864_v26 = vpack.c.b16 %v5832_v15, %v5832_v15  ;;  %v5241_v6 = vunpack.c.l.b16 %v6824_v21 }
 0x366   : > { %v5589_v24 = vrot.slane %v5239_v13, 3  ;;  %v5591_v52 = vrot.slane %v5240_v58, 2  ;;  %v2783_v53 = vcombine.high %v2781_v39, %v2781_v39  ;;  %v6435_v10 = vrot.slane %v2774_v61, 9 }
 0x367   : > { %v5588_v25 = vsel %vm5388_vm5, %v5587_v1, %v5586_v3  ;;  %v6436_v19 = vrot.slane %v2782_v35, 9  ;;  %5929 = vst.msk [vmem:[%s8013_s7 + $0x7c] sm:$0xf] %vm5897_vm9, %v5864_v26  ;;  %v5593_v14 = vrot.slane %v5241_v6, 1  ;;  %v6437_v20 = vrot.slane %v2781_v39, 9 }
 0x368   : > { %v5590_v60 = vsel %vm5391_vm6, %v5589_v24, %v5588_v25  ;;  %v6438_v29 = vrot.slane %v2783_v53, 9  ;;  %v4086_v48 = vmax.f32 %v2774_v61, %v6435_v10  ;;  %v5808_v3 = vsel %vm5382_vm3, %v5807_v40, %v9166_v9 }
 0x369   : > { %v5592_v0 = vsel %vm5394_vm7, %v5591_v52, %v5590_v60  ;;  %v4087_v31 = vmax.f32 %v2782_v35, %v6436_v19  ;;  %v5809_v28 = vrot.slane %v9158_v47, 5  ;;  %v4088_v22 = vmax.f32 %v2781_v39, %v6437_v20 }
 0x36a   : > { %v5594_v5 = vsel %vm5397_vm8, %v5593_v14, %v5592_v0  ;;  %v4089_v2 = vmax.f32 %v2783_v53, %v6438_v29  ;;  %v6949_v30 = vpack.c.bf16 %v4086_v48, %v4086_v48 }
 0x36b   : > { %v5847_v12 = vpack.c.b16 %v5594_v5, %v5594_v5  ;;  %v6950_v11 = vpack.c.bf16 %v4087_v31, %v4087_v31  ;;  %v6951_v44 = vpack.c.bf16 %v4088_v22, %v4088_v22  ;;  %v5810_v62 = vsel %vm5385_vm4, %v5809_v28, %v5808_v3 }
 0x36c   : > { %v6952_v56 = vpack.c.bf16 %v4089_v2, %v4089_v2  ;;  %v5366_v57 = vunpack.c.l.b16 %v6949_v30 }
 0x36d   : > { %5912 = vst.msk [vmem:[%s8013_s7 + $0x38] sm:$0xf] %vm5897_vm9, %v5847_v12  ;;  %v5367_v54 = vunpack.c.l.b16 %v6950_v11  ;;  %v5368_v41 = vunpack.c.l.b16 %v6951_v44 }
 0x36e   : > { %v5369_v40 = vunpack.c.l.b16 %v6952_v56  ;;  %v5811_v9 = vrot.slane %v5366_v57, 4 }
 0x36f   : > { %v5813_v47 = vrot.slane %v5367_v54, 3  ;;  %v5815_v45 = vrot.slane %v5368_v41, 2 }
 0x370   : > { %v5812_v36 = vsel %vm5388_vm5, %v5811_v9, %v5810_v62  ;;  %v5817_v23 = vrot.slane %v5369_v40, 1 }
 0x371   : > { %v5814_v34 = vsel %vm5391_vm6, %v5813_v47, %v5812_v36 }
 0x372   : > { %v5816_v27 = vsel %vm5394_vm7, %v5815_v45, %v5814_v34 }
 0x373   : > { %v5818_v33 = vsel %vm5397_vm8, %v5817_v23, %v5816_v27 }
 0x374   : > { %v5863_v59 = vpack.c.b16 %v5818_v33, %v5818_v33 }
 0x376   : > { %5928 = vst.msk [vmem:[%s8013_s7 + $0x78] sm:$0xf] %vm5897_vm9, %v5863_v59 }
 0x377 PF: > { %s17_s19 = sadd.s32 1, %s7471_s19   ;;  %s9353_s12 = smov %s7447_s13 }
 0x378   : > { %p14_p9 = scmp.ge.s32.totalorder %s17_s19, 10   ;;  %s9354_s13 = smov %s7451_s14 }
 0x379   : > { %s9355_s14 = smov %s7612_s6  ;;  %s9356_s15 = smov %s7463_s17 }
 0x37a   : > { %s9357_s16 = smov %s7467_s18  ;;  %s9358_s17 = smov %s9361_s20 }
 0x37b   : > { %s9359_s18 = smov %s9365_s25  ;;  %16 = sbr.rel (!%p14_p9) target bundleno = 8 (0x8), region = 76 }
 0x382   :  { %5959 = vsyncpa [#allocation3], 1 }
 0x383   :  { %5961 = vsyncpa [#allocation3 + $0x1], 1 }
 0x384   :  { %5962 = vsyncpa [#allocation5], 1 }

// kernel: c3d_forward.5
= control target key start
LH: loop header
LB: loop body
LE: loop exit
PB: predicated region body
PF: predicated region fallthrough
CT: control target
= control target key end

     0   :  { %s5957_s12 = smov 0   ;;  %s5959_s13 = smov 0   ;;  %s7455_s0 = inlined_call_operand.vmem [shape: bf16[2,4,256,864], index: 0, kind: input, shape index: {}]   ;;  %s7456_s1 = inlined_call_operand.vmem [shape: bf16[864,64], index: 1, kind: input, shape index: {}]   ;;  %s7457_s2 = inlined_call_operand.vmem [shape: f32[1,64], index: 2, kind: input, shape index: {}]   ;;  %s7458_s3 = inlined_call_operand.vmem [shape: bf16[2,2,64,64], index: 3, kind: output, shape index: {}]  }
   0x1   :  { %s5961_s14 = smov 0   ;;  %s5963_s15 = smov 0  }
   0x2   :  { %s5965_s16 = smov 0  }
   0x3 LB: > { %s22_s17 = sadd.s32 1, %s5925_s14  ;;  %s25_s18 = sadd.s32 1, %s5929_s15  ;;  %s5933_s16 = sphi %s5965_s16, %s13_s16   ;;  %s5929_s15 = sphi %s5963_s15, %s7584_s15   ;;  %s5925_s14 = sphi %s5961_s14, %s7583_s14   ;;  %s5921_s13 = sphi %s5959_s13, %s7582_s13   ;;  %s5917_s12 = sphi %s5957_s12, %s7581_s12  }
   0x4   : > { %p23_p0 = scmp.ge.s32.totalorder %s22_s17, 2  ;;  %p4564_p1 = scmp.ge.s32.totalorder %s5933_s16, 1 }
   0x5   : > { %p159_p2 = scmp.lt.s32.totalorder %s5933_s16, 5 }
   0x6   : > { %s7586_s17 = smov (%p23_p0, %s22_s17), 0  ;;  %s7588_s18 = smov (!%p23_p0, %s25_s18), %s5929_s15 }
   0x7   : > { %p160_p3 = pnand %p4564_p1, %p159_p2  ;;  %p27_p4 = scmp.ge.s32.totalorder %s7588_s18, 2 }
   0x9   : > { %s7590_s18 = smov (%p27_p4, %s7588_s18), 0  ;;  %163 = sbr.rel (%p160_p3) target bundleno = 845 (0x34d), region = 32 }
  0x10   : > { %v5521_v0 = vld [vmem:[%s7456_s1] sm:$0xff]   ;;  %v5935_v1 = vmov 0   ;;  %v5523_v3 = vld [vmem:[%s7456_s1 + $0x8] sm:$0xff]   ;;  %v5525_v5 = vld [vmem:[%s7456_s1 + $0x10] sm:$0xff]   ;;  %s4565_s4 = sshll.u32 %s5917_s12, 1  ;;  %p193_p5 = scmp.lt.s32.totalorder %s5921_s13, 1 }
  0x11   : > { %2125 = vmatprep.subr.bf16.mxu1 %v5935_v1  ;;  %2414 = vmatprep.subr.bf16.mxu0 %v5935_v1  ;;  %v5999_v2 = vld [vmem:[%s7456_s1 + $0x80] sm:$0xff]   ;;  %v6009_v4 = vld [vmem:[%s7456_s1 + $0x88] sm:$0xff]   ;;  %v6020_v6 = vld [vmem:[%s7456_s1 + $0x90] sm:$0xff]   ;;  %p195_p6 = scmp.lt.s32.totalorder %s4565_s4, 3  ;;  %vm2028_vm0 = vcmask 785408   ;;  %vm4322_vm1 = vcmask 1041409  }
  0x12   : > { %2126 = vmatpush1.bf16.msra.mxu1 %v5521_v0  ;;  %2415 = vmatpush1.bf16.msra.mxu0 %v5999_v2  ;;  %v5527_v7 = vld [vmem:[%s7456_s1 + $0x18] sm:$0xff]   ;;  %v5529_v9 = vld [vmem:[%s7456_s1 + $0x20] sm:$0xff]   ;;  %s7592_s13 = smov (!%p193_p5, %s5921_s13), 1  ;;  %v5531_v11 = vld [vmem:[%s7456_s1 + $0x28] sm:$0xff]   ;;  %p205_p7 = scmp.lt.s32.totalorder %s5917_s12, 1  ;;  %vm4325_vm2 = vcmask 1042434  }
  0x13   : > { %2127 = vmatprep.subr.bf16.mxu1 %v5935_v1  ;;  %2416 = vmatprep.subr.bf16.mxu0 %v5935_v1  ;;  %v6032_v8 = vld [vmem:[%s7456_s1 + $0x98] sm:$0xff]   ;;  %v6044_v10 = vld [vmem:[%s7456_s1 + $0xa0] sm:$0xff]   ;;  %s7594_s4 = smov (!%p195_p6, %s4565_s4), 3  ;;  %v6058_v12 = vld [vmem:[%s7456_s1 + $0xa8] sm:$0xff]   ;;  %s5478_s24 = smul.u32 896, %s7592_s13  ;;  %vm4328_vm3 = vcmask 1043459  }
  0x14   : > { %s5477_s25 = smul.u32 224, %s7594_s4  ;;  %v5533_v13 = vld [vmem:[%s7456_s1 + $0x30] sm:$0xff]   ;;  %v5535_v15 = vld [vmem:[%s7456_s1 + $0x38] sm:$0xff]   ;;  %v5537_v17 = vld [vmem:[%s7456_s1 + $0x40] sm:$0xff]   ;;  %vm4331_vm4 = vcmask 1044484   ;;  %s7596_s12 = smov (!%p205_p7, %s5917_s12), 1 }
  0x15   : > { %v6070_v14 = vld [vmem:[%s7456_s1 + $0xb0] sm:$0xff]   ;;  %v6081_v16 = vld [vmem:[%s7456_s1 + $0xb8] sm:$0xff]   ;;  %v6097_v18 = vld [vmem:[%s7456_s1 + $0xc0] sm:$0xff]   ;;  %vm4334_vm5 = vcmask 1045509   ;;  %vm4337_vm6 = vcmask 1046534   ;;  %vm4340_vm7 = vcmask 1047559  }
  0x16   : > { %2128 = vmatpush1.bf16.msra.mxu1 %v5523_v3  ;;  %2417 = vmatpush1.bf16.msra.mxu0 %v6009_v4  ;;  %s199_s30 = sadd.s32 %s5478_s24, %s5477_s25  ;;  %v5539_v20 = vld [vmem:[%s7456_s1 + $0x48] sm:$0xff]   ;;  %v5541_v23 = vld [vmem:[%s7456_s1 + $0x50] sm:$0xff]   ;;  %v5543_v25 = vld [vmem:[%s7456_s1 + $0x58] sm:$0xff]   ;;  %s4568_s21 = sshll.u32 %s7592_s13, 4  ;;  %vm4456_vm8 = vcmask 519168  }
  0x17   : > { %2129 = vmatprep.subr.bf16.mxu1 %v5935_v1  ;;  %2418 = vmatprep.subr.bf16.mxu0 %v5935_v1  ;;  %s4566_s8 = sshll.u32 %s199_s30, 2  ;;  %v6110_v22 = vld [vmem:[%s7456_s1 + $0xc8] sm:$0xff]   ;;  %v6121_v24 = vld [vmem:[%s7456_s1 + $0xd0] sm:$0xff]   ;;  %v6132_v26 = vld [vmem:[%s7456_s1 + $0xd8] sm:$0xff]  }
  0x18   : > { %s6090_s20 = scalar_lea.vmem %s7455_s0, %s4566_s8  ;;  %v5545_v27 = vld [vmem:[%s7456_s1 + $0x60] sm:$0xff]   ;;  %v5547_v29 = vld [vmem:[%s7456_s1 + $0x68] sm:$0xff]   ;;  %v5549_v31 = vld [vmem:[%s7456_s1 + $0x70] sm:$0xff]  }
  0x19   : > { %v5555_v19 = vld [vmem:[%s6090_s20 + $0x4] ss:$28 sps:$4 sm:$0xff]   ;;  %v5558_v21 = vld [vmem:[%s6090_s20 + $0xc] ss:$28 sps:$4 sm:$0xff]   ;;  %v6165_v32 = vld [vmem:[%s7456_s1 + $0xf0] sm:$0xff]  }
  0x1a   : > { %2130 = vmatpush1.bf16.msra.mxu1 %v5525_v5  ;;  %2419 = vmatpush1.bf16.msra.mxu0 %v6020_v6  ;;  %v6143_v28 = vld [vmem:[%s7456_s1 + $0xe0] sm:$0xff]   ;;  %v6154_v30 = vld [vmem:[%s7456_s1 + $0xe8] sm:$0xff]   ;;  %v5551_v33 = vld [vmem:[%s7456_s1 + $0x78] sm:$0xff]  }
  0x1b   : > { %2131 = vmatprep.subr.bf16.mxu1 %v5935_v1  ;;  %2420 = vmatprep.subr.bf16.mxu0 %v5935_v1  ;;  %v6176_v34 = vld [vmem:[%s7456_s1 + $0xf8] sm:$0xff]   ;;  %v5556_v36 = vld [vmem:[%s6090_s20 + $0x8] ss:$28 sps:$4 sm:$0xff]   ;;  %v5567_v43 = vld [vmem:[%s6090_s20 + $0x74] ss:$28 sps:$4 sm:$0xff]  }
  0x1c   : > { %2157 = vmatprep.mubr.bf16.mxu1 %v5555_v19  ;;  %2446 = vmatprep.mubr.bf16.mxu0 %v5558_v21  ;;  %v5553_v35 = vld [vmem:[%s6090_s20] ss:$28 sps:$4 sm:$0xff]   ;;  %v5566_v40 = vld [vmem:[%s7456_s1 + $0x108] sm:$0xff]   ;;  %v5564_v41 = vld [vmem:[%s6090_s20 + $0x38] ss:$28 sps:$4 sm:$0xff]  }
  0x1d   : > { %v5559_v37 = vld [vmem:[%s7456_s1 + $0x100] sm:$0xff]   ;;  %v5560_v38 = vld [vmem:[%s6090_s20 + $0x3c] ss:$28 sps:$4 sm:$0xff]   ;;  %v5579_v45 = vld [vmem:[%s7456_s1 + $0x110] sm:$0xff]  }
  0x1e   : > { %2132 = vmatpush1.bf16.msra.mxu1 %v5527_v7  ;;  %2421 = vmatpush1.bf16.msra.mxu0 %v6032_v8  ;;  %v5562_v39 = vld [vmem:[%s6090_s20 + $0x44] ss:$28 sps:$4 sm:$0xff]   ;;  %v5569_v44 = vld [vmem:[%s6090_s20 + $0x7c] ss:$28 sps:$4 sm:$0xff]   ;;  %v5571_v47 = vld [vmem:[%s6090_s20 + $0x70] ss:$28 sps:$4 sm:$0xff]  }
  0x1f   : > { %2133 = vmatprep.subr.bf16.mxu1 %v5935_v1  ;;  %2422 = vmatprep.subr.bf16.mxu0 %v5935_v1  ;;  %v5565_v42 = vld [vmem:[%s6090_s20 + $0x40] ss:$28 sps:$4 sm:$0xff]   ;;  %v5572_v48 = vld [vmem:[%s6090_s20 + $0x78] ss:$28 sps:$4 sm:$0xff]   ;;  %v5573_v49 = vld [vmem:[%s6090_s20 + $0xac] ss:$28 sps:$4 sm:$0xff]  }
  0x20   : > { %v5586_v46 = vld [vmem:[%s7456_s1 + $0x118] sm:$0xff]   ;;  %v5575_v50 = vld [vmem:[%s6090_s20 + $0xb4] ss:$28 sps:$4 sm:$0xff]   ;;  %v5599_v51 = vld [vmem:[%s7456_s1 + $0x120] sm:$0xff]  }
  0x21   : > { %v5606_v52 = vld [vmem:[%s7456_s1 + $0x128] sm:$0xff]   ;;  %v5580_v55 = vld [vmem:[%s6090_s20 + $0xe4] ss:$28 sps:$4 sm:$0xff]   ;;  %v5619_v57 = vld [vmem:[%s7456_s1 + $0x130] sm:$0xff]  }
  0x22   : > { %2134 = vmatpush1.bf16.msra.mxu1 %v5529_v9  ;;  %2423 = vmatpush1.bf16.msra.mxu0 %v6044_v10  ;;  %v5577_v53 = vld [vmem:[%s6090_s20 + $0xa8] ss:$28 sps:$4 sm:$0xff]   ;;  %v5578_v54 = vld [vmem:[%s6090_s20 + $0xb0] ss:$28 sps:$4 sm:$0xff]   ;;  %v5626_v58 = vld [vmem:[%s7456_s1 + $0x138] sm:$0xff]  }
  0x23   : > { %2135 = vmatprep.subr.bf16.mxu1 %v5935_v1  ;;  %2424 = vmatprep.subr.bf16.mxu0 %v5935_v1  ;;  %v5582_v56 = vld [vmem:[%s6090_s20 + $0xec] ss:$28 sps:$4 sm:$0xff]   ;;  %v5584_v59 = vld [vmem:[%s6090_s20 + $0xe0] ss:$28 sps:$4 sm:$0xff]   ;;  %v5598_v9 = vld [vmem:[%s6090_s20 + $0x158] ss:$28 sps:$4 sm:$0xff]  }
  0x24   : > { %v5585_v60 = vld [vmem:[%s6090_s20 + $0xe8] ss:$28 sps:$4 sm:$0xff]   ;;  %v5587_v61 = vld [vmem:[%s6090_s20 + $0x11c] ss:$28 sps:$4 sm:$0xff]   ;;  %v5597_v7 = vld [vmem:[%s6090_s20 + $0x150] ss:$28 sps:$4 sm:$0xff]  }
  0x25   : > { %v5589_v62 = vld [vmem:[%s6090_s20 + $0x124] ss:$28 sps:$4 sm:$0xff]   ;;  %v5646_v0 = vld [vmem:[%s7456_s1 + $0x148] sm:$0xff]   ;;  %v5595_v5 = vld [vmem:[%s6090_s20 + $0x15c] ss:$28 sps:$4 sm:$0xff]  }
  0x26   : > { %2136 = vmatpush1.bf16.msra.mxu1 %v5531_v11  ;;  %2425 = vmatpush1.bf16.msra.mxu0 %v6058_v12  ;;  %v5639_v63 = vld [vmem:[%s7456_s1 + $0x140] sm:$0xff]   ;;  %v5602_v11 = vld [vmem:[%s6090_s20 + $0x194] ss:$28 sps:$4 sm:$0xff]  }
  0x27   : > { %2137 = vmatprep.subr.bf16.mxu1 %v5935_v1  ;;  %2426 = vmatprep.subr.bf16.mxu0 %v5935_v1  ;;  %v5592_v3 = vld [vmem:[%s6090_s20 + $0x120] ss:$28 sps:$4 sm:$0xff]   ;;  %v5612_v21 = vld [vmem:[%s6090_s20 + $0x1c8] ss:$28 sps:$4 sm:$0xff]  }
  0x28   : > { %v5611_v19 = vld [vmem:[%s6090_s20 + $0x1c0] ss:$28 sps:$4 sm:$0xff]  }
  0x2a   : > { %2138 = vmatpush1.bf16.msra.mxu1 %v5533_v13  ;;  %2427 = vmatpush1.bf16.msra.mxu0 %v6070_v14  ;;  %v5604_v13 = vld [vmem:[%s6090_s20 + $0x188] ss:$28 sps:$4 sm:$0xff]  }
  0x2b   : > { %2139 = vmatprep.subr.bf16.mxu1 %v5935_v1  ;;  %2428 = vmatprep.subr.bf16.mxu0 %v5935_v1 }
  0x2e   : > { %2140 = vmatpush1.bf16.msra.mxu1 %v5535_v15  ;;  %2429 = vmatpush1.bf16.msra.mxu0 %v6081_v16  ;;  %v5605_v15 = vld [vmem:[%s6090_s20 + $0x190] ss:$28 sps:$4 sm:$0xff]  }
  0x2f   : > { %2141 = vmatprep.subr.bf16.mxu1 %v5935_v1  ;;  %2430 = vmatprep.subr.bf16.mxu0 %v5935_v1 }
  0x32   : > { %2142 = vmatpush1.bf16.msra.mxu1 %v5537_v17  ;;  %2431 = vmatpush1.bf16.msra.mxu0 %v6097_v18  ;;  %v5609_v17 = vld [vmem:[%s6090_s20 + $0x1cc] ss:$28 sps:$4 sm:$0xff]  }
  0x33   : > { %2143 = vmatprep.subr.bf16.mxu1 %v5935_v1  ;;  %2432 = vmatprep.subr.bf16.mxu0 %v5935_v1 }
  0x36   : > { %2144 = vmatpush1.bf16.msra.mxu1 %v5539_v20  ;;  %2433 = vmatpush1.bf16.msra.mxu0 %v6110_v22  ;;  %v5706_v20 = vld [vmem:[%s7456_s1 + $0x178] sm:$0xff]  }
  0x37   : > { %2145 = vmatprep.subr.bf16.mxu1 %v5935_v1  ;;  %2434 = vmatprep.subr.bf16.mxu0 %v5935_v1 }
  0x3a   : > { %2146 = vmatpush1.bf16.msra.mxu1 %v5541_v23  ;;  %2435 = vmatpush1.bf16.msra.mxu0 %v6121_v24  ;;  %v5615_v23 = vld [vmem:[%s6090_s20 + $0x204] ss:$28 sps:$4 sm:$0xff]  }
  0x3b   : > { %2147 = vmatprep.subr.bf16.mxu1 %v5935_v1  ;;  %2436 = vmatprep.subr.bf16.mxu0 %v5935_v1 }
  0x3e   : > { %2148 = vmatpush1.bf16.msra.mxu1 %v5543_v25  ;;  %2437 = vmatpush1.bf16.msra.mxu0 %v6132_v26  ;;  %v5618_v25 = vld [vmem:[%s6090_s20 + $0x200] ss:$28 sps:$4 sm:$0xff]  }
  0x3f   : > { %2149 = vmatprep.subr.bf16.mxu1 %v5935_v1  ;;  %2438 = vmatprep.subr.bf16.mxu0 %v5935_v1 }
  0x42   : > { %2150 = vmatpush1.bf16.msra.mxu1 %v5545_v27  ;;  %2439 = vmatpush1.bf16.msra.mxu0 %v6143_v28  ;;  %v5622_v27 = vld [vmem:[%s6090_s20 + $0x23c] ss:$28 sps:$4 sm:$0xff]  }
  0x43   : > { %2151 = vmatprep.subr.bf16.mxu1 %v5935_v1  ;;  %2440 = vmatprep.subr.bf16.mxu0 %v5935_v1 }
  0x46   : > { %2152 = vmatpush1.bf16.msra.mxu1 %v5547_v29  ;;  %2441 = vmatpush1.bf16.msra.mxu0 %v6154_v30  ;;  %v5627_v29 = vld [vmem:[%s6090_s20 + $0x26c] ss:$28 sps:$4 sm:$0xff]  }
  0x47   : > { %2153 = vmatprep.subr.bf16.mxu1 %v5935_v1  ;;  %2442 = vmatprep.subr.bf16.mxu0 %v5935_v1 }
  0x4a   : > { %2154 = vmatpush1.bf16.msra.mxu1 %v5549_v31  ;;  %2443 = vmatpush1.bf16.msra.mxu0 %v6165_v32  ;;  %v5631_v31 = vld [vmem:[%s6090_s20 + $0x268] ss:$28 sps:$4 sm:$0xff]  }
  0x4b   : > { %2155 = vmatprep.subr.bf16.mxu1 %v5935_v1  ;;  %2444 = vmatprep.subr.bf16.mxu0 %v5935_v1 }
  0x4e   : > { %2156 = vmatpush1.bf16.msra.mxu1 %v5551_v33  ;;  %2445 = vmatpush1.bf16.msra.mxu0 %v6176_v34  ;;  %v5633_v33 = vld [vmem:[%s6090_s20 + $0x2a4] ss:$28 sps:$4 sm:$0xff]  }
  0x4f   : > { %5189 = vmatprep.subr.bf16.mxu1 %v5935_v1  ;;  %2703 = vmatprep.subr.bf16.mxu0 %v5935_v1 }
  0x51   : > { %2158 = vmatmul.mubr.bf16.vlgmr.msra.gmra.mrb[0].mxu1 %v5553_v35  ;;  %2447 = vmatmul.mubr.bf16.vlgmr.msra.gmra.mrb[0].mxu0 %v5556_v36  ;;  %v5637_v35 = vld [vmem:[%s6090_s20 + $0x2a0] ss:$28 sps:$4 sm:$0xff]   ;;  %v5638_v36 = vld [vmem:[%s6090_s20 + $0x2a8] ss:$28 sps:$4 sm:$0xff]  }
  0x52   : > { %5205 = vmatpush1.bf16.msra.mxu1 %v5999_v2  ;;  %2704 = vmatpush1.bf16.msra.mxu0 %v5559_v37  ;;  %v5591_v2 = vld [vmem:[%s6090_s20 + $0x118] ss:$28 sps:$4 sm:$0xff]  }
  0x53   : > { %2165 = vmatprep.mubr.bf16.mxu1 %v5560_v38  ;;  %2454 = vmatprep.mubr.bf16.mxu0 %v5562_v39  ;;  %v5640_v37 = vld [vmem:[%s6090_s20 + $0x2dc] ss:$28 sps:$4 sm:$0xff]   ;;  %v5642_v38 = vld [vmem:[%s6090_s20 + $0x2e4] ss:$28 sps:$4 sm:$0xff]  }
  0x54   : > { %2705 = vmatprep.subr.bf16.mxu0 %v5935_v1  ;;  %5190 = vmatprep.subr.bf16.mxu1 %v5935_v1  ;;  %v5644_v39 = vld [vmem:[%s6090_s20 + $0x2d8] ss:$28 sps:$4 sm:$0xff]  }
  0x56   : > { %5206 = vmatpush1.bf16.msra.mxu1 %v6009_v4  ;;  %2706 = vmatpush1.bf16.msra.mxu0 %v5566_v40  ;;  %v5593_v4 = vld [vmem:[%s6090_s20 + $0x154] ss:$28 sps:$4 sm:$0xff]   ;;  %v5645_v40 = vld [vmem:[%s6090_s20 + $0x2e0] ss:$28 sps:$4 sm:$0xff]  }
  0x57   : > { %5191 = vmatprep.subr.bf16.mxu1 %v5935_v1  ;;  %2707 = vmatprep.subr.bf16.mxu0 %v5935_v1 }
  0x59   : > { %2166 = vmatmul.mubr.bf16.gmra.mrb[4].mxu1 %v5564_v41  ;;  %2455 = vmatmul.mubr.bf16.gmra.mrb[4].mxu0 %v5565_v42  ;;  %v5647_v41 = vld [vmem:[%s6090_s20 + $0x314] ss:$28 sps:$4 sm:$0xff]   ;;  %v5649_v42 = vld [vmem:[%s6090_s20 + $0x31c] ss:$28 sps:$4 sm:$0xff]  }
  0x5a   : > { %2173 = vmatprep.mubr.bf16.mxu1 %v5567_v43  ;;  %2462 = vmatprep.mubr.bf16.mxu0 %v5569_v44  ;;  %v5651_v43 = vld [vmem:[%s6090_s20 + $0x310] ss:$28 sps:$4 sm:$0xff]   ;;  %v5652_v44 = vld [vmem:[%s6090_s20 + $0x318] ss:$28 sps:$4 sm:$0xff]  }
  0x5b   : > { %2708 = vmatpush1.bf16.msra.mxu0 %v5579_v45  ;;  %5207 = vmatpush1.bf16.msra.mxu1 %v6020_v6  ;;  %v5659_v6 = vld [vmem:[%s7456_s1 + $0x150] sm:$0xff]   ;;  %v5653_v45 = vld [vmem:[%s6090_s20 + $0x34c] ss:$28 sps:$4 sm:$0xff]  }
  0x5c   : > { %2709 = vmatprep.subr.bf16.mxu0 %v5935_v1  ;;  %5192 = vmatprep.subr.bf16.mxu1 %v5935_v1 }
  0x5f   : > { %2710 = vmatpush1.bf16.msra.mxu0 %v5586_v46  ;;  %5208 = vmatpush1.bf16.msra.mxu1 %v6032_v8  ;;  %v5666_v8 = vld [vmem:[%s7456_s1 + $0x158] sm:$0xff]   ;;  %v5655_v46 = vld [vmem:[%s6090_s20 + $0x354] ss:$28 sps:$4 sm:$0xff]  }
  0x60   : > { %2711 = vmatprep.subr.bf16.mxu0 %v5935_v1  ;;  %5193 = vmatprep.subr.bf16.mxu1 %v5935_v1 }
  0x61   : > { %2174 = vmatmul.mubr.bf16.gmra.mrb[8].mxu1 %v5571_v47  ;;  %2463 = vmatmul.mubr.bf16.gmra.mrb[8].mxu0 %v5572_v48  ;;  %v5657_v47 = vld [vmem:[%s6090_s20 + $0x348] ss:$28 sps:$4 sm:$0xff]   ;;  %v5658_v48 = vld [vmem:[%s6090_s20 + $0x350] ss:$28 sps:$4 sm:$0xff]  }
  0x62   : > { %2181 = vmatprep.mubr.bf16.mxu1 %v5573_v49  ;;  %2470 = vmatprep.mubr.bf16.mxu0 %v5575_v50  ;;  %v5660_v49 = vld [vmem:[%s6090_s20 + $0x384] ss:$28 sps:$4 sm:$0xff]   ;;  %v5662_v50 = vld [vmem:[%s6090_s20 + $0x38c] ss:$28 sps:$4 sm:$0xff]  }
  0x63   : > { %2712 = vmatpush1.bf16.msra.mxu0 %v5599_v51  ;;  %5209 = vmatpush1.bf16.msra.mxu1 %v6044_v10  ;;  %v5600_v10 = vld [vmem:[%s6090_s20 + $0x18c] ss:$28 sps:$4 sm:$0xff]   ;;  %v5664_v51 = vld [vmem:[%s6090_s20 + $0x380] ss:$28 sps:$4 sm:$0xff]  }
  0x64   : > { %2713 = vmatprep.subr.bf16.mxu0 %v5935_v1  ;;  %5194 = vmatprep.subr.bf16.mxu1 %v5935_v1 }
  0x67   : > { %2714 = vmatpush1.bf16.msra.mxu0 %v5606_v52  ;;  %5210 = vmatpush1.bf16.msra.mxu1 %v6058_v12  ;;  %v5679_v12 = vld [vmem:[%s7456_s1 + $0x160] sm:$0xff]  }
  0x68   : > { %2715 = vmatprep.subr.bf16.mxu0 %v5935_v1  ;;  %5195 = vmatprep.subr.bf16.mxu1 %v5935_v1  ;;  %v5665_v52 = vld [vmem:[%s6090_s20 + $0x388] ss:$28 sps:$4 sm:$0xff]  }
  0x69   : > { %2182 = vmatmul.mubr.bf16.gmra.mrb[12].mxu1 %v5577_v53  ;;  %2471 = vmatmul.mubr.bf16.gmra.mrb[12].mxu0 %v5578_v54  ;;  %v5667_v53 = vld [vmem:[%s6090_s20 + $0x3bc] ss:$28 sps:$4 sm:$0xff]   ;;  %v5669_v54 = vld [vmem:[%s6090_s20 + $0x3c4] ss:$28 sps:$4 sm:$0xff]  }
  0x6a   : > { %2189 = vmatprep.mubr.bf16.mxu1 %v5580_v55  ;;  %2478 = vmatprep.mubr.bf16.mxu0 %v5582_v56  ;;  %v6347_v55 = vld [vmem:[%s7456_s1 + $0x180] sm:$0xff]   ;;  %v5671_v56 = vld [vmem:[%s6090_s20 + $0x3b8] ss:$28 sps:$4 sm:$0xff]  }
  0x6b   : > { %2716 = vmatpush1.bf16.msra.mxu0 %v5619_v57  ;;  %5211 = vmatpush1.bf16.msra.mxu1 %v6070_v14  ;;  %v5686_v14 = vld [vmem:[%s7456_s1 + $0x168] sm:$0xff]   ;;  %v5672_v57 = vld [vmem:[%s6090_s20 + $0x3c0] ss:$28 sps:$4 sm:$0xff]  }
  0x6c   : > { %2717 = vmatprep.subr.bf16.mxu0 %v5935_v1  ;;  %5196 = vmatprep.subr.bf16.mxu1 %v5935_v1 }
  0x6f   : > { %2718 = vmatpush1.bf16.msra.mxu0 %v5626_v58  ;;  %5212 = vmatpush1.bf16.msra.mxu1 %v6081_v16  ;;  %v5607_v16 = vld [vmem:[%s6090_s20 + $0x1c4] ss:$28 sps:$4 sm:$0xff]   ;;  %v5673_v58 = vld [vmem:[%s6090_s20 + $0x3f4] ss:$28 sps:$4 sm:$0xff]  }
  0x70   : > { %2719 = vmatprep.subr.bf16.mxu0 %v5935_v1  ;;  %5197 = vmatprep.subr.bf16.mxu1 %v5935_v1 }
  0x71   : > { %2190 = vmatmul.mubr.bf16.gmra.mrb[16].mxu1 %v5584_v59  ;;  %2479 = vmatmul.mubr.bf16.gmra.mrb[16].mxu0 %v5585_v60  ;;  %v5675_v59 = vld [vmem:[%s6090_s20 + $0x3fc] ss:$28 sps:$4 sm:$0xff]   ;;  %v5677_v60 = vld [vmem:[%s6090_s20 + $0x3f0] ss:$28 sps:$4 sm:$0xff]  }
  0x72   : > { %2197 = vmatprep.mubr.bf16.mxu1 %v5587_v61  ;;  %2486 = vmatprep.mubr.bf16.mxu0 %v5589_v62  ;;  %v5678_v61 = vld [vmem:[%s6090_s20 + $0x3f8] ss:$28 sps:$4 sm:$0xff]   ;;  %v5680_v62 = vld [vmem:[%s6090_s20 + $0x42c] ss:$28 sps:$4 sm:$0xff]  }
  0x73   : > { %2720 = vmatpush1.bf16.msra.mxu0 %v5639_v63  ;;  %5213 = vmatpush1.bf16.msra.mxu1 %v6097_v18  ;;  %v5699_v18 = vld [vmem:[%s7456_s1 + $0x170] sm:$0xff]  }
  0x74   : > { %2721 = vmatprep.subr.bf16.mxu0 %v5935_v1  ;;  %5198 = vmatprep.subr.bf16.mxu1 %v5935_v1  ;;  %v5682_v63 = vld [vmem:[%s6090_s20 + $0x434] ss:$28 sps:$4 sm:$0xff]  }
  0x77   : > { %2722 = vmatpush1.bf16.msra.mxu0 %v5646_v0  ;;  %5214 = vmatpush1.bf16.msra.mxu1 %v6110_v22  ;;  %v5613_v22 = vld [vmem:[%s6090_s20 + $0x1fc] ss:$28 sps:$4 sm:$0xff]   ;;  %v5684_v0 = vld [vmem:[%s6090_s20 + $0x428] ss:$28 sps:$4 sm:$0xff]  }
  0x78   : > { %2723 = vmatprep.subr.bf16.mxu0 %v5935_v1  ;;  %5199 = vmatprep.subr.bf16.mxu1 %v5935_v1 }
  0x79   : > { %2198 = vmatmul.mubr.bf16.gmra.mrb[20].mxu1 %v5591_v2  ;;  %2487 = vmatmul.mubr.bf16.gmra.mrb[20].mxu0 %v5592_v3  ;;  %v5685_v2 = vld [vmem:[%s6090_s20 + $0x430] ss:$28 sps:$4 sm:$0xff]   ;;  %v5687_v3 = vld [vmem:[%s6090_s20 + $0x464] ss:$28 sps:$4 sm:$0xff]  }
  0x7a   : > { %2205 = vmatprep.mubr.bf16.mxu1 %v5593_v4  ;;  %2494 = vmatprep.mubr.bf16.mxu0 %v5595_v5  ;;  %v5689_v4 = vld [vmem:[%s6090_s20 + $0x46c] ss:$28 sps:$4 sm:$0xff]   ;;  %v5691_v5 = vld [vmem:[%s6090_s20 + $0x460] ss:$28 sps:$4 sm:$0xff]  }
  0x7b   : > { %2724 = vmatpush1.bf16.msra.mxu0 %v5659_v6  ;;  %5215 = vmatpush1.bf16.msra.mxu1 %v6121_v24  ;;  %v5617_v24 = vld [vmem:[%s6090_s20 + $0x1f8] ss:$28 sps:$4 sm:$0xff]   ;;  %v5692_v6 = vld [vmem:[%s6090_s20 + $0x468] ss:$28 sps:$4 sm:$0xff]  }
  0x7c   : > { %2725 = vmatprep.subr.bf16.mxu0 %v5935_v1  ;;  %5200 = vmatprep.subr.bf16.mxu1 %v5935_v1 }
  0x7f   : > { %2726 = vmatpush1.bf16.msra.mxu0 %v5666_v8  ;;  %5216 = vmatpush1.bf16.msra.mxu1 %v6132_v26  ;;  %v5620_v26 = vld [vmem:[%s6090_s20 + $0x234] ss:$28 sps:$4 sm:$0xff]   ;;  %v5695_v8 = vld [vmem:[%s6090_s20 + $0x4a4] ss:$28 sps:$4 sm:$0xff]  }
  0x80   : > { %2727 = vmatprep.subr.bf16.mxu0 %v5935_v1  ;;  %5201 = vmatprep.subr.bf16.mxu1 %v5935_v1 }
  0x81   : > { %2206 = vmatmul.mubr.bf16.gmra.mrb[24].mxu1 %v5597_v7  ;;  %2495 = vmatmul.mubr.bf16.gmra.mrb[24].mxu0 %v5598_v9  ;;  %v5693_v7 = vld [vmem:[%s6090_s20 + $0x49c] ss:$28 sps:$4 sm:$0xff]  }
  0x82   : > { %2213 = vmatprep.mubr.bf16.mxu1 %v5600_v10  ;;  %2502 = vmatprep.mubr.bf16.mxu0 %v5602_v11  ;;  %v5697_v9 = vld [vmem:[%s6090_s20 + $0x498] ss:$28 sps:$4 sm:$0xff]   ;;  %v5698_v10 = vld [vmem:[%s6090_s20 + $0x4a0] ss:$28 sps:$4 sm:$0xff]  }
  0x83   : > { %2728 = vmatpush1.bf16.msra.mxu0 %v5679_v12  ;;  %5217 = vmatpush1.bf16.msra.mxu1 %v6143_v28  ;;  %v5625_v28 = vld [vmem:[%s6090_s20 + $0x238] ss:$28 sps:$4 sm:$0xff]  }
  0x84   : > { %2729 = vmatprep.subr.bf16.mxu0 %v5935_v1  ;;  %5202 = vmatprep.subr.bf16.mxu1 %v5935_v1  ;;  %v5700_v11 = vld [vmem:[%s6090_s20 + $0x4d4] ss:$28 sps:$4 sm:$0xff]   ;;  %v5702_v12 = vld [vmem:[%s6090_s20 + $0x4dc] ss:$28 sps:$4 sm:$0xff]  }
  0x87   : > { %2730 = vmatpush1.bf16.msra.mxu0 %v5686_v14  ;;  %5218 = vmatpush1.bf16.msra.mxu1 %v6154_v30  ;;  %v5629_v30 = vld [vmem:[%s6090_s20 + $0x274] ss:$28 sps:$4 sm:$0xff]  }
  0x88   : > { %2731 = vmatprep.subr.bf16.mxu0 %v5935_v1  ;;  %5203 = vmatprep.subr.bf16.mxu1 %v5935_v1  ;;  %v5705_v14 = vld [vmem:[%s6090_s20 + $0x4d8] ss:$28 sps:$4 sm:$0xff]  }
  0x89   : > { %2214 = vmatmul.mubr.bf16.gmra.mrb[28].mxu1 %v5604_v13  ;;  %2503 = vmatmul.mubr.bf16.gmra.mrb[28].mxu0 %v5605_v15  ;;  %v5704_v13 = vld [vmem:[%s6090_s20 + $0x4d0] ss:$28 sps:$4 sm:$0xff]  }
  0x8a   : > { %2221 = vmatprep.mubr.bf16.mxu1 %v5607_v16  ;;  %2510 = vmatprep.mubr.bf16.mxu0 %v5609_v17  ;;  %v5707_v15 = vld [vmem:[%s6090_s20 + $0x50c] ss:$28 sps:$4 sm:$0xff]   ;;  %v5709_v16 = vld [vmem:[%s6090_s20 + $0x514] ss:$28 sps:$4 sm:$0xff]  }
  0x8b   : > { %2732 = vmatpush1.bf16.msra.mxu0 %v5699_v18  ;;  %5219 = vmatpush1.bf16.msra.mxu1 %v6165_v32  ;;  %v5632_v32 = vld [vmem:[%s6090_s20 + $0x270] ss:$28 sps:$4 sm:$0xff]   ;;  %v5711_v17 = vld [vmem:[%s6090_s20 + $0x508] ss:$28 sps:$4 sm:$0xff]  }
  0x8c   : > { %2733 = vmatprep.subr.bf16.mxu0 %v5935_v1  ;;  %5204 = vmatprep.subr.bf16.mxu1 %v5935_v1  ;;  %v5624_v1 = vld [vmem:[%s6090_s20 + $0x230] ss:$28 sps:$4 sm:$0xff]  }
  0x8d   : > { %v5712_v18 = vld [vmem:[%s6090_s20 + $0x510] ss:$28 sps:$4 sm:$0xff]  }
  0x8f   : > { %2734 = vmatpush1.bf16.msra.mxu0 %v5706_v20  ;;  %5220 = vmatpush1.bf16.msra.mxu1 %v6176_v34  ;;  %v5635_v34 = vld [vmem:[%s6090_s20 + $0x2ac] ss:$28 sps:$4 sm:$0xff]   ;;  %v5717_v20 = vld [vmem:[%s6090_s20 + $0x14] ss:$28 sps:$4 sm:$0xff]  }
  0x90   : > { %5113 = vmatprep.subr.bf16.mxu1 %v6347_v55 }
  0x91   : > { %2222 = vmatmul.mubr.bf16.gmra.mrb[32].mxu1 %v5611_v19  ;;  %2511 = vmatmul.mubr.bf16.gmra.mrb[32].mxu0 %v5612_v21  ;;  %v5713_v19 = vld [vmem:[%s6090_s20 + $0x544] ss:$28 sps:$4 sm:$0xff]  }
  0x92   : > { %2229 = vmatprep.mubr.bf16.mxu1 %v5613_v22  ;;  %2518 = vmatprep.mubr.bf16.mxu0 %v5615_v23  ;;  %v5718_v21 = vld [vmem:[%s6090_s20 + $0x540] ss:$28 sps:$4 sm:$0xff]   ;;  %v5715_v22 = vld [vmem:[%s6090_s20 + $0x10] ss:$28 sps:$4 sm:$0xff]  }
  0x93   : > { %v5719_v23 = vld [vmem:[%s6090_s20 + $0x57c] ss:$28 sps:$4 sm:$0xff]  }
  0x99   : > { %2230 = vmatmul.mubr.bf16.gmra.mrb[36].mxu1 %v5617_v24  ;;  %2519 = vmatmul.mubr.bf16.gmra.mrb[36].mxu0 %v5618_v25  ;;  %v5721_v24 = vld [vmem:[%s6090_s20 + $0x4c] ss:$28 sps:$4 sm:$0xff]   ;;  %v5723_v25 = vld [vmem:[%s6090_s20 + $0x578] ss:$28 sps:$4 sm:$0xff]  }
  0x9a   : > { %2237 = vmatprep.mubr.bf16.mxu1 %v5620_v26  ;;  %2526 = vmatprep.mubr.bf16.mxu0 %v5622_v27  ;;  %v5724_v26 = vld [vmem:[%s6090_s20 + $0x48] ss:$28 sps:$4 sm:$0xff]   ;;  %v5725_v27 = vld [vmem:[%s6090_s20 + $0x5b4] ss:$28 sps:$4 sm:$0xff]  }
  0xa1   : > { %2238 = vmatmul.mubr.bf16.gmra.mrb[40].mxu1 %v5624_v1  ;;  %2527 = vmatmul.mubr.bf16.gmra.mrb[40].mxu0 %v5625_v28  ;;  %v5727_v1 = vld [vmem:[%s6090_s20 + $0x84] ss:$28 sps:$4 sm:$0xff]   ;;  %v5729_v28 = vld [vmem:[%s6090_s20 + $0x5b0] ss:$28 sps:$4 sm:$0xff]  }
  0xa2   : > { %2245 = vmatprep.mubr.bf16.mxu1 %v5627_v29  ;;  %2534 = vmatprep.mubr.bf16.mxu0 %v5629_v30  ;;  %v5730_v29 = vld [vmem:[%s6090_s20 + $0x80] ss:$28 sps:$4 sm:$0xff]   ;;  %v5731_v30 = vld [vmem:[%s6090_s20 + $0x5ec] ss:$28 sps:$4 sm:$0xff]  }
  0xa9   : > { %2246 = vmatmul.mubr.bf16.gmra.mrb[44].mxu1 %v5631_v31  ;;  %2535 = vmatmul.mubr.bf16.gmra.mrb[44].mxu0 %v5632_v32  ;;  %v5733_v31 = vld [vmem:[%s6090_s20 + $0xbc] ss:$28 sps:$4 sm:$0xff]  }
  0xaa   : > { %2253 = vmatprep.mubr.bf16.mxu1 %v5633_v33  ;;  %2542 = vmatprep.mubr.bf16.mxu0 %v5635_v34  ;;  %v5735_v34 = vld [vmem:[%s6090_s20 + $0x5e8] ss:$28 sps:$4 sm:$0xff]  }
  0xb1   : > { %2254 = vmatmul.mubr.bf16.gmra.mrb[48].mxu1 %v5637_v35  ;;  %2543 = vmatmul.mubr.bf16.gmra.mrb[48].mxu0 %v5638_v36  ;;  %v5736_v36 = vld [vmem:[%s6090_s20 + $0xb8] ss:$28 sps:$4 sm:$0xff]  }
  0xb2   : > { %2261 = vmatprep.mubr.bf16.mxu1 %v5640_v37  ;;  %2550 = vmatprep.mubr.bf16.mxu0 %v5642_v38  ;;  %v5737_v37 = vld [vmem:[%s6090_s20 + $0x624] ss:$28 sps:$4 sm:$0xff]  }
  0xb9   : > { %2262 = vmatmul.mubr.bf16.gmra.mrb[52].mxu1 %v5644_v39  ;;  %2551 = vmatmul.mubr.bf16.gmra.mrb[52].mxu0 %v5645_v40  ;;  %v5739_v39 = vld [vmem:[%s6090_s20 + $0xf4] ss:$28 sps:$4 sm:$0xff]  }
  0xba   : > { %2269 = vmatprep.mubr.bf16.mxu1 %v5647_v41  ;;  %2558 = vmatprep.mubr.bf16.mxu0 %v5649_v42  ;;  %v5741_v42 = vld [vmem:[%s6090_s20 + $0x620] ss:$28 sps:$4 sm:$0xff]  }
  0xc1   : > { %2270 = vmatmul.mubr.bf16.gmra.mrb[56].mxu1 %v5651_v43  ;;  %2559 = vmatmul.mubr.bf16.gmra.mrb[56].mxu0 %v5652_v44  ;;  %v5742_v44 = vld [vmem:[%s6090_s20 + $0xf0] ss:$28 sps:$4 sm:$0xff]  }
  0xc2   : > { %2277 = vmatprep.mubr.bf16.mxu1 %v5653_v45  ;;  %2566 = vmatprep.mubr.bf16.mxu0 %v5655_v46  ;;  %v5743_v45 = vld [vmem:[%s6090_s20 + $0x65c] ss:$28 sps:$4 sm:$0xff]  }
  0xc9   : > { %2278 = vmatmul.mubr.bf16.gmra.mrb[60].mxu1 %v5657_v47  ;;  %2567 = vmatmul.mubr.bf16.gmra.mrb[60].mxu0 %v5658_v48  ;;  %v5745_v47 = vld [vmem:[%s6090_s20 + $0x12c] ss:$28 sps:$4 sm:$0xff]  }
  0xca   : > { %2285 = vmatprep.mubr.bf16.mxu1 %v5660_v49  ;;  %2574 = vmatprep.mubr.bf16.mxu0 %v5662_v50  ;;  %v5747_v50 = vld [vmem:[%s6090_s20 + $0x658] ss:$28 sps:$4 sm:$0xff]  }
  0xd1   : > { %2286 = vmatmul.mubr.bf16.gmra.mrb[64].mxu1 %v5664_v51  ;;  %2575 = vmatmul.mubr.bf16.gmra.mrb[64].mxu0 %v5665_v52  ;;  %v5748_v52 = vld [vmem:[%s6090_s20 + $0x128] ss:$28 sps:$4 sm:$0xff]  }
  0xd2   : > { %2293 = vmatprep.mubr.bf16.mxu1 %v5667_v53  ;;  %2582 = vmatprep.mubr.bf16.mxu0 %v5669_v54  ;;  %v5749_v53 = vld [vmem:[%s6090_s20 + $0x694] ss:$28 sps:$4 sm:$0xff]  }
  0xd9   : > { %2294 = vmatmul.mubr.bf16.gmra.mrb[68].mxu1 %v5671_v56  ;;  %2583 = vmatmul.mubr.bf16.gmra.mrb[68].mxu0 %v5672_v57  ;;  %v5751_v56 = vld [vmem:[%s6090_s20 + $0x164] ss:$28 sps:$4 sm:$0xff]  }
  0xda   : > { %2301 = vmatprep.mubr.bf16.mxu1 %v5673_v58  ;;  %2590 = vmatprep.mubr.bf16.mxu0 %v5675_v59  ;;  %v5753_v59 = vld [vmem:[%s6090_s20 + $0x690] ss:$28 sps:$4 sm:$0xff]  }
  0xe1   : > { %2302 = vmatmul.mubr.bf16.gmra.mrb[72].mxu1 %v5677_v60  ;;  %2591 = vmatmul.mubr.bf16.gmra.mrb[72].mxu0 %v5678_v61  ;;  %v5754_v61 = vld [vmem:[%s6090_s20 + $0x160] ss:$28 sps:$4 sm:$0xff]  }
  0xe2   : > { %2309 = vmatprep.mubr.bf16.mxu1 %v5680_v62  ;;  %2598 = vmatprep.mubr.bf16.mxu0 %v5682_v63  ;;  %v5755_v62 = vld [vmem:[%s6090_s20 + $0x6cc] ss:$28 sps:$4 sm:$0xff]  }
  0xe9   : > { %2310 = vmatmul.mubr.bf16.gmra.mrb[76].mxu1 %v5684_v0  ;;  %2599 = vmatmul.mubr.bf16.gmra.mrb[76].mxu0 %v5685_v2  ;;  %v5757_v0 = vld [vmem:[%s6090_s20 + $0x19c] ss:$28 sps:$4 sm:$0xff]  }
  0xea   : > { %2317 = vmatprep.mubr.bf16.mxu1 %v5687_v3  ;;  %2606 = vmatprep.mubr.bf16.mxu0 %v5689_v4  ;;  %v5759_v4 = vld [vmem:[%s6090_s20 + $0x6c8] ss:$28 sps:$4 sm:$0xff]  }
  0xf1   : > { %2318 = vmatmul.mubr.bf16.gmra.mrb[80].mxu1 %v5691_v5  ;;  %2607 = vmatmul.mubr.bf16.gmra.mrb[80].mxu0 %v5692_v6  ;;  %v5760_v6 = vld [vmem:[%s6090_s20 + $0x198] ss:$28 sps:$4 sm:$0xff]  }
  0xf2   : > { %2325 = vmatprep.mubr.bf16.mxu1 %v5693_v7  ;;  %2614 = vmatprep.mubr.bf16.mxu0 %v5695_v8  ;;  %v5763_v7 = vld [vmem:[%s6090_s20 + $0x54c] ss:$28 sps:$4 sm:$0xff]  }
  0xf9   : > { %2326 = vmatmul.mubr.bf16.gmra.mrb[84].mxu1 %v5697_v9  ;;  %2615 = vmatmul.mubr.bf16.gmra.mrb[84].mxu0 %v5698_v10  ;;  %v5764_v9 = vld [vmem:[%s6090_s20 + $0x1d4] ss:$28 sps:$4 sm:$0xff]  }
  0xfa   : > { %2333 = vmatprep.mubr.bf16.mxu1 %v5700_v11  ;;  %2622 = vmatprep.mubr.bf16.mxu0 %v5702_v12  ;;  %v5761_v12 = vld [vmem:[%s6090_s20 + $0x548] ss:$28 sps:$4 sm:$0xff]  }
 0x101   : > { %2334 = vmatmul.mubr.bf16.gmra.mrb[88].mxu1 %v5704_v13  ;;  %2623 = vmatmul.mubr.bf16.gmra.mrb[88].mxu0 %v5705_v14  ;;  %v5766_v14 = vld [vmem:[%s6090_s20 + $0x1d0] ss:$28 sps:$4 sm:$0xff]  }
 0x102   : > { %2341 = vmatprep.mubr.bf16.mxu1 %v5707_v15  ;;  %2630 = vmatprep.mubr.bf16.mxu0 %v5709_v16  ;;  %v5768_v16 = vld [vmem:[%s6090_s20 + $0x584] ss:$28 sps:$4 sm:$0xff]  }
 0x109   : > { %2342 = vmatmul.mubr.bf16.gmra.mrb[92].mxu1 %v5711_v17  ;;  %2631 = vmatmul.mubr.bf16.gmra.mrb[92].mxu0 %v5712_v18  ;;  %v5770_v17 = vld [vmem:[%s6090_s20 + $0x20c] ss:$28 sps:$4 sm:$0xff]  }
 0x10a   : > { %2349 = vmatprep.mubr.bf16.mxu1 %v5713_v19  ;;  %2735 = vmatprep.mubr.bf16.mxu0 %v5717_v20  ;;  %v5774_v18 = vld [vmem:[%s7456_s1 + $0x188] sm:$0xff]   ;;  %v5785_v19 = vld [vmem:[%s7456_s1 + $0x190] sm:$0xff]  }
 0x111   : > { %2350 = vmatmul.mubr.bf16.gmra.mrb[96].mxu1 %v5718_v21  ;;  %2736 = vmatmul.mubr.bf16.vlgmr.msra.gmra.mrb[0].mxu0 %v5715_v22  ;;  %v5772_v22 = vld [vmem:[%s6090_s20 + $0x580] ss:$28 sps:$4 sm:$0xff]  }
 0x112   : > { %2357 = vmatprep.mubr.bf16.mxu1 %v5719_v23  ;;  %2743 = vmatprep.mubr.bf16.mxu0 %v5721_v24  ;;  %v5773_v24 = vld [vmem:[%s6090_s20 + $0x208] ss:$28 sps:$4 sm:$0xff]  }
 0x119   : > { %2358 = vmatmul.mubr.bf16.gmra.mrb[100].mxu1 %v5723_v25  ;;  %2744 = vmatmul.mubr.bf16.gmra.mrb[4].mxu0 %v5724_v26  ;;  %v5775_v25 = vld [vmem:[%s6090_s20 + $0x5bc] ss:$28 sps:$4 sm:$0xff]  }
 0x11a   : > { %2365 = vmatprep.mubr.bf16.mxu1 %v5725_v27  ;;  %2751 = vmatprep.mubr.bf16.mxu0 %v5727_v1  ;;  %v5794_v27 = vld [vmem:[%s7456_s1 + $0x198] sm:$0xff]  }
 0x121   : > { %2366 = vmatmul.mubr.bf16.gmra.mrb[104].mxu1 %v5729_v28  ;;  %2752 = vmatmul.mubr.bf16.gmra.mrb[8].mxu0 %v5730_v29  ;;  %v5801_v28 = vld [vmem:[%s7456_s1 + $0x1a0] sm:$0xff]  }
 0x122   : > { %2373 = vmatprep.mubr.bf16.mxu1 %v5731_v30  ;;  %2759 = vmatprep.mubr.bf16.mxu0 %v5733_v31  ;;  %v5779_v30 = vld [vmem:[%s6090_s20 + $0x5b8] ss:$28 sps:$4 sm:$0xff]  }
 0x124   : > { %v6390_v32 = vpop.f32.mrb[0].mxu1 }
 0x125   : > { %v2161_v33 = vpop.f32.mrb[1].mxu1 }
 0x126   : > { %v6393_v35 = vpop.f32.mrb[2].mxu1  ;;  %v5780_v33 = vld [vmem:[%s6090_s20 + $0x240] ss:$28 sps:$4 sm:$0xff]  }
 0x127   : > { %v2164_v38 = vpop.f32.mrb[3].mxu1 }
 0x128   : > { %v5812_v38 = vld [vmem:[%s7456_s1 + $0x1a8] sm:$0xff]  }
 0x129   : > { %2374 = vmatmul.mubr.bf16.gmra.mrb[108].mxu1 %v5735_v34  ;;  %2760 = vmatmul.mubr.bf16.gmra.mrb[12].mxu0 %v5736_v36  ;;  %v5781_v34 = vld [vmem:[%s6090_s20 + $0x5f4] ss:$28 sps:$4 sm:$0xff]  }
 0x12a   : > { %2381 = vmatprep.mubr.bf16.mxu1 %v5737_v37  ;;  %2767 = vmatprep.mubr.bf16.mxu0 %v5739_v39  ;;  %v5783_v37 = vld [vmem:[%s6090_s20 + $0x27c] ss:$28 sps:$4 sm:$0xff]  }
 0x12c   : > { %v6398_v40 = vpop.f32.mrb[4].mxu1 }
 0x12d   : > { %v2169_v41 = vpop.f32.mrb[5].mxu1 }
 0x12e   : > { %v6401_v43 = vpop.f32.mrb[6].mxu1 }
 0x12f   : > { %v2172_v46 = vpop.f32.mrb[7].mxu1 }
 0x130   : > { %v5788_v46 = vld [vmem:[%s6090_s20 + $0x62c] ss:$28 sps:$4 sm:$0xff]  }
 0x131   : > { %2382 = vmatmul.mubr.bf16.gmra.mrb[112].mxu1 %v5741_v42  ;;  %2768 = vmatmul.mubr.bf16.gmra.mrb[16].mxu0 %v5742_v44  ;;  %v5786_v42 = vld [vmem:[%s6090_s20 + $0x5f0] ss:$28 sps:$4 sm:$0xff]  }
 0x132   : > { %2389 = vmatprep.mubr.bf16.mxu1 %v5743_v45  ;;  %2775 = vmatprep.mubr.bf16.mxu0 %v5745_v47  ;;  %v5787_v45 = vld [vmem:[%s6090_s20 + $0x278] ss:$28 sps:$4 sm:$0xff]  }
 0x134   : > { %v6406_v48 = vpop.f32.mrb[8].mxu1 }
 0x135   : > { %v2177_v49 = vpop.f32.mrb[9].mxu1 }
 0x136   : > { %v6409_v51 = vpop.f32.mrb[10].mxu1  ;;  %v5790_v49 = vld [vmem:[%s6090_s20 + $0x2b4] ss:$28 sps:$4 sm:$0xff]  }
 0x137   : > { %v2180_v54 = vpop.f32.mrb[11].mxu1 }
 0x139   : > { %2390 = vmatmul.mubr.bf16.gmra.mrb[116].mxu1 %v5747_v50  ;;  %2776 = vmatmul.mubr.bf16.gmra.mrb[20].mxu0 %v5748_v52 }
 0x13a   : > { %2397 = vmatprep.mubr.bf16.mxu1 %v5749_v53  ;;  %2783 = vmatprep.mubr.bf16.mxu0 %v5751_v56  ;;  %v5792_v53 = vld [vmem:[%s6090_s20 + $0x628] ss:$28 sps:$4 sm:$0xff]   ;;  %v5793_v56 = vld [vmem:[%s6090_s20 + $0x2b0] ss:$28 sps:$4 sm:$0xff]  }
 0x13c   : > { %v6414_v57 = vpop.f32.mrb[12].mxu1 }
 0x13d   : > { %v2185_v58 = vpop.f32.mrb[13].mxu1 }
 0x13e   : > { %v6417_v60 = vpop.f32.mrb[14].mxu1  ;;  %v5795_v58 = vld [vmem:[%s6090_s20 + $0x664] ss:$28 sps:$4 sm:$0xff]  }
 0x13f   : > { %v2188_v63 = vpop.f32.mrb[15].mxu1 }
 0x141   : > { %2398 = vmatmul.mubr.bf16.gmra.mrb[120].mxu1 %v5753_v59  ;;  %2784 = vmatmul.mubr.bf16.gmra.mrb[24].mxu0 %v5754_v61  ;;  %v5797_v61 = vld [vmem:[%s6090_s20 + $0x2ec] ss:$28 sps:$4 sm:$0xff]  }
 0x142   : > { %2405 = vmatprep.mubr.bf16.mxu1 %v5755_v62  ;;  %2791 = vmatprep.mubr.bf16.mxu0 %v5757_v0  ;;  %v5799_v0 = vld [vmem:[%s6090_s20 + $0x660] ss:$28 sps:$4 sm:$0xff]  }
 0x144   : > { %v6422_v2 = vpop.f32.mrb[16].mxu1 }
 0x145   : > { %v2193_v3 = vpop.f32.mrb[17].mxu1 }
 0x146   : > { %v6425_v5 = vpop.f32.mrb[18].mxu1 }
 0x147   : > { %v2196_v8 = vpop.f32.mrb[19].mxu1 }
 0x148   : > { %v5804_v8 = vld [vmem:[%s6090_s20 + $0x324] ss:$28 sps:$4 sm:$0xff]  }
 0x149   : > { %2406 = vmatmul.mubr.bf16.gmra.mrb[124].mxu1 %v5759_v4  ;;  %2792 = vmatmul.mubr.bf16.gmra.mrb[28].mxu0 %v5760_v6  ;;  %v5800_v4 = vld [vmem:[%s6090_s20 + $0x2e8] ss:$28 sps:$4 sm:$0xff]   ;;  %v5802_v6 = vld [vmem:[%s6090_s20 + $0x69c] ss:$28 sps:$4 sm:$0xff]  }
 0x14a   : > { %2638 = vmatprep.mubr.bf16.mxu1 %v5763_v7  ;;  %2799 = vmatprep.mubr.bf16.mxu0 %v5764_v9 }
 0x14c   : > { %v6430_v10 = vpop.f32.mrb[20].mxu1 }
 0x14d   : > { %v2201_v11 = vpop.f32.mrb[21].mxu1 }
 0x14e   : > { %v6433_v13 = vpop.f32.mrb[22].mxu1 }
 0x14f   : > { %v2204_v15 = vpop.f32.mrb[23].mxu1 }
 0x150   : > { %v5807_v15 = vld [vmem:[%s6090_s20 + $0x320] ss:$28 sps:$4 sm:$0xff]  }
 0x151   : > { %2639 = vmatmul.mubr.bf16.vlgmr.msra.gmra.mrb[96].mxu1 %v5761_v12  ;;  %2800 = vmatmul.mubr.bf16.gmra.mrb[32].mxu0 %v5766_v14  ;;  %v5806_v12 = vld [vmem:[%s6090_s20 + $0x698] ss:$28 sps:$4 sm:$0xff]  }
 0x152   : > { %5114 = vmatpush3.bf16.msra.mxu1 %v6347_v55  ;;  %2646 = vmatprep.mubr.bf16.mxu1 %v5768_v16  ;;  %v5777_v55 = vld [vmem:[%s6090_s20 + $0x244] ss:$28 sps:$4 sm:$0xff]   ;;  %v5808_v16 = vld [vmem:[%s6090_s20 + $0x6d4] ss:$28 sps:$4 sm:$0xff]  }
 0x153   : > { %2807 = vmatprep.mubr.bf16.mxu0 %v5770_v17  ;;  %5115 = vmatprep.subr.bf16.mxu1 %v5774_v18 }
 0x154   : > { %v6445_v20 = vpop.f32.mrb[24].mxu1 }
 0x155   : > { %v2209_v21 = vpop.f32.mrb[25].mxu1 }
 0x156   : > { %v6448_v23 = vpop.f32.mrb[26].mxu1  ;;  %5116 = vmatpush3.bf16.msra.mxu1 %v5774_v18  ;;  %v5810_v18 = vld [vmem:[%s6090_s20 + $0x35c] ss:$28 sps:$4 sm:$0xff]  }
 0x157   : > { %v2212_v26 = vpop.f32.mrb[27].mxu1  ;;  %5117 = vmatprep.subr.bf16.mxu1 %v5785_v19 }
 0x158   : > { %v5817_v26 = vld [vmem:[%s6090_s20 + $0x18] ss:$28 sps:$4 sm:$0xff]  }
 0x159   : > { %2647 = vmatmul.mubr.bf16.gmra.mrb[100].mxu1 %v5772_v22  ;;  %2808 = vmatmul.mubr.bf16.gmra.mrb[36].mxu0 %v5773_v24  ;;  %v5813_v22 = vld [vmem:[%s6090_s20 + $0x6d0] ss:$28 sps:$4 sm:$0xff]  }
 0x15a   : > { %2654 = vmatprep.mubr.bf16.mxu1 %v5775_v25  ;;  %2815 = vmatprep.mubr.bf16.mxu0 %v5777_v55  ;;  %v5814_v25 = vld [vmem:[%s6090_s20 + $0x358] ss:$28 sps:$4 sm:$0xff]  }
 0x15b   : > { %5118 = vmatpush3.bf16.msra.mxu1 %v5785_v19 }
 0x15c   : > { %v6456_v1 = vpop.f32.mrb[28].mxu1  ;;  %5119 = vmatprep.subr.bf16.mxu1 %v5794_v27 }
 0x15d   : > { %v2217_v29 = vpop.f32.mrb[29].mxu1 }
 0x15e   : > { %v6462_v31 = vpop.f32.mrb[30].mxu1 }
 0x15f   : > { %v2220_v36 = vpop.f32.mrb[31].mxu1  ;;  %5120 = vmatpush3.bf16.msra.mxu1 %v5794_v27  ;;  %v5815_v27 = vld [vmem:[%s6090_s20 + $0x394] ss:$28 sps:$4 sm:$0xff]  }
 0x160   : > { %5121 = vmatprep.subr.bf16.mxu1 %v5801_v28  ;;  %v5822_v36 = vld [vmem:[%s6090_s20 + $0x88] ss:$28 sps:$4 sm:$0xff]  }
 0x161   : > { %2655 = vmatmul.mubr.bf16.gmra.mrb[104].mxu1 %v5779_v30  ;;  %2816 = vmatmul.mubr.bf16.gmra.mrb[40].mxu0 %v5780_v33  ;;  %v5819_v30 = vld [vmem:[%s6090_s20 + $0x50] ss:$28 sps:$4 sm:$0xff]  }
 0x162   : > { %2662 = vmatprep.mubr.bf16.mxu1 %v5781_v34  ;;  %2823 = vmatprep.mubr.bf16.mxu0 %v5783_v37  ;;  %v5818_v34 = vld [vmem:[%s6090_s20 + $0x390] ss:$28 sps:$4 sm:$0xff]  }
 0x163   : > { %5122 = vmatpush3.bf16.msra.mxu1 %v5801_v28 }
 0x164   : > { %v6470_v39 = vpop.f32.mrb[32].mxu1  ;;  %5123 = vmatprep.subr.bf16.mxu1 %v5812_v38 }
 0x165   : > { %v2225_v41 = vpop.f32.mrb[33].mxu1 }
 0x166   : > { %v6473_v44 = vpop.f32.mrb[34].mxu1 }
 0x167   : > { %v2228_v47 = vpop.f32.mrb[35].mxu1  ;;  %5124 = vmatpush3.bf16.msra.mxu1 %v5812_v38  ;;  %v5820_v38 = vld [vmem:[%s6090_s20 + $0x3cc] ss:$28 sps:$4 sm:$0xff]  }
 0x168   : > { %v5823_v47 = vld [vmem:[%s6090_s20 + $0x3c8] ss:$28 sps:$4 sm:$0xff]  }
 0x169   : > { %2663 = vmatmul.mubr.bf16.gmra.mrb[108].mxu1 %v5786_v42  ;;  %2824 = vmatmul.mubr.bf16.gmra.mrb[44].mxu0 %v5787_v45  ;;  %v5824_v45 = vld [vmem:[%s6090_s20 + $0xc0] ss:$28 sps:$4 sm:$0xff]  }
 0x16a   : > { %2670 = vmatprep.mubr.bf16.mxu1 %v5788_v46  ;;  %2831 = vmatprep.mubr.bf16.mxu0 %v5790_v49  ;;  %v5827_v49 = vld [vmem:[%s6090_s20 + $0xf8] ss:$28 sps:$4 sm:$0xff]  }
 0x16c   : > { %v6478_v50 = vpop.f32.mrb[36].mxu1 }
 0x16d   : > { %v2233_v52 = vpop.f32.mrb[37].mxu1 }
 0x16e   : > { %v6481_v54 = vpop.f32.mrb[38].mxu1 }
 0x16f   : > { %v2236_v59 = vpop.f32.mrb[39].mxu1 }
 0x170   : > { %v5829_v59 = vld [vmem:[%s6090_s20 + $0x130] ss:$28 sps:$4 sm:$0xff]  }
 0x171   : > { %2671 = vmatmul.mubr.bf16.gmra.mrb[112].mxu1 %v5792_v53  ;;  %2832 = vmatmul.mubr.bf16.gmra.mrb[48].mxu0 %v5793_v56  ;;  %v5825_v53 = vld [vmem:[%s6090_s20 + $0x404] ss:$28 sps:$4 sm:$0xff]  }
 0x172   : > { %2678 = vmatprep.mubr.bf16.mxu1 %v5795_v58  ;;  %2839 = vmatprep.mubr.bf16.mxu0 %v5797_v61 }
 0x174   : > { %v6486_v62 = vpop.f32.mrb[40].mxu1 }
 0x175   : > { %v2241_v63 = vpop.f32.mrb[41].mxu1 }
 0x176   : > { %v6489_v3 = vpop.f32.mrb[42].mxu1  ;;  %v5828_v63 = vld [vmem:[%s6090_s20 + $0x400] ss:$28 sps:$4 sm:$0xff]  }
 0x177   : > { %v2244_v7 = vpop.f32.mrb[43].mxu1 }
 0x179   : > { %2679 = vmatmul.mubr.bf16.gmra.mrb[116].mxu1 %v5799_v0  ;;  %2840 = vmatmul.mubr.bf16.gmra.mrb[52].mxu0 %v5800_v4  ;;  %v5832_v0 = vld [vmem:[%s6090_s20 + $0x168] ss:$28 sps:$4 sm:$0xff]  }
 0x17a   : > { %2686 = vmatprep.mubr.bf16.mxu1 %v5802_v6  ;;  %2847 = vmatprep.mubr.bf16.mxu0 %v5804_v8  ;;  %v5830_v6 = vld [vmem:[%s6090_s20 + $0x43c] ss:$28 sps:$4 sm:$0xff]  }
 0x17c   : > { %v6494_v9 = vpop.f32.mrb[44].mxu1 }
 0x17d   : > { %v2249_v11 = vpop.f32.mrb[45].mxu1 }
 0x17e   : > { %v6497_v14 = vpop.f32.mrb[46].mxu1  ;;  %v5834_v11 = vld [vmem:[%s6090_s20 + $0x1a0] ss:$28 sps:$4 sm:$0xff]  }
 0x17f   : > { %v2252_v17 = vpop.f32.mrb[47].mxu1 }
 0x181   : > { %2687 = vmatmul.mubr.bf16.gmra.mrb[120].mxu1 %v5806_v12  ;;  %2848 = vmatmul.mubr.bf16.gmra.mrb[56].mxu0 %v5807_v15  ;;  %v5833_v15 = vld [vmem:[%s6090_s20 + $0x438] ss:$28 sps:$4 sm:$0xff]  }
 0x182   : > { %2694 = vmatprep.mubr.bf16.mxu1 %v5808_v16  ;;  %2855 = vmatprep.mubr.bf16.mxu0 %v5810_v18  ;;  %v5837_v16 = vld [vmem:[%s6090_s20 + $0x1d8] ss:$28 sps:$4 sm:$0xff]  }
 0x183   : > { %v5835_v18 = vld [vmem:[%s6090_s20 + $0x474] ss:$28 sps:$4 sm:$0xff]  }
 0x184   : > { %v6502_v19 = vpop.f32.mrb[48].mxu1 }
 0x185   : > { %v2257_v21 = vpop.f32.mrb[49].mxu1 }
 0x186   : > { %v6505_v24 = vpop.f32.mrb[50].mxu1 }
 0x187   : > { %v2260_v55 = vpop.f32.mrb[51].mxu1 }
 0x188   : > { %v5838_v55 = vld [vmem:[%s6090_s20 + $0x470] ss:$28 sps:$4 sm:$0xff]  }
 0x189   : > { %2695 = vmatmul.mubr.bf16.gmra.mrb[124].mxu1 %v5813_v22  ;;  %2856 = vmatmul.mubr.bf16.gmra.mrb[60].mxu0 %v5814_v25  ;;  %v5839_v25 = vld [vmem:[%s6090_s20 + $0x210] ss:$28 sps:$4 sm:$0xff]  }
 0x18a   : > { %5125 = vmatprep.mubr.msk.bf16.mxu1 %vm2028_vm0, %v5817_v26  ;;  %2863 = vmatprep.mubr.bf16.mxu0 %v5815_v27  ;;  %v5842_v27 = vld [vmem:[%s6090_s20 + $0x248] ss:$28 sps:$4 sm:$0xff]  }
 0x18c   : > { %v6511_v28 = vpop.f32.mrb[52].mxu1 }
 0x18d   : > { %v2265_v29 = vpop.f32.mrb[53].mxu1 }
 0x18e   : > { %v6514_v33 = vpop.f32.mrb[54].mxu1 }
 0x18f   : > { %v2268_v37 = vpop.f32.mrb[55].mxu1 }
 0x190   : > { %v5844_v37 = vld [vmem:[%s6090_s20 + $0x280] ss:$28 sps:$4 sm:$0xff]  }
 0x191   : > { %5126 = vmatmul.mubr.msk.bf16.vlgmr.msra.gmra.mrb[128].mxu1 %vm2028_vm0, %v5819_v30  ;;  %2864 = vmatmul.mubr.bf16.gmra.mrb[64].mxu0 %v5818_v34  ;;  %v5840_v30 = vld [vmem:[%s6090_s20 + $0x4ac] ss:$28 sps:$4 sm:$0xff]  }
 0x192   : > { %5129 = vmatprep.mubr.msk.bf16.mxu1 %vm2028_vm0, %v5822_v36  ;;  %2871 = vmatprep.mubr.bf16.mxu0 %v5820_v38 }
 0x194   : > { %v6521_v41 = vpop.f32.mrb[56].mxu1 }
 0x195   : > { %v2273_v42 = vpop.f32.mrb[57].mxu1 }
 0x196   : > { %v6524_v46 = vpop.f32.mrb[58].mxu1  ;;  %v5843_v42 = vld [vmem:[%s6090_s20 + $0x4a8] ss:$28 sps:$4 sm:$0xff]  }
 0x197   : > { %v2276_v52 = vpop.f32.mrb[59].mxu1 }
 0x199   : > { %5130 = vmatmul.mubr.msk.bf16.gmra.mrb[132].mxu1 %vm2028_vm0, %v5824_v45  ;;  %2872 = vmatmul.mubr.bf16.gmra.mrb[68].mxu0 %v5823_v47  ;;  %v5847_v45 = vld [vmem:[%s6090_s20 + $0x2b8] ss:$28 sps:$4 sm:$0xff]  }
 0x19a   : > { %5133 = vmatprep.mubr.msk.bf16.mxu1 %vm2028_vm0, %v5827_v49  ;;  %2879 = vmatprep.mubr.bf16.mxu0 %v5825_v53  ;;  %v5845_v49 = vld [vmem:[%s6090_s20 + $0x4e4] ss:$28 sps:$4 sm:$0xff]  }
 0x19c   : > { %v6531_v56 = vpop.f32.mrb[60].mxu1 }
 0x19d   : > { %v2281_v58 = vpop.f32.mrb[61].mxu1 }
 0x19e   : > { %v6534_v61 = vpop.f32.mrb[62].mxu1  ;;  %v5849_v58 = vld [vmem:[%s6090_s20 + $0x2f0] ss:$28 sps:$4 sm:$0xff]  }
 0x19f   : > { %v2284_v4 = vpop.f32.mrb[63].mxu1 }
 0x1a1   : > { %5134 = vmatmul.mubr.msk.bf16.gmra.mrb[136].mxu1 %vm2028_vm0, %v5829_v59  ;;  %2880 = vmatmul.mubr.bf16.gmra.mrb[72].mxu0 %v5828_v63  ;;  %v5848_v63 = vld [vmem:[%s6090_s20 + $0x4e0] ss:$28 sps:$4 sm:$0xff]  }
 0x1a2   : > { %5137 = vmatprep.mubr.msk.bf16.mxu1 %vm2028_vm0, %v5832_v0  ;;  %2887 = vmatprep.mubr.bf16.mxu0 %v5830_v6  ;;  %v5852_v0 = vld [vmem:[%s6090_s20 + $0x328] ss:$28 sps:$4 sm:$0xff]   ;;  %v5850_v6 = vld [vmem:[%s6090_s20 + $0x51c] ss:$28 sps:$4 sm:$0xff]  }
 0x1a4   : > { %v6541_v7 = vpop.f32.mrb[64].mxu1 }
 0x1a5   : > { %v2289_v8 = vpop.f32.mrb[65].mxu1 }
 0x1a6   : > { %v6544_v12 = vpop.f32.mrb[66].mxu1 }
 0x1a7   : > { %v2292_v17 = vpop.f32.mrb[67].mxu1 }
 0x1a8   : > { %v5853_v17 = vld [vmem:[%s6090_s20 + $0x518] ss:$28 sps:$4 sm:$0xff]  }
 0x1a9   : > { %5138 = vmatmul.mubr.msk.bf16.gmra.mrb[140].mxu1 %vm2028_vm0, %v5834_v11  ;;  %2888 = vmatmul.mubr.bf16.gmra.mrb[76].mxu0 %v5833_v15  ;;  %v5854_v15 = vld [vmem:[%s6090_s20 + $0x360] ss:$28 sps:$4 sm:$0xff]  }
 0x1aa   : > { %5141 = vmatprep.mubr.msk.bf16.mxu1 %vm2028_vm0, %v5837_v16  ;;  %2895 = vmatprep.mubr.bf16.mxu0 %v5835_v18  ;;  %v5857_v18 = vld [vmem:[%s6090_s20 + $0x398] ss:$28 sps:$4 sm:$0xff]  }
 0x1ac   : > { %v6551_v21 = vpop.f32.mrb[68].mxu1 }
 0x1ad   : > { %v2297_v22 = vpop.f32.mrb[69].mxu1 }
 0x1ae   : > { %v6554_v26 = vpop.f32.mrb[70].mxu1 }
 0x1af   : > { %v2300_v29 = vpop.f32.mrb[71].mxu1 }
 0x1b0   : > { %v5859_v29 = vld [vmem:[%s6090_s20 + $0x3d0] ss:$28 sps:$4 sm:$0xff]  }
 0x1b1   : > { %5142 = vmatmul.mubr.msk.bf16.gmra.mrb[144].mxu1 %vm2028_vm0, %v5839_v25  ;;  %2896 = vmatmul.mubr.bf16.gmra.mrb[80].mxu0 %v5838_v55  ;;  %v5855_v25 = vld [vmem:[%s6090_s20 + $0x554] ss:$28 sps:$4 sm:$0xff]  }
 0x1b2   : > { %5145 = vmatprep.mubr.msk.bf16.mxu1 %vm2028_vm0, %v5842_v27  ;;  %2903 = vmatprep.mubr.bf16.mxu0 %v5840_v30 }
 0x1b4   : > { %v6561_v34 = vpop.f32.mrb[72].mxu1 }
 0x1b5   : > { %v2305_v36 = vpop.f32.mrb[73].mxu1 }
 0x1b6   : > { %v6564_v38 = vpop.f32.mrb[74].mxu1  ;;  %v5858_v36 = vld [vmem:[%s6090_s20 + $0x550] ss:$28 sps:$4 sm:$0xff]  }
 0x1b7   : > { %v2308_v47 = vpop.f32.mrb[75].mxu1 }
 0x1b9   : > { %5146 = vmatmul.mubr.msk.bf16.gmra.mrb[148].mxu1 %vm2028_vm0, %v5844_v37  ;;  %2904 = vmatmul.mubr.bf16.gmra.mrb[84].mxu0 %v5843_v42  ;;  %v5862_v37 = vld [vmem:[%s6090_s20 + $0x408] ss:$28 sps:$4 sm:$0xff]  }
 0x1ba   : > { %5149 = vmatprep.mubr.msk.bf16.mxu1 %vm2028_vm0, %v5847_v45  ;;  %2911 = vmatprep.mubr.bf16.mxu0 %v5845_v49  ;;  %v5860_v45 = vld [vmem:[%s6090_s20 + $0x58c] ss:$28 sps:$4 sm:$0xff]  }
 0x1bc   : > { %v6571_v52 = vpop.f32.mrb[76].mxu1 }
 0x1bd   : > { %v2313_v53 = vpop.f32.mrb[77].mxu1 }
 0x1be   : > { %v6574_v59 = vpop.f32.mrb[78].mxu1  ;;  %v5864_v53 = vld [vmem:[%s6090_s20 + $0x440] ss:$28 sps:$4 sm:$0xff]  }
 0x1bf   : > { %v2316_v4 = vpop.f32.mrb[79].mxu1 }
 0x1c1   : > { %5150 = vmatmul.mubr.msk.bf16.gmra.mrb[152].mxu1 %vm2028_vm0, %v5849_v58  ;;  %2912 = vmatmul.mubr.bf16.gmra.mrb[88].mxu0 %v5848_v63  ;;  %v5863_v63 = vld [vmem:[%s6090_s20 + $0x588] ss:$28 sps:$4 sm:$0xff]  }
 0x1c2   : > { %5153 = vmatprep.mubr.msk.bf16.mxu1 %vm2028_vm0, %v5852_v0  ;;  %2919 = vmatprep.mubr.bf16.mxu0 %v5850_v6  ;;  %v5867_v0 = vld [vmem:[%s6090_s20 + $0x478] ss:$28 sps:$4 sm:$0xff]   ;;  %v5865_v6 = vld [vmem:[%s6090_s20 + $0x5c4] ss:$28 sps:$4 sm:$0xff]  }
 0x1c4   : > { %v6581_v8 = vpop.f32.mrb[80].mxu1 }
 0x1c5   : > { %v2321_v11 = vpop.f32.mrb[81].mxu1 }
 0x1c6   : > { %v6584_v16 = vpop.f32.mrb[82].mxu1 }
 0x1c7   : > { %v2324_v22 = vpop.f32.mrb[83].mxu1 }
 0x1c8   : > { %v5868_v22 = vld [vmem:[%s6090_s20 + $0x5c0] ss:$28 sps:$4 sm:$0xff]  }
 0x1c9   : > { %5154 = vmatmul.mubr.msk.bf16.gmra.mrb[156].mxu1 %vm2028_vm0, %v5854_v15  ;;  %2920 = vmatmul.mubr.bf16.gmra.mrb[92].mxu0 %v5853_v17  ;;  %v5869_v17 = vld [vmem:[%s6090_s20 + $0x4b0] ss:$28 sps:$4 sm:$0xff]  }
 0x1ca   : > { %5157 = vmatprep.mubr.msk.bf16.mxu1 %vm2028_vm0, %v5857_v18  ;;  %2927 = vmatprep.mubr.bf16.mxu0 %v5855_v25  ;;  %v5872_v25 = vld [vmem:[%s6090_s20 + $0x4e8] ss:$28 sps:$4 sm:$0xff]  }
 0x1cc   : > { %v6591_v55 = vpop.f32.mrb[84].mxu1 }
 0x1cd   : > { %v2329_v27 = vpop.f32.mrb[85].mxu1 }
 0x1ce   : > { %v6594_v30 = vpop.f32.mrb[86].mxu1 }
 0x1cf   : > { %v2332_v42 = vpop.f32.mrb[87].mxu1 }
 0x1d1   : > { %5158 = vmatmul.mubr.msk.bf16.gmra.mrb[160].mxu1 %vm2028_vm0, %v5859_v29  ;;  %2928 = vmatmul.mubr.bf16.gmra.mrb[96].mxu0 %v5858_v36  ;;  %v5870_v29 = vld [vmem:[%s6090_s20 + $0x5fc] ss:$28 sps:$4 sm:$0xff]   ;;  %v6622_v36 = vld [vmem:[%s7457_s2] ss:$0 sm:$0xff] }
 0x1d2   : > { %5161 = vmatprep.mubr.msk.bf16.mxu1 %vm2028_vm0, %v5862_v37  ;;  %2935 = vmatprep.mubr.bf16.mxu0 %v5860_v45  ;;  %v2160_v37 = vadd.f32 %v6622_v36, %v6390_v32  ;;  %v5874_v45 = vld [vmem:[%s6090_s20 + $0x520] ss:$28 sps:$4 sm:$0xff]   ;;  %v2168_v32 = vadd.f32 %v6622_v36, %v6398_v40  ;;  %v2176_v40 = vadd.f32 %v6622_v36, %v6406_v48 }
 0x1d3   : > { %v2184_v48 = vadd.f32 %v6622_v36, %v6414_v57  ;;  %v2192_v57 = vadd.f32 %v6622_v36, %v6422_v2 }
 0x1d4   : > { %v6601_v47 = vpop.f32.mrb[88].mxu1 }
 0x1d5   : > { %v2337_v49 = vpop.f32.mrb[89].mxu1 }
 0x1d6   : > { %v6604_v58 = vpop.f32.mrb[90].mxu1  ;;  %v2163_v49 = vadd.f32 %v6622_v36, %v6393_v35 }
 0x1d7   : > { %v2340_v4 = vpop.f32.mrb[91].mxu1 }
 0x1d8   : > { %v5877_v4 = vld [vmem:[%s6090_s20 + $0x558] ss:$28 sps:$4 sm:$0xff]  }
 0x1d9   : > { %5162 = vmatmul.mubr.msk.bf16.gmra.mrb[164].mxu1 %vm2028_vm0, %v5864_v53  ;;  %2936 = vmatmul.mubr.bf16.gmra.mrb[100].mxu0 %v5863_v63 }
 0x1da   : > { %5165 = vmatprep.mubr.msk.bf16.mxu1 %vm2028_vm0, %v5867_v0  ;;  %2943 = vmatprep.mubr.bf16.mxu0 %v5865_v6  ;;  %v5873_v0 = vld [vmem:[%s6090_s20 + $0x5f8] ss:$28 sps:$4 sm:$0xff]  }
 0x1dc   : > { %v6611_v11 = vpop.f32.mrb[92].mxu1 }
 0x1dd   : > { %v2345_v15 = vpop.f32.mrb[93].mxu1 }
 0x1de   : > { %v6614_v18 = vpop.f32.mrb[94].mxu1  ;;  %v5875_v15 = vld [vmem:[%s6090_s20 + $0x634] ss:$28 sps:$4 sm:$0xff]  }
 0x1df   : > { %v2348_v27 = vpop.f32.mrb[95].mxu1 }
 0x1e0   : > { %v2171_v27 = vadd.f32 %v6622_v36, %v6401_v43 }
 0x1e1   : > { %5166 = vmatmul.mubr.msk.bf16.gmra.mrb[168].mxu1 %vm2028_vm0, %v5869_v17  ;;  %2944 = vmatmul.mubr.bf16.gmra.mrb[104].mxu0 %v5868_v22 }
 0x1e2   : > { %5169 = vmatprep.mubr.msk.bf16.mxu1 %vm2028_vm0, %v5872_v25  ;;  %2951 = vmatprep.mubr.bf16.mxu0 %v5870_v29  ;;  %v5879_v25 = vld [vmem:[%s6090_s20 + $0x590] ss:$28 sps:$4 sm:$0xff]  }
 0x1e4   : > { %v2737_v42 = vpop.f32.mrb[0].mxu0 }
 0x1e5   : > { %v6631_v53 = vadd.f32 %v2737_v42, %v2160_v37  ;;  %v2739_v63 = vpop.f32.mrb[1].mxu0  ;;  %v5878_v42 = vld [vmem:[%s6090_s20 + $0x630] ss:$28 sps:$4 sm:$0xff]  }
 0x1e6   : > { %v2740_v6 = vpop.f32.mrb[2].mxu0  ;;  %v5880_v63 = vld [vmem:[%s6090_s20 + $0x66c] ss:$28 sps:$4 sm:$0xff]  }
 0x1e7   : > { %v6636_v17 = vadd.f32 %v2740_v6, %v2163_v49  ;;  %v2742_v22 = vpop.f32.mrb[3].mxu0  ;;  %v5882_v49 = vld [vmem:[%s6090_s20 + $0x5c8] ss:$28 sps:$4 sm:$0xff]   ;;  %v5884_v6 = vld [vmem:[%s6090_s20 + $0x600] ss:$28 sps:$4 sm:$0xff]  }
 0x1e9   : > { %5170 = vmatmul.mubr.msk.bf16.gmra.mrb[172].mxu1 %vm2028_vm0, %v5874_v45  ;;  %2952 = vmatmul.mubr.bf16.gmra.mrb[108].mxu0 %v5873_v0 }
 0x1ea   : > { %5173 = vmatprep.mubr.msk.bf16.mxu1 %vm2028_vm0, %v5877_v4  ;;  %2959 = vmatprep.mubr.bf16.mxu0 %v5875_v15  ;;  %v2179_v15 = vadd.f32 %v6622_v36, %v6409_v51 }
 0x1ec   : > { %v2745_v35 = vpop.f32.mrb[4].mxu0 }
 0x1ed   : > { %v6645_v29 = vadd.f32 %v2745_v35, %v2168_v32  ;;  %v2747_v37 = vpop.f32.mrb[5].mxu0  ;;  %v5883_v35 = vld [vmem:[%s6090_s20 + $0x668] ss:$28 sps:$4 sm:$0xff]  }
 0x1ee   : > { %v2748_v45 = vpop.f32.mrb[6].mxu0  ;;  %v5885_v37 = vld [vmem:[%s6090_s20 + $0x6a4] ss:$28 sps:$4 sm:$0xff]  }
 0x1ef   : > { %v6650_v0 = vadd.f32 %v2748_v45, %v2171_v27  ;;  %v2750_v4 = vpop.f32.mrb[7].mxu0  ;;  %v5887_v27 = vld [vmem:[%s6090_s20 + $0x638] ss:$28 sps:$4 sm:$0xff]   ;;  %v5889_v45 = vld [vmem:[%s6090_s20 + $0x670] ss:$28 sps:$4 sm:$0xff]  }
 0x1f1   : > { %5174 = vmatmul.mubr.msk.bf16.gmra.mrb[176].mxu1 %vm2028_vm0, %v5879_v25  ;;  %2960 = vmatmul.mubr.bf16.gmra.mrb[112].mxu0 %v5878_v42 }
 0x1f2   : > { %5177 = vmatprep.mubr.msk.bf16.mxu1 %vm2028_vm0, %v5882_v49  ;;  %2967 = vmatprep.mubr.bf16.mxu0 %v5880_v63  ;;  %v2187_v63 = vadd.f32 %v6622_v36, %v6417_v60 }
 0x1f4   : > { %v2753_v43 = vpop.f32.mrb[8].mxu0 }
 0x1f5   : > { %v6659_v22 = vadd.f32 %v2753_v43, %v2176_v40  ;;  %v2755_v32 = vpop.f32.mrb[9].mxu0  ;;  %v5888_v43 = vld [vmem:[%s6090_s20 + $0x6a0] ss:$28 sps:$4 sm:$0xff]  }
 0x1f6   : > { %v2756_v25 = vpop.f32.mrb[10].mxu0  ;;  %v5890_v32 = vld [vmem:[%s6090_s20 + $0x6dc] ss:$28 sps:$4 sm:$0xff]  }
 0x1f7   : > { %v6664_v42 = vadd.f32 %v2756_v25, %v2179_v15  ;;  %v2758_v49 = vpop.f32.mrb[11].mxu0  ;;  %v5892_v15 = vld [vmem:[%s6090_s20 + $0x6a8] ss:$28 sps:$4 sm:$0xff]   ;;  %v5894_v25 = vld [vmem:[%s6090_s20 + $0x6e0] ss:$28 sps:$4 sm:$0xff]  }
 0x1f9   : > { %5178 = vmatmul.mubr.msk.bf16.gmra.mrb[180].mxu1 %vm2028_vm0, %v5884_v6  ;;  %2968 = vmatmul.mubr.bf16.gmra.mrb[116].mxu0 %v5883_v35 }
 0x1fa   : > { %5181 = vmatprep.mubr.msk.bf16.mxu1 %vm2028_vm0, %v5887_v27  ;;  %2975 = vmatprep.mubr.bf16.mxu0 %v5885_v37  ;;  %v2195_v37 = vadd.f32 %v6622_v36, %v6425_v5 }
 0x1fc   : > { %v2761_v51 = vpop.f32.mrb[12].mxu0 }
 0x1fd   : > { %v6673_v4 = vadd.f32 %v2761_v51, %v2184_v48  ;;  %v2763_v40 = vpop.f32.mrb[13].mxu0  ;;  %v5893_v51 = vld [vmem:[%s6090_s20 + $0x6d8] ss:$28 sps:$4 sm:$0xff]   ;;  %s4567_s20 = sshll.u32 %s7596_s12, 3 }
 0x1fe   : > { %v2764_v6 = vpop.f32.mrb[14].mxu0  ;;  %s7116_s22 = sadd.s32 %s4568_s21, %s4567_s20 }
 0x1ff   : > { %v6678_v35 = vadd.f32 %v2764_v6, %v2187_v63  ;;  %v2766_v27 = vpop.f32.mrb[15].mxu0  ;;  %s4569_s12 = sshll.u32 %s7116_s22, 2 }
 0x200   : > { %s7146_s24 = scalar_lea.vmem %s7458_s3, %s4569_s12 }
 0x201   : > { %5182 = vmatmul.mubr.msk.bf16.gmra.mrb[184].mxu1 %vm2028_vm0, %v5889_v45  ;;  %2976 = vmatmul.mubr.bf16.gmra.mrb[120].mxu0 %v5888_v43  ;;  %v2200_v43 = vadd.f32 %v6622_v36, %v6430_v10 }
 0x202   : > { %5185 = vmatprep.mubr.msk.bf16.mxu1 %vm2028_vm0, %v5892_v15  ;;  %2983 = vmatprep.mubr.bf16.mxu0 %v5890_v32  ;;  %v2203_v15 = vadd.f32 %v6622_v36, %v6433_v13 }
 0x204   : > { %v2769_v60 = vpop.f32.mrb[16].mxu0 }
 0x205   : > { %v6687_v49 = vadd.f32 %v2769_v60, %v2192_v57  ;;  %v2771_v48 = vpop.f32.mrb[17].mxu0  ;;  %v2208_v60 = vadd.f32 %v6622_v36, %v6445_v20 }
 0x206   : > { %v2772_v63 = vpop.f32.mrb[18].mxu0 }
 0x207   : > { %v6690_v40 = vadd.f32 %v2772_v63, %v2195_v37  ;;  %v2774_v45 = vpop.f32.mrb[19].mxu0 }
 0x208   : > { %v2216_v45 = vadd.f32 %v6622_v36, %v6456_v1  ;;  %v2227_v1 = vadd.f32 %v6622_v36, %v6473_v44  ;;  %v2235_v44 = vadd.f32 %v6622_v36, %v6481_v54  ;;  %v2243_v54 = vadd.f32 %v6622_v36, %v6489_v3 }
 0x209   : > { %5186 = vmatmul.mubr.msk.bf16.gmra.mrb[188].mxu1 %vm2028_vm0, %v5894_v25  ;;  %2984 = vmatmul.mubr.bf16.gmra.mrb[124].mxu0 %v5893_v51  ;;  %v2211_v25 = vadd.f32 %v6622_v36, %v6448_v23  ;;  %v2251_v3 = vadd.f32 %v6622_v36, %v6497_v14  ;;  %v2259_v14 = vadd.f32 %v6622_v36, %v6505_v24 }
 0x20a   : > { %v2267_v24 = vadd.f32 %v6622_v36, %v6514_v33  ;;  %v2275_v33 = vadd.f32 %v6622_v36, %v6524_v46  ;;  %v2283_v46 = vadd.f32 %v6622_v36, %v6534_v61  ;;  %v2291_v61 = vadd.f32 %v6622_v36, %v6544_v12 }
 0x20b   : > { %v2296_v12 = vadd.f32 %v6622_v36, %v6551_v21 }
 0x20c   : > { %v2777_v2 = vpop.f32.mrb[20].mxu0 }
 0x20d   : > { %v6697_v6 = vadd.f32 %v2777_v2, %v2200_v43  ;;  %v2779_v5 = vpop.f32.mrb[21].mxu0  ;;  %v2219_v2 = vadd.f32 %v6622_v36, %v6462_v31 }
 0x20e   : > { %v2780_v32 = vpop.f32.mrb[22].mxu0 }
 0x20f   : > { %v6699_v27 = vadd.f32 %v2780_v32, %v2203_v15  ;;  %v2782_v57 = vpop.f32.mrb[23].mxu0 }
 0x210   : > { %v2224_v57 = vadd.f32 %v6622_v36, %v6470_v39  ;;  %v2232_v39 = vadd.f32 %v6622_v36, %v6478_v50  ;;  %v2240_v50 = vadd.f32 %v6622_v36, %v6486_v62  ;;  %v2248_v62 = vadd.f32 %v6622_v36, %v6494_v9 }
 0x211   : > { %v2256_v9 = vadd.f32 %v6622_v36, %v6502_v19  ;;  %v2264_v19 = vadd.f32 %v6622_v36, %v6511_v28  ;;  %v2272_v28 = vadd.f32 %v6622_v36, %v6521_v41  ;;  %v2280_v41 = vadd.f32 %v6622_v36, %v6531_v56 }
 0x212   : > { %v2288_v56 = vadd.f32 %v6622_v36, %v6541_v7 }
 0x214   : > { %v2785_v37 = vpop.f32.mrb[24].mxu0 }
 0x215   : > { %v6705_v48 = vadd.f32 %v2785_v37, %v2208_v60  ;;  %v2787_v10 = vpop.f32.mrb[25].mxu0 }
 0x216   : > { %v2788_v51 = vpop.f32.mrb[26].mxu0 }
 0x217   : > { %v6707_v63 = vadd.f32 %v2788_v51, %v2211_v25  ;;  %v2790_v13 = vpop.f32.mrb[27].mxu0 }
 0x21c   : > { %v2793_v43 = vpop.f32.mrb[28].mxu0 }
 0x21d   : > { %v6713_v15 = vadd.f32 %v2793_v43, %v2216_v45  ;;  %v2795_v20 = vpop.f32.mrb[29].mxu0 }
 0x21e   : > { %v2796_v5 = vpop.f32.mrb[30].mxu0 }
 0x21f   : > { %v6715_v32 = vadd.f32 %v2796_v5, %v2219_v2  ;;  %v2798_v23 = vpop.f32.mrb[31].mxu0 }
 0x224   : > { %v6719_v60 = vpop.f32.mrb[96].mxu1  ;;  %v2801_v37 = vpop.f32.mrb[32].mxu0 }
 0x225   : > { %v2642_v25 = vpop.f32.mrb[97].mxu1  ;;  %v6723_v10 = vadd.f32 %v2801_v37, %v2224_v57  ;;  %v2803_v31 = vpop.f32.mrb[33].mxu0 }
 0x226   : > { %v6725_v51 = vpop.f32.mrb[98].mxu1  ;;  %v2804_v13 = vpop.f32.mrb[34].mxu0 }
 0x227   : > { %v2645_v45 = vpop.f32.mrb[99].mxu1  ;;  %v6727_v43 = vadd.f32 %v2804_v13, %v2227_v1  ;;  %v2806_v2 = vpop.f32.mrb[35].mxu0 }
 0x22c   : > { %v6731_v20 = vpop.f32.mrb[100].mxu1  ;;  %v2809_v5 = vpop.f32.mrb[36].mxu0 }
 0x22d   : > { %7468 = vst [vmem:[#allocation2_spill] sm:$0xff] %v6731_v20  ;;  %v2650_v23 = vpop.f32.mrb[101].mxu1  ;;  %v6735_v57 = vadd.f32 %v2809_v5, %v2232_v39  ;;  %v2811_v37 = vpop.f32.mrb[37].mxu0 }
 0x22e   : > { %v6737_v25 = vpop.f32.mrb[102].mxu1  ;;  %v2812_v31 = vpop.f32.mrb[38].mxu0 }
 0x22f   : > { %7469 = vst [vmem:[#allocation3_spill] sm:$0xff] %v6737_v25  ;;  %v2653_v45 = vpop.f32.mrb[103].mxu1  ;;  %v6739_v1 = vadd.f32 %v2812_v31, %v2235_v44  ;;  %v2814_v13 = vpop.f32.mrb[39].mxu0 }
 0x234   : > { %v6743_v2 = vpop.f32.mrb[104].mxu1  ;;  %v2817_v20 = vpop.f32.mrb[40].mxu0 }
 0x235   : > { %7470 = vst [vmem:[#allocation4_spill] sm:$0xff] %v6743_v2  ;;  %v2658_v23 = vpop.f32.mrb[105].mxu1  ;;  %v6747_v39 = vadd.f32 %v2817_v20, %v2240_v50  ;;  %v2819_v5 = vpop.f32.mrb[41].mxu0 }
 0x236   : > { %v6749_v37 = vpop.f32.mrb[106].mxu1  ;;  %v2820_v25 = vpop.f32.mrb[42].mxu0 }
 0x237   : > { %7471 = vst [vmem:[#allocation5_spill] sm:$0xff] %v6749_v37  ;;  %v2661_v45 = vpop.f32.mrb[107].mxu1  ;;  %v6751_v44 = vadd.f32 %v2820_v25, %v2243_v54  ;;  %v2822_v31 = vpop.f32.mrb[43].mxu0 }
 0x23c   : > { %v6755_v13 = vpop.f32.mrb[108].mxu1  ;;  %v2825_v2 = vpop.f32.mrb[44].mxu0 }
 0x23d   : > { %7472 = vst [vmem:[#allocation6_spill] sm:$0xff] %v6755_v13  ;;  %v2666_v23 = vpop.f32.mrb[109].mxu1  ;;  %v6759_v20 = vadd.f32 %v2825_v2, %v2248_v62  ;;  %v2827_v50 = vpop.f32.mrb[45].mxu0 }
 0x23e   : > { %v6761_v5 = vpop.f32.mrb[110].mxu1  ;;  %v2828_v37 = vpop.f32.mrb[46].mxu0 }
 0x23f   : > { %7473 = vst [vmem:[#allocation7_spill] sm:$0xff] %v6761_v5  ;;  %v2669_v45 = vpop.f32.mrb[111].mxu1  ;;  %v6763_v25 = vadd.f32 %v2828_v37, %v2251_v3  ;;  %v2830_v54 = vpop.f32.mrb[47].mxu0 }
 0x244   : > { %v6767_v31 = vpop.f32.mrb[112].mxu1  ;;  %v2833_v13 = vpop.f32.mrb[48].mxu0 }
 0x245   : > { %7474 = vst [vmem:[#allocation8_spill] sm:$0xff] %v6767_v31  ;;  %v2674_v23 = vpop.f32.mrb[113].mxu1  ;;  %v6771_v2 = vadd.f32 %v2833_v13, %v2256_v9  ;;  %v2835_v62 = vpop.f32.mrb[49].mxu0 }
 0x246   : > { %v6773_v50 = vpop.f32.mrb[114].mxu1  ;;  %v2836_v5 = vpop.f32.mrb[50].mxu0 }
 0x247   : > { %7475 = vst [vmem:[#allocation9_spill] sm:$0xff] %v6773_v50  ;;  %v2677_v45 = vpop.f32.mrb[115].mxu1  ;;  %v6775_v37 = vadd.f32 %v2836_v5, %v2259_v14  ;;  %v2838_v3 = vpop.f32.mrb[51].mxu0 }
 0x24c   : > { %v6779_v54 = vpop.f32.mrb[116].mxu1  ;;  %v2841_v31 = vpop.f32.mrb[52].mxu0 }
 0x24d   : > { %7476 = vst [vmem:[#allocation10_spill] sm:$0xff] %v6779_v54  ;;  %v2682_v23 = vpop.f32.mrb[117].mxu1  ;;  %v6783_v13 = vadd.f32 %v2841_v31, %v2264_v19  ;;  %v2843_v9 = vpop.f32.mrb[53].mxu0 }
 0x24e   : > { %v6785_v62 = vpop.f32.mrb[118].mxu1  ;;  %v2844_v50 = vpop.f32.mrb[54].mxu0 }
 0x24f   : > { %7477 = vst [vmem:[#allocation11_spill] sm:$0xff] %v6785_v62  ;;  %v2685_v45 = vpop.f32.mrb[119].mxu1  ;;  %v6787_v5 = vadd.f32 %v2844_v50, %v2267_v24  ;;  %v2846_v14 = vpop.f32.mrb[55].mxu0 }
 0x254   : > { %v6791_v3 = vpop.f32.mrb[120].mxu1  ;;  %v2849_v54 = vpop.f32.mrb[56].mxu0 }
 0x255   : > { %7478 = vst [vmem:[#allocation12_spill] sm:$0xff] %v6791_v3  ;;  %v2690_v23 = vpop.f32.mrb[121].mxu1  ;;  %v6795_v31 = vadd.f32 %v2849_v54, %v2272_v28  ;;  %v2851_v19 = vpop.f32.mrb[57].mxu0 }
 0x256   : > { %v6797_v9 = vpop.f32.mrb[122].mxu1  ;;  %v2852_v62 = vpop.f32.mrb[58].mxu0 }
 0x257   : > { %7479 = vst [vmem:[#allocation13_spill] sm:$0xff] %v6797_v9  ;;  %v2693_v45 = vpop.f32.mrb[123].mxu1  ;;  %v6799_v50 = vadd.f32 %v2852_v62, %v2275_v33  ;;  %v2854_v24 = vpop.f32.mrb[59].mxu0 }
 0x259   : > { %7480 = vst [vmem:[#allocation14_spill] sm:$0xff] %v6799_v50 }
 0x25c   : > { %v6803_v14 = vpop.f32.mrb[124].mxu1  ;;  %v2857_v3 = vpop.f32.mrb[60].mxu0 }
 0x25d   : > { %7481 = vst [vmem:[#allocation15_spill] sm:$0xff] %v6803_v14  ;;  %v2698_v23 = vpop.f32.mrb[125].mxu1  ;;  %v6807_v54 = vadd.f32 %v2857_v3, %v2280_v41  ;;  %v2859_v28 = vpop.f32.mrb[61].mxu0 }
 0x25e   : > { %v6809_v19 = vpop.f32.mrb[126].mxu1  ;;  %v2860_v9 = vpop.f32.mrb[62].mxu0 }
 0x25f   : > { %v2701_v45 = vpop.f32.mrb[127].mxu1  ;;  %v6811_v62 = vadd.f32 %v2860_v9, %v2283_v46  ;;  %v2862_v33 = vpop.f32.mrb[63].mxu0 }
 0x264   : > { %v5127_v24 = vpop.f32.mrb[128].mxu1  ;;  %v2865_v14 = vpop.f32.mrb[64].mxu0 }
 0x265   : > { %v6816_v23 = vadd.f32 %v6645_v29, %v5127_v24  ;;  %v3026_v50 = vpop.f32.mrb[129].mxu1  ;;  %v6820_v3 = vadd.f32 %v2865_v14, %v2288_v56  ;;  %v2867_v41 = vpop.f32.mrb[65].mxu0 }
 0x266   : > { %v6823_v28 = vadd.f32 %v6631_v53, %v3026_v50  ;;  %v5128_v9 = vpop.f32.mrb[130].mxu1  ;;  %v2868_v46 = vpop.f32.mrb[66].mxu0 }
 0x267   : > { %v6826_v45 = vadd.f32 %v6650_v0, %v5128_v9  ;;  %v3029_v7 = vpop.f32.mrb[131].mxu1  ;;  %v6828_v33 = vadd.f32 %v2868_v46, %v2291_v61  ;;  %v2870_v29 = vpop.f32.mrb[67].mxu0  ;;  %v2299_v0 = vadd.f32 %v6622_v36, %v6554_v26  ;;  %v2304_v26 = vadd.f32 %v6622_v36, %v6561_v34 }
 0x268   : > { %v6831_v24 = vadd.f32 %v6636_v17, %v3029_v7 }
 0x26c   : > { %v5131_v14 = vpop.f32.mrb[132].mxu1  ;;  %v2873_v56 = vpop.f32.mrb[68].mxu0 }
 0x26d   : > { %v6836_v53 = vadd.f32 %v6673_v4, %v5131_v14  ;;  %v3042_v50 = vpop.f32.mrb[133].mxu1  ;;  %v6840_v41 = vadd.f32 %v2873_v56, %v2296_v12  ;;  %v2875_v61 = vpop.f32.mrb[69].mxu0 }
 0x26e   : > { %v6843_v9 = vadd.f32 %v6659_v22, %v3042_v50  ;;  %v5132_v17 = vpop.f32.mrb[134].mxu1  ;;  %v2876_v46 = vpop.f32.mrb[70].mxu0 }
 0x26f   : > { %v6846_v7 = vadd.f32 %v6678_v35, %v5132_v17  ;;  %v3045_v21 = vpop.f32.mrb[135].mxu1  ;;  %v6848_v29 = vadd.f32 %v2876_v46, %v2299_v0  ;;  %v2878_v4 = vpop.f32.mrb[71].mxu0  ;;  %v2307_v35 = vadd.f32 %v6622_v36, %v6564_v38  ;;  %v2312_v38 = vadd.f32 %v6622_v36, %v6571_v52 }
 0x270   : > { %v6851_v14 = vadd.f32 %v6664_v42, %v3045_v21 }
 0x274   : > { %v5135_v12 = vpop.f32.mrb[136].mxu1  ;;  %v2881_v56 = vpop.f32.mrb[72].mxu0 }
 0x275   : > { %v6856_v22 = vadd.f32 %v6697_v6, %v5135_v12  ;;  %v3058_v50 = vpop.f32.mrb[137].mxu1  ;;  %v6860_v61 = vadd.f32 %v2881_v56, %v2304_v26  ;;  %v2883_v0 = vpop.f32.mrb[73].mxu0 }
 0x276   : > { %v6863_v17 = vadd.f32 %v6687_v49, %v3058_v50  ;;  %v5136_v42 = vpop.f32.mrb[138].mxu1  ;;  %v2884_v46 = vpop.f32.mrb[74].mxu0 }
 0x277   : > { %v6866_v21 = vadd.f32 %v6699_v27, %v5136_v42  ;;  %v3061_v34 = vpop.f32.mrb[139].mxu1  ;;  %v6868_v4 = vadd.f32 %v2884_v46, %v2307_v35  ;;  %v2886_v6 = vpop.f32.mrb[75].mxu0  ;;  %v2315_v27 = vadd.f32 %v6622_v36, %v6574_v59  ;;  %v2320_v59 = vadd.f32 %v6622_v36, %v6581_v8 }
 0x278   : > { %v6871_v12 = vadd.f32 %v6690_v40, %v3061_v34 }
 0x27c   : > { %v5139_v26 = vpop.f32.mrb[140].mxu1  ;;  %v2889_v56 = vpop.f32.mrb[76].mxu0 }
 0x27d   : > { %v6876_v49 = vadd.f32 %v6713_v15, %v5139_v26  ;;  %v3074_v50 = vpop.f32.mrb[141].mxu1  ;;  %v6880_v0 = vadd.f32 %v2889_v56, %v2312_v38  ;;  %v2891_v35 = vpop.f32.mrb[77].mxu0 }
 0x27e   : > { %v6883_v42 = vadd.f32 %v6705_v48, %v3074_v50  ;;  %v5140_v40 = vpop.f32.mrb[142].mxu1  ;;  %v2892_v46 = vpop.f32.mrb[78].mxu0 }
 0x27f   : > { %v6886_v34 = vadd.f32 %v6715_v32, %v5140_v40  ;;  %v3077_v52 = vpop.f32.mrb[143].mxu1  ;;  %v6888_v6 = vadd.f32 %v2892_v46, %v2315_v27  ;;  %v2894_v15 = vpop.f32.mrb[79].mxu0  ;;  %v2323_v32 = vadd.f32 %v6622_v36, %v6584_v16  ;;  %v2328_v16 = vadd.f32 %v6622_v36, %v6591_v55 }
 0x280   : > { %v6891_v26 = vadd.f32 %v6707_v63, %v3077_v52 }
 0x284   : > { %v5143_v38 = vpop.f32.mrb[144].mxu1  ;;  %v2897_v56 = vpop.f32.mrb[80].mxu0 }
 0x285   : > { %v6896_v48 = vadd.f32 %v6735_v57, %v5143_v38  ;;  %v3090_v50 = vpop.f32.mrb[145].mxu1  ;;  %v6900_v35 = vadd.f32 %v2897_v56, %v2320_v59  ;;  %v2899_v27 = vpop.f32.mrb[81].mxu0 }
 0x286   : > { %v6903_v40 = vadd.f32 %v6723_v10, %v3090_v50  ;;  %v5144_v63 = vpop.f32.mrb[146].mxu1  ;;  %v2900_v46 = vpop.f32.mrb[82].mxu0 }
 0x287   : > { %7482 = vst [vmem:[#allocation16_spill] sm:$0xff] %v6900_v35  ;;  %v6906_v52 = vadd.f32 %v6739_v1, %v5144_v63  ;;  %v3093_v8 = vpop.f32.mrb[147].mxu1  ;;  %v6908_v15 = vadd.f32 %v2900_v46, %v2323_v32  ;;  %v2902_v57 = vpop.f32.mrb[83].mxu0  ;;  %v2331_v1 = vadd.f32 %v6622_v36, %v6594_v30  ;;  %v2336_v30 = vadd.f32 %v6622_v36, %v6601_v47 }
 0x288   : > { %v6911_v38 = vadd.f32 %v6727_v43, %v3093_v8 }
 0x289   : > { %7483 = vst [vmem:[#allocation17_spill] sm:$0xff] %v6908_v15 }
 0x28c   : > { %v5147_v59 = vpop.f32.mrb[148].mxu1  ;;  %v2905_v56 = vpop.f32.mrb[84].mxu0 }
 0x28d   : > { %v6916_v10 = vadd.f32 %v6759_v20, %v5147_v59  ;;  %v3106_v50 = vpop.f32.mrb[149].mxu1  ;;  %v6920_v27 = vadd.f32 %v2905_v56, %v2328_v16  ;;  %v2907_v32 = vpop.f32.mrb[85].mxu0 }
 0x28e   : > { %v6923_v63 = vadd.f32 %v6747_v39, %v3106_v50  ;;  %v5148_v43 = vpop.f32.mrb[150].mxu1  ;;  %v2908_v46 = vpop.f32.mrb[86].mxu0  ;;  %v5936_v32 = vmov 1983009808  }
 0x28f   : > { %v6926_v8 = vadd.f32 %v6763_v25, %v5148_v43  ;;  %v3109_v55 = vpop.f32.mrb[151].mxu1  ;;  %v6928_v57 = vadd.f32 %v2908_v46, %v2331_v1  ;;  %v2910_v20 = vpop.f32.mrb[87].mxu0  ;;  %v3411_v15 = vunpack.c.l.s4 %v5936_v32  ;;  %v3413_v25 = vlaneseq }
 0x290   : > { %v6931_v59 = vadd.f32 %v6751_v44, %v3109_v55  ;;  %v2339_v1 = vadd.f32 %v6622_v36, %v6604_v58 }
 0x291   : > { %7484 = vst [vmem:[#allocation18_spill] sm:$0xff] %v6926_v8  ;;  %7485 = vst [vmem:[#allocation19_spill] sm:$0xff] %v6928_v57  ;;  %v3412_v35 = vunpack.c.0.s8 %v3411_v15  ;;  %v3414_v58 = vshrl.u32 %v3413_v25, 7 }
 0x292   : > { %7486 = vst [vmem:[#allocation20_spill] sm:$0xff] %v6931_v59 }
 0x294   : > { %v5151_v16 = vpop.f32.mrb[152].mxu1  ;;  %v2913_v56 = vpop.f32.mrb[88].mxu0 }
 0x295   : > { %v6936_v39 = vadd.f32 %v6783_v13, %v5151_v16  ;;  %v3122_v50 = vpop.f32.mrb[153].mxu1  ;;  %v6940_v43 = vadd.f32 %v2913_v56, %v2336_v30  ;;  %v2915_v46 = vpop.f32.mrb[89].mxu0  ;;  %v2344_v30 = vadd.f32 %v6622_v36, %v6611_v11  ;;  %v5317_v56 = vadd.f32 %v6622_v36, %v6719_v60  ;;  %v7496_v60 = vld [vmem:[#allocation4_spill] sm:$0xff] }
 0x296   : > { %v6943_v44 = vadd.f32 %v6771_v2, %v3122_v50  ;;  %v5152_v55 = vpop.f32.mrb[154].mxu1  ;;  %v2916_v47 = vpop.f32.mrb[90].mxu0  ;;  %v2347_v2 = vadd.f32 %v6622_v36, %v6614_v18  ;;  %v5319_v50 = vadd.f32 %v6622_v36, %v6725_v51  ;;  %v6968_v11 = vsub.s32 %v3412_v35, %v3414_v58  ;;  %v7495_v46 = vld [vmem:[#allocation3_spill] sm:$0xff]  ;;  %v7500_v35 = vld [vmem:[#allocation6_spill] sm:$0xff] }
 0x297   : > { %7487 = vst [vmem:[#allocation21_spill] sm:$0xff] %v6936_v39  ;;  %7488 = vst [vmem:[#allocation22_spill] sm:$0xff] %v6940_v43  ;;  %v6946_v20 = vadd.f32 %v6787_v5, %v5152_v55  ;;  %v3125_v13 = vpop.f32.mrb[155].mxu1  ;;  %v6948_v16 = vadd.f32 %v2916_v47, %v2339_v1  ;;  %v2918_v57 = vpop.f32.mrb[91].mxu0  ;;  %v7493_v1 = vld [vmem:[#allocation2_spill] sm:$0xff]  ;;  %v6972_v18 = vadd.f32 %v6622_v36, %v7495_v46  ;;  %v7502_v46 = vld [vmem:[#allocation7_spill] sm:$0xff] }
 0x298   : > { %7489 = vst [vmem:[#allocation23_spill] sm:$0xff] %v6943_v44  ;;  %v6951_v32 = vadd.f32 %v6775_v37, %v3125_v13  ;;  %v6963_v57 = vadd.f32 %v6622_v36, %v7493_v1  ;;  %v6976_v55 = vadd.f32 %v6622_v36, %v7496_v60  ;;  %v6989_v58 = vadd.f32 %v6622_v36, %v7500_v35 }
 0x299   : > { %7490 = vst [vmem:[#allocation24_spill] sm:$0xff] %v6946_v20  ;;  %7491 = vst [vmem:[#allocation25_spill] sm:$0xff] %v6948_v16  ;;  %v6993_v16 = vadd.f32 %v6622_v36, %v7502_v46  ;;  %v7511_v46 = vld [vmem:[#allocation10_spill] sm:$0xff] }
 0x29a   : > { %7492 = vst [vmem:[#allocation26_spill] sm:$0xff] %v6951_v32 }
 0x29b   : > { %7503 = vst [vmem:[#allocation6_spill] sm:$0xff] %v6993_v16  ;;  %v7013_v16 = vadd.f32 %v6622_v36, %v7511_v46  ;;  %v3281_v46 = vmax.f32 %v6823_v28, 0.0 }
 0x29c   : > { %v5155_v5 = vpop.f32.mrb[156].mxu1  ;;  %v2921_v37 = vpop.f32.mrb[92].mxu0 }
 0x29d   : > { %v6966_v15 = vadd.f32 %v6807_v54, %v5155_v5  ;;  %v3138_v25 = vpop.f32.mrb[157].mxu1  ;;  %v6978_v51 = vadd.f32 %v2921_v37, %v2344_v30  ;;  %v2923_v47 = vpop.f32.mrb[93].mxu0  ;;  %v7499_v54 = vld [vmem:[#allocation5_spill] sm:$0xff]  ;;  %7512 = vst [vmem:[#allocation10_spill] sm:$0xff] %v7013_v16 }
 0x29e   : > { %v6981_v13 = vadd.f32 %v6795_v31, %v3138_v25  ;;  %v5156_v1 = vpop.f32.mrb[158].mxu1  ;;  %v6985_v5 = vadd.f32 %v6622_v36, %v7499_v54  ;;  %7501 = vst [vmem:[#allocation5_spill] sm:$0xff] %v6989_v58  ;;  %v2924_v60 = vpop.f32.mrb[94].mxu0  ;;  %v7505_v31 = vld [vmem:[#allocation8_spill] sm:$0xff]  ;;  %v7507_v47 = vld [vmem:[#allocation9_spill] sm:$0xff] }
 0x29f   : > { %7494 = vst [vmem:[#allocation2_spill] sm:$0xff] %v6966_v15  ;;  %7497 = vst [vmem:[#allocation3_spill] sm:$0xff] %v6978_v51  ;;  %v6996_v30 = vadd.f32 %v6811_v62, %v5156_v1  ;;  %v3141_v37 = vpop.f32.mrb[159].mxu1  ;;  %v7000_v25 = vadd.f32 %v6622_v36, %v7505_v31  ;;  %v7004_v54 = vadd.f32 %v6622_v36, %v7507_v47  ;;  %v2926_v35 = vpop.f32.mrb[95].mxu0  ;;  %v7509_v51 = vld [vmem:[#allocation14_spill] sm:$0xff]  ;;  %v7513_v62 = vld [vmem:[#allocation11_spill] sm:$0xff] }
 0x2a0   : > { %7498 = vst [vmem:[#allocation4_spill] sm:$0xff] %v6981_v13  ;;  %v7006_v43 = vadd.f32 %v2924_v60, %v2347_v2  ;;  %v7009_v58 = vadd.f32 %v7509_v51, %v3141_v37  ;;  %v7017_v1 = vadd.f32 %v6622_v36, %v7513_v62  ;;  %v7515_v31 = vld [vmem:[#allocation12_spill] sm:$0xff]  ;;  %v7517_v47 = vld [vmem:[#allocation13_spill] sm:$0xff]  ;;  %v7519_v60 = vld [vmem:[#allocation15_spill] sm:$0xff]  ;;  %v7033_v37 = vadd.f32 %v6622_v36, %v6809_v19 }
 0x2a1   : > { %7504 = vst [vmem:[#allocation7_spill] sm:$0xff] %v6996_v30  ;;  %7506 = vst [vmem:[#allocation8_spill] sm:$0xff] %v7000_v25  ;;  %v7021_v25 = vadd.f32 %v6622_v36, %v7515_v31  ;;  %v7025_v2 = vadd.f32 %v6622_v36, %v7517_v47  ;;  %v7029_v51 = vadd.f32 %v6622_v36, %v7519_v60  ;;  %v3283_v35 = vmax.f32 %v6816_v23, 0.0 }
 0x2a2   : > { %7508 = vst [vmem:[#allocation9_spill] sm:$0xff] %v7004_v54  ;;  %7510 = vst [vmem:[#allocation14_spill] sm:$0xff] %v7009_v58  ;;  %v3284_v62 = vmax.f32 %v6826_v45, 0.0  ;;  %v3282_v31 = vmax.f32 %v6831_v24, 0.0 }
 0x2a3   : > { %7514 = vst [vmem:[#allocation11_spill] sm:$0xff] %v7017_v1  ;;  %7516 = vst [vmem:[#allocation12_spill] sm:$0xff] %v7021_v25 }
 0x2a4   : > { %7518 = vst [vmem:[#allocation13_spill] sm:$0xff] %v7025_v2  ;;  %7520 = vst [vmem:[#allocation15_spill] sm:$0xff] %v7029_v51  ;;  %v5159_v19 = vpop.f32.mrb[160].mxu1  ;;  %v2929_v24 = vpop.f32.mrb[96].mxu0 }
 0x2a5   : > { %7521 = vst [vmem:[#allocation27_spill] sm:$0xff] %v7033_v37  ;;  %v3163_v58 = vadd.f32 %v6840_v41, %v5159_v19  ;;  %v3154_v37 = vpop.f32.mrb[161].mxu1  ;;  %v7051_v60 = vadd.f32 %v5317_v56, %v2929_v24  ;;  %v2931_v51 = vpop.f32.mrb[97].mxu0 }
 0x2a6   : > { %v3155_v36 = vadd.f32 %v6820_v3, %v3154_v37  ;;  %v5160_v25 = vpop.f32.mrb[162].mxu1  ;;  %v2932_v45 = vpop.f32.mrb[98].mxu0 }
 0x2a7   : > { %v3315_v1 = vmax.f32 %v3163_v58, 0.0  ;;  %v3166_v16 = vadd.f32 %v6848_v29, %v5160_v25  ;;  %v3157_v41 = vpop.f32.mrb[163].mxu1  ;;  %v7058_v54 = vadd.f32 %v5319_v50, %v2932_v45  ;;  %v2934_v56 = vpop.f32.mrb[99].mxu0 }
 0x2a8   : > { %v3313_v47 = vmax.f32 %v3155_v36, 0.0  ;;  %v3158_v51 = vadd.f32 %v6828_v33, %v3157_v41 }
 0x2a9   : > { %v3347_v24 = vmax.f32 %v3283_v35, %v3315_v1  ;;  %v3316_v23 = vmax.f32 %v3166_v16, 0.0 }
 0x2aa   : > { %v3345_v29 = vmax.f32 %v3281_v46, %v3313_v47  ;;  %v3314_v25 = vmax.f32 %v3158_v51, 0.0 }
 0x2ab   : > { %v3348_v45 = vmax.f32 %v3284_v62, %v3316_v23 }
 0x2ac   : > { %v3377_v56 = vmax.f32 %v3345_v29, %v3347_v24  ;;  %v3346_v1 = vmax.f32 %v3282_v31, %v3314_v25  ;;  %v5163_v16 = vpop.f32.mrb[164].mxu1  ;;  %v2937_v47 = vpop.f32.mrb[100].mxu0 }
 0x2ad   : > { %v3179_v51 = vadd.f32 %v6880_v0, %v5163_v16  ;;  %v3170_v50 = vpop.f32.mrb[165].mxu1  ;;  %v7076_v41 = vadd.f32 %v6963_v57, %v2937_v47  ;;  %v2939_v31 = vpop.f32.mrb[101].mxu0 }
 0x2ae   : > { %v3409_v19 = vcombine.high %v3377_v56, %v3377_v56  ;;  %v3416_v62 = vrot.slane %v3377_v56, %v6968_v11  ;;  %v3378_v23 = vmax.f32 %v3346_v1, %v3348_v45  ;;  %v5164_v24 = vpop.f32.mrb[166].mxu1  ;;  %v3171_v28 = vadd.f32 %v6860_v61, %v3170_v50  ;;  %v2940_v46 = vpop.f32.mrb[102].mxu0 }
 0x2af   : > { %v3319_v25 = vmax.f32 %v3179_v51, 0.0  ;;  %v7081_v35 = vadd.f32 %v6888_v6, %v5164_v24  ;;  %v7083_v0 = vpop.f32.mrb[167].mxu1  ;;  %v2942_v57 = vpop.f32.mrb[103].mxu0  ;;  %v7522_v51 = vmax.f32 %v6836_v53, 0.0  ;;  %v7091_v50 = vadd.f32 %v6972_v18, %v2940_v46 }
 0x2b0   : > { %v3423_v56 = vrot.slane %v3409_v19, %v6968_v11  ;;  %v3424_v45 = vcombine.high %v3416_v62, %v3416_v62  ;;  %v4881_v1 = vrot.slane %v3416_v62, 9  ;;  %v3426_v16 = vcombine.high %v3378_v23, %v3378_v23 }
 0x2b1   : > { %v3433_v47 = vrot.slane %v3378_v23, %v6968_v11  ;;  %v3351_v31 = vmax.f32 %v7522_v51, %v3319_v25  ;;  %v3317_v61 = vmax.f32 %v3171_v28, 0.0  ;;  %v7523_v23 = vmax.f32 %v6843_v9, 0.0 }
 0x2b2   : > { %v3425_v6 = vcombine.high %v3423_v56, %v3423_v56  ;;  %v4882_v24 = vrot.slane %v3424_v45, 9  ;;  %v4883_v19 = vrot.slane %v3423_v56, 9  ;;  %v3937_v29 = vmax.f32 %v3416_v62, %v4881_v1 }
 0x2b3   : > { %v3440_v57 = vrot.slane %v3426_v16, %v6968_v11  ;;  %v3441_v33 = vcombine.high %v3433_v47, %v3433_v47  ;;  %v4885_v36 = vrot.slane %v3433_v47, 9  ;;  %v3349_v53 = vmax.f32 %v7523_v23, %v3317_v61 }
 0x2b4   : > { %v4884_v25 = vrot.slane %v3425_v6, 9  ;;  %v3938_v28 = vmax.f32 %v3424_v45, %v4882_v24  ;;  %v3939_v51 = vmax.f32 %v3423_v56, %v4883_v19  ;;  %v5011_v18 = vpack.c.bf16 %v3937_v29, %v3937_v29  ;;  %v7096_v46 = vpop.f32.mrb[168].mxu1  ;;  %v7103_v37 = vpop.f32.mrb[104].mxu0 }
 0x2b5   : > { %v3442_v62 = vcombine.high %v3440_v57, %v3440_v57  ;;  %v4886_v1 = vrot.slane %v3441_v33, 9  ;;  %v4887_v58 = vrot.slane %v3440_v57, 9  ;;  %v3941_v16 = vmax.f32 %v3433_v47, %v4885_v36  ;;  %v7105_v3 = vpop.f32.mrb[169].mxu1  ;;  %v2947_v29 = vpop.f32.mrb[105].mxu0 }
 0x2b6   : > { %v3940_v9 = vmax.f32 %v3425_v6, %v4884_v25  ;;  %v5012_v61 = vpack.c.bf16 %v3938_v28, %v3938_v28  ;;  %v5013_v45 = vpack.c.bf16 %v3939_v51, %v3939_v51  ;;  %v4257_v56 = vunpack.c.l.b16 %v5011_v18  ;;  %v7107_v24 = vpop.f32.mrb[170].mxu1  ;;  %v7109_v36 = vpop.f32.mrb[106].mxu0 }
 0x2b7   : > { %v4888_v19 = vrot.slane %v3442_v62, 9  ;;  %v3942_v23 = vmax.f32 %v3441_v33, %v4886_v1  ;;  %v3943_v2 = vmax.f32 %v3440_v57, %v4887_v58  ;;  %v5015_v30 = vpack.c.bf16 %v3941_v16, %v3941_v16  ;;  %v7111_v47 = vpop.f32.mrb[171].mxu1  ;;  %v2950_v51 = vpop.f32.mrb[107].mxu0 }
 0x2b8   : > { %v5014_v13 = vpack.c.bf16 %v3940_v9, %v3940_v9  ;;  %v4258_v6 = vunpack.c.l.b16 %v5012_v61  ;;  %v4259_v25 = vunpack.c.l.b16 %v5013_v45  ;;  %v3379_v28 = vmax.f32 %v3349_v53, %v3351_v31 }
 0x2b9   : > { %v3944_v18 = vmax.f32 %v3442_v62, %v4888_v19  ;;  %v5016_v29 = vpack.c.bf16 %v3942_v23, %v3942_v23  ;;  %v5017_v15 = vpack.c.bf16 %v3943_v2, %v3943_v2  ;;  %v4261_v32 = vunpack.c.l.b16 %v5015_v30 }
 0x2ba   : > { %v4260_v20 = vunpack.c.l.b16 %v5014_v13  ;;  %v4321_v33 = vrot.slane %v4258_v6, 7  ;;  %v4324_v58 = vrot.slane %v4259_v25, 6  ;;  %v3443_v57 = vcombine.high %v3379_v28, %v3379_v28 }
 0x2bb   : > { %v5018_v1 = vpack.c.bf16 %v3944_v18, %v3944_v18  ;;  %v4262_v16 = vunpack.c.l.b16 %v5016_v29  ;;  %v4263_v44 = vunpack.c.l.b16 %v5017_v15  ;;  %v4330_v39 = vrot.slane %v4261_v32, 4 }
 0x2bc   : > { %v4323_v9 = vsel %vm4322_vm1, %v4321_v33, %v4257_v56  ;;  %v4327_v61 = vrot.slane %v4260_v20, 5  ;;  %v3450_v31 = vrot.slane %v3379_v28, %v6968_v11  ;;  %v3457_v2 = vrot.slane %v3443_v57, %v6968_v11  ;;  %v7120_v30 = vpop.f32.mrb[172].mxu1  ;;  %v7123_v19 = vpop.f32.mrb[108].mxu0 }
 0x2bd   : > { %v4326_v13 = vsel %vm4325_vm2, %v4324_v58, %v4323_v9  ;;  %v4264_v53 = vunpack.c.l.b16 %v5018_v1  ;;  %v4333_v62 = vrot.slane %v4262_v16, 3  ;;  %v4336_v45 = vrot.slane %v4263_v44, 2  ;;  %v7125_v32 = vpop.f32.mrb[173].mxu1  ;;  %v2955_v6 = vpop.f32.mrb[109].mxu0 }
 0x2be   : > { %v4329_v20 = vsel %vm4328_vm3, %v4327_v61, %v4326_v13  ;;  %v3458_v15 = vcombine.high %v3450_v31, %v3450_v31  ;;  %v3459_v56 = vcombine.high %v3457_v2, %v3457_v2  ;;  %v4889_v23 = vrot.slane %v3450_v31, 9  ;;  %v7128_v25 = vpop.f32.mrb[174].mxu1  ;;  %v7133_v44 = vpop.f32.mrb[110].mxu0 }
 0x2bf   : > { %v4332_v28 = vsel %vm4331_vm4, %v4330_v39, %v4329_v20  ;;  %v4339_v51 = vrot.slane %v4264_v53, 1  ;;  %v4891_v18 = vrot.slane %v3457_v2, 9  ;;  %v3320_v29 = vmax.f32 %v7081_v35, 0.0  ;;  %v7135_v33 = vpop.f32.mrb[175].mxu1  ;;  %v2958_v9 = vpop.f32.mrb[111].mxu0 }
 0x2c0   : > { %v4335_v58 = vsel %vm4334_vm5, %v4333_v62, %v4332_v28  ;;  %v4890_v57 = vrot.slane %v3458_v15, 9  ;;  %v4892_v1 = vrot.slane %v3459_v56, 9  ;;  %v3945_v16 = vmax.f32 %v3450_v31, %v4889_v23  ;;  %v7528_v9 = vld [vmem:[#allocation19_spill] sm:$0xff] }
 0x2c1   : > { %v4338_v61 = vsel %vm4337_vm6, %v4336_v45, %v4335_v58  ;;  %v3947_v13 = vmax.f32 %v3457_v2, %v4891_v18  ;;  %v7524_v6 = vmax.f32 %v6846_v7, 0.0  ;;  %v3174_v53 = vadd.f32 %v6868_v4, %v7083_v0  ;;  %v7526_v58 = vld [vmem:[#allocation16_spill] sm:$0xff] }
 0x2c2   : > { %v4341_v35 = vsel %vm4340_vm7, %v4339_v51, %v4338_v61  ;;  %v3946_v62 = vmax.f32 %v3458_v15, %v4890_v57  ;;  %v3948_v31 = vmax.f32 %v3459_v56, %v4892_v1  ;;  %v5019_v20 = vpack.c.bf16 %v3945_v16, %v3945_v16 }
 0x2c3   : > { %v3352_v39 = vmax.f32 %v7524_v6, %v3320_v29  ;;  %v4440_v23 = vpack.c.b16 %v4341_v35, %v4341_v35  ;;  %v5021_v45 = vpack.c.bf16 %v3947_v13, %v3947_v13  ;;  %v3318_v2 = vmax.f32 %v3174_v53, 0.0  ;;  %v7529_v35 = vld [vmem:[#allocation17_spill] sm:$0xff] }
 0x2c4   : > { %v7151_v7 = vadd.f32 %v6976_v55, %v7103_v37  ;;  %v5020_v28 = vpack.c.bf16 %v3946_v62, %v3946_v62  ;;  %v5022_v4 = vpack.c.bf16 %v3948_v31, %v3948_v31  ;;  %v4265_v0 = vunpack.c.l.b16 %v5019_v20  ;;  %v7155_v29 = vpop.f32.mrb[176].mxu1  ;;  %v7167_v37 = vpop.f32.mrb[112].mxu0 }
 0x2c5   : > { %v3195_v18 = vadd.f32 %v6920_v27, %v7096_v46  ;;  %4457 = vst.msk [vmem:[%s7146_s24] sm:$0xf] %vm4456_vm8, %v4440_v23  ;;  %v4267_v15 = vunpack.c.l.b16 %v5021_v45  ;;  %v7525_v56 = vmax.f32 %v6851_v14, 0.0  ;;  %v3187_v57 = vadd.f32 %v7526_v58, %v7105_v3  ;;  %v7169_v1 = vpop.f32.mrb[177].mxu1  ;;  %v2963_v13 = vpop.f32.mrb[113].mxu0  ;;  %v7533_v58 = vld [vmem:[#allocation5_spill] sm:$0xff] }
 0x2c6   : > { %v7165_v55 = vadd.f32 %v6985_v5, %v7109_v36  ;;  %v4266_v27 = vunpack.c.l.b16 %v5020_v28  ;;  %v4268_v46 = vunpack.c.l.b16 %v5022_v4  ;;  %v3198_v61 = vadd.f32 %v7528_v9, %v7107_v24  ;;  %v7173_v14 = vpop.f32.mrb[178].mxu1  ;;  %v7177_v36 = vpop.f32.mrb[114].mxu0 }
 0x2c7   : > { %v3350_v51 = vmax.f32 %v7525_v56, %v3318_v2  ;;  %v3323_v16 = vmax.f32 %v3195_v18, 0.0  ;;  %v4344_v6 = vrot.slane %v4267_v15, 6  ;;  %v3321_v3 = vmax.f32 %v3187_v57, 0.0  ;;  %v7179_v62 = vpop.f32.mrb[179].mxu1  ;;  %v2966_v24 = vpop.f32.mrb[115].mxu0 }
 0x2c8   : > { %7527 = vst [vmem:[#allocation16_spill] sm:$0xff] %v7165_v55  ;;  %v3190_v5 = vadd.f32 %v7529_v35, %v7111_v47  ;;  %v4342_v31 = vrot.slane %v4266_v27, 7  ;;  %v4346_v20 = vrot.slane %v4268_v46, 5  ;;  %v7530_v23 = vmax.f32 %v6856_v22, 0.0  ;;  %v7534_v22 = vld [vmem:[#allocation3_spill] sm:$0xff] }
 0x2c9   : > { %v3380_v53 = vmax.f32 %v3350_v51, %v3352_v39  ;;  %v3324_v2 = vmax.f32 %v3198_v61, 0.0  ;;  %v7531_v39 = vmax.f32 %v6863_v17, 0.0  ;;  %v7532_v56 = vmax.f32 %v6866_v21, 0.0 }
 0x2ca   : > { %v3355_v45 = vmax.f32 %v7530_v23, %v3323_v16  ;;  %v3322_v15 = vmax.f32 %v3190_v5, 0.0  ;;  %v4343_v47 = vsel %vm4322_vm1, %v4342_v31, %v4265_v0  ;;  %v7191_v57 = vadd.f32 %v7533_v58, %v7123_v19 }
 0x2cb   : > { %v3460_v28 = vcombine.high %v3380_v53, %v3380_v53  ;;  %v3467_v4 = vrot.slane %v3380_v53, %v6968_v11  ;;  %v3353_v18 = vmax.f32 %v7531_v39, %v3321_v3  ;;  %v3356_v51 = vmax.f32 %v7532_v56, %v3324_v2 }
 0x2cc   : > { %v3211_v27 = vadd.f32 %v7534_v22, %v7120_v30  ;;  %v4345_v46 = vsel %vm4325_vm2, %v4344_v6, %v4343_v47  ;;  %v7535_v0 = vmax.f32 %v6871_v12, 0.0  ;;  %v7200_v3 = vpop.f32.mrb[180].mxu1  ;;  %v7202_v30 = vpop.f32.mrb[116].mxu0 }
 0x2cd   : > { %v3474_v16 = vrot.slane %v3460_v28, %v6968_v11  ;;  %v3475_v9 = vcombine.high %v3467_v4, %v3467_v4  ;;  %v4893_v17 = vrot.slane %v3467_v4, 9  ;;  %v4347_v61 = vsel %vm4328_vm3, %v4346_v20, %v4345_v46  ;;  %v7204_v6 = vpop.f32.mrb[181].mxu1  ;;  %v2971_v12 = vpop.f32.mrb[117].mxu0 }
 0x2ce   : > { %v3381_v13 = vmax.f32 %v3353_v18, %v3355_v45  ;;  %v3354_v21 = vmax.f32 %v7535_v0, %v3322_v15  ;;  %v3327_v53 = vmax.f32 %v3211_v27, 0.0  ;;  %v7536_v20 = vmax.f32 %v6876_v49, 0.0  ;;  %v7211_v28 = vpop.f32.mrb[182].mxu1 }
 0x2cf   : > { %v3476_v19 = vcombine.high %v3474_v16, %v3474_v16  ;;  %v4894_v35 = vrot.slane %v3475_v9, 9  ;;  %v4895_v5 = vrot.slane %v3474_v16, 9  ;;  %v3949_v31 = vmax.f32 %v3467_v4, %v4893_v17  ;;  %v7213_v4 = vpop.f32.mrb[118].mxu0  ;;  %v7215_v56 = vpop.f32.mrb[183].mxu1 }
 0x2d0   : > { %v3477_v23 = vcombine.high %v3381_v13, %v3381_v13  ;;  %v3484_v2 = vrot.slane %v3381_v13, %v6968_v11  ;;  %v3382_v24 = vmax.f32 %v3354_v21, %v3356_v51  ;;  %v7209_v45 = vmax.f32 %v7536_v20, %v3327_v53  ;;  %7537 = vst [vmem:[#allocation19_spill] sm:$0xff] %v7215_v56  ;;  %v2974_v46 = vpop.f32.mrb[119].mxu0 }
 0x2d1   : > { %v4896_v39 = vrot.slane %v3476_v19, 9  ;;  %v3950_v18 = vmax.f32 %v3475_v9, %v4894_v35  ;;  %v3951_v15 = vmax.f32 %v3474_v16, %v4895_v5  ;;  %v5023_v47 = vpack.c.bf16 %v3949_v31, %v3949_v31 }
 0x2d2   : > { %v3491_v58 = vrot.slane %v3477_v23, %v6968_v11  ;;  %v3492_v22 = vcombine.high %v3484_v2, %v3484_v2  ;;  %v4897_v27 = vrot.slane %v3484_v2, 9  ;;  %v3494_v51 = vcombine.high %v3382_v24, %v3382_v24 }
 0x2d3   : > { %v3952_v49 = vmax.f32 %v3476_v19, %v4896_v39  ;;  %v5024_v17 = vpack.c.bf16 %v3950_v18, %v3950_v18  ;;  %v5025_v13 = vpack.c.bf16 %v3951_v15, %v3951_v15  ;;  %v4269_v0 = vunpack.c.l.b16 %v5023_v47 }
 0x2d4   : > { %v3493_v21 = vcombine.high %v3491_v58, %v3491_v58  ;;  %v4898_v53 = vrot.slane %v3492_v22, 9  ;;  %v4899_v20 = vrot.slane %v3491_v58, 9  ;;  %v3953_v9 = vmax.f32 %v3484_v2, %v4897_v27  ;;  %v7218_v56 = vpop.f32.mrb[184].mxu1  ;;  %v7221_v15 = vpop.f32.mrb[120].mxu0 }
 0x2d5   : > { %v5026_v16 = vpack.c.bf16 %v3952_v49, %v3952_v49  ;;  %v4270_v35 = vunpack.c.l.b16 %v5024_v17  ;;  %v4271_v5 = vunpack.c.l.b16 %v5025_v13  ;;  %v4348_v31 = vrot.slane %v4269_v0, 4  ;;  %v7223_v47 = vpop.f32.mrb[185].mxu1  ;;  %v2979_v17 = vpop.f32.mrb[121].mxu0 }
 0x2d6   : > { %v4900_v12 = vrot.slane %v3493_v21, 9  ;;  %v3954_v59 = vmax.f32 %v3492_v22, %v4898_v53  ;;  %v3955_v55 = vmax.f32 %v3491_v58, %v4899_v20  ;;  %v5027_v23 = vpack.c.bf16 %v3953_v9, %v3953_v9  ;;  %v7225_v13 = vpop.f32.mrb[186].mxu1  ;;  %v7230_v53 = vpop.f32.mrb[122].mxu0 }
 0x2d7   : > { %v4272_v8 = vunpack.c.l.b16 %v5026_v16  ;;  %v4349_v19 = vsel %vm4331_vm4, %v4348_v31, %v4347_v61  ;;  %v4350_v39 = vrot.slane %v4270_v35, 3  ;;  %v4352_v18 = vrot.slane %v4271_v5, 2  ;;  %v7232_v20 = vpop.f32.mrb[187].mxu1  ;;  %v2982_v16 = vpop.f32.mrb[123].mxu0 }
 0x2d8   : > { %v3956_v2 = vmax.f32 %v3493_v21, %v4900_v12  ;;  %v5028_v27 = vpack.c.bf16 %v3954_v59, %v3954_v59  ;;  %v5029_v46 = vpack.c.bf16 %v3955_v55, %v3955_v55  ;;  %v4273_v49 = vunpack.c.l.b16 %v5027_v23  ;;  %7538 = vst [vmem:[#allocation17_spill] sm:$0xff] %v7232_v20 }
 0x2d9   : > { %v4351_v58 = vsel %vm4334_vm5, %v4350_v39, %v4349_v19  ;;  %v4354_v22 = vrot.slane %v4272_v8, 1  ;;  %v3501_v0 = vrot.slane %v3382_v24, %v6968_v11  ;;  %v3508_v61 = vrot.slane %v3494_v51, %v6968_v11 }
 0x2da   : > { %v4353_v9 = vsel %vm4337_vm6, %v4352_v18, %v4351_v58  ;;  %v5030_v21 = vpack.c.bf16 %v3956_v2, %v3956_v2  ;;  %v4274_v59 = vunpack.c.l.b16 %v5028_v27  ;;  %v4275_v55 = vunpack.c.l.b16 %v5029_v46  ;;  %v7539_v27 = vld [vmem:[#allocation22_spill] sm:$0xff] }
 0x2db   : > { %v4355_v35 = vsel %vm4340_vm7, %v4354_v22, %v4353_v9  ;;  %v3509_v5 = vcombine.high %v3501_v0, %v3501_v0  ;;  %v3510_v31 = vcombine.high %v3508_v61, %v3508_v61  ;;  %v4901_v8 = vrot.slane %v3501_v0, 9  ;;  %v7540_v58 = vld [vmem:[#allocation6_spill] sm:$0xff] }
 0x2dc   : > { %v4441_v12 = vpack.c.b16 %v4355_v35, %v4355_v35  ;;  %v4276_v24 = vunpack.c.l.b16 %v5030_v21  ;;  %v4356_v23 = vrot.slane %v4274_v59, 7  ;;  %v4358_v51 = vrot.slane %v4275_v55, 6  ;;  %v7245_v9 = vpop.f32.mrb[188].mxu1 }
 0x2dd   : > { %v4902_v19 = vrot.slane %v3509_v5, 9  ;;  %v4903_v39 = vrot.slane %v3508_v61, 9  ;;  %v4904_v17 = vrot.slane %v3510_v31, 9  ;;  %v3957_v20 = vmax.f32 %v3501_v0, %v4901_v8  ;;  %v7248_v0 = vpop.f32.mrb[124].mxu0  ;;  %v7250_v35 = vpop.f32.mrb[189].mxu1 }
 0x2de   : > { %4458 = vst.msk [vmem:[%s7146_s24 + $0x4] sm:$0xf] %vm4456_vm8, %v4441_v12  ;;  %v4357_v18 = vsel %vm4322_vm1, %v4356_v23, %v4273_v49  ;;  %v4360_v2 = vrot.slane %v4276_v24, 5  ;;  %v3203_v46 = vadd.f32 %v7539_v27, %v7125_v32  ;;  %v7243_v22 = vadd.f32 %v7540_v58, %v7133_v44  ;;  %v2987_v44 = vpop.f32.mrb[125].mxu0  ;;  %v7255_v24 = vpop.f32.mrb[190].mxu1 }
 0x2df   : > { %v4359_v21 = vsel %vm4325_vm2, %v4358_v51, %v4357_v18  ;;  %v3958_v59 = vmax.f32 %v3509_v5, %v4902_v19  ;;  %v3959_v55 = vmax.f32 %v3508_v61, %v4903_v39  ;;  %v3960_v16 = vmax.f32 %v3510_v31, %v4904_v17  ;;  %v7541_v61 = vld [vmem:[#allocation25_spill] sm:$0xff]  ;;  %v7259_v31 = vpop.f32.mrb[126].mxu0  ;;  %v7261_v19 = vpop.f32.mrb[191].mxu1 }
 0x2e0   : > { %v5031_v49 = vpack.c.bf16 %v3957_v20, %v3957_v20  ;;  %v4361_v8 = vsel %vm4328_vm3, %v4360_v2, %v4359_v21  ;;  %v3325_v12 = vmax.f32 %v3203_v46, 0.0  ;;  %v3214_v32 = vadd.f32 %v7006_v43, %v7128_v25  ;;  %v7543_v43 = vld [vmem:[#allocation8_spill] sm:$0xff]  ;;  %v2990_v2 = vpop.f32.mrb[127].mxu0 }
 0x2e1   : > { %v5032_v23 = vpack.c.bf16 %v3958_v59, %v3958_v59  ;;  %v5033_v27 = vpack.c.bf16 %v3959_v55, %v3959_v55  ;;  %v5034_v51 = vpack.c.bf16 %v3960_v16, %v3960_v16  ;;  %v3206_v5 = vadd.f32 %v7541_v61, %v7135_v33 }
 0x2e2   : > { %v4277_v20 = vunpack.c.l.b16 %v5031_v49  ;;  %v7542_v39 = vmax.f32 %v6883_v42, 0.0  ;;  %v3328_v18 = vmax.f32 %v3214_v32, 0.0  ;;  %v7267_v25 = vadd.f32 %v7543_v43, %v7167_v37 }
 0x2e3   : > { %v4278_v46 = vunpack.c.l.b16 %v5032_v23  ;;  %v4279_v58 = vunpack.c.l.b16 %v5033_v27  ;;  %v4280_v21 = vunpack.c.l.b16 %v5034_v51  ;;  %v3326_v59 = vmax.f32 %v3206_v5, 0.0 }
 0x2e4   : > { %v3357_v17 = vmax.f32 %v7542_v39, %v3325_v12  ;;  %v4362_v55 = vrot.slane %v4277_v20, 4  ;;  %v7544_v16 = vmax.f32 %v6886_v34, 0.0  ;;  %v3227_v42 = vadd.f32 %v7076_v41, %v7155_v29  ;;  %v7546_v41 = vld [vmem:[#allocation9_spill] sm:$0xff] }
 0x2e5   : > { %v4364_v49 = vrot.slane %v4278_v46, 3  ;;  %v4366_v12 = vrot.slane %v4279_v58, 2  ;;  %v4368_v32 = vrot.slane %v4280_v21, 1  ;;  %v7545_v37 = vmax.f32 %v6891_v26, 0.0 }
 0x2e6   : > { %v3383_v33 = vmax.f32 %v3357_v17, %v7209_v45  ;;  %v3360_v44 = vmax.f32 %v7544_v16, %v3328_v18  ;;  %v4363_v23 = vsel %vm4331_vm4, %v4362_v55, %v4361_v8  ;;  %v3331_v5 = vmax.f32 %v3227_v42, 0.0 }
 0x2e7   : > { %v3358_v61 = vmax.f32 %v7545_v37, %v3326_v59  ;;  %v4365_v45 = vsel %vm4334_vm5, %v4364_v49, %v4363_v23  ;;  %v3219_v34 = vadd.f32 %v7051_v60, %v7169_v1  ;;  %v7283_v29 = vadd.f32 %v7546_v41, %v7177_v36 }
 0x2e8   : > { %v3511_v27 = vcombine.high %v3383_v33, %v3383_v33  ;;  %v3518_v51 = vrot.slane %v3383_v33, %v6968_v11  ;;  %v4367_v39 = vsel %vm4337_vm6, %v4366_v12, %v4365_v45  ;;  %v7547_v46 = vmax.f32 %v6896_v48, 0.0 }
 0x2e9   : > { %v3384_v20 = vmax.f32 %v3358_v61, %v3360_v44  ;;  %v4369_v18 = vsel %vm4340_vm7, %v4368_v32, %v4367_v39  ;;  %v3329_v12 = vmax.f32 %v3219_v34, 0.0  ;;  %v7548_v34 = vmax.f32 %v6903_v40, 0.0 }
 0x2ea   : > { %v3525_v26 = vrot.slane %v3511_v27, %v6968_v11  ;;  %v3526_v8 = vcombine.high %v3518_v51, %v3518_v51  ;;  %v4905_v17 = vrot.slane %v3518_v51, 9  ;;  %v3363_v58 = vmax.f32 %v7547_v46, %v3331_v5 }
 0x2eb   : > { %v3528_v43 = vcombine.high %v3384_v20, %v3384_v20  ;;  %v3535_v2 = vrot.slane %v3384_v20, %v6968_v11  ;;  %v4442_v60 = vpack.c.b16 %v4369_v18, %v4369_v18 }
 0x2ec   : > { %v3527_v1 = vcombine.high %v3525_v26, %v3525_v26  ;;  %v4906_v21 = vrot.slane %v3526_v8, 9  ;;  %v4907_v36 = vrot.slane %v3525_v26, 9  ;;  %v3961_v59 = vmax.f32 %v3518_v51, %v4905_v17 }
 0x2ed   : > { %v3542_v55 = vrot.slane %v3528_v43, %v6968_v11  ;;  %v3543_v33 = vcombine.high %v3535_v2, %v3535_v2  ;;  %v4909_v16 = vrot.slane %v3535_v2, 9  ;;  %4459 = vst.msk [vmem:[%s7146_s24 + $0x8] sm:$0xf] %vm4456_vm8, %v4442_v60 }
 0x2ee   : > { %v4908_v44 = vrot.slane %v3527_v1, 9  ;;  %v3962_v42 = vmax.f32 %v3526_v8, %v4906_v21  ;;  %v3963_v49 = vmax.f32 %v3525_v26, %v4907_v36  ;;  %v5035_v32 = vpack.c.bf16 %v3961_v59, %v3961_v59 }
 0x2ef   : > { %v3544_v37 = vcombine.high %v3542_v55, %v3542_v55  ;;  %v4910_v61 = vrot.slane %v3543_v33, 9  ;;  %v4911_v48 = vrot.slane %v3542_v55, 9  ;;  %v3965_v45 = vmax.f32 %v3535_v2, %v4909_v16 }
 0x2f0   : > { %v3964_v23 = vmax.f32 %v3527_v1, %v4908_v44  ;;  %v5036_v27 = vpack.c.bf16 %v3962_v42, %v3962_v42  ;;  %v5037_v5 = vpack.c.bf16 %v3963_v49, %v3963_v49  ;;  %v4281_v20 = vunpack.c.l.b16 %v5035_v32 }
 0x2f1   : > { %v4912_v51 = vrot.slane %v3544_v37, 9  ;;  %v3966_v41 = vmax.f32 %v3543_v33, %v4910_v61  ;;  %v3967_v39 = vmax.f32 %v3542_v55, %v4911_v48  ;;  %v5039_v46 = vpack.c.bf16 %v3965_v45, %v3965_v45 }
 0x2f2   : > { %v5038_v17 = vpack.c.bf16 %v3964_v23, %v3964_v23  ;;  %v4282_v18 = vunpack.c.l.b16 %v5036_v27  ;;  %v4283_v43 = vunpack.c.l.b16 %v5037_v5  ;;  %v3361_v21 = vmax.f32 %v7548_v34, %v3329_v12 }
 0x2f3   : > { %v3968_v60 = vmax.f32 %v3544_v37, %v4912_v51  ;;  %v5040_v8 = vpack.c.bf16 %v3966_v41, %v3966_v41  ;;  %v5041_v26 = vpack.c.bf16 %v3967_v39, %v3967_v39  ;;  %v4285_v44 = vunpack.c.l.b16 %v5039_v46  ;;  %v7549_v41 = vld [vmem:[#allocation10_spill] sm:$0xff] }
 0x2f4   : > { %v4284_v36 = vunpack.c.l.b16 %v5038_v17  ;;  %v4370_v59 = vrot.slane %v4282_v18, 7  ;;  %v4372_v1 = vrot.slane %v4283_v43, 6  ;;  %v3385_v49 = vmax.f32 %v3361_v21, %v3363_v58 }
 0x2f5   : > { %v5042_v42 = vpack.c.bf16 %v3968_v60, %v3968_v60  ;;  %v4286_v2 = vunpack.c.l.b16 %v5040_v8  ;;  %v4287_v16 = vunpack.c.l.b16 %v5041_v26  ;;  %v4376_v32 = vrot.slane %v4285_v44, 4 }
 0x2f6   : > { %v4371_v55 = vsel %vm4322_vm1, %v4370_v59, %v4281_v20  ;;  %v4374_v33 = vrot.slane %v4284_v36, 5  ;;  %v3230_v37 = vadd.f32 %v7091_v50, %v7173_v14  ;;  %v3545_v27 = vcombine.high %v3385_v49, %v3385_v49 }
 0x2f7   : > { %v4373_v61 = vsel %vm4325_vm2, %v4372_v1, %v4371_v55  ;;  %v4288_v48 = vunpack.c.l.b16 %v5042_v42  ;;  %v4378_v40 = vrot.slane %v4286_v2, 3  ;;  %v4380_v12 = vrot.slane %v4287_v16, 2 }
 0x2f8   : > { %v4375_v23 = vsel %vm4328_vm3, %v4374_v33, %v4373_v61  ;;  %v3552_v5 = vrot.slane %v3385_v49, %v6968_v11  ;;  %v3332_v45 = vmax.f32 %v3230_v37, 0.0  ;;  %v3222_v20 = vadd.f32 %v7058_v54, %v7179_v62  ;;  %v7553_v33 = vld [vmem:[#allocation11_spill] sm:$0xff] }
 0x2f9   : > { %v4377_v58 = vsel %vm4331_vm4, %v4376_v32, %v4375_v23  ;;  %v4382_v51 = vrot.slane %v4288_v48, 1  ;;  %v7307_v50 = vadd.f32 %v7549_v41, %v7202_v30  ;;  %v3559_v39 = vrot.slane %v3545_v27, %v6968_v11 }
 0x2fa   : > { %v4379_v14 = vsel %vm4334_vm5, %v4378_v40, %v4377_v58  ;;  %v3560_v17 = vcombine.high %v3552_v5, %v3552_v5  ;;  %v4913_v18 = vrot.slane %v3552_v5, 9  ;;  %v7550_v46 = vmax.f32 %v6906_v52, 0.0 }
 0x2fb   : > { %v4381_v43 = vsel %vm4337_vm6, %v4380_v12, %v4379_v14  ;;  %v3330_v8 = vmax.f32 %v3222_v20, 0.0  ;;  %v3243_v54 = vadd.f32 %v7191_v57, %v7200_v3  ;;  %v3561_v30 = vcombine.high %v3559_v39, %v3559_v39 }
 0x2fc   : > { %v3364_v60 = vmax.f32 %v7550_v46, %v3332_v45  ;;  %v4383_v62 = vsel %vm4340_vm7, %v4382_v51, %v4381_v43  ;;  %v4914_v26 = vrot.slane %v3560_v17, 9  ;;  %v4915_v34 = vrot.slane %v3559_v39, 9 }
 0x2fd   : > { %v4443_v21 = vpack.c.b16 %v4383_v62, %v4383_v62  ;;  %v3969_v36 = vmax.f32 %v3552_v5, %v4913_v18  ;;  %v7551_v59 = vmax.f32 %v6911_v38, 0.0  ;;  %v3335_v44 = vmax.f32 %v3243_v54, 0.0 }
 0x2fe   : > { %v4916_v42 = vrot.slane %v3561_v30, 9  ;;  %v3970_v2 = vmax.f32 %v3560_v17, %v4914_v26  ;;  %v3971_v52 = vmax.f32 %v3559_v39, %v4915_v34  ;;  %v3235_v16 = vadd.f32 %v7151_v7, %v7204_v6 }
 0x2ff   : > { %v3362_v1 = vmax.f32 %v7551_v59, %v3330_v8  ;;  %4460 = vst.msk [vmem:[%s7146_s24 + $0xc] sm:$0xf] %vm4456_vm8, %v4443_v21  ;;  %v5043_v57 = vpack.c.bf16 %v3969_v36, %v3969_v36  ;;  %v7552_v49 = vmax.f32 %v6916_v10, 0.0  ;;  %v7327_v32 = vadd.f32 %v7553_v33, %v7213_v4 }
 0x300   : > { %v3972_v38 = vmax.f32 %v3561_v30, %v4916_v42  ;;  %v5044_v37 = vpack.c.bf16 %v3970_v2, %v3970_v2  ;;  %v5045_v61 = vpack.c.bf16 %v3971_v52, %v3971_v52  ;;  %v3333_v48 = vmax.f32 %v3235_v16, 0.0 }
 0x301   : > { %v3386_v3 = vmax.f32 %v3362_v1, %v3364_v60  ;;  %v3367_v55 = vmax.f32 %v7552_v49, %v3335_v44  ;;  %v4289_v40 = vunpack.c.l.b16 %v5043_v57  ;;  %v3246_v7 = vadd.f32 %v7243_v22, %v7211_v28 }
 0x302   : > { %v5046_v6 = vpack.c.bf16 %v3972_v38, %v3972_v38  ;;  %v4290_v27 = vunpack.c.l.b16 %v5044_v37  ;;  %v4291_v5 = vunpack.c.l.b16 %v5045_v61  ;;  %v7554_v10 = vmax.f32 %v6923_v63, 0.0 }
 0x303   : > { %v3562_v12 = vcombine.high %v3386_v3, %v3386_v3  ;;  %v3569_v23 = vrot.slane %v3386_v3, %v6968_v11  ;;  %v3336_v20 = vmax.f32 %v3246_v7, 0.0 }
 0x304   : > { %v3365_v45 = vmax.f32 %v7554_v10, %v3333_v48  ;;  %v4292_v41 = vunpack.c.l.b16 %v5046_v6  ;;  %v4384_v14 = vrot.slane %v4290_v27, 7  ;;  %v4386_v39 = vrot.slane %v4291_v5, 6 }
 0x305   : > { %v3576_v4 = vrot.slane %v3562_v12, %v6968_v11  ;;  %v3577_v58 = vcombine.high %v3569_v23, %v3569_v23  ;;  %v4917_v51 = vrot.slane %v3569_v23, 9 }
 0x306   : > { %v3387_v17 = vmax.f32 %v3365_v45, %v3367_v55  ;;  %v4385_v28 = vsel %vm4322_vm1, %v4384_v14, %v4289_v40  ;;  %v4388_v22 = vrot.slane %v4292_v41, 5  ;;  %v7555_v41 = vld [vmem:[#allocation18_spill] sm:$0xff] }
 0x307   : > { %v3578_v18 = vcombine.high %v3576_v4, %v3576_v4  ;;  %v4918_v43 = vrot.slane %v3577_v58, 9  ;;  %v4919_v46 = vrot.slane %v3576_v4, 9  ;;  %v3973_v60 = vmax.f32 %v3569_v23, %v4917_v51 }
 0x308   : > { %v3579_v8 = vcombine.high %v3387_v17, %v3387_v17  ;;  %v3586_v63 = vrot.slane %v3387_v17, %v6968_v11  ;;  %v4387_v54 = vsel %vm4325_vm2, %v4386_v39, %v4385_v28  ;;  %v7556_v14 = vmax.f32 %v7555_v41, 0.0  ;;  %v7557_v28 = vld [vmem:[#allocation19_spill] sm:$0xff] }
 0x309   : > { %v4920_v62 = vrot.slane %v3578_v18, 9  ;;  %v3974_v30 = vmax.f32 %v3577_v58, %v4918_v43  ;;  %v3975_v26 = vmax.f32 %v3576_v4, %v4919_v46  ;;  %v5047_v34 = vpack.c.bf16 %v3973_v60, %v3973_v60 }
 0x30a   : > { %v4389_v21 = vsel %vm4328_vm3, %v4388_v22, %v4387_v54  ;;  %v3593_v36 = vrot.slane %v3579_v8, %v6968_v11  ;;  %v3594_v59 = vcombine.high %v3586_v63, %v3586_v63  ;;  %v4921_v2 = vrot.slane %v3586_v63, 9  ;;  %v7558_v22 = vld [vmem:[#allocation16_spill] sm:$0xff] }
 0x30b   : > { %v3976_v1 = vmax.f32 %v3578_v18, %v4920_v62  ;;  %v5048_v44 = vpack.c.bf16 %v3974_v30, %v3974_v30  ;;  %v5049_v42 = vpack.c.bf16 %v3975_v26, %v3975_v26  ;;  %v4293_v52 = vunpack.c.l.b16 %v5047_v34 }
 0x30c   : > { %v3595_v16 = vcombine.high %v3593_v36, %v3593_v36  ;;  %v4922_v57 = vrot.slane %v3594_v59, 9  ;;  %v4923_v3 = vrot.slane %v3593_v36, 9  ;;  %v3977_v38 = vmax.f32 %v3586_v63, %v4921_v2  ;;  %v7559_v63 = vld [vmem:[#allocation12_spill] sm:$0xff] }
 0x30d   : > { %v5050_v49 = vpack.c.bf16 %v3976_v1, %v3976_v1  ;;  %v4294_v55 = vunpack.c.l.b16 %v5048_v44  ;;  %v4295_v33 = vunpack.c.l.b16 %v5049_v42  ;;  %v4390_v37 = vrot.slane %v4293_v52, 4  ;;  %v7560_v1 = vld [vmem:[#allocation13_spill] sm:$0xff] }
 0x30e   : > { %v4924_v61 = vrot.slane %v3595_v16, 9  ;;  %v3978_v48 = vmax.f32 %v3594_v59, %v4922_v57  ;;  %v3979_v40 = vmax.f32 %v3593_v36, %v4923_v3  ;;  %v5051_v6 = vpack.c.bf16 %v3977_v38, %v3977_v38 }
 0x30f   : > { %v4296_v12 = vunpack.c.l.b16 %v5050_v49  ;;  %v4392_v23 = vrot.slane %v4294_v55, 3  ;;  %v4394_v7 = vrot.slane %v4295_v33, 2  ;;  %v4391_v27 = vsel %vm4331_vm4, %v4390_v37, %v4389_v21  ;;  %v7566_v37 = vld [vmem:[#allocation15_spill] sm:$0xff] }
 0x310   : > { %v3980_v5 = vmax.f32 %v3595_v16, %v4924_v61  ;;  %v5052_v10 = vpack.c.bf16 %v3978_v48, %v3978_v48  ;;  %v5053_v45 = vpack.c.bf16 %v3979_v40, %v3979_v40  ;;  %v4297_v51 = vunpack.c.l.b16 %v5051_v6  ;;  %v7562_v16 = vld [vmem:[#allocation20_spill] sm:$0xff] }
 0x311   : > { %v4393_v4 = vsel %vm4334_vm5, %v4392_v23, %v4391_v27  ;;  %v4396_v58 = vrot.slane %v4296_v12, 1  ;;  %v3368_v39 = vmax.f32 %v7556_v14, %v3336_v20  ;;  %v3238_v8 = vadd.f32 %v7558_v22, %v7557_v28  ;;  %v7569_v12 = vld [vmem:[#allocation27_spill] sm:$0xff]  ;;  %v7574_v22 = vld [vmem:[#allocation2_spill] sm:$0xff] }
 0x312   : > { %v4395_v17 = vsel %vm4337_vm6, %v4394_v7, %v4393_v4  ;;  %v5054_v18 = vpack.c.bf16 %v3980_v5, %v3980_v5  ;;  %v4298_v43 = vunpack.c.l.b16 %v5052_v10  ;;  %v4299_v46 = vunpack.c.l.b16 %v5053_v45  ;;  %v7570_v7 = vld [vmem:[#allocation24_spill] sm:$0xff]  ;;  %v7572_v5 = vld [vmem:[#allocation26_spill] sm:$0xff] }
 0x313   : > { %v4397_v60 = vsel %vm4340_vm7, %v4396_v58, %v4395_v17  ;;  %v5342_v54 = vadd.f32 %v7559_v63, %v7221_v15  ;;  %v3259_v62 = vadd.f32 %v7307_v50, %v7218_v56  ;;  %v3334_v21 = vmax.f32 %v3238_v8, 0.0  ;;  %v7561_v50 = vld [vmem:[#allocation17_spill] sm:$0xff] }
 0x314   : > { %v4444_v30 = vpack.c.b16 %v4397_v60, %v4397_v60  ;;  %v4300_v26 = vunpack.c.l.b16 %v5054_v18  ;;  %v4398_v20 = vrot.slane %v4298_v43, 7  ;;  %v4400_v34 = vrot.slane %v4299_v46, 6 }
 0x315   : > { %v3339_v36 = vmax.f32 %v3259_v62, 0.0  ;;  %v3251_v59 = vadd.f32 %v7267_v25, %v7223_v47  ;;  %v5344_v44 = vadd.f32 %v7560_v1, %v7230_v53  ;;  %v3262_v56 = vadd.f32 %v7327_v32, %v7225_v13  ;;  %v7564_v47 = vld [vmem:[#allocation21_spill] sm:$0xff]  ;;  %v7567_v32 = vld [vmem:[#allocation23_spill] sm:$0xff] }
 0x316   : > { %4461 = vst.msk [vmem:[%s7146_s24 + $0x10] sm:$0xf] %vm4456_vm8, %v4444_v30  ;;  %v4399_v42 = vsel %vm4322_vm1, %v4398_v20, %v4297_v51  ;;  %v4402_v15 = vrot.slane %v4300_v26, 5  ;;  %v3254_v2 = vadd.f32 %v7283_v29, %v7561_v50  ;;  %v7563_v57 = vmax.f32 %v7562_v16, 0.0 }
 0x317   : > { %v4401_v52 = vsel %vm4325_vm2, %v4400_v34, %v4399_v42  ;;  %v7565_v25 = vmax.f32 %v7564_v47, 0.0  ;;  %v3337_v53 = vmax.f32 %v3251_v59, 0.0  ;;  %v3340_v33 = vmax.f32 %v3262_v56, 0.0 }
 0x318   : > { %v3366_v3 = vmax.f32 %v7563_v57, %v3334_v21  ;;  %v4403_v55 = vsel %vm4328_vm3, %v4402_v15, %v4401_v52  ;;  %v3338_v38 = vmax.f32 %v3254_v2, 0.0  ;;  %v5346_v61 = vadd.f32 %v7566_v37, %v7248_v0 }
 0x319   : > { %v3371_v49 = vmax.f32 %v7565_v25, %v3339_v36  ;;  %v7568_v48 = vmax.f32 %v7567_v32, 0.0  ;;  %v7374_v40 = vadd.f32 %v5342_v54, %v7250_v35  ;;  %v5348_v23 = vadd.f32 %v7569_v12, %v7259_v31 }
 0x31a   : > { %v3388_v13 = vmax.f32 %v3366_v3, %v3368_v39  ;;  %v7571_v6 = vmax.f32 %v7570_v7, 0.0  ;;  %v7573_v10 = vmax.f32 %v7572_v5, 0.0  ;;  %v3275_v4 = vadd.f32 %v5346_v61, %v7245_v9 }
 0x31b   : > { %v3369_v29 = vmax.f32 %v7568_v48, %v3337_v53  ;;  %v7384_v0 = vadd.f32 %v5344_v44, %v7261_v19  ;;  %v3341_v35 = vmax.f32 %v7374_v40, 0.0  ;;  %v7389_v31 = vadd.f32 %v5348_v23, %v7255_v24 }
 0x31c   : > { %v3372_v27 = vmax.f32 %v7571_v6, %v3340_v33  ;;  %v3370_v45 = vmax.f32 %v7573_v10, %v3338_v38  ;;  %v3596_v58 = vcombine.high %v3388_v13, %v3388_v13  ;;  %v3603_v51 = vrot.slane %v3388_v13, %v6968_v11 }
 0x31d   : > { %v3389_v41 = vmax.f32 %v3369_v29, %v3371_v49  ;;  %v3343_v39 = vmax.f32 %v3275_v4, 0.0  ;;  %v3342_v17 = vmax.f32 %v7384_v0, 0.0  ;;  %v7575_v8 = vmax.f32 %v7574_v22, 0.0 }
 0x31e   : > { %v3390_v14 = vmax.f32 %v3370_v45, %v3372_v27  ;;  %v3610_v18 = vrot.slane %v3596_v58, %v6968_v11  ;;  %v3611_v43 = vcombine.high %v3603_v51, %v3603_v51  ;;  %v4925_v9 = vrot.slane %v3603_v51, 9 }
 0x31f   : > { %v3613_v46 = vcombine.high %v3389_v41, %v3389_v41  ;;  %v3620_v19 = vrot.slane %v3389_v41, %v6968_v11  ;;  %v7397_v63 = vmax.f32 %v7575_v8, %v3343_v39 }
 0x320   : > { %v3630_v60 = vcombine.high %v3390_v14, %v3390_v14  ;;  %v3637_v28 = vrot.slane %v3390_v14, %v6968_v11  ;;  %v3612_v54 = vcombine.high %v3610_v18, %v3610_v18  ;;  %v4926_v62 = vrot.slane %v3611_v43, 9 }
 0x321   : > { %v4927_v24 = vrot.slane %v3610_v18, 9  ;;  %v3981_v30 = vmax.f32 %v3603_v51, %v4925_v9  ;;  %v3627_v26 = vrot.slane %v3613_v46, %v6968_v11  ;;  %v3628_v20 = vcombine.high %v3620_v19, %v3620_v19 }
 0x322   : > { %v4929_v34 = vrot.slane %v3620_v19, 9  ;;  %v3644_v21 = vrot.slane %v3630_v60, %v6968_v11  ;;  %v4928_v36 = vrot.slane %v3612_v54, 9  ;;  %v3982_v59 = vmax.f32 %v3611_v43, %v4926_v62 }
 0x323   : > { %v3983_v1 = vmax.f32 %v3610_v18, %v4927_v24  ;;  %v5055_v44 = vpack.c.bf16 %v3981_v30, %v3981_v30  ;;  %v3629_v42 = vcombine.high %v3627_v26, %v3627_v26  ;;  %v4930_v15 = vrot.slane %v3628_v20, 9 }
 0x324   : > { %v4931_v56 = vrot.slane %v3627_v26, 9  ;;  %v3985_v50 = vmax.f32 %v3620_v19, %v4929_v34  ;;  %v3984_v2 = vmax.f32 %v3612_v54, %v4928_v36  ;;  %v5056_v52 = vpack.c.bf16 %v3982_v59, %v3982_v59  ;;  %v7576_v19 = vld [vmem:[#allocation14_spill] sm:$0xff]  ;;  %v7577_v36 = vld [vmem:[#allocation4_spill] sm:$0xff] }
 0x325   : > { %v5057_v16 = vpack.c.bf16 %v3983_v1, %v3983_v1  ;;  %v4301_v57 = vunpack.c.l.b16 %v5055_v44  ;;  %v4932_v3 = vrot.slane %v3629_v42, 9  ;;  %v3986_v47 = vmax.f32 %v3628_v20, %v4930_v15 }
 0x326   : > { %v3987_v25 = vmax.f32 %v3627_v26, %v4931_v56  ;;  %v5059_v49 = vpack.c.bf16 %v3985_v50, %v3985_v50  ;;  %v5058_v53 = vpack.c.bf16 %v3984_v2, %v3984_v2  ;;  %v4302_v33 = vunpack.c.l.b16 %v5056_v52  ;;  %v7579_v2 = vld [vmem:[#allocation7_spill] sm:$0xff] }
 0x327   : > { %v4303_v38 = vunpack.c.l.b16 %v5057_v16  ;;  %v4404_v37 = vrot.slane %v4301_v57, 4  ;;  %v3988_v61 = vmax.f32 %v3629_v42, %v4932_v3  ;;  %v5060_v13 = vpack.c.bf16 %v3986_v47, %v3986_v47 }
 0x328   : > { %v5061_v32 = vpack.c.bf16 %v3987_v25, %v3987_v25  ;;  %v4305_v48 = vunpack.c.l.b16 %v5059_v49  ;;  %v4304_v29 = vunpack.c.l.b16 %v5058_v53  ;;  %v4406_v23 = vrot.slane %v4302_v33, 3 }
 0x329   : > { %v4405_v12 = vsel %vm4331_vm4, %v4404_v37, %v4403_v55  ;;  %v4408_v7 = vrot.slane %v4303_v38, 2  ;;  %v5062_v6 = vpack.c.bf16 %v3988_v61, %v3988_v61  ;;  %v4306_v27 = vunpack.c.l.b16 %v5060_v13 }
 0x32a   : > { %v4307_v5 = vunpack.c.l.b16 %v5061_v32  ;;  %v3645_v10 = vcombine.high %v3637_v28, %v3637_v28  ;;  %v4407_v45 = vsel %vm4334_vm5, %v4406_v23, %v4405_v12  ;;  %v4410_v4 = vrot.slane %v4304_v29, 1 }
 0x32b   : > { %v3646_v58 = vcombine.high %v3644_v21, %v3644_v21  ;;  %v4933_v51 = vrot.slane %v3637_v28, 9  ;;  %v4409_v41 = vsel %vm4337_vm6, %v4408_v7, %v4407_v45  ;;  %v4308_v14 = vunpack.c.l.b16 %v5062_v6 }
 0x32c   : > { %v4412_v39 = vrot.slane %v4306_v27, 7  ;;  %v4414_v18 = vrot.slane %v4307_v5, 6  ;;  %v4411_v43 = vsel %vm4340_vm7, %v4410_v4, %v4409_v41  ;;  %v4934_v55 = vrot.slane %v3645_v10, 9 }
 0x32d   : > { %v4935_v9 = vrot.slane %v3644_v21, 9  ;;  %v4936_v46 = vrot.slane %v3646_v58, 9  ;;  %v3310_v60 = vmax.f32 %v7576_v19, 0.0  ;;  %v4445_v22 = vpack.c.b16 %v4411_v43, %v4411_v43 }
 0x32e   : > { %v4413_v8 = vsel %vm4322_vm1, %v4412_v39, %v4305_v48  ;;  %v3989_v54 = vmax.f32 %v3637_v28, %v4933_v51  ;;  %v4416_v62 = vrot.slane %v4308_v14, 5  ;;  %v3990_v24 = vmax.f32 %v3645_v10, %v4934_v55 }
 0x32f   : > { %v3991_v30 = vmax.f32 %v3644_v21, %v4935_v9  ;;  %v3992_v26 = vmax.f32 %v3646_v58, %v4936_v46  ;;  %4462 = vst.msk [vmem:[%s7146_s24 + $0x14] sm:$0xf] %vm4456_vm8, %v4445_v22  ;;  %v4415_v20 = vsel %vm4325_vm2, %v4414_v18, %v4413_v8  ;;  %v7578_v59 = vmax.f32 %v7577_v36, 0.0 }
 0x330   : > { %v5063_v34 = vpack.c.bf16 %v3989_v54, %v3989_v54  ;;  %v3344_v44 = vmax.f32 %v7389_v31, 0.0  ;;  %v5064_v42 = vpack.c.bf16 %v3990_v24, %v3990_v24  ;;  %v3374_v28 = vmax.f32 %v3310_v60, %v3342_v17 }
 0x331   : > { %v3373_v1 = vmax.f32 %v7578_v59, %v3341_v35  ;;  %v5065_v15 = vpack.c.bf16 %v3991_v30, %v3991_v30  ;;  %v5066_v56 = vpack.c.bf16 %v3992_v26, %v3992_v26  ;;  %v7580_v52 = vmax.f32 %v7579_v2, 0.0 }
 0x332   : > { %v4309_v21 = vunpack.c.l.b16 %v5063_v34  ;;  %v4310_v57 = vunpack.c.l.b16 %v5064_v42  ;;  %v4417_v47 = vsel %vm4328_vm3, %v4416_v62, %v4415_v20 }
 0x333   : > { %v3391_v50 = vmax.f32 %v3373_v1, %v7397_v63  ;;  %v3376_v16 = vmax.f32 %v7580_v52, %v3344_v44  ;;  %v4311_v3 = vunpack.c.l.b16 %v5065_v15  ;;  %v4312_v40 = vunpack.c.l.b16 %v5066_v56 }
 0x334   : > { %v4418_v35 = vrot.slane %v4309_v21, 4  ;;  %v4420_v53 = vrot.slane %v4310_v57, 3 }
 0x335   : > { %v3647_v25 = vcombine.high %v3391_v50, %v3391_v50  ;;  %v3654_v31 = vrot.slane %v3391_v50, %v6968_v11  ;;  %v3392_v49 = vmax.f32 %v3374_v28, %v3376_v16  ;;  %v4422_v33 = vrot.slane %v4311_v3, 2 }
 0x336   : > { %v4419_v0 = vsel %vm4331_vm4, %v4418_v35, %v4417_v47  ;;  %v4424_v61 = vrot.slane %v4312_v40, 1 }
 0x337   : > { %v3661_v17 = vrot.slane %v3647_v25, %v6968_v11  ;;  %v3662_v63 = vcombine.high %v3654_v31, %v3654_v31  ;;  %v4937_v38 = vrot.slane %v3654_v31, 9  ;;  %v4421_v37 = vsel %vm4334_vm5, %v4420_v53, %v4419_v0 }
 0x338   : > { %v3664_v13 = vcombine.high %v3392_v49, %v3392_v49  ;;  %v3671_v32 = vrot.slane %v3392_v49, %v6968_v11  ;;  %v4423_v48 = vsel %vm4337_vm6, %v4422_v33, %v4421_v37 }
 0x339   : > { %v3663_v29 = vcombine.high %v3661_v17, %v3661_v17  ;;  %v4938_v12 = vrot.slane %v3662_v63, 9  ;;  %v4939_v23 = vrot.slane %v3661_v17, 9  ;;  %v4425_v7 = vsel %vm4340_vm7, %v4424_v61, %v4423_v48 }
 0x33a   : > { %v3993_v6 = vmax.f32 %v3654_v31, %v4937_v38  ;;  %v3678_v27 = vrot.slane %v3664_v13, %v6968_v11  ;;  %v3679_v5 = vcombine.high %v3671_v32, %v3671_v32  ;;  %v4446_v10 = vpack.c.b16 %v4425_v7, %v4425_v7 }
 0x33b   : > { %v4940_v45 = vrot.slane %v3663_v29, 9  ;;  %v3994_v4 = vmax.f32 %v3662_v63, %v4938_v12  ;;  %v3995_v58 = vmax.f32 %v3661_v17, %v4939_v23  ;;  %v4941_v14 = vrot.slane %v3671_v32, 9 }
 0x33c   : > { %v5067_v51 = vpack.c.bf16 %v3993_v6, %v3993_v6  ;;  %v3680_v41 = vcombine.high %v3678_v27, %v3678_v27  ;;  %v4942_v39 = vrot.slane %v3679_v5, 9  ;;  %4463 = vst.msk [vmem:[%s7146_s24 + $0x18] sm:$0xf] %vm4456_vm8, %v4446_v10  ;;  %v4943_v9 = vrot.slane %v3678_v27, 9 }
 0x33d   : > { %v3996_v18 = vmax.f32 %v3663_v29, %v4940_v45  ;;  %v5068_v43 = vpack.c.bf16 %v3994_v4, %v3994_v4  ;;  %v5069_v55 = vpack.c.bf16 %v3995_v58, %v3995_v58  ;;  %v3997_v19 = vmax.f32 %v3671_v32, %v4941_v14 }
 0x33e   : > { %v4944_v46 = vrot.slane %v3680_v41, 9  ;;  %v3998_v60 = vmax.f32 %v3679_v5, %v4942_v39  ;;  %v3999_v54 = vmax.f32 %v3678_v27, %v4943_v9  ;;  %v4313_v62 = vunpack.c.l.b16 %v5067_v51 }
 0x33f   : > { %v5070_v22 = vpack.c.bf16 %v3996_v18, %v3996_v18  ;;  %v4314_v11 = vunpack.c.l.b16 %v5068_v43  ;;  %v4315_v8 = vunpack.c.l.b16 %v5069_v55  ;;  %v5071_v30 = vpack.c.bf16 %v3997_v19, %v3997_v19 }
 0x340   : > { %v4000_v24 = vmax.f32 %v3680_v41, %v4944_v46  ;;  %v5072_v26 = vpack.c.bf16 %v3998_v60, %v3998_v60  ;;  %v5073_v59 = vpack.c.bf16 %v3999_v54, %v3999_v54 }
 0x341   : > { %v4316_v20 = vunpack.c.l.b16 %v5070_v22  ;;  %v4426_v34 = vrot.slane %v4314_v11, 7  ;;  %v4428_v36 = vrot.slane %v4315_v8, 6  ;;  %v4317_v44 = vunpack.c.l.b16 %v5071_v30 }
 0x342   : > { %v5074_v1 = vpack.c.bf16 %v4000_v24, %v4000_v24  ;;  %v4318_v42 = vunpack.c.l.b16 %v5072_v26  ;;  %v4319_v28 = vunpack.c.l.b16 %v5073_v59 }
 0x343   : > { %v4427_v15 = vsel %vm4322_vm1, %v4426_v34, %v4313_v62  ;;  %v4430_v56 = vrot.slane %v4316_v20, 5  ;;  %v4432_v2 = vrot.slane %v4317_v44, 4 }
 0x344   : > { %v4429_v21 = vsel %vm4325_vm2, %v4428_v36, %v4427_v15  ;;  %v4320_v50 = vunpack.c.l.b16 %v5074_v1  ;;  %v4434_v16 = vrot.slane %v4318_v42, 3  ;;  %v4436_v3 = vrot.slane %v4319_v28, 2 }
 0x345   : > { %v4431_v52 = vsel %vm4328_vm3, %v4430_v56, %v4429_v21 }
 0x346   : > { %v4433_v57 = vsel %vm4331_vm4, %v4432_v2, %v4431_v52  ;;  %v4438_v47 = vrot.slane %v4320_v50, 1 }
 0x347   : > { %v4435_v40 = vsel %vm4334_vm5, %v4434_v16, %v4433_v57 }
 0x348   : > { %v4437_v35 = vsel %vm4337_vm6, %v4436_v3, %v4435_v40 }
 0x349   : > { %v4439_v25 = vsel %vm4340_vm7, %v4438_v47, %v4437_v35 }
 0x34a   : > { %v4447_v31 = vpack.c.b16 %v4439_v25, %v4439_v25 }
 0x34c   : > { %4464 = vst.msk [vmem:[%s7146_s24 + $0x1c] sm:$0xf] %vm4456_vm8, %v4447_v31 }
 0x34d PF: > { %s13_s16 = sadd.s32 1, %s5933_s16   ;;  %s7581_s12 = smov %s5925_s14 }
 0x34e   : > { %p10_p8 = scmp.ge.s32.totalorder %s13_s16, 6   ;;  %s7582_s13 = smov %s5929_s15 }
 0x34f   : > { %s7583_s14 = smov %s7586_s17  ;;  %s7584_s15 = smov %s7590_s18 }
 0x350   :  { %12 = sbr.rel (!%p10_p8) target bundleno = 3 (0x3), region = 62 }

// kernel: c3d_forward.6
= control target key start
LH: loop header
LB: loop body
LE: loop exit
PB: predicated region body
PF: predicated region fallthrough
CT: control target
= control target key end

     0   :  { %s3882_s12 = smov 0   ;;  %s3884_s13 = smov 0   ;;  %s4578_s0 = inlined_call_operand.vmem [shape: bf16[2,2,64,1728], index: 0, kind: input, shape index: {}]   ;;  %s4579_s1 = inlined_call_operand.vmem [shape: bf16[1728,128], index: 1, kind: input, shape index: {}]   ;;  %s4580_s2 = inlined_call_operand.vmem [shape: f32[1,128], index: 2, kind: input, shape index: {}]   ;;  %s4581_s3 = inlined_call_operand.vmem [shape: bf16[2,1,16,128], index: 3, kind: output, shape index: {}]  }
   0x1   :  { %s3886_s14 = smov 0  }
   0x2 LB: > { %s25_s15 = sadd.s32 1, %s3854_s13  ;;  %p2849_p0 = scmp.ge.s32.totalorder %s3858_s14, 1  ;;  %s3858_s14 = sphi %s3886_s14, %s13_s14   ;;  %s3854_s13 = sphi %s3884_s13, %s4583_s13   ;;  %s3850_s12 = sphi %s3882_s12, %s4582_s12  }
   0x3   : > { %p27_p1 = scmp.ge.s32.totalorder %s25_s15, 2  ;;  %p159_p2 = scmp.lt.s32.totalorder %s3858_s14, 3 }
   0x5   : > { %s4585_s15 = smov (%p27_p1, %s25_s15), 0  ;;  %p160_p3 = pnand %p2849_p0, %p159_p2 }
   0x6   : > { %v3560_v0 = vld [vmem:[%s4579_s1 + $0x40] sm:$0xff] (!%p160_p3)   ;;  %v3562_v2 = vld [vmem:[%s4579_s1 + $0x48] sm:$0xff] (!%p160_p3)   ;;  %p193_p4 = scmp.lt.s32.totalorder (!%p160_p3), %s3850_s12, 1  ;;  %v3564_v4 = vld [vmem:[%s4579_s1 + $0x50] sm:$0xff] (!%p160_p3)   ;;  %vm1748_vm0 = vcmask (!%p160_p3), 523264   ;;  %vm2713_vm1 = vcmask (!%p160_p3), 1041409  }
   0x7   : > { %163 = sbr.rel (%p160_p3) target bundleno = 509 (0x1fd), region = 32  ;;  %v3561_v1 = vld [vmem:[%s4579_s1] sm:$0xff] (!%p160_p3)   ;;  %3517 = vmatprep.subr.bf16.mxu1 (!%p160_p3), %v3560_v0  ;;  %3133 = vmatprep.subr.bf16.mxu0 (!%p160_p3), %v3560_v0  ;;  %v3563_v3 = vld [vmem:[%s4579_s1 + $0x8] sm:$0xff] (!%p160_p3)   ;;  %v3565_v5 = vld [vmem:[%s4579_s1 + $0x10] sm:$0xff] (!%p160_p3)   ;;  %vm2716_vm2 = vcmask (!%p160_p3), 1042434   ;;  %vm2719_vm3 = vcmask (!%p160_p3), 1043459  }
   0x8   : > { %3525 = vmatpush3.bf16.msra.mxu1 (!%p160_p3), %v3561_v1  ;;  %3134 = vmatpush3.bf16.msra.mxu0 (!%p160_p3), %v3561_v1  ;;  %v3566_v6 = vld [vmem:[%s4579_s1 + $0x58] sm:$0xff] (!%p160_p3)   ;;  %v3568_v8 = vld [vmem:[%s4579_s1 + $0x60] sm:$0xff] (!%p160_p3)   ;;  %v3570_v10 = vld [vmem:[%s4579_s1 + $0x68] sm:$0xff] (!%p160_p3)   ;;  %vm2722_vm4 = vcmask (!%p160_p3), 1044484   ;;  %vm2725_vm5 = vcmask (!%p160_p3), 1045509   ;;  %vm2728_vm6 = vcmask (!%p160_p3), 1046534  }
   0x9   : > { %3518 = vmatprep.subr.bf16.mxu1 (!%p160_p3), %v3562_v2  ;;  %3135 = vmatprep.subr.bf16.mxu0 (!%p160_p3), %v3562_v2  ;;  %v3567_v7 = vld [vmem:[%s4579_s1 + $0x18] sm:$0xff] (!%p160_p3)   ;;  %v3569_v9 = vld [vmem:[%s4579_s1 + $0x20] sm:$0xff] (!%p160_p3)   ;;  %v3571_v12 = vld [vmem:[%s4579_s1 + $0x28] sm:$0xff] (!%p160_p3)   ;;  %vm2731_vm7 = vcmask (!%p160_p3), 1047559  }
   0xa   : > { %v3572_v14 = vld [vmem:[%s4579_s1 + $0x70] sm:$0xff] (!%p160_p3)   ;;  %v3574_v16 = vld [vmem:[%s4579_s1 + $0x78] sm:$0xff] (!%p160_p3)   ;;  %v3579_v18 = vld [vmem:[%s4579_s1 + $0xc0] sm:$0xff] (!%p160_p3)  }
   0xb   : > { %v3573_v15 = vld [vmem:[%s4579_s1 + $0x30] sm:$0xff] (!%p160_p3)   ;;  %v3575_v17 = vld [vmem:[%s4579_s1 + $0x38] sm:$0xff] (!%p160_p3)   ;;  %v3584_v21 = vld [vmem:[%s4579_s1 + $0x140] sm:$0xff] (!%p160_p3)  }
   0xc   : > { %3526 = vmatpush3.bf16.msra.mxu1 (!%p160_p3), %v3563_v3  ;;  %3136 = vmatpush3.bf16.msra.mxu0 (!%p160_p3), %v3563_v3  ;;  %v3583_v22 = vld [vmem:[%s4579_s1 + $0x80] sm:$0xff] (!%p160_p3)   ;;  %v3586_v24 = vld [vmem:[%s4579_s1 + $0xc8] sm:$0xff] (!%p160_p3)   ;;  %v3593_v30 = vld [vmem:[%s4579_s1 + $0xd0] sm:$0xff] (!%p160_p3)  }
   0xd   : > { %3519 = vmatprep.subr.bf16.mxu1 (!%p160_p3), %v3564_v4  ;;  %3137 = vmatprep.subr.bf16.mxu0 (!%p160_p3), %v3564_v4  ;;  %v3585_v23 = vld [vmem:[%s4579_s1 + $0x100] sm:$0xff] (!%p160_p3)   ;;  %v3588_v25 = vld [vmem:[%s4579_s1 + $0x148] sm:$0xff] (!%p160_p3)   ;;  %v3598_v32 = vld [vmem:[%s4579_s1 + $0x150] sm:$0xff] (!%p160_p3)  }
   0xe   : > { %s4587_s12 = smov (!%p193_p4, %s3850_s12), 1  ;;  %v3587_v27 = vld [vmem:[%s4579_s1 + $0x88] sm:$0xff]   ;;  %v3596_v33 = vld [vmem:[%s4579_s1 + $0x90] sm:$0xff]   ;;  %v3600_v36 = vld [vmem:[%s4579_s1 + $0xd8] sm:$0xff]  }
   0xf   : > { %s3533_s30 = smul.u32 896, %s4587_s12  ;;  %v3591_v29 = vld [vmem:[%s4579_s1 + $0x108] sm:$0xff]   ;;  %v3599_v35 = vld [vmem:[%s4579_s1 + $0x110] sm:$0xff]   ;;  %v3602_v37 = vld [vmem:[%s4579_s1 + $0x158] sm:$0xff]   ;;  %s3116_s16 = sshll.u32 %s4587_s12, 3 }
  0x10   : > { %3527 = vmatpush3.bf16.msra.mxu1 %v3565_v5  ;;  %3138 = vmatpush3.bf16.msra.mxu0 %v3565_v5  ;;  %v3601_v38 = vld [vmem:[%s4579_s1 + $0x98] sm:$0xff]   ;;  %v3607_v42 = vld [vmem:[%s4579_s1 + $0xe0] sm:$0xff]   ;;  %v3614_v48 = vld [vmem:[%s4579_s1 + $0xe8] sm:$0xff]   ;;  %s4555_s18 = scalar_lea.vmem %s4581_s3, %s3116_s16 }
  0x11   : > { %3520 = vmatprep.subr.bf16.mxu1 %v3566_v6  ;;  %3139 = vmatprep.subr.bf16.mxu0 %v3566_v6  ;;  %s3933_s10 = scalar_lea.vmem %s4578_s0, %s3533_s30  ;;  %v3605_v41 = vld [vmem:[%s4579_s1 + $0x118] sm:$0xff]   ;;  %v3612_v44 = vld [vmem:[%s4579_s1 + $0x160] sm:$0xff]   ;;  %v3616_v49 = vld [vmem:[%s4579_s1 + $0x168] sm:$0xff]  }
  0x12   : > { %v3578_v11 = vld [vmem:[%s3933_s10 + $0x1c4] ss:$56 sps:$4 sm:$0xff]   ;;  %v3576_v19 = vld [vmem:[%s3933_s10 + $0x1c0] ss:$56 sps:$4 sm:$0xff]   ;;  %v3589_v26 = vld [vmem:[%s3933_s10 + $0x234] ss:$56 sps:$4 sm:$0xff]  }
  0x13   : > { %v3582_v13 = vld [vmem:[%s3933_s10 + $0x4] ss:$56 sps:$4 sm:$0xff]   ;;  %1837 = vmatprep.mubr.bf16.mxu1 %v3578_v11  ;;  %v3580_v20 = vld [vmem:[%s3933_s10] ss:$56 sps:$4 sm:$0xff]   ;;  %v3594_v28 = vld [vmem:[%s3933_s10 + $0x74] ss:$56 sps:$4 sm:$0xff]  }
  0x14   : > { %3528 = vmatpush3.bf16.msra.mxu1 %v3567_v7  ;;  %3140 = vmatpush3.bf16.msra.mxu0 %v3567_v7  ;;  %v3592_v31 = vld [vmem:[%s3933_s10 + $0x230] ss:$56 sps:$4 sm:$0xff]   ;;  %v3603_v39 = vld [vmem:[%s3933_s10 + $0x2a4] ss:$56 sps:$4 sm:$0xff]   ;;  %v3606_v43 = vld [vmem:[%s3933_s10 + $0x2a0] ss:$56 sps:$4 sm:$0xff]  }
  0x15   : > { %3521 = vmatprep.subr.bf16.mxu1 %v3568_v8  ;;  %3141 = vmatprep.subr.bf16.mxu0 %v3568_v8  ;;  %v3597_v34 = vld [vmem:[%s3933_s10 + $0x70] ss:$56 sps:$4 sm:$0xff]   ;;  %v3608_v40 = vld [vmem:[%s3933_s10 + $0xe4] ss:$56 sps:$4 sm:$0xff]   ;;  %v3611_v46 = vld [vmem:[%s3933_s10 + $0xe0] ss:$56 sps:$4 sm:$0xff]  }
  0x16   : > { %1805 = vmatprep.mubr.bf16.mxu0 %v3582_v13  ;;  %v3610_v45 = vld [vmem:[%s4579_s1 + $0xa0] sm:$0xff]   ;;  %v3615_v50 = vld [vmem:[%s4579_s1 + $0xa8] sm:$0xff]   ;;  %v3621_v55 = vld [vmem:[%s4579_s1 + $0xf0] sm:$0xff]  }
  0x17   : > { %v3613_v47 = vld [vmem:[%s4579_s1 + $0x120] sm:$0xff]   ;;  %v3617_v51 = vld [vmem:[%s3933_s10 + $0x314] ss:$56 sps:$4 sm:$0xff]   ;;  %v3620_v54 = vld [vmem:[%s3933_s10 + $0x310] ss:$56 sps:$4 sm:$0xff]  }
  0x18   : > { %3529 = vmatpush3.bf16.msra.mxu1 %v3569_v9  ;;  %3142 = vmatpush3.bf16.msra.mxu0 %v3569_v9  ;;  %v3619_v52 = vld [vmem:[%s4579_s1 + $0x128] sm:$0xff]   ;;  %v3624_v56 = vld [vmem:[%s4579_s1 + $0xb0] sm:$0xff]   ;;  %v3628_v60 = vld [vmem:[%s4579_s1 + $0xf8] sm:$0xff]  }
  0x19   : > { %3522 = vmatprep.subr.bf16.mxu1 %v3570_v10  ;;  %3143 = vmatprep.subr.bf16.mxu0 %v3570_v10  ;;  %v3622_v53 = vld [vmem:[%s3933_s10 + $0x154] ss:$56 sps:$4 sm:$0xff]   ;;  %v3625_v58 = vld [vmem:[%s3933_s10 + $0x150] ss:$56 sps:$4 sm:$0xff]   ;;  %v3630_v61 = vld [vmem:[%s4579_s1 + $0x178] sm:$0xff]  }
  0x1a   : > { %v3626_v57 = vld [vmem:[%s4579_s1 + $0x170] sm:$0xff]   ;;  %v3629_v62 = vld [vmem:[%s4579_s1 + $0xb8] sm:$0xff]   ;;  %v3633_v63 = vld [vmem:[%s3933_s10 + $0xc] ss:$56 sps:$4 sm:$0xff]  }
  0x1b   : > { %v3627_v59 = vld [vmem:[%s4579_s1 + $0x130] sm:$0xff]   ;;  %v3634_v0 = vld [vmem:[%s4579_s1 + $0x138] sm:$0xff]   ;;  %v3631_v1 = vld [vmem:[%s3933_s10 + $0x8] ss:$56 sps:$4 sm:$0xff]  }
  0x1c   : > { %3530 = vmatpush3.bf16.msra.mxu1 %v3571_v12  ;;  %3144 = vmatpush3.bf16.msra.mxu0 %v3571_v12  ;;  %v3635_v2 = vld [vmem:[%s4579_s1 + $0x1c0] sm:$0xff]   ;;  %v3636_v3 = vld [vmem:[%s3933_s10 + $0x10] ss:$56 sps:$4 sm:$0xff]   ;;  %v3638_v4 = vld [vmem:[%s3933_s10 + $0x14] ss:$56 sps:$4 sm:$0xff]  }
  0x1d   : > { %3523 = vmatprep.subr.bf16.mxu1 %v3572_v14  ;;  %3145 = vmatprep.subr.bf16.mxu0 %v3572_v14  ;;  %v3639_v5 = vld [vmem:[%s4579_s1 + $0x180] sm:$0xff]   ;;  %v3642_v8 = vld [vmem:[%s3933_s10 + $0x7c] ss:$56 sps:$4 sm:$0xff]   ;;  %v3645_v9 = vld [vmem:[%s4579_s1 + $0x1c8] sm:$0xff]  }
  0x1e   : > { %v3640_v6 = vld [vmem:[%s4579_s1 + $0x240] sm:$0xff]   ;;  %v3644_v10 = vld [vmem:[%s3933_s10 + $0x78] ss:$56 sps:$4 sm:$0xff]   ;;  %v3648_v12 = vld [vmem:[%s4579_s1 + $0x188] sm:$0xff]  }
  0x1f   : > { %v3641_v7 = vld [vmem:[%s4579_s1 + $0x200] sm:$0xff]   ;;  %v3650_v14 = vld [vmem:[%s4579_s1 + $0x248] sm:$0xff]  }
  0x20   : > { %3531 = vmatpush3.bf16.msra.mxu1 %v3573_v15  ;;  %3146 = vmatpush3.bf16.msra.mxu0 %v3573_v15  ;;  %v3646_v11 = vld [vmem:[%s3933_s10 + $0x84] ss:$56 sps:$4 sm:$0xff]   ;;  %v3649_v13 = vld [vmem:[%s3933_s10 + $0x80] ss:$56 sps:$4 sm:$0xff]   ;;  %v3651_v15 = vld [vmem:[%s4579_s1 + $0x208] sm:$0xff]  }
  0x21   : > { %3524 = vmatprep.subr.bf16.mxu1 %v3574_v16  ;;  %3147 = vmatprep.subr.bf16.mxu0 %v3574_v16  ;;  %v3652_v16 = vld [vmem:[%s3933_s10 + $0xec] ss:$56 sps:$4 sm:$0xff]  }
  0x24   : > { %3532 = vmatpush3.bf16.msra.mxu1 %v3575_v17  ;;  %3148 = vmatpush3.bf16.msra.mxu0 %v3575_v17  ;;  %v3655_v17 = vld [vmem:[%s4579_s1 + $0x1d0] sm:$0xff]  }
  0x25   : > { %3197 = vmatprep.subr.bf16.mxu1 %v3579_v18  ;;  %3261 = vmatprep.subr.bf16.mxu0 %v3584_v21  ;;  %v3656_v18 = vld [vmem:[%s3933_s10 + $0xf4] ss:$56 sps:$4 sm:$0xff]   ;;  %v3659_v21 = vld [vmem:[%s3933_s10 + $0xf0] ss:$56 sps:$4 sm:$0xff]  }
  0x27   : > { %1838 = vmatmul.mubr.bf16.vlgmr.msra.gmra.mrb[0].mxu1 %v3576_v19  ;;  %1806 = vmatmul.mubr.bf16.vlgmr.msra.gmra.mrb[0].mxu0 %v3580_v20  ;;  %v3654_v19 = vld [vmem:[%s3933_s10 + $0xe8] ss:$56 sps:$4 sm:$0xff]   ;;  %v3658_v20 = vld [vmem:[%s4579_s1 + $0x190] sm:$0xff]  }
  0x28   : > { %3198 = vmatpush3.bf16.msra.mxu1 %v3583_v22  ;;  %3262 = vmatpush3.bf16.msra.mxu0 %v3585_v23  ;;  %v3660_v22 = vld [vmem:[%s4579_s1 + $0x250] sm:$0xff]  }
  0x29   : > { %3199 = vmatprep.subr.bf16.mxu1 %v3586_v24  ;;  %3263 = vmatprep.subr.bf16.mxu0 %v3588_v25  ;;  %v3661_v23 = vld [vmem:[%s4579_s1 + $0x210] sm:$0xff]   ;;  %v3665_v25 = vld [vmem:[%s4579_s1 + $0x1d8] sm:$0xff]  }
  0x2a   : > { %1845 = vmatprep.mubr.bf16.mxu1 %v3589_v26  ;;  %1813 = vmatprep.mubr.bf16.mxu0 %v3594_v28  ;;  %v3662_v24 = vld [vmem:[%s3933_s10 + $0x15c] ss:$56 sps:$4 sm:$0xff]   ;;  %v3664_v28 = vld [vmem:[%s3933_s10 + $0x158] ss:$56 sps:$4 sm:$0xff]  }
  0x2b   : > { %v3666_v26 = vld [vmem:[%s3933_s10 + $0x164] ss:$56 sps:$4 sm:$0xff]  }
  0x2c   : > { %3200 = vmatpush3.bf16.msra.mxu1 %v3587_v27  ;;  %3264 = vmatpush3.bf16.msra.mxu0 %v3591_v29  ;;  %v3668_v27 = vld [vmem:[%s4579_s1 + $0x198] sm:$0xff]  }
  0x2d   : > { %3201 = vmatprep.subr.bf16.mxu1 %v3593_v30  ;;  %3265 = vmatprep.subr.bf16.mxu0 %v3598_v32  ;;  %v3670_v29 = vld [vmem:[%s4579_s1 + $0x258] sm:$0xff]   ;;  %v3672_v32 = vld [vmem:[%s3933_s10 + $0x1cc] ss:$56 sps:$4 sm:$0xff]  }
  0x2e   : > { %v3671_v30 = vld [vmem:[%s4579_s1 + $0x218] sm:$0xff]  }
  0x2f   : > { %1846 = vmatmul.mubr.bf16.gmra.mrb[4].mxu1 %v3592_v31  ;;  %1814 = vmatmul.mubr.bf16.gmra.mrb[4].mxu0 %v3597_v34  ;;  %v3669_v31 = vld [vmem:[%s3933_s10 + $0x160] ss:$56 sps:$4 sm:$0xff]   ;;  %v3676_v34 = vld [vmem:[%s3933_s10 + $0x1d4] ss:$56 sps:$4 sm:$0xff]  }
  0x30   : > { %3202 = vmatpush3.bf16.msra.mxu1 %v3596_v33  ;;  %3266 = vmatpush3.bf16.msra.mxu0 %v3599_v35  ;;  %v3675_v33 = vld [vmem:[%s4579_s1 + $0x1e0] sm:$0xff]  }
  0x31   : > { %3203 = vmatprep.subr.bf16.mxu1 %v3600_v36  ;;  %3267 = vmatprep.subr.bf16.mxu0 %v3602_v37  ;;  %v3678_v35 = vld [vmem:[%s4579_s1 + $0x1a0] sm:$0xff]  }
  0x32   : > { %1853 = vmatprep.mubr.bf16.mxu1 %v3603_v39  ;;  %1821 = vmatprep.mubr.bf16.mxu0 %v3608_v40  ;;  %v3680_v36 = vld [vmem:[%s4579_s1 + $0x260] sm:$0xff]   ;;  %v3679_v39 = vld [vmem:[%s3933_s10 + $0x1d0] ss:$56 sps:$4 sm:$0xff]   ;;  %v3682_v40 = vld [vmem:[%s3933_s10 + $0x23c] ss:$56 sps:$4 sm:$0xff]  }
  0x33   : > { %v3681_v37 = vld [vmem:[%s4579_s1 + $0x220] sm:$0xff]  }
  0x34   : > { %3204 = vmatpush3.bf16.msra.mxu1 %v3601_v38  ;;  %3268 = vmatpush3.bf16.msra.mxu0 %v3605_v41  ;;  %v3674_v38 = vld [vmem:[%s3933_s10 + $0x1c8] ss:$56 sps:$4 sm:$0xff]  }
  0x35   : > { %3205 = vmatprep.subr.bf16.mxu1 %v3607_v42  ;;  %3269 = vmatprep.subr.bf16.mxu0 %v3612_v44  ;;  %v3685_v41 = vld [vmem:[%s4579_s1 + $0x1e8] sm:$0xff]   ;;  %v3686_v42 = vld [vmem:[%s3933_s10 + $0x244] ss:$56 sps:$4 sm:$0xff]  }
  0x36   : > { %v3690_v44 = vld [vmem:[%s4579_s1 + $0x268] sm:$0xff]  }
  0x37   : > { %1854 = vmatmul.mubr.bf16.gmra.mrb[8].mxu1 %v3606_v43  ;;  %1822 = vmatmul.mubr.bf16.gmra.mrb[8].mxu0 %v3611_v46  ;;  %v3688_v43 = vld [vmem:[%s4579_s1 + $0x1a8] sm:$0xff]   ;;  %v3684_v46 = vld [vmem:[%s3933_s10 + $0x238] ss:$56 sps:$4 sm:$0xff]  }
  0x38   : > { %3206 = vmatpush3.bf16.msra.mxu1 %v3610_v45  ;;  %3270 = vmatpush3.bf16.msra.mxu0 %v3613_v47  ;;  %v3691_v45 = vld [vmem:[%s4579_s1 + $0x228] sm:$0xff]   ;;  %v3689_v47 = vld [vmem:[%s3933_s10 + $0x240] ss:$56 sps:$4 sm:$0xff]  }
  0x39   : > { %3207 = vmatprep.subr.bf16.mxu1 %v3614_v48  ;;  %3271 = vmatprep.subr.bf16.mxu0 %v3616_v49  ;;  %v3695_v48 = vld [vmem:[%s4579_s1 + $0x1f0] sm:$0xff]   ;;  %v3692_v49 = vld [vmem:[%s3933_s10 + $0x2ac] ss:$56 sps:$4 sm:$0xff]  }
  0x3a   : > { %1861 = vmatprep.mubr.bf16.mxu1 %v3617_v51  ;;  %1829 = vmatprep.mubr.bf16.mxu0 %v3622_v53  ;;  %v3696_v51 = vld [vmem:[%s3933_s10 + $0x2b4] ss:$56 sps:$4 sm:$0xff]  }
  0x3b   : > { %v3701_v53 = vld [vmem:[%s4579_s1 + $0x230] sm:$0xff]  }
  0x3c   : > { %3208 = vmatpush3.bf16.msra.mxu1 %v3615_v50  ;;  %3272 = vmatpush3.bf16.msra.mxu0 %v3619_v52  ;;  %v3698_v50 = vld [vmem:[%s4579_s1 + $0x1b0] sm:$0xff]  }
  0x3d   : > { %3209 = vmatprep.subr.bf16.mxu1 %v3621_v55  ;;  %3273 = vmatprep.subr.bf16.mxu0 %v3626_v57  ;;  %v3700_v52 = vld [vmem:[%s4579_s1 + $0x270] sm:$0xff]   ;;  %v3694_v55 = vld [vmem:[%s3933_s10 + $0x2a8] ss:$56 sps:$4 sm:$0xff]  }
  0x3e   : > { %v3702_v57 = vld [vmem:[%s3933_s10 + $0x31c] ss:$56 sps:$4 sm:$0xff]  }
  0x3f   : > { %1862 = vmatmul.mubr.bf16.gmra.mrb[12].mxu1 %v3620_v54  ;;  %1830 = vmatmul.mubr.bf16.gmra.mrb[12].mxu0 %v3625_v58  ;;  %v3705_v54 = vld [vmem:[%s4579_s1 + $0x1f8] sm:$0xff]  }
  0x40   : > { %3210 = vmatpush3.bf16.msra.mxu1 %v3624_v56  ;;  %3274 = vmatpush3.bf16.msra.mxu0 %v3627_v59  ;;  %v3699_v56 = vld [vmem:[%s3933_s10 + $0x2b0] ss:$56 sps:$4 sm:$0xff]   ;;  %v3706_v58 = vld [vmem:[%s3933_s10 + $0x324] ss:$56 sps:$4 sm:$0xff]  }
  0x41   : > { %3211 = vmatprep.subr.bf16.mxu1 %v3628_v60  ;;  %3275 = vmatprep.subr.bf16.mxu0 %v3630_v61  ;;  %v3708_v59 = vld [vmem:[%s4579_s1 + $0x1b8] sm:$0xff]  }
  0x42   : > { %1902 = vmatprep.mubr.bf16.mxu1 %v3633_v63  ;;  %1999 = vmatprep.mubr.bf16.mxu0 %v3638_v4  ;;  %v3710_v60 = vld [vmem:[%s4579_s1 + $0x278] sm:$0xff]   ;;  %v3860_v63 = vmov 0  }
  0x43   : > { %v3711_v61 = vld [vmem:[%s4579_s1 + $0x238] sm:$0xff]  }
  0x44   : > { %3212 = vmatpush3.bf16.msra.mxu1 %v3629_v62  ;;  %3276 = vmatpush3.bf16.msra.mxu0 %v3634_v0  ;;  %v3715_v62 = vld [vmem:[%s4579_s1 + $0x2c0] sm:$0xff]   ;;  %v3704_v0 = vld [vmem:[%s3933_s10 + $0x318] ss:$56 sps:$4 sm:$0xff]  }
  0x45   : > { %3325 = vmatprep.subr.bf16.mxu1 %v3635_v2  ;;  %3389 = vmatprep.subr.bf16.mxu0 %v3640_v6  ;;  %v3714_v2 = vld [vmem:[%s3933_s10 + $0x1c] ss:$56 sps:$4 sm:$0xff]   ;;  %v3712_v4 = vld [vmem:[%s3933_s10 + $0x18] ss:$56 sps:$4 sm:$0xff]   ;;  %v3719_v6 = vld [vmem:[%s4579_s1 + $0x280] sm:$0xff]  }
  0x47   : > { %1903 = vmatmul.mubr.bf16.vlgmr.msra.gmra.mrb[16].mxu1 %v3631_v1  ;;  %2000 = vmatmul.mubr.bf16.vlgmr.msra.gmra.mrb[16].mxu0 %v3636_v3  ;;  %v3709_v1 = vld [vmem:[%s3933_s10 + $0x320] ss:$56 sps:$4 sm:$0xff]   ;;  %v3718_v3 = vld [vmem:[%s3933_s10 + $0x24] ss:$56 sps:$4 sm:$0xff]  }
  0x48   : > { %3326 = vmatpush3.bf16.msra.mxu1 %v3639_v5  ;;  %3390 = vmatpush3.bf16.msra.mxu0 %v3641_v7  ;;  %v3716_v5 = vld [vmem:[%s3933_s10 + $0x20] ss:$56 sps:$4 sm:$0xff]  }
  0x49   : > { %1910 = vmatprep.mubr.bf16.mxu1 %v3642_v8  ;;  %3327 = vmatprep.subr.bf16.mxu1 %v3645_v9  ;;  %v3720_v7 = vld [vmem:[%s4579_s1 + $0x300] sm:$0xff]   ;;  %v3724_v9 = vld [vmem:[%s4579_s1 + $0x2c8] sm:$0xff]  }
  0x4a   : > { %2007 = vmatprep.mubr.bf16.mxu0 %v3646_v11  ;;  %3391 = vmatprep.subr.bf16.mxu0 %v3650_v14  ;;  %v3721_v8 = vld [vmem:[%s3933_s10 + $0x8c] ss:$56 sps:$4 sm:$0xff]   ;;  %v3723_v14 = vld [vmem:[%s3933_s10 + $0x88] ss:$56 sps:$4 sm:$0xff]  }
  0x4b   : > { %v3727_v11 = vld [vmem:[%s4579_s1 + $0x288] sm:$0xff]  }
  0x4c   : > { %3328 = vmatpush3.bf16.msra.mxu1 %v3648_v12  ;;  %3392 = vmatpush3.bf16.msra.mxu0 %v3651_v15  ;;  %v3729_v12 = vld [vmem:[%s4579_s1 + $0x308] sm:$0xff]  }
  0x4d   : > { %3329 = vmatprep.subr.bf16.mxu1 %v3655_v17  ;;  %3393 = vmatprep.subr.bf16.mxu0 %v3660_v22  ;;  %v3728_v15 = vld [vmem:[%s3933_s10 + $0x90] ss:$56 sps:$4 sm:$0xff]   ;;  %v3734_v17 = vld [vmem:[%s3933_s10 + $0x104] ss:$56 sps:$4 sm:$0xff]  }
  0x4e   : > { %v3732_v22 = vld [vmem:[%s3933_s10 + $0xf8] ss:$56 sps:$4 sm:$0xff]  }
  0x4f   : > { %1911 = vmatmul.mubr.bf16.gmra.mrb[20].mxu1 %v3644_v10  ;;  %2008 = vmatmul.mubr.bf16.gmra.mrb[20].mxu0 %v3649_v13  ;;  %v3725_v10 = vld [vmem:[%s3933_s10 + $0x94] ss:$56 sps:$4 sm:$0xff]  }
  0x50   : > { %1918 = vmatprep.mubr.bf16.mxu1 %v3652_v16  ;;  %2015 = vmatprep.mubr.bf16.mxu0 %v3656_v18  ;;  %v3733_v13 = vld [vmem:[%s4579_s1 + $0x2d0] sm:$0xff]  }
  0x51   : > { %3330 = vmatpush3.bf16.msra.mxu1 %v3658_v20  ;;  %3394 = vmatpush3.bf16.msra.mxu0 %v3661_v23  ;;  %v3730_v16 = vld [vmem:[%s3933_s10 + $0xfc] ss:$56 sps:$4 sm:$0xff]   ;;  %v3738_v23 = vld [vmem:[%s3933_s10 + $0x100] ss:$56 sps:$4 sm:$0xff]  }
  0x52   : > { %3331 = vmatprep.subr.bf16.mxu1 %v3665_v25  ;;  %3395 = vmatprep.subr.bf16.mxu0 %v3670_v29  ;;  %v3736_v18 = vld [vmem:[%s4579_s1 + $0x290] sm:$0xff]   ;;  %v3743_v20 = vld [vmem:[%s4579_s1 + $0x2d8] sm:$0xff]   ;;  %v3752_v25 = vld [vmem:[%s4579_s1 + $0x2e0] sm:$0xff]  }
  0x53   : > { %v3755_v29 = vld [vmem:[%s4579_s1 + $0x2a0] sm:$0xff]  }
  0x55   : > { %3332 = vmatpush3.bf16.msra.mxu1 %v3668_v27  ;;  %3396 = vmatpush3.bf16.msra.mxu0 %v3671_v30  ;;  %v3744_v27 = vld [vmem:[%s3933_s10 + $0x174] ss:$56 sps:$4 sm:$0xff]  }
  0x56   : > { %3333 = vmatprep.subr.bf16.mxu1 %v3675_v33  ;;  %3397 = vmatprep.subr.bf16.mxu0 %v3680_v36  ;;  %v3762_v30 = vld [vmem:[%s4579_s1 + $0x2e8] sm:$0xff]   ;;  %v3753_v36 = vld [vmem:[%s3933_s10 + $0x1e4] ss:$56 sps:$4 sm:$0xff]  }
  0x57   : > { %1919 = vmatmul.mubr.bf16.gmra.mrb[24].mxu1 %v3654_v19  ;;  %2016 = vmatmul.mubr.bf16.gmra.mrb[24].mxu0 %v3659_v21  ;;  %v3737_v19 = vld [vmem:[%s4579_s1 + $0x310] sm:$0xff]   ;;  %v3739_v21 = vld [vmem:[%s4579_s1 + $0x318] sm:$0xff]  }
  0x58   : > { %1926 = vmatprep.mubr.bf16.mxu1 %v3662_v24  ;;  %2023 = vmatprep.mubr.bf16.mxu0 %v3666_v26  ;;  %v3746_v24 = vld [vmem:[%s4579_s1 + $0x298] sm:$0xff]   ;;  %v3740_v26 = vld [vmem:[%s3933_s10 + $0x16c] ss:$56 sps:$4 sm:$0xff]   ;;  %v3747_v33 = vld [vmem:[%s3933_s10 + $0x170] ss:$56 sps:$4 sm:$0xff]  }
  0x59   : > { %3334 = vmatpush3.bf16.msra.mxu1 %v3678_v35  ;;  %3398 = vmatpush3.bf16.msra.mxu0 %v3681_v37  ;;  %v3749_v35 = vld [vmem:[%s3933_s10 + $0x1dc] ss:$56 sps:$4 sm:$0xff]  }
  0x5a   : > { %3335 = vmatprep.subr.bf16.mxu1 %v3685_v41  ;;  %3399 = vmatprep.subr.bf16.mxu0 %v3690_v44  ;;  %v3771_v37 = vld [vmem:[%s4579_s1 + $0x2f0] sm:$0xff]   ;;  %v3759_v44 = vld [vmem:[%s3933_s10 + $0x24c] ss:$56 sps:$4 sm:$0xff]  }
  0x5b   : > { %v3751_v41 = vld [vmem:[%s3933_s10 + $0x1d8] ss:$56 sps:$4 sm:$0xff]  }
  0x5d   : > { %3336 = vmatpush3.bf16.msra.mxu1 %v3688_v43  ;;  %3400 = vmatpush3.bf16.msra.mxu0 %v3691_v45  ;;  %v3781_v43 = vld [vmem:[%s4579_s1 + $0x2f8] sm:$0xff]  }
  0x5e   : > { %3337 = vmatprep.subr.bf16.mxu1 %v3695_v48  ;;  %3401 = vmatprep.subr.bf16.mxu0 %v3700_v52  ;;  %v3784_v45 = vld [vmem:[%s4579_s1 + $0x2b8] sm:$0xff]   ;;  %v3777_v48 = vld [vmem:[%s4579_s1 + $0x348] sm:$0xff]  }
  0x5f   : > { %1927 = vmatmul.mubr.bf16.gmra.mrb[28].mxu1 %v3664_v28  ;;  %2024 = vmatmul.mubr.bf16.gmra.mrb[28].mxu0 %v3669_v31  ;;  %v3748_v28 = vld [vmem:[%s4579_s1 + $0x320] sm:$0xff]   ;;  %v3756_v31 = vld [vmem:[%s4579_s1 + $0x328] sm:$0xff]  }
  0x60   : > { %1934 = vmatprep.mubr.bf16.mxu1 %v3672_v32  ;;  %2031 = vmatprep.mubr.bf16.mxu0 %v3676_v34  ;;  %v3742_v32 = vld [vmem:[%s3933_s10 + $0x168] ss:$56 sps:$4 sm:$0xff]   ;;  %v3772_v52 = vld [vmem:[%s3933_s10 + $0x2c4] ss:$56 sps:$4 sm:$0xff]  }
  0x61   : > { %3338 = vmatpush3.bf16.msra.mxu1 %v3698_v50  ;;  %3402 = vmatpush3.bf16.msra.mxu0 %v3701_v53  ;;  %v3765_v34 = vld [vmem:[%s4579_s1 + $0x2a8] sm:$0xff]   ;;  %v3786_v53 = vld [vmem:[%s4579_s1 + $0x350] sm:$0xff]  }
  0x62   : > { %3339 = vmatprep.subr.bf16.mxu1 %v3705_v54  ;;  %3403 = vmatprep.subr.bf16.mxu0 %v3710_v60  ;;  %v3766_v50 = vld [vmem:[%s3933_s10 + $0x250] ss:$56 sps:$4 sm:$0xff]   ;;  %v3790_v54 = vld [vmem:[%s4579_s1 + $0x358] sm:$0xff]  }
  0x63   : > { %v3785_v60 = vld [vmem:[%s3933_s10 + $0x330] ss:$56 sps:$4 sm:$0xff]  }
  0x65   : > { %3340 = vmatpush3.bf16.msra.mxu1 %v3708_v59  ;;  %3404 = vmatpush3.bf16.msra.mxu0 %v3711_v61  ;;  %v3780_v59 = vld [vmem:[%s3933_s10 + $0x328] ss:$56 sps:$4 sm:$0xff]   ;;  %v3789_v61 = vld [vmem:[%s3933_s10 + $0x2c] ss:$56 sps:$4 sm:$0xff]  }
  0x66   : > { %3453 = vmatprep.subr.bf16.mxu1 %v3715_v62  ;;  %2355 = vmatprep.subr.bf16.mxu0 %v3860_v63  ;;  %v3793_v62 = vld [vmem:[%s3933_s10 + $0x34] ss:$56 sps:$4 sm:$0xff]  }
  0x67   : > { %1935 = vmatmul.mubr.bf16.gmra.mrb[32].mxu1 %v3674_v38  ;;  %2032 = vmatmul.mubr.bf16.gmra.mrb[32].mxu0 %v3679_v39  ;;  %v3758_v38 = vld [vmem:[%s4579_s1 + $0x330] sm:$0xff]  }
  0x68   : > { %1942 = vmatprep.mubr.bf16.mxu1 %v3682_v40  ;;  %2039 = vmatprep.mubr.bf16.mxu0 %v3686_v42  ;;  %v3774_v39 = vld [vmem:[%s4579_s1 + $0x2b0] sm:$0xff]   ;;  %v3767_v40 = vld [vmem:[%s4579_s1 + $0x338] sm:$0xff]  }
  0x69   : > { %v3757_v42 = vld [vmem:[%s3933_s10 + $0x1e0] ss:$56 sps:$4 sm:$0xff]  }
  0x6f   : > { %1943 = vmatmul.mubr.bf16.gmra.mrb[36].mxu1 %v3684_v46  ;;  %2040 = vmatmul.mubr.bf16.gmra.mrb[36].mxu0 %v3689_v47  ;;  %v3763_v46 = vld [vmem:[%s3933_s10 + $0x254] ss:$56 sps:$4 sm:$0xff]   ;;  %v3775_v47 = vld [vmem:[%s4579_s1 + $0x340] sm:$0xff]  }
  0x70   : > { %1950 = vmatprep.mubr.bf16.mxu1 %v3692_v49  ;;  %2047 = vmatprep.mubr.bf16.mxu0 %v3696_v51  ;;  %v3761_v49 = vld [vmem:[%s3933_s10 + $0x248] ss:$56 sps:$4 sm:$0xff]   ;;  %v3768_v51 = vld [vmem:[%s3933_s10 + $0x2bc] ss:$56 sps:$4 sm:$0xff]  }
  0x77   : > { %1951 = vmatmul.mubr.bf16.gmra.mrb[40].mxu1 %v3694_v55  ;;  %2048 = vmatmul.mubr.bf16.gmra.mrb[40].mxu0 %v3699_v56  ;;  %v3770_v55 = vld [vmem:[%s3933_s10 + $0x2b8] ss:$56 sps:$4 sm:$0xff]  }
  0x78   : > { %1958 = vmatprep.mubr.bf16.mxu1 %v3702_v57  ;;  %2055 = vmatprep.mubr.bf16.mxu0 %v3706_v58  ;;  %v3776_v56 = vld [vmem:[%s3933_s10 + $0x2c0] ss:$56 sps:$4 sm:$0xff]   ;;  %v3778_v57 = vld [vmem:[%s3933_s10 + $0x32c] ss:$56 sps:$4 sm:$0xff]  }
  0x79   : > { %v3782_v58 = vld [vmem:[%s3933_s10 + $0x334] ss:$56 sps:$4 sm:$0xff]  }
  0x7f   : > { %1959 = vmatmul.mubr.bf16.gmra.mrb[44].mxu1 %v3704_v0  ;;  %2056 = vmatmul.mubr.bf16.gmra.mrb[44].mxu0 %v3709_v1  ;;  %v3791_v0 = vld [vmem:[%s3933_s10 + $0x30] ss:$56 sps:$4 sm:$0xff]   ;;  %v3794_v1 = vld [vmem:[%s3933_s10 + $0x9c] ss:$56 sps:$4 sm:$0xff]  }
  0x80   : > { %2096 = vmatprep.mubr.bf16.mxu1 %v3714_v2  ;;  %2193 = vmatprep.mubr.bf16.mxu0 %v3718_v3  ;;  %v3797_v2 = vld [vmem:[%s3933_s10 + $0xa4] ss:$56 sps:$4 sm:$0xff]   ;;  %v3796_v3 = vld [vmem:[%s3933_s10 + $0x98] ss:$56 sps:$4 sm:$0xff]  }
  0x87   : > { %2097 = vmatmul.mubr.bf16.vlgmr.msra.gmra.mrb[48].mxu1 %v3712_v4  ;;  %2194 = vmatmul.mubr.bf16.vlgmr.msra.gmra.mrb[48].mxu0 %v3716_v5  ;;  %v3799_v4 = vld [vmem:[%s3933_s10 + $0xa0] ss:$56 sps:$4 sm:$0xff]   ;;  %v3800_v5 = vld [vmem:[%s3933_s10 + $0x10c] ss:$56 sps:$4 sm:$0xff]  }
  0x88   : > { %3454 = vmatpush3.bf16.msra.mxu1 %v3719_v6  ;;  %2356 = vmatpush1.bf16.msra.mxu0 %v3720_v7  ;;  %v3803_v6 = vld [vmem:[%s3933_s10 + $0x114] ss:$56 sps:$4 sm:$0xff]   ;;  %v3802_v7 = vld [vmem:[%s3933_s10 + $0x108] ss:$56 sps:$4 sm:$0xff]  }
  0x89   : > { %2104 = vmatprep.mubr.bf16.mxu1 %v3721_v8  ;;  %3455 = vmatprep.subr.bf16.mxu1 %v3724_v9  ;;  %v3805_v8 = vld [vmem:[%s3933_s10 + $0x110] ss:$56 sps:$4 sm:$0xff]   ;;  %v3806_v9 = vld [vmem:[%s3933_s10 + $0x17c] ss:$56 sps:$4 sm:$0xff]  }
  0x8a   : > { %2201 = vmatprep.mubr.bf16.mxu0 %v3725_v10  ;;  %2357 = vmatprep.subr.bf16.mxu0 %v3860_v63  ;;  %v3809_v10 = vld [vmem:[%s3933_s10 + $0x184] ss:$56 sps:$4 sm:$0xff]  }
  0x8c   : > { %3456 = vmatpush3.bf16.msra.mxu1 %v3727_v11  ;;  %2358 = vmatpush1.bf16.msra.mxu0 %v3729_v12  ;;  %v3808_v11 = vld [vmem:[%s3933_s10 + $0x178] ss:$56 sps:$4 sm:$0xff]  }
  0x8d   : > { %3457 = vmatprep.subr.bf16.mxu1 %v3733_v13  ;;  %2359 = vmatprep.subr.bf16.mxu0 %v3860_v63  ;;  %v3811_v12 = vld [vmem:[%s3933_s10 + $0x180] ss:$56 sps:$4 sm:$0xff]   ;;  %v3812_v13 = vld [vmem:[%s3933_s10 + $0x1ec] ss:$56 sps:$4 sm:$0xff]  }
  0x8f   : > { %2105 = vmatmul.mubr.bf16.gmra.mrb[52].mxu1 %v3723_v14  ;;  %2202 = vmatmul.mubr.bf16.gmra.mrb[52].mxu0 %v3728_v15  ;;  %v3815_v14 = vld [vmem:[%s3933_s10 + $0x1f4] ss:$56 sps:$4 sm:$0xff]   ;;  %v3814_v15 = vld [vmem:[%s3933_s10 + $0x1e8] ss:$56 sps:$4 sm:$0xff]  }
  0x90   : > { %2112 = vmatprep.mubr.bf16.mxu1 %v3730_v16  ;;  %2209 = vmatprep.mubr.bf16.mxu0 %v3734_v17  ;;  %v3817_v16 = vld [vmem:[%s3933_s10 + $0x1f0] ss:$56 sps:$4 sm:$0xff]   ;;  %v3818_v17 = vld [vmem:[%s3933_s10 + $0x25c] ss:$56 sps:$4 sm:$0xff]  }
  0x91   : > { %3458 = vmatpush3.bf16.msra.mxu1 %v3736_v18  ;;  %2360 = vmatpush1.bf16.msra.mxu0 %v3737_v19  ;;  %v3821_v18 = vld [vmem:[%s3933_s10 + $0x264] ss:$56 sps:$4 sm:$0xff]   ;;  %v3820_v19 = vld [vmem:[%s3933_s10 + $0x258] ss:$56 sps:$4 sm:$0xff]  }
  0x92   : > { %2361 = vmatprep.subr.bf16.mxu0 %v3860_v63  ;;  %3459 = vmatprep.subr.bf16.mxu1 %v3743_v20  ;;  %v3823_v20 = vld [vmem:[%s3933_s10 + $0x260] ss:$56 sps:$4 sm:$0xff]  }
  0x95   : > { %2362 = vmatpush1.bf16.msra.mxu0 %v3739_v21  ;;  %3460 = vmatpush3.bf16.msra.mxu1 %v3746_v24  ;;  %v3824_v21 = vld [vmem:[%s3933_s10 + $0x2cc] ss:$56 sps:$4 sm:$0xff]   ;;  %v3829_v24 = vld [vmem:[%s3933_s10 + $0x2d0] ss:$56 sps:$4 sm:$0xff]  }
  0x96   : > { %2363 = vmatprep.subr.bf16.mxu0 %v3860_v63  ;;  %3461 = vmatprep.subr.bf16.mxu1 %v3752_v25  ;;  %v3830_v25 = vld [vmem:[%s3933_s10 + $0x33c] ss:$56 sps:$4 sm:$0xff]  }
  0x97   : > { %2113 = vmatmul.mubr.bf16.gmra.mrb[56].mxu1 %v3732_v22  ;;  %2210 = vmatmul.mubr.bf16.gmra.mrb[56].mxu0 %v3738_v23  ;;  %v3827_v22 = vld [vmem:[%s3933_s10 + $0x2d4] ss:$56 sps:$4 sm:$0xff]   ;;  %v3826_v23 = vld [vmem:[%s3933_s10 + $0x2c8] ss:$56 sps:$4 sm:$0xff]  }
  0x98   : > { %2120 = vmatprep.mubr.bf16.mxu1 %v3740_v26  ;;  %2217 = vmatprep.mubr.bf16.mxu0 %v3744_v27  ;;  %v3833_v26 = vld [vmem:[%s3933_s10 + $0x344] ss:$56 sps:$4 sm:$0xff]  }
  0x99   : > { %2364 = vmatpush1.bf16.msra.mxu0 %v3748_v28  ;;  %3462 = vmatpush3.bf16.msra.mxu1 %v3755_v29 }
  0x9a   : > { %2365 = vmatprep.subr.bf16.mxu0 %v3860_v63  ;;  %3463 = vmatprep.subr.bf16.mxu1 %v3762_v30 }
  0x9d   : > { %2366 = vmatpush1.bf16.msra.mxu0 %v3756_v31  ;;  %3464 = vmatpush3.bf16.msra.mxu1 %v3765_v34  ;;  %v3832_v31 = vld [vmem:[%s3933_s10 + $0x338] ss:$56 sps:$4 sm:$0xff]  }
  0x9e   : > { %2367 = vmatprep.subr.bf16.mxu0 %v3860_v63  ;;  %3465 = vmatprep.subr.bf16.mxu1 %v3771_v37 }
  0x9f   : > { %2121 = vmatmul.mubr.bf16.gmra.mrb[60].mxu1 %v3742_v32  ;;  %2218 = vmatmul.mubr.bf16.gmra.mrb[60].mxu0 %v3747_v33  ;;  %v3835_v32 = vld [vmem:[%s3933_s10 + $0x340] ss:$56 sps:$4 sm:$0xff]  }
  0xa0   : > { %2128 = vmatprep.mubr.bf16.mxu1 %v3749_v35  ;;  %2225 = vmatprep.mubr.bf16.mxu0 %v3753_v36 }
  0xa1   : > { %2368 = vmatpush1.bf16.msra.mxu0 %v3758_v38  ;;  %3466 = vmatpush3.bf16.msra.mxu1 %v3774_v39 }
  0xa2   : > { %2369 = vmatprep.subr.bf16.mxu0 %v3860_v63  ;;  %3467 = vmatprep.subr.bf16.mxu1 %v3781_v43 }
  0xa5   : > { %2370 = vmatpush1.bf16.msra.mxu0 %v3767_v40  ;;  %3468 = vmatpush3.bf16.msra.mxu1 %v3784_v45 }
  0xa6   : > { %2371 = vmatprep.subr.bf16.mxu0 %v3860_v63 }
  0xa7   : > { %2129 = vmatmul.mubr.bf16.gmra.mrb[64].mxu1 %v3751_v41  ;;  %2226 = vmatmul.mubr.bf16.gmra.mrb[64].mxu0 %v3757_v42 }
  0xa8   : > { %2136 = vmatprep.mubr.bf16.mxu1 %v3759_v44  ;;  %2233 = vmatprep.mubr.bf16.mxu0 %v3763_v46 }
  0xa9   : > { %2372 = vmatpush1.bf16.msra.mxu0 %v3775_v47 }
  0xaa   : > { %2373 = vmatprep.subr.bf16.mxu0 %v3860_v63 }
  0xad   : > { %2374 = vmatpush1.bf16.msra.mxu0 %v3777_v48 }
  0xae   : > { %2375 = vmatprep.subr.bf16.mxu0 %v3860_v63 }
  0xaf   : > { %2137 = vmatmul.mubr.bf16.gmra.mrb[68].mxu1 %v3761_v49  ;;  %2234 = vmatmul.mubr.bf16.gmra.mrb[68].mxu0 %v3766_v50 }
  0xb0   : > { %2144 = vmatprep.mubr.bf16.mxu1 %v3768_v51  ;;  %2241 = vmatprep.mubr.bf16.mxu0 %v3772_v52 }
  0xb1   : > { %2376 = vmatpush1.bf16.msra.mxu0 %v3786_v53 }
  0xb2   : > { %2377 = vmatprep.subr.bf16.mxu0 %v3860_v63  ;;  %v3787_v63 = vld [vmem:[%s3933_s10 + $0x28] ss:$56 sps:$4 sm:$0xff]  }
  0xb5   : > { %2378 = vmatpush1.bf16.msra.mxu0 %v3790_v54 }
  0xb7   : > { %2145 = vmatmul.mubr.bf16.gmra.mrb[72].mxu1 %v3770_v55  ;;  %2242 = vmatmul.mubr.bf16.gmra.mrb[72].mxu0 %v3776_v56 }
  0xb8   : > { %2152 = vmatprep.mubr.bf16.mxu1 %v3778_v57  ;;  %2249 = vmatprep.mubr.bf16.mxu0 %v3782_v58 }
  0xbf   : > { %2153 = vmatmul.mubr.bf16.gmra.mrb[76].mxu1 %v3780_v59  ;;  %2250 = vmatmul.mubr.bf16.gmra.mrb[76].mxu0 %v3785_v60 }
  0xc0   : > { %2290 = vmatprep.mubr.bf16.mxu1 %v3789_v61  ;;  %3074 = vmatprep.mubr.msk.bf16.mxu0 %vm1748_vm0, %v3793_v62 }
  0xc7   : > { %2291 = vmatmul.mubr.bf16.vlgmr.msra.gmra.mrb[80].mxu1 %v3787_v63  ;;  %2388 = vmatmul.mubr.bf16.vlgmr.msra.gmra.mrb[80].mxu0 %v3791_v0 }
  0xc8   : > { %2298 = vmatprep.mubr.bf16.mxu1 %v3794_v1  ;;  %3075 = vmatprep.mubr.msk.bf16.mxu0 %vm1748_vm0, %v3797_v2 }
  0xcf   : > { %2299 = vmatmul.mubr.bf16.gmra.mrb[84].mxu1 %v3796_v3  ;;  %2396 = vmatmul.mubr.bf16.gmra.mrb[84].mxu0 %v3799_v4 }
  0xd0   : > { %2306 = vmatprep.mubr.bf16.mxu1 %v3800_v5  ;;  %3076 = vmatprep.mubr.msk.bf16.mxu0 %vm1748_vm0, %v3803_v6 }
  0xd7   : > { %2307 = vmatmul.mubr.bf16.gmra.mrb[88].mxu1 %v3802_v7  ;;  %2404 = vmatmul.mubr.bf16.gmra.mrb[88].mxu0 %v3805_v8 }
  0xd8   : > { %2314 = vmatprep.mubr.bf16.mxu1 %v3806_v9  ;;  %3077 = vmatprep.mubr.msk.bf16.mxu0 %vm1748_vm0, %v3809_v10 }
  0xdf   : > { %2315 = vmatmul.mubr.bf16.gmra.mrb[92].mxu1 %v3808_v11  ;;  %2412 = vmatmul.mubr.bf16.gmra.mrb[92].mxu0 %v3811_v12 }
  0xe0   : > { %2322 = vmatprep.mubr.bf16.mxu1 %v3812_v13  ;;  %3078 = vmatprep.mubr.msk.bf16.mxu0 %vm1748_vm0, %v3815_v14 }
  0xe7   : > { %2323 = vmatmul.mubr.bf16.gmra.mrb[96].mxu1 %v3814_v15  ;;  %2420 = vmatmul.mubr.bf16.gmra.mrb[96].mxu0 %v3817_v16  ;;  %v4387_v15 = vld [vmem:[%s4580_s2] ss:$0 sm:$0xff] }
  0xe8   : > { %2330 = vmatprep.mubr.bf16.mxu1 %v3818_v17  ;;  %3079 = vmatprep.mubr.msk.bf16.mxu0 %vm1748_vm0, %v3821_v18 }
  0xef   : > { %2331 = vmatmul.mubr.bf16.gmra.mrb[100].mxu1 %v3820_v19  ;;  %2428 = vmatmul.mubr.bf16.gmra.mrb[100].mxu0 %v3823_v20 }
  0xf0   : > { %2338 = vmatprep.mubr.bf16.mxu1 %v3824_v21  ;;  %3080 = vmatprep.mubr.msk.bf16.mxu0 %vm1748_vm0, %v3827_v22 }
  0xf7   : > { %2339 = vmatmul.mubr.bf16.gmra.mrb[104].mxu1 %v3826_v23  ;;  %2436 = vmatmul.mubr.bf16.gmra.mrb[104].mxu0 %v3829_v24 }
  0xf8   : > { %2346 = vmatprep.mubr.bf16.mxu1 %v3830_v25  ;;  %3081 = vmatprep.mubr.msk.bf16.mxu0 %vm1748_vm0, %v3833_v26 }
  0xfa   : > { %v3173_v27 = vpop.f32.mrb[0].mxu1  ;;  %v3149_v28 = vpop.f32.mrb[0].mxu0 }
  0xfb   : > { %v3174_v29 = vpop.f32.mrb[1].mxu1  ;;  %v3150_v30 = vpop.f32.mrb[1].mxu0 }
  0xfc   : > { %v4364_v33 = vadd.f32 %v3174_v29, %v3173_v27  ;;  %v3176_v34 = vpop.f32.mrb[2].mxu1  ;;  %v3151_v35 = vadd.f32 %v3150_v30, %v3149_v28  ;;  %v3152_v36 = vpop.f32.mrb[2].mxu0 }
  0xfd   : > { %v3177_v37 = vpop.f32.mrb[3].mxu1  ;;  %v3153_v38 = vpop.f32.mrb[3].mxu0 }
  0xfe   : > { %v4366_v39 = vadd.f32 %v3177_v37, %v3176_v34  ;;  %v3154_v40 = vadd.f32 %v3153_v38, %v3152_v36  ;;  %v1808_v18 = vadd.f32 %v3151_v35, %v4387_v15 }
  0xff   : > { %2347 = vmatmul.mubr.bf16.gmra.mrb[108].mxu1 %v3832_v31  ;;  %2444 = vmatmul.mubr.bf16.gmra.mrb[108].mxu0 %v3835_v32 }
 0x100   : > { %v1811_v25 = vadd.f32 %v3154_v40, %v4387_v15 }
 0x102   : > { %v3179_v41 = vpop.f32.mrb[4].mxu1  ;;  %v3155_v42 = vpop.f32.mrb[4].mxu0 }
 0x103   : > { %v3180_v43 = vpop.f32.mrb[5].mxu1  ;;  %v3156_v44 = vpop.f32.mrb[5].mxu0 }
 0x104   : > { %v4368_v45 = vadd.f32 %v3180_v43, %v3179_v41  ;;  %v3182_v46 = vpop.f32.mrb[6].mxu1  ;;  %v3157_v47 = vadd.f32 %v3156_v44, %v3155_v42  ;;  %v3158_v48 = vpop.f32.mrb[6].mxu0 }
 0x105   : > { %v3183_v49 = vpop.f32.mrb[7].mxu1  ;;  %v3159_v50 = vpop.f32.mrb[7].mxu0 }
 0x106   : > { %v4370_v51 = vadd.f32 %v3183_v49, %v3182_v46  ;;  %v3160_v52 = vadd.f32 %v3159_v50, %v3158_v48  ;;  %v1816_v37 = vadd.f32 %v3157_v47, %v4387_v15 }
 0x108   : > { %v1819_v46 = vadd.f32 %v3160_v52, %v4387_v15 }
 0x10a   : > { %v3185_v53 = vpop.f32.mrb[8].mxu1  ;;  %v3161_v54 = vpop.f32.mrb[8].mxu0 }
 0x10b   : > { %v3186_v55 = vpop.f32.mrb[9].mxu1  ;;  %v3162_v56 = vpop.f32.mrb[9].mxu0 }
 0x10c   : > { %v4372_v57 = vadd.f32 %v3186_v55, %v3185_v53  ;;  %v3188_v58 = vpop.f32.mrb[10].mxu1  ;;  %v3163_v59 = vadd.f32 %v3162_v56, %v3161_v54  ;;  %v3164_v60 = vpop.f32.mrb[10].mxu0 }
 0x10d   : > { %v3189_v61 = vpop.f32.mrb[11].mxu1  ;;  %v3165_v62 = vpop.f32.mrb[11].mxu0 }
 0x10e   : > { %v4374_v63 = vadd.f32 %v3189_v61, %v3188_v58  ;;  %v3166_v0 = vadd.f32 %v3165_v62, %v3164_v60  ;;  %v1824_v61 = vadd.f32 %v3163_v59, %v4387_v15 }
 0x112   : > { %v3191_v1 = vpop.f32.mrb[12].mxu1  ;;  %v3167_v2 = vpop.f32.mrb[12].mxu0 }
 0x113   : > { %v3192_v3 = vpop.f32.mrb[13].mxu1  ;;  %v3168_v4 = vpop.f32.mrb[13].mxu0 }
 0x114   : > { %v4376_v5 = vadd.f32 %v3192_v3, %v3191_v1  ;;  %v3194_v6 = vpop.f32.mrb[14].mxu1  ;;  %v4378_v7 = vadd.f32 %v3168_v4, %v3167_v2  ;;  %v3170_v8 = vpop.f32.mrb[14].mxu0 }
 0x115   : > { %v3195_v9 = vpop.f32.mrb[15].mxu1  ;;  %v3171_v10 = vpop.f32.mrb[15].mxu0 }
 0x116   : > { %v4380_v11 = vadd.f32 %v3195_v9, %v3194_v6  ;;  %v4382_v12 = vadd.f32 %v3171_v10, %v3170_v8  ;;  %v1827_v6 = vadd.f32 %v3166_v0, %v4387_v15 }
 0x11a   : > { %v3213_v13 = vpop.f32.mrb[16].mxu1  ;;  %v3277_v14 = vpop.f32.mrb[16].mxu0 }
 0x11b   : > { %v3214_v16 = vpop.f32.mrb[17].mxu1  ;;  %v3278_v17 = vpop.f32.mrb[17].mxu0 }
 0x11c   : > { %v3215_v19 = vadd.f32 %v3214_v16, %v3213_v13  ;;  %v3216_v20 = vpop.f32.mrb[18].mxu1  ;;  %v3279_v21 = vadd.f32 %v3278_v17, %v3277_v14  ;;  %v3280_v22 = vpop.f32.mrb[18].mxu0 }
 0x11d   : > { %v3217_v23 = vpop.f32.mrb[19].mxu1  ;;  %v3281_v24 = vpop.f32.mrb[19].mxu0 }
 0x11e   : > { %v1905_v26 = vadd.f32 %v3215_v19, %v1808_v18  ;;  %v3218_v27 = vadd.f32 %v3217_v23, %v3216_v20  ;;  %v3282_v28 = vadd.f32 %v3281_v24, %v3280_v22  ;;  %v1832_v20 = vadd.f32 %v4378_v7, %v4387_v15 }
 0x120   : > { %v1908_v29 = vadd.f32 %v3218_v27, %v1811_v25  ;;  %v4391_v30 = vadd.f32 %v3279_v21, %v1905_v26  ;;  %v1835_v26 = vadd.f32 %v4382_v12, %v4387_v15 }
 0x122   : > { %v4393_v31 = vadd.f32 %v3282_v28, %v1908_v29  ;;  %v3219_v32 = vpop.f32.mrb[20].mxu1  ;;  %v3283_v34 = vpop.f32.mrb[20].mxu0 }
 0x123   : > { %v3220_v36 = vpop.f32.mrb[21].mxu1  ;;  %v3284_v35 = vpop.f32.mrb[21].mxu0 }
 0x124   : > { %v3221_v38 = vadd.f32 %v3220_v36, %v3219_v32  ;;  %v3222_v41 = vpop.f32.mrb[22].mxu1  ;;  %v3285_v42 = vadd.f32 %v3284_v35, %v3283_v34  ;;  %v3286_v43 = vpop.f32.mrb[22].mxu0 }
 0x125   : > { %v3223_v44 = vpop.f32.mrb[23].mxu1  ;;  %v3287_v40 = vpop.f32.mrb[23].mxu0 }
 0x126   : > { %v1913_v48 = vadd.f32 %v3221_v38, %v1816_v37  ;;  %v3224_v49 = vadd.f32 %v3223_v44, %v3222_v41  ;;  %v3288_v50 = vadd.f32 %v3287_v40, %v3286_v43  ;;  %v1840_v41 = vadd.f32 %v4364_v33, %v4387_v15 }
 0x128   : > { %v1916_v53 = vadd.f32 %v3224_v49, %v1819_v46  ;;  %v4397_v54 = vadd.f32 %v3285_v42, %v1913_v48  ;;  %v1843_v48 = vadd.f32 %v4366_v39, %v4387_v15 }
 0x12a   : > { %v4399_v55 = vadd.f32 %v3288_v50, %v1916_v53  ;;  %v3225_v56 = vpop.f32.mrb[24].mxu1  ;;  %v3289_v58 = vpop.f32.mrb[24].mxu0 }
 0x12b   : > { %v3226_v60 = vpop.f32.mrb[25].mxu1  ;;  %v3290_v47 = vpop.f32.mrb[25].mxu0 }
 0x12c   : > { %v3227_v62 = vadd.f32 %v3226_v60, %v3225_v56  ;;  %v3228_v1 = vpop.f32.mrb[26].mxu1  ;;  %v3291_v2 = vadd.f32 %v3290_v47, %v3289_v58  ;;  %v3292_v3 = vpop.f32.mrb[26].mxu0 }
 0x12d   : > { %v3229_v4 = vpop.f32.mrb[27].mxu1  ;;  %v3293_v52 = vpop.f32.mrb[27].mxu0 }
 0x12e   : > { %v1921_v8 = vadd.f32 %v3227_v62, %v1824_v61  ;;  %v3230_v9 = vadd.f32 %v3229_v4, %v3228_v1  ;;  %v3294_v10 = vadd.f32 %v3293_v52, %v3292_v3  ;;  %v1848_v1 = vadd.f32 %v4368_v45, %v4387_v15 }
 0x130   : > { %v1924_v13 = vadd.f32 %v3230_v9, %v1827_v6  ;;  %v4403_v14 = vadd.f32 %v3291_v2, %v1921_v8  ;;  %v1851_v8 = vadd.f32 %v4370_v51, %v4387_v15 }
 0x132   : > { %v4405_v16 = vadd.f32 %v3294_v10, %v1924_v13  ;;  %v3231_v17 = vpop.f32.mrb[28].mxu1  ;;  %v3295_v18 = vpop.f32.mrb[28].mxu0 }
 0x133   : > { %v3232_v19 = vpop.f32.mrb[29].mxu1  ;;  %v3296_v59 = vpop.f32.mrb[29].mxu0 }
 0x134   : > { %v3233_v21 = vadd.f32 %v3232_v19, %v3231_v17  ;;  %v3234_v22 = vpop.f32.mrb[30].mxu1  ;;  %v3297_v23 = vadd.f32 %v3296_v59, %v3295_v18  ;;  %v3298_v24 = vpop.f32.mrb[30].mxu0 }
 0x135   : > { %v3235_v0 = vpop.f32.mrb[31].mxu1  ;;  %v3299_v25 = vpop.f32.mrb[31].mxu0 }
 0x136   : > { %v1929_v27 = vadd.f32 %v3233_v21, %v1832_v20  ;;  %v3236_v28 = vadd.f32 %v3235_v0, %v3234_v22  ;;  %v3300_v29 = vadd.f32 %v3299_v25, %v3298_v24  ;;  %v1856_v22 = vadd.f32 %v4372_v57, %v4387_v15 }
 0x138   : > { %v1932_v32 = vadd.f32 %v3236_v28, %v1835_v26  ;;  %v4411_v34 = vadd.f32 %v3297_v23, %v1929_v27  ;;  %v1859_v27 = vadd.f32 %v4374_v63, %v4387_v15 }
 0x13a   : > { %v4413_v36 = vadd.f32 %v3300_v29, %v1932_v32  ;;  %v3237_v35 = vpop.f32.mrb[32].mxu1  ;;  %v3301_v37 = vpop.f32.mrb[32].mxu0 }
 0x13b   : > { %v3238_v7 = vpop.f32.mrb[33].mxu1  ;;  %v3302_v38 = vpop.f32.mrb[33].mxu0 }
 0x13c   : > { %v3239_v42 = vadd.f32 %v3238_v7, %v3237_v35  ;;  %v3240_v43 = vpop.f32.mrb[34].mxu1  ;;  %v3303_v44 = vadd.f32 %v3302_v38, %v3301_v37  ;;  %v3304_v40 = vpop.f32.mrb[34].mxu0 }
 0x13d   : > { %v3241_v12 = vpop.f32.mrb[35].mxu1  ;;  %v3305_v46 = vpop.f32.mrb[35].mxu0 }
 0x13e   : > { %v1937_v49 = vadd.f32 %v3239_v42, %v1840_v41  ;;  %v3242_v50 = vadd.f32 %v3241_v12, %v3240_v43  ;;  %v3306_v53 = vadd.f32 %v3305_v46, %v3304_v40  ;;  %v1864_v43 = vadd.f32 %v4376_v5, %v4387_v15 }
 0x140   : > { %v1940_v56 = vadd.f32 %v3242_v50, %v1843_v48  ;;  %v4419_v58 = vadd.f32 %v3303_v44, %v1937_v49  ;;  %v1867_v49 = vadd.f32 %v4380_v11, %v4387_v15 }
 0x142   : > { %v4421_v60 = vadd.f32 %v3306_v53, %v1940_v56  ;;  %v3243_v47 = vpop.f32.mrb[36].mxu1  ;;  %v3307_v61 = vpop.f32.mrb[36].mxu0 }
 0x143   : > { %v3244_v33 = vpop.f32.mrb[37].mxu1  ;;  %v3308_v62 = vpop.f32.mrb[37].mxu0 }
 0x144   : > { %v3245_v2 = vadd.f32 %v3244_v33, %v3243_v47  ;;  %v3246_v3 = vpop.f32.mrb[38].mxu1  ;;  %v3309_v4 = vadd.f32 %v3308_v62, %v3307_v61  ;;  %v3310_v52 = vpop.f32.mrb[38].mxu0 }
 0x145   : > { %v3247_v39 = vpop.f32.mrb[39].mxu1  ;;  %v3311_v6 = vpop.f32.mrb[39].mxu0 }
 0x146   : > { %v1945_v9 = vadd.f32 %v3245_v2, %v1848_v1  ;;  %v3248_v10 = vadd.f32 %v3247_v39, %v3246_v3  ;;  %v3312_v13 = vadd.f32 %v3311_v6, %v3310_v52 }
 0x148   : > { %v1948_v17 = vadd.f32 %v3248_v10, %v1851_v8  ;;  %v4427_v18 = vadd.f32 %v3309_v4, %v1945_v9 }
 0x14a   : > { %v4429_v19 = vadd.f32 %v3312_v13, %v1948_v17  ;;  %v3249_v59 = vpop.f32.mrb[40].mxu1  ;;  %v3313_v20 = vpop.f32.mrb[40].mxu0 }
 0x14b   : > { %v3250_v45 = vpop.f32.mrb[41].mxu1  ;;  %v3314_v21 = vpop.f32.mrb[41].mxu0 }
 0x14c   : > { %v3251_v23 = vadd.f32 %v3250_v45, %v3249_v59  ;;  %v3252_v24 = vpop.f32.mrb[42].mxu1  ;;  %v3315_v0 = vadd.f32 %v3314_v21, %v3313_v20  ;;  %v3316_v25 = vpop.f32.mrb[42].mxu0 }
 0x14d   : > { %v3253_v51 = vpop.f32.mrb[43].mxu1  ;;  %v3317_v26 = vpop.f32.mrb[43].mxu0 }
 0x14e   : > { %v1953_v28 = vadd.f32 %v3251_v23, %v1856_v22  ;;  %v3254_v29 = vadd.f32 %v3253_v51, %v3252_v24  ;;  %v3318_v32 = vadd.f32 %v3317_v26, %v3316_v25 }
 0x150   : > { %v1956_v35 = vadd.f32 %v3254_v29, %v1859_v27  ;;  %v4435_v37 = vadd.f32 %v3315_v0, %v1953_v28 }
 0x152   : > { %v4437_v7 = vadd.f32 %v3318_v32, %v1956_v35  ;;  %v3255_v38 = vpop.f32.mrb[44].mxu1  ;;  %v3319_v41 = vpop.f32.mrb[44].mxu0 }
 0x153   : > { %v3256_v57 = vpop.f32.mrb[45].mxu1  ;;  %v3320_v42 = vpop.f32.mrb[45].mxu0 }
 0x154   : > { %v3257_v44 = vadd.f32 %v3256_v57, %v3255_v38  ;;  %v3258_v40 = vpop.f32.mrb[46].mxu1  ;;  %v3321_v12 = vadd.f32 %v3320_v42, %v3319_v41  ;;  %v3322_v46 = vpop.f32.mrb[46].mxu0 }
 0x155   : > { %v3259_v63 = vpop.f32.mrb[47].mxu1  ;;  %v3323_v48 = vpop.f32.mrb[47].mxu0 }
 0x156   : > { %v1961_v50 = vadd.f32 %v3257_v44, %v1864_v43  ;;  %v3260_v53 = vadd.f32 %v3259_v63, %v3258_v40  ;;  %v3324_v56 = vadd.f32 %v3323_v48, %v3322_v46 }
 0x158   : > { %v1964_v47 = vadd.f32 %v3260_v53, %v1867_v49  ;;  %v4443_v61 = vadd.f32 %v3321_v12, %v1961_v50 }
 0x15a   : > { %v4445_v33 = vadd.f32 %v3324_v56, %v1964_v47  ;;  %v3341_v62 = vpop.f32.mrb[48].mxu1  ;;  %v3405_v1 = vpop.f32.mrb[48].mxu0 }
 0x15b   : > { %v3342_v5 = vpop.f32.mrb[49].mxu1  ;;  %v3406_v2 = vpop.f32.mrb[49].mxu0 }
 0x15c   : > { %v3343_v3 = vadd.f32 %v3342_v5, %v3341_v62  ;;  %v3344_v4 = vpop.f32.mrb[50].mxu1  ;;  %v3407_v52 = vadd.f32 %v3406_v2, %v3405_v1  ;;  %v3408_v39 = vpop.f32.mrb[50].mxu0 }
 0x15d   : > { %v3345_v6 = vpop.f32.mrb[51].mxu1  ;;  %v3409_v8 = vpop.f32.mrb[51].mxu0 }
 0x15e   : > { %v2099_v11 = vadd.f32 %v3343_v3, %v4391_v30  ;;  %v3346_v15 = vadd.f32 %v3345_v6, %v3344_v4  ;;  %v3410_v9 = vadd.f32 %v3409_v8, %v3408_v39 }
 0x160   : > { %v2102_v10 = vadd.f32 %v3346_v15, %v4393_v31  ;;  %v4449_v13 = vadd.f32 %v3407_v52, %v2099_v11 }
 0x162   : > { %v4451_v17 = vadd.f32 %v3410_v9, %v2102_v10  ;;  %v3347_v59 = vpop.f32.mrb[52].mxu1  ;;  %v3411_v20 = vpop.f32.mrb[52].mxu0 }
 0x163   : > { %v3348_v45 = vpop.f32.mrb[53].mxu1  ;;  %v3412_v21 = vpop.f32.mrb[53].mxu0 }
 0x164   : > { %v3349_v22 = vadd.f32 %v3348_v45, %v3347_v59  ;;  %v3350_v23 = vpop.f32.mrb[54].mxu1  ;;  %v3413_v24 = vadd.f32 %v3412_v21, %v3411_v20  ;;  %v3414_v0 = vpop.f32.mrb[54].mxu0 }
 0x165   : > { %v3351_v25 = vpop.f32.mrb[55].mxu1  ;;  %v3415_v51 = vpop.f32.mrb[55].mxu0 }
 0x166   : > { %v2107_v30 = vadd.f32 %v3349_v22, %v4397_v54  ;;  %v3352_v26 = vadd.f32 %v3351_v25, %v3350_v23  ;;  %v3416_v27 = vadd.f32 %v3415_v51, %v3414_v0 }
 0x168   : > { %v2110_v31 = vadd.f32 %v3352_v26, %v4399_v55  ;;  %v4455_v28 = vadd.f32 %v3413_v24, %v2107_v30 }
 0x16a   : > { %v4457_v29 = vadd.f32 %v3416_v27, %v2110_v31  ;;  %v3353_v32 = vpop.f32.mrb[56].mxu1  ;;  %v3417_v35 = vpop.f32.mrb[56].mxu0 }
 0x16b   : > { %v3354_v38 = vpop.f32.mrb[57].mxu1  ;;  %v3418_v41 = vpop.f32.mrb[57].mxu0 }
 0x16c   : > { %v3355_v57 = vadd.f32 %v3354_v38, %v3353_v32  ;;  %v3356_v42 = vpop.f32.mrb[58].mxu1  ;;  %v3419_v43 = vadd.f32 %v3418_v41, %v3417_v35  ;;  %v3420_v44 = vpop.f32.mrb[58].mxu0 }
 0x16d   : > { %v3357_v40 = vpop.f32.mrb[59].mxu1  ;;  %v3421_v12 = vpop.f32.mrb[59].mxu0 }
 0x16e   : > { %v2115_v54 = vadd.f32 %v3355_v57, %v4403_v14  ;;  %v3358_v46 = vadd.f32 %v3357_v40, %v3356_v42  ;;  %v3422_v63 = vadd.f32 %v3421_v12, %v3420_v44 }
 0x170   : > { %v2118_v55 = vadd.f32 %v3358_v46, %v4405_v16  ;;  %v4461_v48 = vadd.f32 %v3419_v43, %v2115_v54 }
 0x172   : > { %v4463_v49 = vadd.f32 %v3422_v63, %v2118_v55  ;;  %v3359_v50 = vpop.f32.mrb[60].mxu1  ;;  %v3423_v53 = vpop.f32.mrb[60].mxu0 }
 0x173   : > { %v3360_v56 = vpop.f32.mrb[61].mxu1  ;;  %v3424_v47 = vpop.f32.mrb[61].mxu0 }
 0x174   : > { %v3361_v62 = vadd.f32 %v3360_v56, %v3359_v50  ;;  %v3362_v1 = vpop.f32.mrb[62].mxu1  ;;  %v3425_v5 = vadd.f32 %v3424_v47, %v3423_v53  ;;  %v3426_v2 = vpop.f32.mrb[62].mxu0 }
 0x175   : > { %v3363_v3 = vpop.f32.mrb[63].mxu1  ;;  %v3427_v4 = vpop.f32.mrb[63].mxu0 }
 0x176   : > { %v2123_v14 = vadd.f32 %v3361_v62, %v4411_v34  ;;  %v3364_v52 = vadd.f32 %v3363_v3, %v3362_v1  ;;  %v3428_v39 = vadd.f32 %v3427_v4, %v3426_v2 }
 0x178   : > { %v2126_v16 = vadd.f32 %v3364_v52, %v4413_v36  ;;  %v4467_v6 = vadd.f32 %v3425_v5, %v2123_v14 }
 0x17a   : > { %v4469_v8 = vadd.f32 %v3428_v39, %v2126_v16  ;;  %v3365_v11 = vpop.f32.mrb[64].mxu1  ;;  %v3429_v15 = vpop.f32.mrb[64].mxu0 }
 0x17b   : > { %v3366_v9 = vpop.f32.mrb[65].mxu1  ;;  %v3430_v10 = vpop.f32.mrb[65].mxu0 }
 0x17c   : > { %v3367_v59 = vadd.f32 %v3366_v9, %v3365_v11  ;;  %v3368_v20 = vpop.f32.mrb[66].mxu1  ;;  %v3431_v45 = vadd.f32 %v3430_v10, %v3429_v15  ;;  %v3432_v21 = vpop.f32.mrb[66].mxu0 }
 0x17d   : > { %v3369_v22 = vpop.f32.mrb[67].mxu1  ;;  %v3433_v23 = vpop.f32.mrb[67].mxu0 }
 0x17e   : > { %v2131_v34 = vadd.f32 %v3367_v59, %v4419_v58  ;;  %v3370_v24 = vadd.f32 %v3369_v22, %v3368_v20  ;;  %v3434_v0 = vadd.f32 %v3433_v23, %v3432_v21 }
 0x180   : > { %v2134_v36 = vadd.f32 %v3370_v24, %v4421_v60  ;;  %v4473_v25 = vadd.f32 %v3431_v45, %v2131_v34 }
 0x182   : > { %v4475_v51 = vadd.f32 %v3434_v0, %v2134_v36  ;;  %v3371_v30 = vpop.f32.mrb[68].mxu1  ;;  %v3435_v26 = vpop.f32.mrb[68].mxu0 }
 0x183   : > { %v3372_v27 = vpop.f32.mrb[69].mxu1  ;;  %v3436_v31 = vpop.f32.mrb[69].mxu0 }
 0x184   : > { %v3373_v32 = vadd.f32 %v3372_v27, %v3371_v30  ;;  %v3374_v35 = vpop.f32.mrb[70].mxu1  ;;  %v3437_v38 = vadd.f32 %v3436_v31, %v3435_v26  ;;  %v3438_v41 = vpop.f32.mrb[70].mxu0 }
 0x185   : > { %v3375_v57 = vpop.f32.mrb[71].mxu1  ;;  %v3439_v42 = vpop.f32.mrb[71].mxu0 }
 0x186   : > { %v2139_v58 = vadd.f32 %v3373_v32, %v4427_v18  ;;  %v3376_v43 = vadd.f32 %v3375_v57, %v3374_v35  ;;  %v3440_v44 = vadd.f32 %v3439_v42, %v3438_v41 }
 0x188   : > { %v2142_v60 = vadd.f32 %v3376_v43, %v4429_v19  ;;  %v4479_v40 = vadd.f32 %v3437_v38, %v2139_v58 }
 0x18a   : > { %v4481_v12 = vadd.f32 %v3440_v44, %v2142_v60  ;;  %v3377_v54 = vpop.f32.mrb[72].mxu1  ;;  %v3441_v46 = vpop.f32.mrb[72].mxu0 }
 0x18b   : > { %v3378_v63 = vpop.f32.mrb[73].mxu1  ;;  %v3442_v55 = vpop.f32.mrb[73].mxu0 }
 0x18c   : > { %v3379_v50 = vadd.f32 %v3378_v63, %v3377_v54  ;;  %v3380_v53 = vpop.f32.mrb[74].mxu1  ;;  %v3443_v56 = vadd.f32 %v3442_v55, %v3441_v46  ;;  %v3444_v47 = vpop.f32.mrb[74].mxu0 }
 0x18d   : > { %v3381_v62 = vpop.f32.mrb[75].mxu1  ;;  %v3445_v1 = vpop.f32.mrb[75].mxu0 }
 0x18e   : > { %v2147_v18 = vadd.f32 %v3379_v50, %v4435_v37  ;;  %v3382_v5 = vadd.f32 %v3381_v62, %v3380_v53  ;;  %v3446_v2 = vadd.f32 %v3445_v1, %v3444_v47 }
 0x190   : > { %v2150_v19 = vadd.f32 %v3382_v5, %v4437_v7  ;;  %v4485_v3 = vadd.f32 %v3443_v56, %v2147_v18 }
 0x192   : > { %v4487_v4 = vadd.f32 %v3446_v2, %v2150_v19  ;;  %v3383_v14 = vpop.f32.mrb[76].mxu1  ;;  %v3447_v52 = vpop.f32.mrb[76].mxu0 }
 0x193   : > { %v3384_v39 = vpop.f32.mrb[77].mxu1  ;;  %v3448_v16 = vpop.f32.mrb[77].mxu0 }
 0x194   : > { %v3385_v11 = vadd.f32 %v3384_v39, %v3383_v14  ;;  %v3386_v15 = vpop.f32.mrb[78].mxu1  ;;  %v3449_v9 = vadd.f32 %v3448_v16, %v3447_v52  ;;  %v3450_v10 = vpop.f32.mrb[78].mxu0 }
 0x195   : > { %v3387_v59 = vpop.f32.mrb[79].mxu1  ;;  %v3451_v20 = vpop.f32.mrb[79].mxu0 }
 0x196   : > { %v2155_v37 = vadd.f32 %v3385_v11, %v4443_v61  ;;  %v3388_v45 = vadd.f32 %v3387_v59, %v3386_v15  ;;  %v3452_v21 = vadd.f32 %v3451_v20, %v3450_v10 }
 0x198   : > { %v2158_v7 = vadd.f32 %v3388_v45, %v4445_v33  ;;  %v4491_v22 = vadd.f32 %v3449_v9, %v2155_v37 }
 0x19a   : > { %v4493_v23 = vadd.f32 %v3452_v21, %v2158_v7  ;;  %v3469_v34 = vpop.f32.mrb[80].mxu1  ;;  %v2389_v24 = vpop.f32.mrb[80].mxu0 }
 0x19b   : > { %v3470_v0 = vpop.f32.mrb[81].mxu1  ;;  %v2391_v36 = vpop.f32.mrb[81].mxu0 }
 0x19c   : > { %v3471_v30 = vadd.f32 %v3470_v0, %v3469_v34  ;;  %v3472_v26 = vpop.f32.mrb[82].mxu1  ;;  %v2392_v27 = vpop.f32.mrb[82].mxu0 }
 0x19d   : > { %v3473_v31 = vpop.f32.mrb[83].mxu1  ;;  %v2394_v32 = vpop.f32.mrb[83].mxu0 }
 0x19e   : > { %v3474_v35 = vadd.f32 %v3473_v31, %v3472_v26  ;;  %v2293_v61 = vadd.f32 %v3471_v30, %v4449_v13 }
 0x1a0   : > { %v4496_v38 = vadd.f32 %v2389_v24, %v2293_v61  ;;  %v2296_v33 = vadd.f32 %v3474_v35, %v4451_v17  ;;  %v3861_v61 = vmov 1983009808  }
 0x1a2   : > { %v4499_v41 = vadd.f32 %v2392_v27, %v2296_v33  ;;  %v3475_v57 = vpop.f32.mrb[84].mxu1  ;;  %v2397_v42 = vpop.f32.mrb[84].mxu0  ;;  %v2486_v33 = vunpack.c.l.s4 %v3861_v61 }
 0x1a3   : > { %v3476_v58 = vpop.f32.mrb[85].mxu1  ;;  %v2399_v43 = vpop.f32.mrb[85].mxu0 }
 0x1a4   : > { %v3477_v44 = vadd.f32 %v3476_v58, %v3475_v57  ;;  %v3478_v60 = vpop.f32.mrb[86].mxu1  ;;  %v2400_v54 = vpop.f32.mrb[86].mxu0  ;;  %v2488_v58 = vlaneseq }
 0x1a5   : > { %v3479_v46 = vpop.f32.mrb[87].mxu1  ;;  %v2402_v63 = vpop.f32.mrb[87].mxu0 }
 0x1a6   : > { %v3480_v55 = vadd.f32 %v3479_v46, %v3478_v60  ;;  %v2301_v50 = vadd.f32 %v3477_v44, %v4455_v28  ;;  %v2487_v44 = vunpack.c.0.s8 %v2486_v33  ;;  %v2452_v60 = vmax.f32 %v4496_v38, 0.0 }
 0x1a7   : > { %v2489_v63 = vshrl.u32 %v2488_v58, 7 }
 0x1a8   : > { %v4502_v53 = vadd.f32 %v2397_v42, %v2301_v50  ;;  %v2304_v13 = vadd.f32 %v3480_v55, %v4457_v29 }
 0x1aa   : > { %v4505_v56 = vadd.f32 %v2400_v54, %v2304_v13  ;;  %v3481_v17 = vpop.f32.mrb[88].mxu1  ;;  %v2405_v47 = vpop.f32.mrb[88].mxu0 }
 0x1ab   : > { %v3482_v62 = vpop.f32.mrb[89].mxu1  ;;  %v2407_v1 = vpop.f32.mrb[89].mxu0 }
 0x1ac   : > { %v3483_v18 = vadd.f32 %v3482_v62, %v3481_v17  ;;  %v3484_v5 = vpop.f32.mrb[90].mxu1  ;;  %v2408_v2 = vpop.f32.mrb[90].mxu0 }
 0x1ad   : > { %v3485_v19 = vpop.f32.mrb[91].mxu1  ;;  %v2410_v14 = vpop.f32.mrb[91].mxu0 }
 0x1ae   : > { %v3486_v52 = vadd.f32 %v3485_v19, %v3484_v5  ;;  %v2309_v39 = vadd.f32 %v3483_v18, %v4461_v48  ;;  %v4523_v14 = vsub.s32 %v2487_v44, %v2489_v63 }
 0x1b0   : > { %v4508_v16 = vadd.f32 %v2405_v47, %v2309_v39  ;;  %v2312_v28 = vadd.f32 %v3486_v52, %v4463_v49  ;;  %v2453_v47 = vmax.f32 %v4499_v41, 0.0 }
 0x1b2   : > { %v4511_v11 = vadd.f32 %v2408_v2, %v2312_v28  ;;  %v3487_v29 = vpop.f32.mrb[92].mxu1  ;;  %v2413_v15 = vpop.f32.mrb[92].mxu0 }
 0x1b3   : > { %v3488_v9 = vpop.f32.mrb[93].mxu1  ;;  %v2415_v10 = vpop.f32.mrb[93].mxu0 }
 0x1b4   : > { %v3489_v59 = vadd.f32 %v3488_v9, %v3487_v29  ;;  %v3490_v20 = vpop.f32.mrb[94].mxu1  ;;  %v2416_v37 = vpop.f32.mrb[94].mxu0 }
 0x1b5   : > { %v3491_v45 = vpop.f32.mrb[95].mxu1  ;;  %v2418_v21 = vpop.f32.mrb[95].mxu0 }
 0x1b6   : > { %v3492_v7 = vadd.f32 %v3491_v45, %v3490_v20  ;;  %v2317_v34 = vadd.f32 %v3489_v59, %v4467_v6 }
 0x1b8   : > { %v4514_v24 = vadd.f32 %v2413_v15, %v2317_v34  ;;  %v2320_v48 = vadd.f32 %v3492_v7, %v4469_v8  ;;  %v2454_v15 = vmax.f32 %v4502_v53, 0.0  ;;  %v2456_v53 = vmax.f32 %v4508_v16, 0.0 }
 0x1ba   : > { %v4517_v0 = vadd.f32 %v2416_v37, %v2320_v48  ;;  %v3493_v49 = vpop.f32.mrb[96].mxu1  ;;  %v2421_v36 = vpop.f32.mrb[96].mxu0  ;;  %v2458_v44 = vmax.f32 %v4514_v24, 0.0 }
 0x1bb   : > { %v3494_v30 = vpop.f32.mrb[97].mxu1  ;;  %v2423_v26 = vpop.f32.mrb[97].mxu0 }
 0x1bc   : > { %v3495_v27 = vadd.f32 %v3494_v30, %v3493_v49  ;;  %v3496_v31 = vpop.f32.mrb[98].mxu1  ;;  %v2424_v32 = vpop.f32.mrb[98].mxu0 }
 0x1bd   : > { %v3497_v35 = vpop.f32.mrb[99].mxu1  ;;  %v2426_v57 = vpop.f32.mrb[99].mxu0 }
 0x1be   : > { %v3498_v42 = vadd.f32 %v3497_v35, %v3496_v31  ;;  %v2325_v6 = vadd.f32 %v3495_v27, %v4473_v25  ;;  %v2457_v57 = vmax.f32 %v4511_v11, 0.0 }
 0x1c0   : > { %v2422_v43 = vadd.f32 %v2421_v36, %v2325_v6  ;;  %v2328_v8 = vadd.f32 %v3498_v42, %v4475_v51 }
 0x1c2   : > { %v2460_v54 = vmax.f32 %v2422_v43, 0.0  ;;  %v2425_v46 = vadd.f32 %v2424_v32, %v2328_v8  ;;  %v3499_v55 = vpop.f32.mrb[100].mxu1  ;;  %v2429_v50 = vpop.f32.mrb[100].mxu0 }
 0x1c3   : > { %v3500_v13 = vpop.f32.mrb[101].mxu1  ;;  %v2431_v17 = vpop.f32.mrb[101].mxu0 }
 0x1c4   : > { %v2468_v62 = vmax.f32 %v2452_v60, %v2460_v54  ;;  %v2461_v1 = vmax.f32 %v2425_v46, 0.0  ;;  %v3501_v18 = vadd.f32 %v3500_v13, %v3499_v55  ;;  %v3502_v25 = vpop.f32.mrb[102].mxu1  ;;  %v2432_v5 = vpop.f32.mrb[102].mxu0 }
 0x1c5   : > { %v3503_v2 = vpop.f32.mrb[103].mxu1  ;;  %v2434_v19 = vpop.f32.mrb[103].mxu0 }
 0x1c6   : > { %v2469_v51 = vmax.f32 %v2453_v47, %v2461_v1  ;;  %v3504_v38 = vadd.f32 %v3503_v2, %v3502_v25  ;;  %v2333_v52 = vadd.f32 %v3501_v18, %v4479_v40 }
 0x1c8   : > { %v2476_v39 = vmax.f32 %v2468_v62, %v2469_v51  ;;  %v2430_v28 = vadd.f32 %v2429_v50, %v2333_v52  ;;  %v2336_v29 = vadd.f32 %v3504_v38, %v4481_v12  ;;  %v2455_v12 = vmax.f32 %v4505_v56, 0.0 }
 0x1ca   : > { %v2484_v41 = vcombine.high %v2476_v39, %v2476_v39  ;;  %v2491_v9 = vrot.slane %v2476_v39, %v4523_v14  ;;  %v2462_v10 = vmax.f32 %v2430_v28, 0.0  ;;  %v2433_v59 = vadd.f32 %v2432_v5, %v2336_v29  ;;  %v3505_v20 = vpop.f32.mrb[104].mxu1  ;;  %v2437_v37 = vpop.f32.mrb[104].mxu0 }
 0x1cb   : > { %v3506_v45 = vpop.f32.mrb[105].mxu1  ;;  %v2439_v21 = vpop.f32.mrb[105].mxu0 }
 0x1cc   : > { %v2498_v7 = vrot.slane %v2484_v41, %v4523_v14  ;;  %v2499_v34 = vcombine.high %v2491_v9, %v2491_v9  ;;  %v3082_v48 = vrot.slane %v2491_v9, 9  ;;  %v2470_v40 = vmax.f32 %v2454_v15, %v2462_v10  ;;  %v3508_v49 = vpop.f32.mrb[106].mxu1  ;;  %v2440_v36 = vpop.f32.mrb[106].mxu0 }
 0x1cd   : > { %v2463_v30 = vmax.f32 %v2433_v59, 0.0  ;;  %v3507_v26 = vadd.f32 %v3506_v45, %v3505_v20  ;;  %v3509_v27 = vpop.f32.mrb[107].mxu1  ;;  %v2442_v31 = vpop.f32.mrb[107].mxu0 }
 0x1ce   : > { %v2500_v32 = vcombine.high %v2498_v7, %v2498_v7  ;;  %v3083_v35 = vrot.slane %v2499_v34, 9  ;;  %v3084_v61 = vrot.slane %v2498_v7, 9  ;;  %v2616_v33 = vmax.f32 %v2491_v9, %v3082_v48 }
 0x1cf   : > { %v2471_v42 = vmax.f32 %v2455_v12, %v2463_v30  ;;  %v3510_v6 = vadd.f32 %v3509_v27, %v3508_v49  ;;  %v2341_v58 = vadd.f32 %v3507_v26, %v4485_v3 }
 0x1d0   : > { %v3085_v56 = vrot.slane %v2500_v32, 9  ;;  %v2617_v43 = vmax.f32 %v2499_v34, %v3083_v35  ;;  %v2618_v16 = vmax.f32 %v2498_v7, %v3084_v61  ;;  %v3117_v8 = vpack.c.bf16 %v2616_v33, %v2616_v33 }
 0x1d1   : > { %v2477_v60 = vmax.f32 %v2470_v40, %v2471_v42  ;;  %v2438_v54 = vadd.f32 %v2437_v37, %v2341_v58  ;;  %v2344_v46 = vadd.f32 %v3510_v6, %v4487_v4 }
 0x1d2   : > { %v2619_v63 = vmax.f32 %v2500_v32, %v3085_v56  ;;  %v3118_v55 = vpack.c.bf16 %v2617_v43, %v2617_v43  ;;  %v3119_v50 = vpack.c.bf16 %v2618_v16, %v2618_v16  ;;  %v2696_v13 = vunpack.c.l.b16 %v3117_v8  ;;  %v3511_v11 = vpop.f32.mrb[108].mxu1  ;;  %v2445_v17 = vpop.f32.mrb[108].mxu0 }
 0x1d3   : > { %v2501_v47 = vcombine.high %v2477_v60, %v2477_v60  ;;  %v2508_v62 = vrot.slane %v2477_v60, %v4523_v14  ;;  %v2464_v3 = vmax.f32 %v2438_v54, 0.0  ;;  %v2441_v1 = vadd.f32 %v2440_v36, %v2344_v46  ;;  %v3512_v18 = vpop.f32.mrb[109].mxu1  ;;  %v2447_v25 = vpop.f32.mrb[109].mxu0 }
 0x1d4   : > { %v3120_v5 = vpack.c.bf16 %v2619_v63, %v2619_v63  ;;  %v2697_v2 = vunpack.c.l.b16 %v3118_v55  ;;  %v2698_v19 = vunpack.c.l.b16 %v3119_v50  ;;  %v3513_v51 = vadd.f32 %v3512_v18, %v3511_v11  ;;  %v3514_v38 = vpop.f32.mrb[110].mxu1  ;;  %v2448_v52 = vpop.f32.mrb[110].mxu0 }
 0x1d5   : > { %v2515_v4 = vrot.slane %v2501_v47, %v4523_v14  ;;  %v2516_v39 = vcombine.high %v2508_v62, %v2508_v62  ;;  %v3086_v28 = vrot.slane %v2508_v62, 9  ;;  %v2472_v29 = vmax.f32 %v2456_v53, %v2464_v3  ;;  %v3515_v15 = vpop.f32.mrb[111].mxu1  ;;  %v2450_v41 = vpop.f32.mrb[111].mxu0 }
 0x1d6   : > { %v2699_v9 = vunpack.c.l.b16 %v3120_v5  ;;  %v2712_v10 = vrot.slane %v2697_v2, 7  ;;  %v2715_v59 = vrot.slane %v2698_v19, 6  ;;  %v2465_v20 = vmax.f32 %v2441_v1, 0.0 }
 0x1d7   : > { %v2517_v37 = vcombine.high %v2515_v4, %v2515_v4  ;;  %v3087_v45 = vrot.slane %v2516_v39, 9  ;;  %v3088_v21 = vrot.slane %v2515_v4, 9  ;;  %v2620_v7 = vmax.f32 %v2508_v62, %v3086_v28 }
 0x1d8   : > { %v2714_v34 = vsel %vm2713_vm1, %v2712_v10, %v2696_v13  ;;  %v2718_v48 = vrot.slane %v2699_v9, 5  ;;  %v2473_v40 = vmax.f32 %v2457_v57, %v2465_v20  ;;  %v3516_v49 = vadd.f32 %v3515_v15, %v3514_v38 }
 0x1d9   : > { %v2717_v36 = vsel %vm2716_vm2, %v2715_v59, %v2714_v34  ;;  %v3089_v12 = vrot.slane %v2517_v37, 9  ;;  %v2621_v53 = vmax.f32 %v2516_v39, %v3087_v45  ;;  %v2622_v30 = vmax.f32 %v2515_v4, %v3088_v21 }
 0x1da   : > { %v3121_v26 = vpack.c.bf16 %v2620_v7, %v2620_v7  ;;  %v2720_v27 = vsel %vm2719_vm3, %v2718_v48, %v2717_v36  ;;  %v2478_v31 = vmax.f32 %v2472_v29, %v2473_v40  ;;  %v2349_v32 = vadd.f32 %v3513_v51, %v4491_v22 }
 0x1db   : > { %v2623_v35 = vmax.f32 %v2517_v37, %v3089_v12  ;;  %v3122_v61 = vpack.c.bf16 %v2621_v53, %v2621_v53  ;;  %v3123_v33 = vpack.c.bf16 %v2622_v30, %v2622_v30  ;;  %v2352_v42 = vadd.f32 %v3516_v49, %v4493_v23 }
 0x1dc   : > { %v2700_v6 = vunpack.c.l.b16 %v3121_v26  ;;  %v2518_v57 = vcombine.high %v2478_v31, %v2478_v31  ;;  %v2525_v58 = vrot.slane %v2478_v31, %v4523_v14  ;;  %v2446_v56 = vadd.f32 %v2445_v17, %v2349_v32 }
 0x1dd   : > { %v3124_v43 = vpack.c.bf16 %v2623_v35, %v2623_v35  ;;  %v2701_v16 = vunpack.c.l.b16 %v3122_v61  ;;  %v2702_v8 = vunpack.c.l.b16 %v3123_v33  ;;  %v2449_v60 = vadd.f32 %v2448_v52, %v2352_v42 }
 0x1de   : > { %v2721_v54 = vrot.slane %v2700_v6, 4  ;;  %v2532_v46 = vrot.slane %v2518_v57, %v4523_v14  ;;  %v2533_v63 = vcombine.high %v2525_v58, %v2525_v58  ;;  %v3090_v22 = vrot.slane %v2525_v58, 9 }
 0x1df   : > { %v2703_v55 = vunpack.c.l.b16 %v3124_v43  ;;  %v2724_v50 = vrot.slane %v2701_v16, 3  ;;  %v2727_v13 = vrot.slane %v2702_v8, 2  ;;  %v2466_v11 = vmax.f32 %v2446_v56, 0.0 }
 0x1e0   : > { %v2723_v23 = vsel %vm2722_vm4, %v2721_v54, %v2720_v27  ;;  %v2534_v47 = vcombine.high %v2532_v46, %v2532_v46  ;;  %v3091_v62 = vrot.slane %v2533_v63, 9  ;;  %v3092_v3 = vrot.slane %v2532_v46, 9 }
 0x1e1   : > { %v2726_v17 = vsel %vm2725_vm5, %v2724_v50, %v2723_v23  ;;  %v2730_v1 = vrot.slane %v2703_v55, 1  ;;  %v2624_v18 = vmax.f32 %v2525_v58, %v3090_v22  ;;  %v2474_v25 = vmax.f32 %v2458_v44, %v2466_v11 }
 0x1e2   : > { %v2729_v5 = vsel %vm2728_vm6, %v2727_v13, %v2726_v17  ;;  %v3093_v2 = vrot.slane %v2534_v47, 9  ;;  %v2625_v19 = vmax.f32 %v2533_v63, %v3091_v62  ;;  %v2626_v51 = vmax.f32 %v2532_v46, %v3092_v3 }
 0x1e3   : > { %v2459_v38 = vmax.f32 %v4517_v0, 0.0  ;;  %v2732_v52 = vsel %vm2731_vm7, %v2730_v1, %v2729_v5  ;;  %v2467_v4 = vmax.f32 %v2449_v60, 0.0  ;;  %v3125_v15 = vpack.c.bf16 %v2624_v18, %v2624_v18 }
 0x1e4   : > { %v2747_v39 = vpack.c.b16 %v2732_v52, %v2732_v52  ;;  %v2627_v28 = vmax.f32 %v2534_v47, %v3093_v2  ;;  %v3126_v24 = vpack.c.bf16 %v2625_v19, %v2625_v19  ;;  %v3127_v44 = vpack.c.bf16 %v2626_v51, %v2626_v51 }
 0x1e5   : > { %v2475_v29 = vmax.f32 %v2459_v38, %v2467_v4  ;;  %v2704_v45 = vunpack.c.l.b16 %v3125_v15 }
 0x1e6   : > { %2751 = vst [vmem:[%s4555_s18] sm:$0xf] %v2747_v39  ;;  %v2705_v41 = vunpack.c.l.b16 %v3126_v24  ;;  %v3128_v10 = vpack.c.bf16 %v2627_v28, %v2627_v28  ;;  %v2706_v0 = vunpack.c.l.b16 %v3127_v44 }
 0x1e7   : > { %v2479_v9 = vmax.f32 %v2474_v25, %v2475_v29 }
 0x1e8   : > { %v2733_v59 = vrot.slane %v2705_v41, 7  ;;  %v2707_v48 = vunpack.c.l.b16 %v3128_v10  ;;  %v2735_v49 = vrot.slane %v2706_v0, 6 }
 0x1e9   : > { %v2535_v20 = vcombine.high %v2479_v9, %v2479_v9  ;;  %v2542_v37 = vrot.slane %v2479_v9, %v4523_v14 }
 0x1ea   : > { %v2734_v40 = vsel %vm2713_vm1, %v2733_v59, %v2704_v45  ;;  %v2737_v61 = vrot.slane %v2707_v48, 5 }
 0x1eb   : > { %v2549_v21 = vrot.slane %v2535_v20, %v4523_v14  ;;  %v2550_v7 = vcombine.high %v2542_v37, %v2542_v37  ;;  %v3094_v34 = vrot.slane %v2542_v37, 9  ;;  %v2736_v35 = vsel %vm2716_vm2, %v2735_v49, %v2734_v40 }
 0x1ec   : > { %v2738_v16 = vsel %vm2719_vm3, %v2737_v61, %v2736_v35 }
 0x1ed   : > { %v2551_v36 = vcombine.high %v2549_v21, %v2549_v21  ;;  %v3095_v12 = vrot.slane %v2550_v7, 9  ;;  %v3096_v53 = vrot.slane %v2549_v21, 9  ;;  %v2628_v30 = vmax.f32 %v2542_v37, %v3094_v34 }
 0x1ef   : > { %v3097_v26 = vrot.slane %v2551_v36, 9  ;;  %v2629_v27 = vmax.f32 %v2550_v7, %v3095_v12  ;;  %v2630_v31 = vmax.f32 %v2549_v21, %v3096_v53  ;;  %v3129_v32 = vpack.c.bf16 %v2628_v30, %v2628_v30 }
 0x1f1   : > { %v2631_v33 = vmax.f32 %v2551_v36, %v3097_v26  ;;  %v3130_v42 = vpack.c.bf16 %v2629_v27, %v2629_v27  ;;  %v3131_v14 = vpack.c.bf16 %v2630_v31, %v2630_v31  ;;  %v2708_v6 = vunpack.c.l.b16 %v3129_v32 }
 0x1f3   : > { %v3132_v57 = vpack.c.bf16 %v2631_v33, %v2631_v33  ;;  %v2709_v58 = vunpack.c.l.b16 %v3130_v42  ;;  %v2710_v56 = vunpack.c.l.b16 %v3131_v14  ;;  %v2739_v43 = vrot.slane %v2708_v6, 4 }
 0x1f5   : > { %v2711_v8 = vunpack.c.l.b16 %v3132_v57  ;;  %v2740_v60 = vsel %vm2722_vm4, %v2739_v43, %v2738_v16  ;;  %v2741_v54 = vrot.slane %v2709_v58, 3  ;;  %v2743_v46 = vrot.slane %v2710_v56, 2 }
 0x1f7   : > { %v2742_v63 = vsel %vm2725_vm5, %v2741_v54, %v2740_v60  ;;  %v2745_v22 = vrot.slane %v2711_v8, 1 }
 0x1f8   : > { %v2744_v55 = vsel %vm2728_vm6, %v2743_v46, %v2742_v63 }
 0x1f9   : > { %v2746_v50 = vsel %vm2731_vm7, %v2745_v22, %v2744_v55 }
 0x1fa   : > { %v2748_v13 = vpack.c.b16 %v2746_v50, %v2746_v50 }
 0x1fc   : > { %2752 = vst [vmem:[%s4555_s18 + $0x4] sm:$0xf] %v2748_v13 }
 0x1fd PF: > { %s13_s14 = sadd.s32 1, %s3858_s14   ;;  %s4582_s12 = smov %s3854_s13 }
 0x1fe   : > { %p10_p5 = scmp.ge.s32.totalorder %s13_s14, 4   ;;  %s4583_s13 = smov %s4585_s15 }
 0x200   :  { %12 = sbr.rel (!%p10_p5) target bundleno = 2 (0x2), region = 62 }

// kernel: c3d_forward.7
= control target key start
LH: loop header
LB: loop body
LE: loop exit
PB: predicated region body
PF: predicated region fallthrough
CT: control target
= control target key end

     0   :  { %v282_v36 = vlaneseq  ;;  %v2962_v37 = vmov 1966171168   ;;  %s3888_s0 = inlined_call_operand.vmem [shape: bf16[2,2048], index: 0, kind: input, shape index: {}]   ;;  %s3889_s1 = inlined_call_operand.vmem [shape: bf16[2048,256], index: 1, kind: input, shape index: {}]   ;;  %s3890_s2 = inlined_call_operand.vmem [shape: f32[1,256], index: 2, kind: input, shape index: {}]   ;;  %s3891_s3 = inlined_call_operand.vmem [shape: bf16[256,10], index: 3, kind: input, shape index: {}]   ;;  %s3892_s4 = inlined_call_operand.vmem [shape: f32[1,10], index: 4, kind: input, shape index: {}]   ;;  %s3893_s5 = inlined_call_operand.hbm [shape: f32[2,10], index: 5, kind: output, shape index: {}]  }
   0x1   :  { %v2536_v0 = vld [vmem:[%s3889_s1 + $0x4] ss:$8 sps:$4 sm:$0xff]   ;;  %v2540_v2 = vld [vmem:[%s3889_s1] ss:$8 sps:$4 sm:$0xff]   ;;  %v2542_v4 = vld [vmem:[%s3889_s1 + $0x14] ss:$8 sps:$4 sm:$0xff]   ;;  %v296_v38 = vunpack.c.l.s4 %v2962_v37 }
   0x2   :  { %v2538_v1 = vld [vmem:[%s3889_s1 + $0x404] ss:$8 sps:$4 sm:$0xff]   ;;  %1688 = vmatprep.subr.bf16.mxu1 %v2536_v0  ;;  %v2541_v3 = vld [vmem:[%s3889_s1 + $0x400] ss:$8 sps:$4 sm:$0xff]   ;;  %v2544_v5 = vld [vmem:[%s3889_s1 + $0x414] ss:$8 sps:$4 sm:$0xff]  }
   0x3   :  { %1852 = vmatprep.subr.bf16.mxu0 %v2538_v1  ;;  %1689 = vmatpush1.bf16.msra.mxu1 %v2540_v2  ;;  %v2546_v6 = vld [vmem:[%s3889_s1 + $0x10] ss:$8 sps:$4 sm:$0xff]   ;;  %v2548_v8 = vld [vmem:[%s3889_s1 + $0x24] ss:$8 sps:$4 sm:$0xff]   ;;  %v2552_v10 = vld [vmem:[%s3889_s1 + $0x20] ss:$8 sps:$4 sm:$0xff]   ;;  %v297_v43 = vunpack.c.0.s8 %v296_v38 }
   0x4   :  { %1853 = vmatpush1.bf16.msra.mxu0 %v2541_v3  ;;  %1690 = vmatprep.subr.bf16.mxu1 %v2542_v4  ;;  %v2547_v7 = vld [vmem:[%s3889_s1 + $0x410] ss:$8 sps:$4 sm:$0xff]   ;;  %v2550_v9 = vld [vmem:[%s3889_s1 + $0x424] ss:$8 sps:$4 sm:$0xff]   ;;  %v2553_v11 = vld [vmem:[%s3889_s1 + $0x420] ss:$8 sps:$4 sm:$0xff]  }
   0x5   :  { %1854 = vmatprep.subr.bf16.mxu0 %v2544_v5  ;;  %v2554_v12 = vld [vmem:[%s3889_s1 + $0x34] ss:$8 sps:$4 sm:$0xff]   ;;  %v2558_v14 = vld [vmem:[%s3889_s1 + $0x30] ss:$8 sps:$4 sm:$0xff]   ;;  %v2560_v16 = vld [vmem:[%s3889_s1 + $0x44] ss:$8 sps:$4 sm:$0xff]  }
   0x6   :  { %v2556_v13 = vld [vmem:[%s3889_s1 + $0x434] ss:$8 sps:$4 sm:$0xff]   ;;  %v2559_v15 = vld [vmem:[%s3889_s1 + $0x430] ss:$8 sps:$4 sm:$0xff]   ;;  %v2562_v17 = vld [vmem:[%s3889_s1 + $0x444] ss:$8 sps:$4 sm:$0xff]  }
   0x7   :  { %1691 = vmatpush1.bf16.msra.mxu1 %v2546_v6  ;;  %v2564_v18 = vld [vmem:[%s3889_s1 + $0x40] ss:$8 sps:$4 sm:$0xff]   ;;  %v2566_v20 = vld [vmem:[%s3889_s1 + $0x54] ss:$8 sps:$4 sm:$0xff]   ;;  %v2570_v22 = vld [vmem:[%s3889_s1 + $0x50] ss:$8 sps:$4 sm:$0xff]  }
   0x8   :  { %1855 = vmatpush1.bf16.msra.mxu0 %v2547_v7  ;;  %1692 = vmatprep.subr.bf16.mxu1 %v2548_v8  ;;  %v2565_v19 = vld [vmem:[%s3889_s1 + $0x440] ss:$8 sps:$4 sm:$0xff]   ;;  %v2568_v21 = vld [vmem:[%s3889_s1 + $0x454] ss:$8 sps:$4 sm:$0xff]   ;;  %v2571_v23 = vld [vmem:[%s3889_s1 + $0x450] ss:$8 sps:$4 sm:$0xff]  }
   0x9   :  { %1856 = vmatprep.subr.bf16.mxu0 %v2550_v9  ;;  %v2572_v24 = vld [vmem:[%s3889_s1 + $0x64] ss:$8 sps:$4 sm:$0xff]   ;;  %v2576_v26 = vld [vmem:[%s3889_s1 + $0x60] ss:$8 sps:$4 sm:$0xff]   ;;  %v2578_v28 = vld [vmem:[%s3889_s1 + $0x74] ss:$8 sps:$4 sm:$0xff]  }
   0xa   :  { %v2574_v25 = vld [vmem:[%s3889_s1 + $0x464] ss:$8 sps:$4 sm:$0xff]   ;;  %v2577_v27 = vld [vmem:[%s3889_s1 + $0x460] ss:$8 sps:$4 sm:$0xff]   ;;  %v2580_v29 = vld [vmem:[%s3889_s1 + $0x474] ss:$8 sps:$4 sm:$0xff]  }
   0xb   :  { %1693 = vmatpush1.bf16.msra.mxu1 %v2552_v10  ;;  %v2582_v30 = vld [vmem:[%s3889_s1 + $0x70] ss:$8 sps:$4 sm:$0xff]   ;;  %v2584_v32 = vld [vmem:[%s3889_s1 + $0x84] ss:$8 sps:$4 sm:$0xff]   ;;  %v2588_v34 = vld [vmem:[%s3889_s1 + $0x80] ss:$8 sps:$4 sm:$0xff]  }
   0xc   :  { %1857 = vmatpush1.bf16.msra.mxu0 %v2553_v11  ;;  %1694 = vmatprep.subr.bf16.mxu1 %v2554_v12  ;;  %v2583_v31 = vld [vmem:[%s3889_s1 + $0x470] ss:$8 sps:$4 sm:$0xff]   ;;  %v2586_v33 = vld [vmem:[%s3889_s1 + $0x484] ss:$8 sps:$4 sm:$0xff]   ;;  %v2589_v35 = vld [vmem:[%s3889_s1 + $0x480] ss:$8 sps:$4 sm:$0xff]  }
   0xd   :  { %1858 = vmatprep.subr.bf16.mxu0 %v2556_v13  ;;  %v2590_v39 = vld [vmem:[%s3889_s1 + $0x94] ss:$8 sps:$4 sm:$0xff]   ;;  %v2594_v41 = vld [vmem:[%s3889_s1 + $0x90] ss:$8 sps:$4 sm:$0xff]   ;;  %v3111_v42 = vshrl.u32 %v282_v36, 7  ;;  %v22_v52 = vld [vmem:[%s3888_s0] sm:$0xff] }
   0xe   :  { %v2592_v40 = vld [vmem:[%s3889_s1 + $0x494] ss:$8 sps:$4 sm:$0xff]   ;;  %v2595_v44 = vld [vmem:[%s3889_s1 + $0x490] ss:$8 sps:$4 sm:$0xff]   ;;  %v2596_v45 = vld [vmem:[%s3889_s1 + $0xa4] ss:$8 sps:$4 sm:$0xff]   ;;  %v294_v12 = vcombine.high %v22_v52, %v22_v52 }
   0xf   :  { %1695 = vmatpush1.bf16.msra.mxu1 %v2558_v14  ;;  %v2598_v46 = vld [vmem:[%s3889_s1 + $0x4a4] ss:$8 sps:$4 sm:$0xff]   ;;  %v2600_v47 = vld [vmem:[%s3889_s1 + $0xa0] ss:$8 sps:$4 sm:$0xff]   ;;  %v3129_v49 = vsub.s32 %v297_v43, %v3111_v42  ;;  %v2602_v50 = vld [vmem:[%s3889_s1 + $0xb4] ss:$8 sps:$4 sm:$0xff]  }
  0x10   :  { %1859 = vmatpush1.bf16.msra.mxu0 %v2559_v15  ;;  %1696 = vmatprep.subr.bf16.mxu1 %v2560_v16  ;;  %v2601_v48 = vld [vmem:[%s3889_s1 + $0x4a0] ss:$8 sps:$4 sm:$0xff]   ;;  %v2604_v51 = vld [vmem:[%s3889_s1 + $0x4b4] ss:$8 sps:$4 sm:$0xff]   ;;  %v2606_v53 = vld [vmem:[%s3889_s1 + $0xb0] ss:$8 sps:$4 sm:$0xff]  }
  0x11   :  { %1860 = vmatprep.subr.bf16.mxu0 %v2562_v17  ;;  %v301_v54 = vrot.slane %v22_v52, %v3129_v49  ;;  %v2607_v55 = vld [vmem:[%s3889_s1 + $0x4b0] ss:$8 sps:$4 sm:$0xff]   ;;  %v23_v56 = vld [vmem:[%s3888_s0 + $0x8] sm:$0xff]  ;;  %v2614_v1 = vld [vmem:[%s3889_s1 + $0xd4] ss:$8 sps:$4 sm:$0xff]  }
  0x12   :  { %v2608_v57 = vld [vmem:[%s3889_s1 + $0xc4] ss:$8 sps:$4 sm:$0xff]   ;;  %v350_v60 = vrot.slane %v23_v56, %v3129_v49  ;;  %v2612_v63 = vld [vmem:[%s3889_s1 + $0xc0] ss:$8 sps:$4 sm:$0xff]   ;;  %v2616_v2 = vld [vmem:[%s3889_s1 + $0x4d4] ss:$8 sps:$4 sm:$0xff]   ;;  %v343_v13 = vcombine.high %v23_v56, %v23_v56 }
  0x13   :  { %1697 = vmatpush1.bf16.msra.mxu1 %v2564_v18  ;;  %v2610_v58 = vld [vmem:[%s3889_s1 + $0x4c4] ss:$8 sps:$4 sm:$0xff]   ;;  %v309_v59 = vcombine.high %v301_v54, %v301_v54  ;;  %v2613_v0 = vld [vmem:[%s3889_s1 + $0x4c0] ss:$8 sps:$4 sm:$0xff]   ;;  %v2618_v4 = vld [vmem:[%s3889_s1 + $0xd0] ss:$8 sps:$4 sm:$0xff]   ;;  %v308_v18 = vrot.slane %v294_v12, %v3129_v49 }
  0x14   :  { %1861 = vmatpush1.bf16.msra.mxu0 %v2565_v19  ;;  %1698 = vmatprep.subr.bf16.mxu1 %v2566_v20  ;;  %v358_v62 = vcombine.high %v350_v60, %v350_v60  ;;  %v2619_v5 = vld [vmem:[%s3889_s1 + $0x4d0] ss:$8 sps:$4 sm:$0xff]   ;;  %v2620_v6 = vld [vmem:[%s3889_s1 + $0xe4] ss:$8 sps:$4 sm:$0xff]   ;;  %v2624_v8 = vld [vmem:[%s3889_s1 + $0xe0] ss:$8 sps:$4 sm:$0xff]   ;;  %v357_v19 = vrot.slane %v343_v13, %v3129_v49  ;;  %v3213_v20 = vrot.slane %v301_v54, %v3129_v49 }
  0x15   :  { %1862 = vmatprep.subr.bf16.mxu0 %v2568_v21  ;;  %v3158_v61 = vrot.slane %v309_v59, %v3129_v49  ;;  %v2622_v7 = vld [vmem:[%s3889_s1 + $0x4e4] ss:$8 sps:$4 sm:$0xff]   ;;  %v2625_v9 = vld [vmem:[%s3889_s1 + $0x4e0] ss:$8 sps:$4 sm:$0xff]   ;;  %v2626_v10 = vld [vmem:[%s3889_s1 + $0xf4] ss:$8 sps:$4 sm:$0xff]   ;;  %v3216_v21 = vrot.slane %v350_v60, %v3129_v49 }
  0x16   :  { %v380_v3 = vrot.slane %v358_v62, %v3129_v49  ;;  %v2628_v11 = vld [vmem:[%s3889_s1 + $0x4f4] ss:$8 sps:$4 sm:$0xff]   ;;  %v2630_v14 = vld [vmem:[%s3889_s1 + $0xf0] ss:$8 sps:$4 sm:$0xff]   ;;  %v2635_v16 = vld [vmem:[%s3889_s1 + $0x104] ss:$8 sps:$4 sm:$0xff]  }
  0x17   :  { %1699 = vmatpush1.bf16.msra.mxu1 %v2570_v22  ;;  %1720 = vmatprep.mubr.bf16.mxu1 %v3158_v61  ;;  %v2631_v15 = vld [vmem:[%s3889_s1 + $0x4f0] ss:$8 sps:$4 sm:$0xff]   ;;  %v2639_v17 = vld [vmem:[%s3889_s1 + $0x504] ss:$8 sps:$4 sm:$0xff]   ;;  %v310_v22 = vcombine.high %v308_v18, %v308_v18  ;;  %v2646_v38 = vld [vmem:[%s3889_s1 + $0x120] ss:$8 sps:$4 sm:$0xff]  }
  0x18   :  { %1863 = vmatpush1.bf16.msra.mxu0 %v2571_v23  ;;  %1700 = vmatprep.subr.bf16.mxu1 %v2572_v24  ;;  %v359_v23 = vcombine.high %v357_v19, %v357_v19  ;;  %v2633_v24 = vld [vmem:[%s3889_s1 + $0x100] ss:$8 sps:$4 sm:$0xff]   ;;  %v2648_v36 = vld [vmem:[%s3889_s1 + $0x124] ss:$8 sps:$4 sm:$0xff]   ;;  %v2652_v43 = vld [vmem:[%s3889_s1 + $0x130] ss:$8 sps:$4 sm:$0xff]  }
  0x19   :  { %1864 = vmatprep.subr.bf16.mxu0 %v2574_v25  ;;  %1884 = vmatprep.mubr.bf16.mxu0 %v380_v3  ;;  %v2637_v25 = vld [vmem:[%s3889_s1 + $0x500] ss:$8 sps:$4 sm:$0xff]   ;;  %v2651_v37 = vld [vmem:[%s3889_s1 + $0x524] ss:$8 sps:$4 sm:$0xff]   ;;  %v2667_v52 = vld [vmem:[%s3889_s1 + $0x550] ss:$8 sps:$4 sm:$0xff]  }
  0x1a   :  { %v2675_v54 = vld [vmem:[%s3889_s1 + $0x564] ss:$8 sps:$4 sm:$0xff]   ;;  %v2673_v56 = vld [vmem:[%s3889_s1 + $0x560] ss:$8 sps:$4 sm:$0xff]   ;;  %v2676_v59 = vld [vmem:[%s3889_s1 + $0x170] ss:$8 sps:$4 sm:$0xff]  }
  0x1b   :  { %1701 = vmatpush1.bf16.msra.mxu1 %v2576_v26  ;;  %v2642_v26 = vld [vmem:[%s3889_s1 + $0x114] ss:$8 sps:$4 sm:$0xff]   ;;  %v2679_v60 = vld [vmem:[%s3889_s1 + $0x570] ss:$8 sps:$4 sm:$0xff]   ;;  %v2687_v62 = vld [vmem:[%s3889_s1 + $0x584] ss:$8 sps:$4 sm:$0xff]  }
  0x1c   :  { %1865 = vmatpush1.bf16.msra.mxu0 %v2577_v27  ;;  %1702 = vmatprep.subr.bf16.mxu1 %v2578_v28  ;;  %v2645_v27 = vld [vmem:[%s3889_s1 + $0x514] ss:$8 sps:$4 sm:$0xff]   ;;  %v3231_v28 = vrot.slane %v310_v22, %v3129_v49  ;;  %v2703_v12 = vld [vmem:[%s3889_s1 + $0x5b0] ss:$8 sps:$4 sm:$0xff]   ;;  %v2708_v13 = vld [vmem:[%s3889_s1 + $0x1c4] ss:$8 sps:$4 sm:$0xff]  }
  0x1d   :  { %1866 = vmatprep.subr.bf16.mxu0 %v2580_v29  ;;  %v3234_v29 = vrot.slane %v359_v23, %v3129_v49  ;;  %v2715_v22 = vld [vmem:[%s3889_s1 + $0x5d0] ss:$8 sps:$4 sm:$0xff]   ;;  %v2720_v23 = vld [vmem:[%s3889_s1 + $0x1e4] ss:$8 sps:$4 sm:$0xff]  }
  0x1f   :  { %1703 = vmatpush1.bf16.msra.mxu1 %v2582_v30  ;;  %v3237_v30 = vrot.slane %v308_v18, %v3129_v49  ;;  %v2717_v18 = vld [vmem:[%s3889_s1 + $0x5d4] ss:$8 sps:$4 sm:$0xff]  }
  0x20   :  { %1867 = vmatpush1.bf16.msra.mxu0 %v2583_v31  ;;  %1704 = vmatprep.subr.bf16.mxu1 %v2584_v32  ;;  %v341_v31 = vcombine.high %v3158_v61, %v3158_v61  ;;  %v390_v32 = vcombine.high %v380_v3, %v380_v3  ;;  %v2684_v61 = vld [vmem:[%s3889_s1 + $0x184] ss:$8 sps:$4 sm:$0xff]   ;;  %v2688_v3 = vld [vmem:[%s3889_s1 + $0x190] ss:$8 sps:$4 sm:$0xff]  }
  0x21   :  { %1868 = vmatprep.subr.bf16.mxu0 %v2586_v33  ;;  %v3242_v33 = vrot.slane %v357_v19, %v3129_v49  ;;  %v2666_v49 = vld [vmem:[%s3889_s1 + $0x154] ss:$8 sps:$4 sm:$0xff]   ;;  %v2712_v19 = vld [vmem:[%s3889_s1 + $0x1d0] ss:$8 sps:$4 sm:$0xff]  }
  0x23   :  { %1705 = vmatpush1.bf16.msra.mxu1 %v2588_v34  ;;  %v2640_v34 = vld [vmem:[%s3889_s1 + $0x110] ss:$8 sps:$4 sm:$0xff]  }
  0x24   :  { %1869 = vmatpush1.bf16.msra.mxu0 %v2589_v35  ;;  %1706 = vmatprep.subr.bf16.mxu1 %v2590_v39  ;;  %v2643_v35 = vld [vmem:[%s3889_s1 + $0x510] ss:$8 sps:$4 sm:$0xff]   ;;  %v2649_v39 = vld [vmem:[%s3889_s1 + $0x520] ss:$8 sps:$4 sm:$0xff]  }
  0x25   :  { %1870 = vmatprep.subr.bf16.mxu0 %v2592_v40  ;;  %v2654_v40 = vld [vmem:[%s3889_s1 + $0x134] ss:$8 sps:$4 sm:$0xff]  }
  0x27   :  { %1707 = vmatpush1.bf16.msra.mxu1 %v2594_v41  ;;  %v2657_v41 = vld [vmem:[%s3889_s1 + $0x534] ss:$8 sps:$4 sm:$0xff]  }
  0x28   :  { %1871 = vmatpush1.bf16.msra.mxu0 %v2595_v44  ;;  %1708 = vmatprep.subr.bf16.mxu1 %v2596_v45  ;;  %v2655_v44 = vld [vmem:[%s3889_s1 + $0x530] ss:$8 sps:$4 sm:$0xff]   ;;  %v2660_v45 = vld [vmem:[%s3889_s1 + $0x144] ss:$8 sps:$4 sm:$0xff]  }
  0x29   :  { %1872 = vmatprep.subr.bf16.mxu0 %v2598_v46  ;;  %v2663_v46 = vld [vmem:[%s3889_s1 + $0x544] ss:$8 sps:$4 sm:$0xff]  }
  0x2b   :  { %1709 = vmatpush1.bf16.msra.mxu1 %v2600_v47  ;;  %v2658_v47 = vld [vmem:[%s3889_s1 + $0x140] ss:$8 sps:$4 sm:$0xff]  }
  0x2c   :  { %1873 = vmatpush1.bf16.msra.mxu0 %v2601_v48  ;;  %1710 = vmatprep.subr.bf16.mxu1 %v2602_v50  ;;  %v2661_v48 = vld [vmem:[%s3889_s1 + $0x540] ss:$8 sps:$4 sm:$0xff]   ;;  %v2669_v50 = vld [vmem:[%s3889_s1 + $0x554] ss:$8 sps:$4 sm:$0xff]  }
  0x2d   :  { %1874 = vmatprep.subr.bf16.mxu0 %v2604_v51  ;;  %v2664_v51 = vld [vmem:[%s3889_s1 + $0x150] ss:$8 sps:$4 sm:$0xff]  }
  0x2f   :  { %1711 = vmatpush1.bf16.msra.mxu1 %v2606_v53  ;;  %v2672_v53 = vld [vmem:[%s3889_s1 + $0x164] ss:$8 sps:$4 sm:$0xff]  }
  0x30   :  { %1875 = vmatpush1.bf16.msra.mxu0 %v2607_v55  ;;  %1712 = vmatprep.subr.bf16.mxu1 %v2608_v57  ;;  %v2670_v55 = vld [vmem:[%s3889_s1 + $0x160] ss:$8 sps:$4 sm:$0xff]   ;;  %v2678_v57 = vld [vmem:[%s3889_s1 + $0x174] ss:$8 sps:$4 sm:$0xff]  }
  0x31   :  { %1876 = vmatprep.subr.bf16.mxu0 %v2610_v58  ;;  %v2681_v58 = vld [vmem:[%s3889_s1 + $0x574] ss:$8 sps:$4 sm:$0xff]  }
  0x33   :  { %1713 = vmatpush1.bf16.msra.mxu1 %v2612_v63  ;;  %v2682_v63 = vld [vmem:[%s3889_s1 + $0x180] ss:$8 sps:$4 sm:$0xff]  }
  0x34   :  { %1877 = vmatpush1.bf16.msra.mxu0 %v2613_v0  ;;  %1714 = vmatprep.subr.bf16.mxu1 %v2614_v1  ;;  %v2685_v0 = vld [vmem:[%s3889_s1 + $0x580] ss:$8 sps:$4 sm:$0xff]   ;;  %v2690_v1 = vld [vmem:[%s3889_s1 + $0x194] ss:$8 sps:$4 sm:$0xff]  }
  0x35   :  { %1878 = vmatprep.subr.bf16.mxu0 %v2616_v2  ;;  %v2693_v2 = vld [vmem:[%s3889_s1 + $0x594] ss:$8 sps:$4 sm:$0xff]  }
  0x37   :  { %1715 = vmatpush1.bf16.msra.mxu1 %v2618_v4  ;;  %v2691_v4 = vld [vmem:[%s3889_s1 + $0x590] ss:$8 sps:$4 sm:$0xff]  }
  0x38   :  { %1879 = vmatpush1.bf16.msra.mxu0 %v2619_v5  ;;  %1716 = vmatprep.subr.bf16.mxu1 %v2620_v6  ;;  %v2696_v5 = vld [vmem:[%s3889_s1 + $0x1a4] ss:$8 sps:$4 sm:$0xff]  }
  0x39   :  { %1880 = vmatprep.subr.bf16.mxu0 %v2622_v7  ;;  %v2699_v6 = vld [vmem:[%s3889_s1 + $0x5a4] ss:$8 sps:$4 sm:$0xff]   ;;  %v2694_v7 = vld [vmem:[%s3889_s1 + $0x1a0] ss:$8 sps:$4 sm:$0xff]  }
  0x3b   :  { %1717 = vmatpush1.bf16.msra.mxu1 %v2624_v8  ;;  %v2697_v8 = vld [vmem:[%s3889_s1 + $0x5a0] ss:$8 sps:$4 sm:$0xff]  }
  0x3c   :  { %1881 = vmatpush1.bf16.msra.mxu0 %v2625_v9  ;;  %1718 = vmatprep.subr.bf16.mxu1 %v2626_v10  ;;  %v2702_v9 = vld [vmem:[%s3889_s1 + $0x1b4] ss:$8 sps:$4 sm:$0xff]  }
  0x3d   :  { %1882 = vmatprep.subr.bf16.mxu0 %v2628_v11  ;;  %v2705_v10 = vld [vmem:[%s3889_s1 + $0x5b4] ss:$8 sps:$4 sm:$0xff]   ;;  %v2700_v11 = vld [vmem:[%s3889_s1 + $0x1b0] ss:$8 sps:$4 sm:$0xff]  }
  0x3f   :  { %1719 = vmatpush1.bf16.msra.mxu1 %v2630_v14  ;;  %v2711_v14 = vld [vmem:[%s3889_s1 + $0x5c4] ss:$8 sps:$4 sm:$0xff]  }
  0x40   :  { %1883 = vmatpush1.bf16.msra.mxu0 %v2631_v15  ;;  %1729 = vmatprep.subr.bf16.mxu1 %v2635_v16  ;;  %v2706_v15 = vld [vmem:[%s3889_s1 + $0x1c0] ss:$8 sps:$4 sm:$0xff]  }
  0x41   :  { %1893 = vmatprep.subr.bf16.mxu0 %v2639_v17  ;;  %v2709_v16 = vld [vmem:[%s3889_s1 + $0x5c0] ss:$8 sps:$4 sm:$0xff]   ;;  %v2714_v17 = vld [vmem:[%s3889_s1 + $0x1d4] ss:$8 sps:$4 sm:$0xff]  }
  0x42   :  { %1721 = vmatmul.mubr.bf16.vlgmr.msra.gmra.mrb[0].mxu1 %v3213_v20 }
  0x43   :  { %1885 = vmatmul.mubr.bf16.vlgmr.msra.gmra.mrb[0].mxu0 %v3216_v21  ;;  %1730 = vmatpush1.bf16.msra.mxu1 %v2633_v24  ;;  %v2723_v24 = vld [vmem:[%s3889_s1 + $0x5e4] ss:$8 sps:$4 sm:$0xff]  }
  0x44   :  { %1894 = vmatpush1.bf16.msra.mxu0 %v2637_v25  ;;  %1731 = vmatprep.subr.bf16.mxu1 %v2642_v26  ;;  %v2718_v25 = vld [vmem:[%s3889_s1 + $0x1e0] ss:$8 sps:$4 sm:$0xff]  }
  0x45   :  { %1895 = vmatprep.subr.bf16.mxu0 %v2645_v27  ;;  %1761 = vmatprep.mubr.bf16.mxu1 %v341_v31  ;;  %v2721_v26 = vld [vmem:[%s3889_s1 + $0x5e0] ss:$8 sps:$4 sm:$0xff]   ;;  %v2726_v27 = vld [vmem:[%s3889_s1 + $0x1f4] ss:$8 sps:$4 sm:$0xff]  }
  0x46   :  { %1925 = vmatprep.mubr.bf16.mxu0 %v390_v32  ;;  %v2729_v31 = vld [vmem:[%s3889_s1 + $0x5f4] ss:$8 sps:$4 sm:$0xff]   ;;  %v2724_v32 = vld [vmem:[%s3889_s1 + $0x1f0] ss:$8 sps:$4 sm:$0xff]  }
  0x47   :  { %1732 = vmatpush1.bf16.msra.mxu1 %v2640_v34  ;;  %v2727_v34 = vld [vmem:[%s3889_s1 + $0x5f0] ss:$8 sps:$4 sm:$0xff]  }
  0x48   :  { %1896 = vmatpush1.bf16.msra.mxu0 %v2643_v35  ;;  %1733 = vmatprep.subr.bf16.mxu1 %v2648_v36  ;;  %v2732_v35 = vld [vmem:[%s3889_s1 + $0x204] ss:$8 sps:$4 sm:$0xff]  }
  0x49   :  { %1897 = vmatprep.subr.bf16.mxu0 %v2651_v37  ;;  %v2735_v36 = vld [vmem:[%s3889_s1 + $0x604] ss:$8 sps:$4 sm:$0xff]   ;;  %v339_v37 = vcombine.high %v3213_v20, %v3213_v20  ;;  %v2741_v20 = vld [vmem:[%s3889_s1 + $0x614] ss:$8 sps:$4 sm:$0xff]  }
  0x4b   :  { %1734 = vmatpush1.bf16.msra.mxu1 %v2646_v38  ;;  %v388_v38 = vcombine.high %v3216_v21, %v3216_v21  ;;  %v2736_v21 = vld [vmem:[%s3889_s1 + $0x210] ss:$8 sps:$4 sm:$0xff]  }
  0x4c   :  { %1898 = vmatpush1.bf16.msra.mxu0 %v2649_v39  ;;  %1735 = vmatprep.subr.bf16.mxu1 %v2654_v40  ;;  %v2730_v39 = vld [vmem:[%s3889_s1 + $0x200] ss:$8 sps:$4 sm:$0xff]  }
  0x4d   :  { %1899 = vmatprep.subr.bf16.mxu0 %v2657_v41  ;;  %v2733_v40 = vld [vmem:[%s3889_s1 + $0x600] ss:$8 sps:$4 sm:$0xff]   ;;  %v2738_v41 = vld [vmem:[%s3889_s1 + $0x214] ss:$8 sps:$4 sm:$0xff]  }
  0x4f   :  { %1736 = vmatpush1.bf16.msra.mxu1 %v2652_v43  ;;  %v2739_v43 = vld [vmem:[%s3889_s1 + $0x610] ss:$8 sps:$4 sm:$0xff]  }
  0x50   :  { %1900 = vmatpush1.bf16.msra.mxu0 %v2655_v44  ;;  %1737 = vmatprep.subr.bf16.mxu1 %v2660_v45  ;;  %v2744_v44 = vld [vmem:[%s3889_s1 + $0x224] ss:$8 sps:$4 sm:$0xff]  }
  0x51   :  { %1901 = vmatprep.subr.bf16.mxu0 %v2663_v46  ;;  %v2747_v45 = vld [vmem:[%s3889_s1 + $0x624] ss:$8 sps:$4 sm:$0xff]   ;;  %v2742_v46 = vld [vmem:[%s3889_s1 + $0x220] ss:$8 sps:$4 sm:$0xff]  }
  0x53   :  { %1738 = vmatpush1.bf16.msra.mxu1 %v2658_v47  ;;  %v2745_v47 = vld [vmem:[%s3889_s1 + $0x620] ss:$8 sps:$4 sm:$0xff]  }
  0x54   :  { %1902 = vmatpush1.bf16.msra.mxu0 %v2661_v48  ;;  %1739 = vmatprep.subr.bf16.mxu1 %v2666_v49  ;;  %v2750_v48 = vld [vmem:[%s3889_s1 + $0x234] ss:$8 sps:$4 sm:$0xff]  }
  0x55   :  { %1903 = vmatprep.subr.bf16.mxu0 %v2669_v50  ;;  %v2753_v49 = vld [vmem:[%s3889_s1 + $0x634] ss:$8 sps:$4 sm:$0xff]   ;;  %v2748_v50 = vld [vmem:[%s3889_s1 + $0x230] ss:$8 sps:$4 sm:$0xff]  }
  0x57   :  { %1740 = vmatpush1.bf16.msra.mxu1 %v2664_v51  ;;  %v2751_v51 = vld [vmem:[%s3889_s1 + $0x630] ss:$8 sps:$4 sm:$0xff]  }
  0x58   :  { %1904 = vmatpush1.bf16.msra.mxu0 %v2667_v52  ;;  %1741 = vmatprep.subr.bf16.mxu1 %v2672_v53  ;;  %v2756_v52 = vld [vmem:[%s3889_s1 + $0x244] ss:$8 sps:$4 sm:$0xff]  }
  0x59   :  { %1905 = vmatprep.subr.bf16.mxu0 %v2675_v54  ;;  %v2759_v53 = vld [vmem:[%s3889_s1 + $0x644] ss:$8 sps:$4 sm:$0xff]   ;;  %v2754_v54 = vld [vmem:[%s3889_s1 + $0x240] ss:$8 sps:$4 sm:$0xff]  }
  0x5b   :  { %1742 = vmatpush1.bf16.msra.mxu1 %v2670_v55  ;;  %v2757_v55 = vld [vmem:[%s3889_s1 + $0x640] ss:$8 sps:$4 sm:$0xff]  }
  0x5c   :  { %1906 = vmatpush1.bf16.msra.mxu0 %v2673_v56  ;;  %1743 = vmatprep.subr.bf16.mxu1 %v2678_v57  ;;  %v2762_v56 = vld [vmem:[%s3889_s1 + $0x254] ss:$8 sps:$4 sm:$0xff]  }
  0x5d   :  { %1907 = vmatprep.subr.bf16.mxu0 %v2681_v58  ;;  %v2765_v57 = vld [vmem:[%s3889_s1 + $0x654] ss:$8 sps:$4 sm:$0xff]   ;;  %v2760_v58 = vld [vmem:[%s3889_s1 + $0x250] ss:$8 sps:$4 sm:$0xff]  }
  0x5f   :  { %1744 = vmatpush1.bf16.msra.mxu1 %v2676_v59  ;;  %v2763_v59 = vld [vmem:[%s3889_s1 + $0x650] ss:$8 sps:$4 sm:$0xff]  }
  0x60   :  { %1908 = vmatpush1.bf16.msra.mxu0 %v2679_v60  ;;  %1745 = vmatprep.subr.bf16.mxu1 %v2684_v61  ;;  %v2768_v60 = vld [vmem:[%s3889_s1 + $0x264] ss:$8 sps:$4 sm:$0xff]  }
  0x61   :  { %1909 = vmatprep.subr.bf16.mxu0 %v2687_v62  ;;  %v2771_v61 = vld [vmem:[%s3889_s1 + $0x664] ss:$8 sps:$4 sm:$0xff]   ;;  %v2766_v62 = vld [vmem:[%s3889_s1 + $0x260] ss:$8 sps:$4 sm:$0xff]  }
  0x63   :  { %1746 = vmatpush1.bf16.msra.mxu1 %v2682_v63  ;;  %v2769_v63 = vld [vmem:[%s3889_s1 + $0x660] ss:$8 sps:$4 sm:$0xff]  }
  0x64   :  { %1910 = vmatpush1.bf16.msra.mxu0 %v2685_v0  ;;  %1747 = vmatprep.subr.bf16.mxu1 %v2690_v1  ;;  %v2774_v0 = vld [vmem:[%s3889_s1 + $0x274] ss:$8 sps:$4 sm:$0xff]  }
  0x65   :  { %1911 = vmatprep.subr.bf16.mxu0 %v2693_v2  ;;  %v2777_v1 = vld [vmem:[%s3889_s1 + $0x674] ss:$8 sps:$4 sm:$0xff]   ;;  %v2772_v2 = vld [vmem:[%s3889_s1 + $0x270] ss:$8 sps:$4 sm:$0xff]  }
  0x67   :  { %1748 = vmatpush1.bf16.msra.mxu1 %v2688_v3  ;;  %v2775_v3 = vld [vmem:[%s3889_s1 + $0x670] ss:$8 sps:$4 sm:$0xff]  }
  0x68   :  { %1912 = vmatpush1.bf16.msra.mxu0 %v2691_v4  ;;  %1749 = vmatprep.subr.bf16.mxu1 %v2696_v5  ;;  %v2780_v4 = vld [vmem:[%s3889_s1 + $0x284] ss:$8 sps:$4 sm:$0xff]  }
  0x69   :  { %1913 = vmatprep.subr.bf16.mxu0 %v2699_v6  ;;  %v2783_v5 = vld [vmem:[%s3889_s1 + $0x684] ss:$8 sps:$4 sm:$0xff]   ;;  %v2778_v6 = vld [vmem:[%s3889_s1 + $0x280] ss:$8 sps:$4 sm:$0xff]  }
  0x6b   :  { %1750 = vmatpush1.bf16.msra.mxu1 %v2694_v7  ;;  %v2781_v7 = vld [vmem:[%s3889_s1 + $0x680] ss:$8 sps:$4 sm:$0xff]  }
  0x6c   :  { %1914 = vmatpush1.bf16.msra.mxu0 %v2697_v8  ;;  %1751 = vmatprep.subr.bf16.mxu1 %v2702_v9  ;;  %v2786_v8 = vld [vmem:[%s3889_s1 + $0x294] ss:$8 sps:$4 sm:$0xff]  }
  0x6d   :  { %1915 = vmatprep.subr.bf16.mxu0 %v2705_v10  ;;  %v2789_v9 = vld [vmem:[%s3889_s1 + $0x694] ss:$8 sps:$4 sm:$0xff]   ;;  %v2784_v10 = vld [vmem:[%s3889_s1 + $0x290] ss:$8 sps:$4 sm:$0xff]  }
  0x6f   :  { %1752 = vmatpush1.bf16.msra.mxu1 %v2700_v11  ;;  %v2787_v11 = vld [vmem:[%s3889_s1 + $0x690] ss:$8 sps:$4 sm:$0xff]  }
  0x70   :  { %1916 = vmatpush1.bf16.msra.mxu0 %v2703_v12  ;;  %1753 = vmatprep.subr.bf16.mxu1 %v2708_v13  ;;  %v2792_v12 = vld [vmem:[%s3889_s1 + $0x2a4] ss:$8 sps:$4 sm:$0xff]  }
  0x71   :  { %1917 = vmatprep.subr.bf16.mxu0 %v2711_v14  ;;  %v2795_v13 = vld [vmem:[%s3889_s1 + $0x6a4] ss:$8 sps:$4 sm:$0xff]   ;;  %v2790_v14 = vld [vmem:[%s3889_s1 + $0x2a0] ss:$8 sps:$4 sm:$0xff]  }
  0x73   :  { %1754 = vmatpush1.bf16.msra.mxu1 %v2706_v15  ;;  %v2793_v15 = vld [vmem:[%s3889_s1 + $0x6a0] ss:$8 sps:$4 sm:$0xff]  }
  0x74   :  { %1918 = vmatpush1.bf16.msra.mxu0 %v2709_v16  ;;  %1755 = vmatprep.subr.bf16.mxu1 %v2714_v17  ;;  %v2798_v16 = vld [vmem:[%s3889_s1 + $0x2b4] ss:$8 sps:$4 sm:$0xff]  }
  0x75   :  { %1919 = vmatprep.subr.bf16.mxu0 %v2717_v18  ;;  %v2801_v17 = vld [vmem:[%s3889_s1 + $0x6b4] ss:$8 sps:$4 sm:$0xff]   ;;  %v2796_v18 = vld [vmem:[%s3889_s1 + $0x2b0] ss:$8 sps:$4 sm:$0xff]  }
  0x77   :  { %1756 = vmatpush1.bf16.msra.mxu1 %v2712_v19  ;;  %v2799_v19 = vld [vmem:[%s3889_s1 + $0x6b0] ss:$8 sps:$4 sm:$0xff]  }
  0x78   :  { %1920 = vmatpush1.bf16.msra.mxu0 %v2715_v22  ;;  %1757 = vmatprep.subr.bf16.mxu1 %v2720_v23  ;;  %v2804_v22 = vld [vmem:[%s3889_s1 + $0x2c4] ss:$8 sps:$4 sm:$0xff]  }
  0x79   :  { %1921 = vmatprep.subr.bf16.mxu0 %v2723_v24  ;;  %v2807_v23 = vld [vmem:[%s3889_s1 + $0x6c4] ss:$8 sps:$4 sm:$0xff]   ;;  %v2802_v24 = vld [vmem:[%s3889_s1 + $0x2c0] ss:$8 sps:$4 sm:$0xff]  }
  0x7b   :  { %1758 = vmatpush1.bf16.msra.mxu1 %v2718_v25  ;;  %v2805_v25 = vld [vmem:[%s3889_s1 + $0x6c0] ss:$8 sps:$4 sm:$0xff]  }
  0x7c   :  { %1922 = vmatpush1.bf16.msra.mxu0 %v2721_v26  ;;  %1759 = vmatprep.subr.bf16.mxu1 %v2726_v27  ;;  %v2810_v26 = vld [vmem:[%s3889_s1 + $0x2d4] ss:$8 sps:$4 sm:$0xff]  }
  0x7d   :  { %1923 = vmatprep.subr.bf16.mxu0 %v2729_v31  ;;  %v2813_v27 = vld [vmem:[%s3889_s1 + $0x6d4] ss:$8 sps:$4 sm:$0xff]   ;;  %v2808_v31 = vld [vmem:[%s3889_s1 + $0x2d0] ss:$8 sps:$4 sm:$0xff]  }
  0x7f   :  { %1760 = vmatpush1.bf16.msra.mxu1 %v2724_v32  ;;  %v2811_v32 = vld [vmem:[%s3889_s1 + $0x6d0] ss:$8 sps:$4 sm:$0xff]  }
  0x80   :  { %1924 = vmatpush1.bf16.msra.mxu0 %v2727_v34  ;;  %1770 = vmatprep.subr.bf16.mxu1 %v2732_v35  ;;  %v2816_v34 = vld [vmem:[%s3889_s1 + $0x2e4] ss:$8 sps:$4 sm:$0xff]  }
  0x81   :  { %1934 = vmatprep.subr.bf16.mxu0 %v2735_v36  ;;  %v2819_v35 = vld [vmem:[%s3889_s1 + $0x6e4] ss:$8 sps:$4 sm:$0xff]   ;;  %v2814_v36 = vld [vmem:[%s3889_s1 + $0x2e0] ss:$8 sps:$4 sm:$0xff]  }
  0x82   :  { %1762 = vmatmul.mubr.bf16.vlgmr.msra.gmra.mrb[0].mxu1 %v339_v37  ;;  %v2817_v37 = vld [vmem:[%s3889_s1 + $0x6e0] ss:$8 sps:$4 sm:$0xff]  }
  0x83   :  { %1926 = vmatmul.mubr.bf16.vlgmr.msra.gmra.mrb[0].mxu0 %v388_v38  ;;  %1771 = vmatpush1.bf16.msra.mxu1 %v2730_v39  ;;  %v2822_v38 = vld [vmem:[%s3889_s1 + $0x2f4] ss:$8 sps:$4 sm:$0xff]  }
  0x84   :  { %1935 = vmatpush1.bf16.msra.mxu0 %v2733_v40  ;;  %1772 = vmatprep.subr.bf16.mxu1 %v2738_v41  ;;  %v2825_v39 = vld [vmem:[%s3889_s1 + $0x6f4] ss:$8 sps:$4 sm:$0xff]  }
  0x85   :  { %1936 = vmatprep.subr.bf16.mxu0 %v2741_v20  ;;  %1802 = vmatprep.mubr.bf16.mxu1 %v3231_v28 }
  0x86   :  { %1966 = vmatprep.mubr.bf16.mxu0 %v3234_v29 }
  0x87   :  { %1773 = vmatpush1.bf16.msra.mxu1 %v2736_v21 }
  0x88   :  { %1937 = vmatpush1.bf16.msra.mxu0 %v2739_v43  ;;  %1774 = vmatprep.subr.bf16.mxu1 %v2744_v44 }
  0x89   :  { %1938 = vmatprep.subr.bf16.mxu0 %v2747_v45 }
  0x8b   :  { %1775 = vmatpush1.bf16.msra.mxu1 %v2742_v46 }
  0x8c   :  { %1939 = vmatpush1.bf16.msra.mxu0 %v2745_v47  ;;  %1776 = vmatprep.subr.bf16.mxu1 %v2750_v48 }
  0x8d   :  { %1940 = vmatprep.subr.bf16.mxu0 %v2753_v49 }
  0x8f   :  { %1777 = vmatpush1.bf16.msra.mxu1 %v2748_v50 }
  0x90   :  { %1941 = vmatpush1.bf16.msra.mxu0 %v2751_v51  ;;  %1778 = vmatprep.subr.bf16.mxu1 %v2756_v52 }
  0x91   :  { %1942 = vmatprep.subr.bf16.mxu0 %v2759_v53 }
  0x93   :  { %1779 = vmatpush1.bf16.msra.mxu1 %v2754_v54 }
  0x94   :  { %1943 = vmatpush1.bf16.msra.mxu0 %v2757_v55  ;;  %1780 = vmatprep.subr.bf16.mxu1 %v2762_v56 }
  0x95   :  { %1944 = vmatprep.subr.bf16.mxu0 %v2765_v57 }
  0x97   :  { %1781 = vmatpush1.bf16.msra.mxu1 %v2760_v58 }
  0x98   :  { %1945 = vmatpush1.bf16.msra.mxu0 %v2763_v59  ;;  %1782 = vmatprep.subr.bf16.mxu1 %v2768_v60 }
  0x99   :  { %1946 = vmatprep.subr.bf16.mxu0 %v2771_v61 }
  0x9b   :  { %1783 = vmatpush1.bf16.msra.mxu1 %v2766_v62 }
  0x9c   :  { %1947 = vmatpush1.bf16.msra.mxu0 %v2769_v63  ;;  %1784 = vmatprep.subr.bf16.mxu1 %v2774_v0 }
  0x9d   :  { %1948 = vmatprep.subr.bf16.mxu0 %v2777_v1 }
  0x9f   :  { %1785 = vmatpush1.bf16.msra.mxu1 %v2772_v2 }
  0xa0   :  { %1949 = vmatpush1.bf16.msra.mxu0 %v2775_v3  ;;  %1786 = vmatprep.subr.bf16.mxu1 %v2780_v4 }
  0xa1   :  { %1950 = vmatprep.subr.bf16.mxu0 %v2783_v5 }
  0xa3   :  { %1787 = vmatpush1.bf16.msra.mxu1 %v2778_v6 }
  0xa4   :  { %1951 = vmatpush1.bf16.msra.mxu0 %v2781_v7  ;;  %1788 = vmatprep.subr.bf16.mxu1 %v2786_v8 }
  0xa5   :  { %1952 = vmatprep.subr.bf16.mxu0 %v2789_v9 }
  0xa7   :  { %1789 = vmatpush1.bf16.msra.mxu1 %v2784_v10 }
  0xa8   :  { %1953 = vmatpush1.bf16.msra.mxu0 %v2787_v11  ;;  %1790 = vmatprep.subr.bf16.mxu1 %v2792_v12 }
  0xa9   :  { %1954 = vmatprep.subr.bf16.mxu0 %v2795_v13 }
  0xab   :  { %1791 = vmatpush1.bf16.msra.mxu1 %v2790_v14 }
  0xac   :  { %1955 = vmatpush1.bf16.msra.mxu0 %v2793_v15  ;;  %1792 = vmatprep.subr.bf16.mxu1 %v2798_v16 }
  0xad   :  { %1956 = vmatprep.subr.bf16.mxu0 %v2801_v17 }
  0xaf   :  { %1793 = vmatpush1.bf16.msra.mxu1 %v2796_v18 }
  0xb0   :  { %1957 = vmatpush1.bf16.msra.mxu0 %v2799_v19  ;;  %1794 = vmatprep.subr.bf16.mxu1 %v2804_v22 }
  0xb1   :  { %1958 = vmatprep.subr.bf16.mxu0 %v2807_v23 }
  0xb3   :  { %1795 = vmatpush1.bf16.msra.mxu1 %v2802_v24 }
  0xb4   :  { %1959 = vmatpush1.bf16.msra.mxu0 %v2805_v25  ;;  %1796 = vmatprep.subr.bf16.mxu1 %v2810_v26 }
  0xb5   :  { %1960 = vmatprep.subr.bf16.mxu0 %v2813_v27 }
  0xb7   :  { %1797 = vmatpush1.bf16.msra.mxu1 %v2808_v31 }
  0xb8   :  { %1961 = vmatpush1.bf16.msra.mxu0 %v2811_v32  ;;  %1798 = vmatprep.subr.bf16.mxu1 %v2816_v34 }
  0xb9   :  { %1962 = vmatprep.subr.bf16.mxu0 %v2819_v35 }
  0xba   :  { %10 = vsyncpa [#allocation3], 0  ;;  %v2820_v40 = vld [vmem:[%s3889_s1 + $0x2f0] ss:$8 sps:$4 sm:$0xff]   ;;  %v2828_v20 = vld [vmem:[%s3889_s1 + $0x304] ss:$8 sps:$4 sm:$0xff]   ;;  %v342_v47 = vcombine.high %v3231_v28, %v3231_v28  ;;  %v391_v48 = vcombine.high %v3234_v29, %v3234_v29 }
  0xbb   :  { %1799 = vmatpush1.bf16.msra.mxu1 %v2814_v36  ;;  %v2823_v41 = vld [vmem:[%s3889_s1 + $0x6f0] ss:$8 sps:$4 sm:$0xff]   ;;  %v2831_v21 = vld [vmem:[%s3889_s1 + $0x704] ss:$8 sps:$4 sm:$0xff]   ;;  %v2826_v43 = vld [vmem:[%s3889_s1 + $0x300] ss:$8 sps:$4 sm:$0xff]  }
  0xbc   :  { %1963 = vmatpush1.bf16.msra.mxu0 %v2817_v37  ;;  %1800 = vmatprep.subr.bf16.mxu1 %v2822_v38  ;;  %v2829_v44 = vld [vmem:[%s3889_s1 + $0x700] ss:$8 sps:$4 sm:$0xff]   ;;  %v2834_v45 = vld [vmem:[%s3889_s1 + $0x314] ss:$8 sps:$4 sm:$0xff]   ;;  %v2832_v49 = vld [vmem:[%s3889_s1 + $0x310] ss:$8 sps:$4 sm:$0xff]  }
  0xbd   :  { %1964 = vmatprep.subr.bf16.mxu0 %v2825_v39  ;;  %v2837_v46 = vld [vmem:[%s3889_s1 + $0x714] ss:$8 sps:$4 sm:$0xff]   ;;  %v2835_v50 = vld [vmem:[%s3889_s1 + $0x710] ss:$8 sps:$4 sm:$0xff]   ;;  %v2840_v28 = vld [vmem:[%s3889_s1 + $0x324] ss:$8 sps:$4 sm:$0xff]  }
  0xbe   :  { %v2843_v29 = vld [vmem:[%s3889_s1 + $0x724] ss:$8 sps:$4 sm:$0xff]   ;;  %v2838_v51 = vld [vmem:[%s3889_s1 + $0x320] ss:$8 sps:$4 sm:$0xff]   ;;  %v2846_v53 = vld [vmem:[%s3889_s1 + $0x334] ss:$8 sps:$4 sm:$0xff]  }
  0xbf   :  { %1801 = vmatpush1.bf16.msra.mxu1 %v2820_v40  ;;  %v2841_v52 = vld [vmem:[%s3889_s1 + $0x720] ss:$8 sps:$4 sm:$0xff]   ;;  %v2849_v54 = vld [vmem:[%s3889_s1 + $0x734] ss:$8 sps:$4 sm:$0xff]   ;;  %v2844_v55 = vld [vmem:[%s3889_s1 + $0x330] ss:$8 sps:$4 sm:$0xff]  }
  0xc0   :  { %1965 = vmatpush1.bf16.msra.mxu0 %v2823_v41  ;;  %1811 = vmatprep.subr.bf16.mxu1 %v2828_v20  ;;  %v2847_v56 = vld [vmem:[%s3889_s1 + $0x730] ss:$8 sps:$4 sm:$0xff]   ;;  %v2852_v57 = vld [vmem:[%s3889_s1 + $0x344] ss:$8 sps:$4 sm:$0xff]   ;;  %v2850_v59 = vld [vmem:[%s3889_s1 + $0x340] ss:$8 sps:$4 sm:$0xff]  }
  0xc1   :  { %1975 = vmatprep.subr.bf16.mxu0 %v2831_v21  ;;  %v2855_v58 = vld [vmem:[%s3889_s1 + $0x744] ss:$8 sps:$4 sm:$0xff]   ;;  %v2853_v60 = vld [vmem:[%s3889_s1 + $0x740] ss:$8 sps:$4 sm:$0xff]   ;;  %v2858_v61 = vld [vmem:[%s3889_s1 + $0x354] ss:$8 sps:$4 sm:$0xff]  }
  0xc2   :  { %1803 = vmatmul.mubr.bf16.vlgmr.msra.gmra.mrb[0].mxu1 %v3237_v30  ;;  %v2861_v62 = vld [vmem:[%s3889_s1 + $0x754] ss:$8 sps:$4 sm:$0xff]   ;;  %v2856_v63 = vld [vmem:[%s3889_s1 + $0x350] ss:$8 sps:$4 sm:$0xff]   ;;  %v2864_v1 = vld [vmem:[%s3889_s1 + $0x364] ss:$8 sps:$4 sm:$0xff]  }
  0xc3   :  { %1967 = vmatmul.mubr.bf16.vlgmr.msra.gmra.mrb[0].mxu0 %v3242_v33  ;;  %1812 = vmatpush1.bf16.msra.mxu1 %v2826_v43  ;;  %v2859_v0 = vld [vmem:[%s3889_s1 + $0x750] ss:$8 sps:$4 sm:$0xff]   ;;  %v2867_v2 = vld [vmem:[%s3889_s1 + $0x764] ss:$8 sps:$4 sm:$0xff]   ;;  %v2862_v3 = vld [vmem:[%s3889_s1 + $0x360] ss:$8 sps:$4 sm:$0xff]  }
  0xc4   :  { %1976 = vmatpush1.bf16.msra.mxu0 %v2829_v44  ;;  %1813 = vmatprep.subr.bf16.mxu1 %v2834_v45  ;;  %v2865_v4 = vld [vmem:[%s3889_s1 + $0x760] ss:$8 sps:$4 sm:$0xff]   ;;  %v2870_v5 = vld [vmem:[%s3889_s1 + $0x374] ss:$8 sps:$4 sm:$0xff]   ;;  %v2868_v7 = vld [vmem:[%s3889_s1 + $0x370] ss:$8 sps:$4 sm:$0xff]  }
  0xc5   :  { %1977 = vmatprep.subr.bf16.mxu0 %v2837_v46  ;;  %1843 = vmatprep.mubr.bf16.mxu1 %v342_v47  ;;  %v2873_v6 = vld [vmem:[%s3889_s1 + $0x774] ss:$8 sps:$4 sm:$0xff]   ;;  %v2871_v8 = vld [vmem:[%s3889_s1 + $0x770] ss:$8 sps:$4 sm:$0xff]   ;;  %v2876_v9 = vld [vmem:[%s3889_s1 + $0x384] ss:$8 sps:$4 sm:$0xff]   ;;  %v340_v47 = vcombine.high %v3237_v30, %v3237_v30 }
  0xc6   :  { %2007 = vmatprep.mubr.bf16.mxu0 %v391_v48  ;;  %v2879_v10 = vld [vmem:[%s3889_s1 + $0x784] ss:$8 sps:$4 sm:$0xff]   ;;  %v2874_v11 = vld [vmem:[%s3889_s1 + $0x380] ss:$8 sps:$4 sm:$0xff]   ;;  %v2882_v13 = vld [vmem:[%s3889_s1 + $0x394] ss:$8 sps:$4 sm:$0xff]   ;;  %v389_v48 = vcombine.high %v3242_v33, %v3242_v33 }
  0xc7   :  { %1814 = vmatpush1.bf16.msra.mxu1 %v2832_v49  ;;  %v2877_v12 = vld [vmem:[%s3889_s1 + $0x780] ss:$8 sps:$4 sm:$0xff]   ;;  %v2885_v14 = vld [vmem:[%s3889_s1 + $0x794] ss:$8 sps:$4 sm:$0xff]   ;;  %v2880_v15 = vld [vmem:[%s3889_s1 + $0x390] ss:$8 sps:$4 sm:$0xff]  }
  0xc8   :  { %1978 = vmatpush1.bf16.msra.mxu0 %v2835_v50  ;;  %1815 = vmatprep.subr.bf16.mxu1 %v2840_v28  ;;  %v2883_v16 = vld [vmem:[%s3889_s1 + $0x790] ss:$8 sps:$4 sm:$0xff]   ;;  %v2888_v17 = vld [vmem:[%s3889_s1 + $0x3a4] ss:$8 sps:$4 sm:$0xff]   ;;  %v2886_v19 = vld [vmem:[%s3889_s1 + $0x3a0] ss:$8 sps:$4 sm:$0xff]  }
  0xc9   :  { %1979 = vmatprep.subr.bf16.mxu0 %v2843_v29  ;;  %v2891_v18 = vld [vmem:[%s3889_s1 + $0x7a4] ss:$8 sps:$4 sm:$0xff]   ;;  %v2889_v22 = vld [vmem:[%s3889_s1 + $0x7a0] ss:$8 sps:$4 sm:$0xff]   ;;  %v2894_v23 = vld [vmem:[%s3889_s1 + $0x3b4] ss:$8 sps:$4 sm:$0xff]  }
  0xca   :  { %v2897_v24 = vld [vmem:[%s3889_s1 + $0x7b4] ss:$8 sps:$4 sm:$0xff]   ;;  %v2892_v25 = vld [vmem:[%s3889_s1 + $0x3b0] ss:$8 sps:$4 sm:$0xff]   ;;  %v2900_v27 = vld [vmem:[%s3889_s1 + $0x3c4] ss:$8 sps:$4 sm:$0xff]  }
  0xcb   :  { %1816 = vmatpush1.bf16.msra.mxu1 %v2838_v51  ;;  %v2895_v26 = vld [vmem:[%s3889_s1 + $0x7b0] ss:$8 sps:$4 sm:$0xff]   ;;  %v2903_v31 = vld [vmem:[%s3889_s1 + $0x7c4] ss:$8 sps:$4 sm:$0xff]   ;;  %v2898_v32 = vld [vmem:[%s3889_s1 + $0x3c0] ss:$8 sps:$4 sm:$0xff]  }
  0xcc   :  { %1980 = vmatpush1.bf16.msra.mxu0 %v2841_v52  ;;  %1817 = vmatprep.subr.bf16.mxu1 %v2846_v53  ;;  %v2901_v34 = vld [vmem:[%s3889_s1 + $0x7c0] ss:$8 sps:$4 sm:$0xff]   ;;  %v2906_v35 = vld [vmem:[%s3889_s1 + $0x3d4] ss:$8 sps:$4 sm:$0xff]   ;;  %v2904_v37 = vld [vmem:[%s3889_s1 + $0x3d0] ss:$8 sps:$4 sm:$0xff]  }
  0xcd   :  { %1981 = vmatprep.subr.bf16.mxu0 %v2849_v54  ;;  %v2909_v36 = vld [vmem:[%s3889_s1 + $0x7d4] ss:$8 sps:$4 sm:$0xff]   ;;  %v2907_v38 = vld [vmem:[%s3889_s1 + $0x7d0] ss:$8 sps:$4 sm:$0xff]   ;;  %v2912_v39 = vld [vmem:[%s3889_s1 + $0x3e4] ss:$8 sps:$4 sm:$0xff]  }
  0xce   :  { %v2915_v40 = vld [vmem:[%s3889_s1 + $0x7e4] ss:$8 sps:$4 sm:$0xff]   ;;  %v2910_v41 = vld [vmem:[%s3889_s1 + $0x3e0] ss:$8 sps:$4 sm:$0xff]   ;;  %v2918_v21 = vld [vmem:[%s3889_s1 + $0x3f4] ss:$8 sps:$4 sm:$0xff]  }
  0xcf   :  { %1818 = vmatpush1.bf16.msra.mxu1 %v2844_v55  ;;  %v2913_v20 = vld [vmem:[%s3889_s1 + $0x7e0] ss:$8 sps:$4 sm:$0xff]   ;;  %v2921_v43 = vld [vmem:[%s3889_s1 + $0x7f4] ss:$8 sps:$4 sm:$0xff]   ;;  %v2916_v44 = vld [vmem:[%s3889_s1 + $0x3f0] ss:$8 sps:$4 sm:$0xff]  }
  0xd0   :  { %1982 = vmatpush1.bf16.msra.mxu0 %v2847_v56  ;;  %1819 = vmatprep.subr.bf16.mxu1 %v2852_v57  ;;  %v2919_v45 = vld [vmem:[%s3889_s1 + $0x7f0] ss:$8 sps:$4 sm:$0xff]   ;;  %v2922_v46 = vld [vmem:[%s3891_s3 + $0x40] sm:$0xff]   ;;  %v2924_v50 = vld [vmem:[%s3891_s3 + $0x48] sm:$0xff]   ;;  %s2963_s23 = smov [#allocation2]   ;;  %vm2195_vm0 = vcmask 74752  }
  0xd1   :  { %1983 = vmatprep.subr.bf16.mxu0 %v2855_v58  ;;  %v2923_v49 = vld [vmem:[%s3891_s3] sm:$0xff]   ;;  %v2925_v30 = vld [vmem:[%s3891_s3 + $0x8] sm:$0xff]   ;;  %v2926_v33 = vld [vmem:[%s3891_s3 + $0x50] sm:$0xff]   ;;  %s2203_s24 = sshll.u32 %s2963_s23, 4  ;;  %s2204_s24 = int_to_ptr.vmem [resolvable:$true] %s2203_s24 }
  0xd2   :  { %v2927_v28 = vld [vmem:[%s3891_s3 + $0x10] sm:$0xff]   ;;  %v2928_v29 = vld [vmem:[%s3891_s3 + $0x58] sm:$0xff]   ;;  %v2930_v52 = vld [vmem:[%s3891_s3 + $0x60] sm:$0xff]   ;;  %s2938_s25 = scalar_lea.vmem %s2204_s24, 32  ;;  %p2943_p1 = scmp.lt.s32.totalorder %s2204_s24, %s2204_s24 }
  0xd3   :  { %1820 = vmatpush1.bf16.msra.mxu1 %v2850_v59  ;;  %v2929_v51 = vld [vmem:[%s3891_s3 + $0x18] sm:$0xff]   ;;  %v2931_v53 = vld [vmem:[%s3891_s3 + $0x20] sm:$0xff]   ;;  %v2932_v54 = vld [vmem:[%s3891_s3 + $0x68] sm:$0xff]   ;;  %p2939_p0 = scmp.ne.s32.totalorder %s2204_s24, %s2938_s25  ;;  %p2944_p2 = scmp.lt.s32.totalorder %s2938_s25, %s2938_s25 }
  0xd4   :  { %1984 = vmatpush1.bf16.msra.mxu0 %v2853_v60  ;;  %1821 = vmatprep.subr.bf16.mxu1 %v2858_v61  ;;  %v2933_v55 = vld [vmem:[%s3891_s3 + $0x28] sm:$0xff]   ;;  %v2934_v56 = vld [vmem:[%s3891_s3 + $0x70] sm:$0xff]   ;;  %v2936_v58 = vld [vmem:[%s3891_s3 + $0x78] sm:$0xff]   ;;  %v284_v60 = vsub.s32 0, %v3111_v42 }
  0xd5   :  { %1985 = vmatprep.subr.bf16.mxu0 %v2861_v62  ;;  %v2935_v57 = vld [vmem:[%s3891_s3 + $0x30] sm:$0xff]   ;;  %v2937_v59 = vld [vmem:[%s3891_s3 + $0x38] sm:$0xff]   ;;  %v280_v61 = vld [vmem:[%s3890_s2] sm:$0x3]  ;;  %v288_v62 = vsub.s32 1, %v3111_v42  ;;  %p2945_p3 = por %p2944_p2, %p2943_p1 }
  0xd7   :  { %1822 = vmatpush1.bf16.msra.mxu1 %v2856_v63  ;;  %v285_v63 = vrot.slane %v280_v61, %v284_v60  ;;  %p2946_p4 = pnand %p2945_p3, %p2939_p0 }
  0xd8   :  { %1986 = vmatpush1.bf16.msra.mxu0 %v2859_v0  ;;  %1823 = vmatprep.subr.bf16.mxu1 %v2864_v1  ;;  %v289_v0 = vrot.slane %v280_v61, %v288_v62 }
  0xd9   :  { %1987 = vmatprep.subr.bf16.mxu0 %v2867_v2 }
  0xdb   :  { %1824 = vmatpush1.bf16.msra.mxu1 %v2862_v3 }
  0xdc   :  { %1988 = vmatpush1.bf16.msra.mxu0 %v2865_v4  ;;  %1825 = vmatprep.subr.bf16.mxu1 %v2870_v5 }
  0xdd   :  { %1989 = vmatprep.subr.bf16.mxu0 %v2873_v6 }
  0xdf   :  { %1826 = vmatpush1.bf16.msra.mxu1 %v2868_v7 }
  0xe0   :  { %1990 = vmatpush1.bf16.msra.mxu0 %v2871_v8  ;;  %1827 = vmatprep.subr.bf16.mxu1 %v2876_v9 }
  0xe1   :  { %1991 = vmatprep.subr.bf16.mxu0 %v2879_v10 }
  0xe3   :  { %1828 = vmatpush1.bf16.msra.mxu1 %v2874_v11 }
  0xe4   :  { %1992 = vmatpush1.bf16.msra.mxu0 %v2877_v12  ;;  %1829 = vmatprep.subr.bf16.mxu1 %v2882_v13 }
  0xe5   :  { %1993 = vmatprep.subr.bf16.mxu0 %v2885_v14 }
  0xe7   :  { %1830 = vmatpush1.bf16.msra.mxu1 %v2880_v15 }
  0xe8   :  { %1994 = vmatpush1.bf16.msra.mxu0 %v2883_v16  ;;  %1831 = vmatprep.subr.bf16.mxu1 %v2888_v17  ;;  %v2467_v17 = vld [vmem:[%s3892_s4] ss:$0 sm:$0xff] }
  0xe9   :  { %1995 = vmatprep.subr.bf16.mxu0 %v2891_v18 }
  0xeb   :  { %1832 = vmatpush1.bf16.msra.mxu1 %v2886_v19 }
  0xec   :  { %1996 = vmatpush1.bf16.msra.mxu0 %v2889_v22  ;;  %1833 = vmatprep.subr.bf16.mxu1 %v2894_v23 }
  0xed   :  { %1997 = vmatprep.subr.bf16.mxu0 %v2897_v24 }
  0xef   :  { %1834 = vmatpush1.bf16.msra.mxu1 %v2892_v25 }
  0xf0   :  { %1998 = vmatpush1.bf16.msra.mxu0 %v2895_v26  ;;  %1835 = vmatprep.subr.bf16.mxu1 %v2900_v27 }
  0xf1   :  { %1999 = vmatprep.subr.bf16.mxu0 %v2903_v31 }
  0xf3   :  { %1836 = vmatpush1.bf16.msra.mxu1 %v2898_v32 }
  0xf4   :  { %2000 = vmatpush1.bf16.msra.mxu0 %v2901_v34  ;;  %1837 = vmatprep.subr.bf16.mxu1 %v2906_v35 }
  0xf5   :  { %2001 = vmatprep.subr.bf16.mxu0 %v2909_v36 }
  0xf7   :  { %1838 = vmatpush1.bf16.msra.mxu1 %v2904_v37 }
  0xf8   :  { %2002 = vmatpush1.bf16.msra.mxu0 %v2907_v38  ;;  %1839 = vmatprep.subr.bf16.mxu1 %v2912_v39 }
  0xf9   :  { %2003 = vmatprep.subr.bf16.mxu0 %v2915_v40 }
  0xfb   :  { %1840 = vmatpush1.bf16.msra.mxu1 %v2910_v41 }
  0xfc   :  { %2004 = vmatpush1.bf16.msra.mxu0 %v2913_v20  ;;  %1841 = vmatprep.subr.bf16.mxu1 %v2918_v21 }
  0xfd   :  { %2005 = vmatprep.subr.bf16.mxu0 %v2921_v43 }
  0xff   :  { %1842 = vmatpush1.bf16.msra.mxu1 %v2916_v44 }
 0x100   :  { %2006 = vmatpush1.bf16.msra.mxu0 %v2919_v45  ;;  %2484 = vmatprep.subr.bf16.mxu1 %v2922_v46 }
 0x102   :  { %1844 = vmatmul.mubr.bf16.vlgmr.msra.gmra.mrb[0].mxu1 %v340_v47 }
 0x103   :  { %2008 = vmatmul.mubr.bf16.vlgmr.msra.gmra.mrb[0].mxu0 %v389_v48  ;;  %2485 = vmatpush3.bf16.msra.mxu1 %v2923_v49 }
 0x104   :  { %2486 = vmatprep.subr.bf16.mxu1 %v2924_v50 }
 0x107   :  { %2487 = vmatpush3.bf16.msra.mxu1 %v2925_v30 }
 0x108   :  { %2488 = vmatprep.subr.bf16.mxu1 %v2926_v33 }
 0x10b   :  { %2489 = vmatpush3.bf16.msra.mxu1 %v2927_v28 }
 0x10c   :  { %2490 = vmatprep.subr.bf16.mxu1 %v2928_v29 }
 0x10f   :  { %2491 = vmatpush3.bf16.msra.mxu1 %v2929_v51 }
 0x110   :  { %2492 = vmatprep.subr.bf16.mxu1 %v2930_v52 }
 0x113   :  { %2493 = vmatpush3.bf16.msra.mxu1 %v2931_v53 }
 0x114   :  { %2494 = vmatprep.subr.bf16.mxu1 %v2932_v54 }
 0x117   :  { %2495 = vmatpush3.bf16.msra.mxu1 %v2933_v55 }
 0x118   :  { %2496 = vmatprep.subr.bf16.mxu1 %v2934_v56 }
 0x11b   :  { %2497 = vmatpush3.bf16.msra.mxu1 %v2935_v57 }
 0x11c   :  { %2498 = vmatprep.subr.bf16.mxu1 %v2936_v58 }
 0x11f   :  { %2499 = vmatpush3.bf16.msra.mxu1 %v2937_v59 }
 0x1d5   :  { %v1845_v1 = vpop.f32.mrb[0].mxu1 }
 0x1d6   :  { %v2009_v2 = vpop.f32.mrb[0].mxu0  ;;  %v2506_v3 = vadd.f32 %v1845_v1, %v285_v63  ;;  %v1847_v4 = vpop.f32.mrb[1].mxu1 }
 0x1d7   :  { %v2011_v5 = vpop.f32.mrb[1].mxu0  ;;  %v2508_v6 = vadd.f32 %v1847_v4, %v289_v0  ;;  %v1849_v7 = vpop.f32.mrb[2].mxu1 }
 0x1d8   :  { %v2013_v8 = vpop.f32.mrb[2].mxu0  ;;  %v2507_v9 = vadd.f32 %v2506_v3, %v2009_v2  ;;  %v1850_v10 = vpop.f32.mrb[3].mxu1 }
 0x1d9   :  { %v2014_v11 = vpop.f32.mrb[3].mxu0  ;;  %v2509_v12 = vadd.f32 %v2508_v6, %v2011_v5 }
 0x1da   :  { %v2016_v13 = vmax.f32 %v2507_v9, 0.0 }
 0x1db   :  { %v2017_v14 = vmax.f32 %v2509_v12, 0.0 }
 0x1dc   :  { %v2018_v16 = vpack.c.bf16 %v2016_v13, %v2016_v13 }
 0x1dd   :  { %v2019_v15 = vpack.c.bf16 %v2017_v14, %v2017_v14 }
 0x1df   :  { %2187 = vmatprep.mubr.bf16.mxu1 %v2019_v15 }
 0x1e0   :  { %2188 = vmatmul.mubr.bf16.vlgmr.msra.gmra.mrb[4].mxu1 %v2018_v16 }
 0x2b3   :  { %v2500_v42 = vpop.f32.mrb[4].mxu1 }
 0x2b4   :  { %v2501_v18 = vpop.f32.mrb[5].mxu1 }
 0x2b5   :  { %v2502_v19 = vadd.f32 %v2501_v18, %v2500_v42  ;;  %v2503_v22 = vpop.f32.mrb[6].mxu1 }
 0x2b6   :  { %v2504_v23 = vpop.f32.mrb[7].mxu1 }
 0x2b7   :  { %v2190_v24 = vadd.f32 %v2502_v19, %v2467_v17 }
 0x2b9   :  { %2196 = vst.msk [vmem:[#allocation2] sm:$0x3] %vm2195_vm0, %v2190_v24 }
 0x2ba   :  { %2949 = shalt.err (!%p2946_p4)
}
 0x2bb   :  { %s2950_s4 = scalar_lea.hbm %s3893_s5, 32 }
 0x2bc   :  { %p2951_p5 = scmp.ne.s32.totalorder %s3893_s5, %s2950_s4  ;;  %p2954_p6 = scmp.lt.u32.totalorder %s2950_s4, %s3893_s5 }
 0x2be   :  { %p2956_p7 = pnand %p2954_p6, %p2951_p5 }
 0x2c0   :  { %2959 = shalt.err (!%p2956_p7)
}
 0x2c1   :  { %2206 = dma.vmem_to_hbm [thread:$0]  %s2204_s24, 32, %s3893_s5, [#allocation3]  }
 0x2c2   :  { %2960 = dma.done.wait [#allocation3], 32  }
 0x2c3   :  { %2961 = vsyncadd [#allocation3], 4294967264 }
 0x2c4   :  { %2210 = vsyncpa [#allocation3], 1 }

</bundles_post_ra>
